<compile_context>
chip_gen: v7x
topology: tpu7x:2x2x1
jax: 0.10.0
libtpu: 0.0.40
codegen_flags: <defaults>
</compile_context>

<pallas_src>
import functools

import jax
import jax.numpy as jnp
from jax import lax
from jax.experimental import pallas as pl
from jax.experimental.pallas import tpu as pltpu

NC = 1      # input channels
NDF = 64    # discriminator feature width
EPS = 1e-5  # BatchNorm eps (PyTorch default)
NEG_SLOPE = 0.2


# ---------------------------------------------------------------------------
# Kernel 1: fused im2col-matmul + LeakyReLU (no BatchNorm), M-tiled grid,
# bf16 output.
# ---------------------------------------------------------------------------
def conv_act_kernel(a_ref, w_ref, o_ref):
    y = jnp.dot(a_ref[...], w_ref[...], preferred_element_type=jnp.float32)
    o_ref[...] = jnp.where(y >= 0.0, y, NEG_SLOPE * y).astype(o_ref.dtype)


def conv_act(patches_bf16, w_bf16, *, tile_m=1024):
    m, k = patches_bf16.shape
    cout = w_bf16.shape[1]
    tile_m = min(tile_m, m)
    grid_m = pl.cdiv(m, tile_m)
    m_pad = grid_m * tile_m
    if m_pad != m:
        # Robust non-divisible-M fallback: zero-pad rows (harmless through
        # matmul + LeakyReLU), slice the result back afterwards.
        patches_bf16 = jnp.pad(patches_bf16, ((0, m_pad - m), (0, 0)))
    out = pl.pallas_call(
        conv_act_kernel,
        out_shape=jax.ShapeDtypeStruct((m_pad, cout), jnp.bfloat16),
        grid=(grid_m,),
        in_specs=[
            pl.BlockSpec((tile_m, k), lambda i: (i, 0)),   # streamed row tiles
            pl.BlockSpec((k, cout), lambda i: (0, 0)),     # weights resident
        ],
        out_specs=pl.BlockSpec((tile_m, cout), lambda i: (i, 0)),
        compiler_params=pltpu.CompilerParams(
            dimension_semantics=("parallel",)),
    )(patches_bf16, w_bf16)
    return out if m_pad == m else out[:m]


# ---------------------------------------------------------------------------
# Kernel 2: fused im2col-matmul + training-mode BatchNorm + LeakyReLU,
# gridded over Cout in 128-lane tiles ("parallel").  Batch statistics are
# per-channel, so each channel tile's mean/var is exact with no cross-tile
# reduction.  bf16 output.
# TODO(synk): for large batches, switch to an M-tiled path that accumulates
# per-channel sum / sum-of-squares in VMEM scratch instead of holding y+cen.
# ---------------------------------------------------------------------------
def conv_bn_act_kernel(a_ref, w_ref, g_ref, b_ref, o_ref, *, inv_m):
    y = jnp.dot(a_ref[...], w_ref[...], preferred_element_type=jnp.float32)
    mean = jnp.sum(y, axis=0, keepdims=True) * inv_m
    cen = y - mean
    var = jnp.sum(cen * cen, axis=0, keepdims=True) * inv_m
    scale = g_ref[...] * lax.rsqrt(var + EPS)
    z = cen * scale + b_ref[...]
    o_ref[...] = jnp.where(z >= 0.0, z, NEG_SLOPE * z).astype(o_ref.dtype)


def conv_bn_act(patches_bf16, w_bf16, gamma, beta, *, tile_c=128):
    m, k = patches_bf16.shape
    cout = w_bf16.shape[1]
    assert cout % tile_c == 0, (cout, tile_c)
    return pl.pallas_call(
        functools.partial(conv_bn_act_kernel, inv_m=1.0 / float(m)),
        out_shape=jax.ShapeDtypeStruct((m, cout), jnp.bfloat16),
        grid=(cout // tile_c,),
        in_specs=[
            pl.BlockSpec((m, k), lambda j: (0, 0)),        # patches resident
            pl.BlockSpec((k, tile_c), lambda j: (0, j)),   # weight col tile
            pl.BlockSpec((1, tile_c), lambda j: (0, j)),   # gamma tile
            pl.BlockSpec((1, tile_c), lambda j: (0, j)),   # beta tile
        ],
        out_specs=pl.BlockSpec((m, tile_c), lambda j: (0, j)),
        compiler_params=pltpu.CompilerParams(
            dimension_semantics=("parallel",)),
    )(patches_bf16, w_bf16,
      gamma.reshape(1, cout).astype(jnp.float32),
      beta.reshape(1, cout).astype(jnp.float32))


# ---------------------------------------------------------------------------
# Kernel 3: conv4 (matmul + BN + LeakyReLU) with conv5 folded in.  Gridded
# over conv4's Cout in 128-lane tiles ("parallel").  Each tile emits the
# per-sample partial logit contribution of its channels, i.e.
#   partial[n, c] = sum_p z[n, p, c] * w5[p, c]
# so conv4's activation never leaves VMEM.  A tiny XLA reduce+sigmoid over
# the (N, Cout) partials finishes conv5 outside.
# ---------------------------------------------------------------------------
def conv4_conv5_kernel(a_ref, w_ref, g_ref, b_ref, w5_ref, o_ref,
                       *, inv_m, n_batch, rps):
    y = jnp.dot(a_ref[...], w_ref[...], preferred_element_type=jnp.float32)
    mean = jnp.sum(y, axis=0, keepdims=True) * inv_m
    cen = y - mean
    var = jnp.sum(cen * cen, axis=0, keepdims=True) * inv_m
    scale = g_ref[...] * lax.rsqrt(var + EPS)
    z = cen * scale + b_ref[...]
    z = jnp.where(z >= 0.0, z, NEG_SLOPE * z)                    # (m, tile_c)

    # conv5 partial logits: z rows are ordered (n, spatial_pos); w5 tile is
    # (rps, tile_c) with the same spatial_pos ordering.
    w5_rep = jnp.concatenate([w5_ref[...]] * n_batch, axis=0)    # (m, tile_c)
    prod = z * w5_rep
    row_idx = lax.broadcasted_iota(jnp.int32, (n_batch * rps, 1), 0)
    parts = []
    for n in range(n_batch):
        sel = (row_idx >= n * rps) & (row_idx < (n + 1) * rps)
        parts.append(jnp.sum(jnp.where(sel, prod, 0.0),
                             axis=0, keepdims=True))             # (1, tile_c)
    o_ref[...] = jnp.concatenate(parts, axis=0)                  # (N, tile_c)


def conv4_conv5(patches_bf16, w4_bf16, gamma, beta, w5_mat,
                *, n_batch, rows_per_sample, tile_c=128):
    m, k = patches_bf16.shape
    cout = w4_bf16.shape[1]
    assert m == n_batch * rows_per_sample, (m, n_batch, rows_per_sample)
    assert cout % tile_c == 0, (cout, tile_c)
    return pl.pallas_call(
        functools.partial(conv4_conv5_kernel, inv_m=1.0 / float(m),
                          n_batch=n_batch, rps=rows_per_sample),
        out_shape=jax.ShapeDtypeStruct((n_batch, cout), jnp.float32),
        grid=(cout // tile_c,),
        in_specs=[
            pl.BlockSpec((m, k), lambda j: (0, 0)),                 # patches
            pl.BlockSpec((k, tile_c), lambda j: (0, j)),            # w4 tile
            pl.BlockSpec((1, tile_c), lambda j: (0, j)),            # gamma
            pl.BlockSpec((1, tile_c), lambda j: (0, j)),            # beta
            pl.BlockSpec((rows_per_sample, tile_c), lambda j: (0, j)),  # w5
        ],
        out_specs=pl.BlockSpec((n_batch, tile_c), lambda j: (0, j)),
        compiler_params=pltpu.CompilerParams(
            dimension_semantics=("parallel",)),
    )(patches_bf16, w4_bf16,
      gamma.reshape(1, cout).astype(jnp.float32),
      beta.reshape(1, cout).astype(jnp.float32),
      w5_mat.astype(jnp.float32))


# ---------------------------------------------------------------------------
# JAX glue: im2col patch extraction (NHWC), weight reshape, full forward.
# ---------------------------------------------------------------------------
def im2col_nhwc(x, k, stride, pad, dtype):
    n, h, w, c = x.shape
    x = x.astype(dtype)
    if pad:
        x = jnp.pad(x, ((0, 0), (pad, pad), (pad, pad), (0, 0)))
    oh = (h + 2 * pad - k) // stride + 1
    ow = (w + 2 * pad - k) // stride + 1
    cols = [x[:, kh:kh + stride * oh:stride, kw:kw + stride * ow:stride, :]
            for kh in range(k) for kw in range(k)]
    patches = jnp.stack(cols, axis=3)          # (n, oh, ow, k*k, c)
    return patches.reshape(n * oh * ow, k * k * c), (n, oh, ow)


def _w_mat(w_pt, dtype):
    # (Cout, Cin, KH, KW) -> (KH*KW*Cin, Cout), matching patch column order.
    cout, cin, kh, kw = w_pt.shape
    return jnp.transpose(w_pt, (2, 3, 1, 0)).reshape(kh * kw * cin, cout).astype(dtype)


def discriminator_forward(x_nchw, params):
    x = jnp.transpose(x_nchw, (0, 2, 3, 1))  # NCHW -> NHWC

    # conv1 + LeakyReLU (bf16 activation out)
    p1, (n, oh, ow) = im2col_nhwc(x, 4, 2, 1, jnp.bfloat16)
    h = conv_act(p1, _w_mat(params["w1"], jnp.bfloat16)).reshape(n, oh, ow, NDF)

    # conv2 + BN + LeakyReLU
    p2, (n, oh, ow) = im2col_nhwc(h, 4, 2, 1, jnp.bfloat16)
    h = conv_bn_act(p2, _w_mat(params["w2"], jnp.bfloat16),
                    params["g2"], params["b2"]).reshape(n, oh, ow, NDF * 2)

    # conv3 + BN + LeakyReLU
    p3, (n, oh, ow) = im2col_nhwc(h, 4, 2, 1, jnp.bfloat16)
    h = conv_bn_act(p3, _w_mat(params["w3"], jnp.bfloat16),
                    params["g3"], params["b3"]).reshape(n, oh, ow, NDF * 4)

    # conv4 + BN + LeakyReLU + conv5 (fused) -> per-channel partial logits
    p4, (n, oh, ow) = im2col_nhwc(h, 4, 2, 1, jnp.bfloat16)
    # conv5 weight (1, 512, 4, 4) -> (kh*kw, cin) matching conv4's row order.
    w5_mat = jnp.transpose(params["w5"][0], (1, 2, 0)).reshape(oh * ow, NDF * 8)
    partials = conv4_conv5(p4, _w_mat(params["w4"], jnp.bfloat16),
                           params["g4"], params["b4"], w5_mat,
                           n_batch=n, rows_per_sample=oh * ow)   # (n, 512)

    out = jax.nn.sigmoid(jnp.sum(partials, axis=1))              # (n,)
    return out.reshape(n, 1, 1, 1)                               # (N,1,1,1)


def init_params(key):
    ks = jax.random.split(key, 5)

    def conv_w(k, cout, cin):
        # DCGAN-style init, deterministic: N(0, 0.02); Conv2d(bias=False).
        return 0.02 * jax.random.normal(k, (cout, cin, 4, 4), jnp.float32)

    return {
        "w1": conv_w(ks[0], NDF, NC),
        "w2": conv_w(ks[1], NDF * 2, NDF),
        "w3": conv_w(ks[2], NDF * 4, NDF * 2),
        "w4": conv_w(ks[3], NDF * 8, NDF * 4),
        "w5": conv_w(ks[4], 1, NDF * 8),
        # BatchNorm affine params: PyTorch defaults (gamma=1, beta=0).
        "g2": jnp.ones((NDF * 2,), jnp.float32),
        "b2": jnp.zeros((NDF * 2,), jnp.float32),
        "g3": jnp.ones((NDF * 4,), jnp.float32),
        "b3": jnp.zeros((NDF * 4,), jnp.float32),
        "g4": jnp.ones((NDF * 8,), jnp.float32),
        "b4": jnp.zeros((NDF * 8,), jnp.float32),
    }
    # TODO(synk): BatchNorm running_mean/running_var buffer updates are not
    # modeled; they do not affect this forward pass (training-mode stats).


if __name__ == "__main__":
    key = jax.random.PRNGKey(0)
    pkey, xkey = jax.random.split(key)
    params = init_params(pkey)
    # DCGAN discriminator expects 64x64 spatial input so the final 4x4/s1/p0
    # conv yields a 1x1 map.  batch=2, nc=1.
    x = jax.random.normal(xkey, (2, NC, 64, 64), jnp.float32)

    fwd = jax.jit(discriminator_forward)
    out = jax.block_until_ready(fwd(x, params))
    assert out.shape == (2, 1, 1, 1), out.shape
    assert bool(jnp.all((out >= 0.0) & (out <= 1.0)))
    print("KERNEL_OK")
</pallas_src>

<mosaic_0001>
module attributes {stable_mosaic.version = 11 : i64} {
  func.func @conv_act_kernel(%arg0: i32, %arg1: memref<1024x16xbf16, #tpu.memory_space<vmem>>, %arg2: memref<16x64xbf16, #tpu.memory_space<vmem>>, %arg3: memref<1024x64xbf16, #tpu.memory_space<vmem>>) attributes {dimension_semantics = [#tpu.dimension_semantics<parallel>], iteration_bounds = array<i64: 2>, scalar_prefetch = 0 : i64, scratch_operands = 0 : i64, tpu.core_type = #tpu.core_type<tc>, window_params = [{transform_indices = @transform_0, window_bounds = array<i64: 1024, 16>}, {pipeline_mode = #tpu.pipeline_mode<synchronous>, transform_indices = @transform_1, window_bounds = array<i64: 16, 64>}, {transform_indices = @transform_2, window_bounds = array<i64: 1024, 64>}]} {
    %c0 = arith.constant 0 : index
    %c0_0 = arith.constant 0 : index
    %0 = vector.load %arg1[%c0, %c0_0] : memref<1024x16xbf16, #tpu.memory_space<vmem>>, vector<1024x16xbf16>
    %c0_1 = arith.constant 0 : index
    %c0_2 = arith.constant 0 : index
    %1 = vector.load %arg2[%c0_1, %c0_2] : memref<16x64xbf16, #tpu.memory_space<vmem>>, vector<16x64xbf16>
    %cst = arith.constant dense<0.000000e+00> : vector<1024x64xf32>
    %2 = tpu.matmul %0, %1, %cst {dimension_numbers = #tpu.dot_dimension_numbers<[1], [0], [0], [1], [0, 0, 1, 1], [], []>} : vector<1024x16xbf16>, vector<16x64xbf16>, vector<1024x64xf32> -> vector<1024x64xf32>
    %cst_3 = arith.constant 0.000000e+00 : f32
    %3 = vector.broadcast %cst_3 : f32 to vector<1024x64xf32>
    %4 = arith.cmpf oge, %2, %3 : vector<1024x64xf32>
    %cst_4 = arith.constant 2.000000e-01 : f32
    %5 = vector.broadcast %cst_4 : f32 to vector<1024x64xf32>
    %6 = arith.mulf %5, %2 : vector<1024x64xf32>
    %7 = arith.select %4, %2, %6 : vector<1024x64xi1>, vector<1024x64xf32>
    %8 = arith.truncf %7 : vector<1024x64xf32> to vector<1024x64xbf16>
    %c0_5 = arith.constant 0 : index
    %c0_6 = arith.constant 0 : index
    %9 = vector.load %arg3[%c0_5, %c0_6] : memref<1024x64xbf16, #tpu.memory_space<vmem>>, vector<1024x64xbf16>
    tpu.vector_store %arg3[%c0_5, %c0_6], %8 {strides = array<i32>} : memref<1024x64xbf16, #tpu.memory_space<vmem>>, vector<1024x64xbf16>,
    return
  }
  func.func @transform_0(%arg0: i32) -> (i32, i32) {
    %c0_i32 = arith.constant 0 : i32
    %c0_i32_0 = arith.constant 0 : i32
    return %arg0, %c0_i32 : i32, i32
  }
  func.func @transform_1(%arg0: i32) -> (i32, i32) {
    %c0_i32 = arith.constant 0 : i32
    %c0_i32_0 = arith.constant 0 : i32
    %c0_i32_1 = arith.constant 0 : i32
    return %c0_i32, %c0_i32_0 : i32, i32
  }
  func.func @transform_2(%arg0: i32) -> (i32, i32) {
    %c0_i32 = arith.constant 0 : i32
    %c0_i32_0 = arith.constant 0 : i32
    return %arg0, %c0_i32 : i32, i32
  }
}

module attributes {stable_mosaic.version = 11 : i64} {
  func.func @conv_bn_act_kernel(%arg0: i32, %arg1: memref<512x1024xbf16, #tpu.memory_space<vmem>>, %arg2: memref<1024x128xbf16, #tpu.memory_space<vmem>>, %arg3: memref<1x128xf32, #tpu.memory_space<vmem>>, %arg4: memref<1x128xf32, #tpu.memory_space<vmem>>, %arg5: memref<512x128xbf16, #tpu.memory_space<vmem>>) attributes {dimension_semantics = [#tpu.dimension_semantics<parallel>], iteration_bounds = array<i64: 1>, scalar_prefetch = 0 : i64, scratch_operands = 0 : i64, tpu.core_type = #tpu.core_type<tc>, window_params = [{pipeline_mode = #tpu.pipeline_mode<synchronous>, transform_indices = @transform_0, window_bounds = array<i64: 512, 1024>}, {transform_indices = @transform_1, window_bounds = array<i64: 1024, 128>}, {transform_indices = @transform_2, window_bounds = array<i64: 1, 128>}, {transform_indices = @transform_3, window_bounds = array<i64: 1, 128>}, {transform_indices = @transform_4, window_bounds = array<i64: 512, 128>}]} {
    %c0 = arith.constant 0 : index
    %c0_0 = arith.constant 0 : index
    %0 = vector.load %arg1[%c0, %c0_0] : memref<512x1024xbf16, #tpu.memory_space<vmem>>, vector<512x1024xbf16>
    %c0_1 = arith.constant 0 : index
    %c0_2 = arith.constant 0 : index
    %1 = vector.load %arg2[%c0_1, %c0_2] : memref<1024x128xbf16, #tpu.memory_space<vmem>>, vector<1024x128xbf16>
    %cst = arith.constant dense<0.000000e+00> : vector<512x128xf32>
    %2 = tpu.matmul %0, %1, %cst {dimension_numbers = #tpu.dot_dimension_numbers<[1], [0], [0], [1], [0, 0, 1, 1], [], []>} : vector<512x1024xbf16>, vector<1024x128xbf16>, vector<512x128xf32> -> vector<512x128xf32>
    %cst_3 = arith.constant dense<0.000000e+00> : vector<128xf32>
    %3 = vector.multi_reduction <add>, %2, %cst_3 [0] : vector<512x128xf32> to vector<128xf32>
    %4 = vector.shape_cast %3 : vector<128xf32> to vector<1x128xf32>
    %cst_4 = arith.constant 0.001953125 : f32
    %5 = vector.broadcast %cst_4 : f32 to vector<1x128xf32>
    %6 = arith.mulf %4, %5 : vector<1x128xf32>
    %7 = vector.broadcast %6 : vector<1x128xf32> to vector<512x128xf32>
    %8 = arith.subf %2, %7 : vector<512x128xf32>
    %9 = arith.mulf %8, %8 : vector<512x128xf32>
    %cst_5 = arith.constant dense<0.000000e+00> : vector<128xf32>
    %10 = vector.multi_reduction <add>, %9, %cst_5 [0] : vector<512x128xf32> to vector<128xf32>
    %11 = vector.shape_cast %10 : vector<128xf32> to vector<1x128xf32>
    %cst_6 = arith.constant 0.001953125 : f32
    %12 = vector.broadcast %cst_6 : f32 to vector<1x128xf32>
    %13 = arith.mulf %11, %12 : vector<1x128xf32>
    %c0_7 = arith.constant 0 : index
    %c0_8 = arith.constant 0 : index
    %14 = vector.load %arg3[%c0_7, %c0_8] : memref<1x128xf32, #tpu.memory_space<vmem>>, vector<1x128xf32>
    %cst_9 = arith.constant 9.99999974E-6 : f32
    %15 = vector.broadcast %cst_9 : f32 to vector<1x128xf32>
    %16 = arith.addf %13, %15 : vector<1x128xf32>
    %17 = math.rsqrt %16 : vector<1x128xf32>
    %18 = arith.mulf %14, %17 : vector<1x128xf32>
    %19 = vector.broadcast %18 : vector<1x128xf32> to vector<512x128xf32>
    %20 = arith.mulf %8, %19 : vector<512x128xf32>
    %c0_10 = arith.constant 0 : index
    %c0_11 = arith.constant 0 : index
    %21 = vector.load %arg4[%c0_10, %c0_11] : memref<1x128xf32, #tpu.memory_space<vmem>>, vector<1x128xf32>
    %22 = vector.broadcast %21 : vector<1x128xf32> to vector<512x128xf32>
    %23 = arith.addf %20, %22 : vector<512x128xf32>
    %cst_12 = arith.constant 0.000000e+00 : f32
    %24 = vector.broadcast %cst_12 : f32 to vector<512x128xf32>
    %25 = arith.cmpf oge, %23, %24 : vector<512x128xf32>
    %cst_13 = arith.constant 2.000000e-01 : f32
    %26 = vector.broadcast %cst_13 : f32 to vector<512x128xf32>
    %27 = arith.mulf %26, %23 : vector<512x128xf32>
    %28 = arith.select %25, %23, %27 : vector<512x128xi1>, vector<512x128xf32>
    %29 = arith.truncf %28 : vector<512x128xf32> to vector<512x128xbf16>
    %c0_14 = arith.constant 0 : index
    %c0_15 = arith.constant 0 : index
    %30 = vector.load %arg5[%c0_14, %c0_15] : memref<512x128xbf16, #tpu.memory_space<vmem>>, vector<512x128xbf16>
    tpu.vector_store %arg5[%c0_14, %c0_15], %29 {strides = array<i32>} : memref<512x128xbf16, #tpu.memory_space<vmem>>, vector<512x128xbf16>,
    return
  }
  func.func @transform_0(%arg0: i32) -> (i32, i32) {
    %c0_i32 = arith.constant 0 : i32
    %c0_i32_0 = arith.constant 0 : i32
    %c0_i32_1 = arith.constant 0 : i32
    return %c0_i32, %c0_i32_0 : i32, i32
  }
  func.func @transform_1(%arg0: i32) -> (i32, i32) {
    %c0_i32 = arith.constant 0 : i32
    %c0_i32_0 = arith.constant 0 : i32
    return %c0_i32, %arg0 : i32, i32
  }
  func.func @transform_2(%arg0: i32) -> (i32, i32) {
    %c0_i32 = arith.constant 0 : i32
    %c0_i32_0 = arith.constant 0 : i32
    return %c0_i32, %arg0 : i32, i32
  }
  func.func @transform_3(%arg0: i32) -> (i32, i32) {
    %c0_i32 = arith.constant 0 : i32
    %c0_i32_0 = arith.constant 0 : i32
    return %c0_i32, %arg0 : i32, i32
  }
  func.func @transform_4(%arg0: i32) -> (i32, i32) {
    %c0_i32 = arith.constant 0 : i32
    %c0_i32_0 = arith.constant 0 : i32
    return %c0_i32, %arg0 : i32, i32
  }
}

module attributes {stable_mosaic.version = 11 : i64} {
  func.func @conv_bn_act_kernel(%arg0: i32, %arg1: memref<128x2048xbf16, #tpu.memory_space<vmem>>, %arg2: memref<2048x128xbf16, #tpu.memory_space<vmem>>, %arg3: memref<1x128xf32, #tpu.memory_space<vmem>>, %arg4: memref<1x128xf32, #tpu.memory_space<vmem>>, %arg5: memref<128x128xbf16, #tpu.memory_space<vmem>>) attributes {dimension_semantics = [#tpu.dimension_semantics<parallel>], iteration_bounds = array<i64: 2>, scalar_prefetch = 0 : i64, scratch_operands = 0 : i64, tpu.core_type = #tpu.core_type<tc>, window_params = [{pipeline_mode = #tpu.pipeline_mode<synchronous>, transform_indices = @transform_0, window_bounds = array<i64: 128, 2048>}, {transform_indices = @transform_1, window_bounds = array<i64: 2048, 128>}, {transform_indices = @transform_2, window_bounds = array<i64: 1, 128>}, {transform_indices = @transform_3, window_bounds = array<i64: 1, 128>}, {transform_indices = @transform_4, window_bounds = array<i64: 128, 128>}]} {
    %c0 = arith.constant 0 : index
    %c0_0 = arith.constant 0 : index
    %0 = vector.load %arg1[%c0, %c0_0] : memref<128x2048xbf16, #tpu.memory_space<vmem>>, vector<128x2048xbf16>
    %c0_1 = arith.constant 0 : index
    %c0_2 = arith.constant 0 : index
    %1 = vector.load %arg2[%c0_1, %c0_2] : memref<2048x128xbf16, #tpu.memory_space<vmem>>, vector<2048x128xbf16>
    %cst = arith.constant dense<0.000000e+00> : vector<128x128xf32>
    %2 = tpu.matmul %0, %1, %cst {dimension_numbers = #tpu.dot_dimension_numbers<[1], [0], [0], [1], [0, 0, 1, 1], [], []>} : vector<128x2048xbf16>, vector<2048x128xbf16>, vector<128x128xf32> -> vector<128x128xf32>
    %cst_3 = arith.constant dense<0.000000e+00> : vector<128xf32>
    %3 = vector.multi_reduction <add>, %2, %cst_3 [0] : vector<128x128xf32> to vector<128xf32>
    %4 = vector.shape_cast %3 : vector<128xf32> to vector<1x128xf32>
    %cst_4 = arith.constant 7.812500e-03 : f32
    %5 = vector.broadcast %cst_4 : f32 to vector<1x128xf32>
    %6 = arith.mulf %4, %5 : vector<1x128xf32>
    %7 = vector.broadcast %6 : vector<1x128xf32> to vector<128x128xf32>
    %8 = arith.subf %2, %7 : vector<128x128xf32>
    %9 = arith.mulf %8, %8 : vector<128x128xf32>
    %cst_5 = arith.constant dense<0.000000e+00> : vector<128xf32>
    %10 = vector.multi_reduction <add>, %9, %cst_5 [0] : vector<128x128xf32> to vector<128xf32>
    %11 = vector.shape_cast %10 : vector<128xf32> to vector<1x128xf32>
    %cst_6 = arith.constant 7.812500e-03 : f32
    %12 = vector.broadcast %cst_6 : f32 to vector<1x128xf32>
    %13 = arith.mulf %11, %12 : vector<1x128xf32>
    %c0_7 = arith.constant 0 : index
    %c0_8 = arith.constant 0 : index
    %14 = vector.load %arg3[%c0_7, %c0_8] : memref<1x128xf32, #tpu.memory_space<vmem>>, vector<1x128xf32>
    %cst_9 = arith.constant 9.99999974E-6 : f32
    %15 = vector.broadcast %cst_9 : f32 to vector<1x128xf32>
    %16 = arith.addf %13, %15 : vector<1x128xf32>
    %17 = math.rsqrt %16 : vector<1x128xf32>
    %18 = arith.mulf %14, %17 : vector<1x128xf32>
    %19 = vector.broadcast %18 : vector<1x128xf32> to vector<128x128xf32>
    %20 = arith.mulf %8, %19 : vector<128x128xf32>
    %c0_10 = arith.constant 0 : index
    %c0_11 = arith.constant 0 : index
    %21 = vector.load %arg4[%c0_10, %c0_11] : memref<1x128xf32, #tpu.memory_space<vmem>>, vector<1x128xf32>
    %22 = vector.broadcast %21 : vector<1x128xf32> to vector<128x128xf32>
    %23 = arith.addf %20, %22 : vector<128x128xf32>
    %cst_12 = arith.constant 0.000000e+00 : f32
    %24 = vector.broadcast %cst_12 : f32 to vector<128x128xf32>
    %25 = arith.cmpf oge, %23, %24 : vector<128x128xf32>
    %cst_13 = arith.constant 2.000000e-01 : f32
    %26 = vector.broadcast %cst_13 : f32 to vector<128x128xf32>
    %27 = arith.mulf %26, %23 : vector<128x128xf32>
    %28 = arith.select %25, %23, %27 : vector<128x128xi1>, vector<128x128xf32>
    %29 = arith.truncf %28 : vector<128x128xf32> to vector<128x128xbf16>
    %c0_14 = arith.constant 0 : index
    %c0_15 = arith.constant 0 : index
    %30 = vector.load %arg5[%c0_14, %c0_15] : memref<128x128xbf16, #tpu.memory_space<vmem>>, vector<128x128xbf16>
    tpu.vector_store %arg5[%c0_14, %c0_15], %29 {strides = array<i32>} : memref<128x128xbf16, #tpu.memory_space<vmem>>, vector<128x128xbf16>,
    return
  }
  func.func @transform_0(%arg0: i32) -> (i32, i32) {
    %c0_i32 = arith.constant 0 : i32
    %c0_i32_0 = arith.constant 0 : i32
    %c0_i32_1 = arith.constant 0 : i32
    return %c0_i32, %c0_i32_0 : i32, i32
  }
  func.func @transform_1(%arg0: i32) -> (i32, i32) {
    %c0_i32 = arith.constant 0 : i32
    %c0_i32_0 = arith.constant 0 : i32
    return %c0_i32, %arg0 : i32, i32
  }
  func.func @transform_2(%arg0: i32) -> (i32, i32) {
    %c0_i32 = arith.constant 0 : i32
    %c0_i32_0 = arith.constant 0 : i32
    return %c0_i32, %arg0 : i32, i32
  }
  func.func @transform_3(%arg0: i32) -> (i32, i32) {
    %c0_i32 = arith.constant 0 : i32
    %c0_i32_0 = arith.constant 0 : i32
    return %c0_i32, %arg0 : i32, i32
  }
  func.func @transform_4(%arg0: i32) -> (i32, i32) {
    %c0_i32 = arith.constant 0 : i32
    %c0_i32_0 = arith.constant 0 : i32
    return %c0_i32, %arg0 : i32, i32
  }
}

module attributes {stable_mosaic.version = 11 : i64} {
  func.func @conv4_conv5_kernel(%arg0: i32, %arg1: memref<32x4096xbf16, #tpu.memory_space<vmem>>, %arg2: memref<4096x128xbf16, #tpu.memory_space<vmem>>, %arg3: memref<1x128xf32, #tpu.memory_space<vmem>>, %arg4: memref<1x128xf32, #tpu.memory_space<vmem>>, %arg5: memref<16x128xf32, #tpu.memory_space<vmem>>, %arg6: memref<2x128xf32, #tpu.memory_space<vmem>>) attributes {dimension_semantics = [#tpu.dimension_semantics<parallel>], iteration_bounds = array<i64: 4>, scalar_prefetch = 0 : i64, scratch_operands = 0 : i64, tpu.core_type = #tpu.core_type<tc>, window_params = [{pipeline_mode = #tpu.pipeline_mode<synchronous>, transform_indices = @transform_0, window_bounds = array<i64: 32, 4096>}, {transform_indices = @transform_1, window_bounds = array<i64: 4096, 128>}, {transform_indices = @transform_2, window_bounds = array<i64: 1, 128>}, {transform_indices = @transform_3, window_bounds = array<i64: 1, 128>}, {transform_indices = @transform_4, window_bounds = array<i64: 16, 128>}, {transform_indices = @transform_5, window_bounds = array<i64: 2, 128>}]} {
    %c0 = arith.constant 0 : index
    %c0_0 = arith.constant 0 : index
    %0 = vector.load %arg1[%c0, %c0_0] : memref<32x4096xbf16, #tpu.memory_space<vmem>>, vector<32x4096xbf16>
    %c0_1 = arith.constant 0 : index
    %c0_2 = arith.constant 0 : index
    %1 = vector.load %arg2[%c0_1, %c0_2] : memref<4096x128xbf16, #tpu.memory_space<vmem>>, vector<4096x128xbf16>
    %cst = arith.constant dense<0.000000e+00> : vector<32x128xf32>
    %2 = tpu.matmul %0, %1, %cst {dimension_numbers = #tpu.dot_dimension_numbers<[1], [0], [0], [1], [0, 0, 1, 1], [], []>} : vector<32x4096xbf16>, vector<4096x128xbf16>, vector<32x128xf32> -> vector<32x128xf32>
    %cst_3 = arith.constant dense<0.000000e+00> : vector<128xf32>
    %3 = vector.multi_reduction <add>, %2, %cst_3 [0] : vector<32x128xf32> to vector<128xf32>
    %4 = vector.shape_cast %3 : vector<128xf32> to vector<1x128xf32>
    %cst_4 = arith.constant 3.125000e-02 : f32
    %5 = vector.broadcast %cst_4 : f32 to vector<1x128xf32>
    %6 = arith.mulf %4, %5 : vector<1x128xf32>
    %7 = vector.broadcast %6 : vector<1x128xf32> to vector<32x128xf32>
    %8 = arith.subf %2, %7 : vector<32x128xf32>
    %9 = arith.mulf %8, %8 : vector<32x128xf32>
    %cst_5 = arith.constant dense<0.000000e+00> : vector<128xf32>
    %10 = vector.multi_reduction <add>, %9, %cst_5 [0] : vector<32x128xf32> to vector<128xf32>
    %11 = vector.shape_cast %10 : vector<128xf32> to vector<1x128xf32>
    %cst_6 = arith.constant 3.125000e-02 : f32
    %12 = vector.broadcast %cst_6 : f32 to vector<1x128xf32>
    %13 = arith.mulf %11, %12 : vector<1x128xf32>
    %c0_7 = arith.constant 0 : index
    %c0_8 = arith.constant 0 : index
    %14 = vector.load %arg3[%c0_7, %c0_8] : memref<1x128xf32, #tpu.memory_space<vmem>>, vector<1x128xf32>
    %cst_9 = arith.constant 9.99999974E-6 : f32
    %15 = vector.broadcast %cst_9 : f32 to vector<1x128xf32>
    %16 = arith.addf %13, %15 : vector<1x128xf32>
    %17 = math.rsqrt %16 : vector<1x128xf32>
    %18 = arith.mulf %14, %17 : vector<1x128xf32>
    %19 = vector.broadcast %18 : vector<1x128xf32> to vector<32x128xf32>
    %20 = arith.mulf %8, %19 : vector<32x128xf32>
    %c0_10 = arith.constant 0 : index
    %c0_11 = arith.constant 0 : index
    %21 = vector.load %arg4[%c0_10, %c0_11] : memref<1x128xf32, #tpu.memory_space<vmem>>, vector<1x128xf32>
    %22 = vector.broadcast %21 : vector<1x128xf32> to vector<32x128xf32>
    %23 = arith.addf %20, %22 : vector<32x128xf32>
    %cst_12 = arith.constant 0.000000e+00 : f32
    %24 = vector.broadcast %cst_12 : f32 to vector<32x128xf32>
    %25 = arith.cmpf oge, %23, %24 : vector<32x128xf32>
    %cst_13 = arith.constant 2.000000e-01 : f32
    %26 = vector.broadcast %cst_13 : f32 to vector<32x128xf32>
    %27 = arith.mulf %26, %23 : vector<32x128xf32>
    %28 = arith.select %25, %23, %27 : vector<32x128xi1>, vector<32x128xf32>
    %c0_14 = arith.constant 0 : index
    %c0_15 = arith.constant 0 : index
    %29 = vector.load %arg5[%c0_14, %c0_15] : memref<16x128xf32, #tpu.memory_space<vmem>>, vector<16x128xf32>
    %30 = tpu.concatenate %29, %29 in 0 : vector<16x128xf32>, vector<16x128xf32> -> vector<32x128xf32>
    %31 = arith.mulf %28, %30 : vector<32x128xf32>
    %32 = tpu.iota {dimensions = array<i32: 0>} : vector<32x1xi32>
    %c0_i32 = arith.constant 0 : i32
    %33 = vector.broadcast %c0_i32 : i32 to vector<32x1xi32>
    %34 = arith.cmpi sge, %32, %33 : vector<32x1xi32>
    %c16_i32 = arith.constant 16 : i32
    %35 = vector.broadcast %c16_i32 : i32 to vector<32x1xi32>
    %36 = arith.cmpi slt, %32, %35 : vector<32x1xi32>
    %37 = arith.andi %34, %36 : vector<32x1xi1>
    %cst_16 = arith.constant 0.000000e+00 : f32
    %38 = vector.shape_cast %37 : vector<32x1xi1> to vector<32x1xi1>
    %39 = vector.broadcast %38 : vector<32x1xi1> to vector<32x128xi1>
    %40 = vector.broadcast %cst_16 : f32 to vector<32x128xf32>
    %41 = arith.select %39, %31, %40 : vector<32x128xi1>, vector<32x128xf32>
    %cst_17 = arith.constant dense<0.000000e+00> : vector<128xf32>
    %42 = vector.multi_reduction <add>, %41, %cst_17 [0] : vector<32x128xf32> to vector<128xf32>
    %43 = vector.shape_cast %42 : vector<128xf32> to vector<1x128xf32>
    %c16_i32_18 = arith.constant 16 : i32
    %44 = vector.broadcast %c16_i32_18 : i32 to vector<32x1xi32>
    %45 = arith.cmpi sge, %32, %44 : vector<32x1xi32>
    %c32_i32 = arith.constant 32 : i32
    %46 = vector.broadcast %c32_i32 : i32 to vector<32x1xi32>
    %47 = arith.cmpi slt, %32, %46 : vector<32x1xi32>
    %48 = arith.andi %45, %47 : vector<32x1xi1>
    %cst_19 = arith.constant 0.000000e+00 : f32
    %49 = vector.shape_cast %48 : vector<32x1xi1> to vector<32x1xi1>
    %50 = vector.broadcast %49 : vector<32x1xi1> to vector<32x128xi1>
    %51 = vector.broadcast %cst_19 : f32 to vector<32x128xf32>
    %52 = arith.select %50, %31, %51 : vector<32x128xi1>, vector<32x128xf32>
    %cst_20 = arith.constant dense<0.000000e+00> : vector<128xf32>
    %53 = vector.multi_reduction <add>, %52, %cst_20 [0] : vector<32x128xf32> to vector<128xf32>
    %54 = vector.shape_cast %53 : vector<128xf32> to vector<1x128xf32>
    %55 = tpu.concatenate %43, %54 in 0 : vector<1x128xf32>, vector<1x128xf32> -> vector<2x128xf32>
    %c0_21 = arith.constant 0 : index
    %c0_22 = arith.constant 0 : index
    %56 = vector.load %arg6[%c0_21, %c0_22] : memref<2x128xf32, #tpu.memory_space<vmem>>, vector<2x128xf32>
    tpu.vector_store %arg6[%c0_21, %c0_22], %55 {strides = array<i32>} : memref<2x128xf32, #tpu.memory_space<vmem>>, vector<2x128xf32>,
    return
  }
  func.func @transform_0(%arg0: i32) -> (i32, i32) {
    %c0_i32 = arith.constant 0 : i32
    %c0_i32_0 = arith.constant 0 : i32
    %c0_i32_1 = arith.constant 0 : i32
    return %c0_i32, %c0_i32_0 : i32, i32
  }
  func.func @transform_1(%arg0: i32) -> (i32, i32) {
    %c0_i32 = arith.constant 0 : i32
    %c0_i32_0 = arith.constant 0 : i32
    return %c0_i32, %arg0 : i32, i32
  }
  func.func @transform_2(%arg0: i32) -> (i32, i32) {
    %c0_i32 = arith.constant 0 : i32
    %c0_i32_0 = arith.constant 0 : i32
    return %c0_i32, %arg0 : i32, i32
  }
  func.func @transform_3(%arg0: i32) -> (i32, i32) {
    %c0_i32 = arith.constant 0 : i32
    %c0_i32_0 = arith.constant 0 : i32
    return %c0_i32, %arg0 : i32, i32
  }
  func.func @transform_4(%arg0: i32) -> (i32, i32) {
    %c0_i32 = arith.constant 0 : i32
    %c0_i32_0 = arith.constant 0 : i32
    return %c0_i32, %arg0 : i32, i32
  }
  func.func @transform_5(%arg0: i32) -> (i32, i32) {
    %c0_i32 = arith.constant 0 : i32
    %c0_i32_0 = arith.constant 0 : i32
    return %c0_i32, %arg0 : i32, i32
  }
}

</mosaic_0001>

<bundles_post_ra>
// kernel: discriminator_forward.4
= control target key start
LH: loop header
LB: loop body
LE: loop exit
PB: predicated region body
PF: predicated region fallthrough
CT: control target
= control target key end

     0   :  { %s3112_s9 = smov 0   ;;  %s3555_s0 = inlined_call_operand.vmem [shape: bf16[2048,16], index: 0, kind: input, shape index: {}]   ;;  %s3556_s1 = inlined_call_operand.vmem [shape: bf16[16,64], index: 1, kind: input, shape index: {}]   ;;  %s3557_s2 = inlined_call_operand.vmem [shape: bf16[2048,64], index: 2, kind: output, shape index: {}]  }
   0x1 LB: > { %s2423_s10 = sadd.s32 4294967295, %s3095_s9   ;;  %p2427_p0 = scmp.ge.s32.totalorder %s3095_s9, 1  ;;  %s3095_s9 = sphi %s3112_s9, %s12_s9  }
   0x2   : > { %p113_p1 = scmp.lt.s32.totalorder %s3095_s9, 3 }
   0x4   : > { %p114_p2 = pnand %p2427_p0, %p113_p1 }
   0x5   : > { %v3024_v0 = vld [vmem:[%s3556_s1] sm:$0xff] (!%p114_p2)   ;;  %s2428_s13 = sshll.u32 (!%p114_p2), %s2423_s10, 7  ;;  %vm604_vm0 = vcmask (!%p114_p2), 130048   ;;  %vm2238_vm4 = vcmask (!%p114_p2), 519168  }
   0x6   : > { %117 = sbr.rel (%p114_p2) target bundleno = 366 (0x16e), region = 28  ;;  %p136_p3 = scmp.lt.s32.totalorder (!%p114_p2), %s2428_s13, 255  ;;  %2884 = vmatprep.subr.bf16.mxu0 (!%p114_p2), %v3024_v0  ;;  %3014 = vmatprep.subr.bf16.mxu1 (!%p114_p2), %v3024_v0 }
   0x7   : > { %2885 = vmatpush3.bf16.msra.mxu0 (!%p114_p2), %v3024_v0  ;;  %3015 = vmatpush3.bf16.msra.mxu1 (!%p114_p2), %v3024_v0 }
   0xd   : > { %s3559_s13 = smov (!%p136_p3, %s2428_s13), 255 }
   0xe   : > { %s2429_s14 = sshll.u32 %s3559_s13, 2 }
   0xf   : > { %s3131_s17 = scalar_lea.vmem %s3555_s0, %s2429_s14  ;;  %s3266_s20 = scalar_lea.vmem %s3557_s2, %s2429_s14 }
  0x10   : > { %v3025_v1 = vld [vmem:[%s3131_s17] sm:$0xff]   ;;  %v3027_v3 = vld [vmem:[%s3131_s17 + $0x8] sm:$0xff]   ;;  %v3029_v5 = vld [vmem:[%s3131_s17 + $0x10] sm:$0xff]  }
  0x11   : > { %v3026_v2 = vld [vmem:[%s3131_s17 + $0x100] sm:$0xff]   ;;  %2886 = vmatprep.mubr.msk.bf16.mxu0 %vm604_vm0, %v3025_v1  ;;  %v3028_v4 = vld [vmem:[%s3131_s17 + $0x108] sm:$0xff]   ;;  %v3030_v6 = vld [vmem:[%s3131_s17 + $0x110] sm:$0xff]  }
  0x12   : > { %2950 = vmatprep.mubr.msk.bf16.mxu1 %vm604_vm0, %v3026_v2  ;;  %2887 = vmatmul.mubr.msk.bf16.vlgmr.msra.gmra.mrb[0].mxu0 %vm604_vm0, %v3027_v3  ;;  %v3031_v7 = vld [vmem:[%s3131_s17 + $0x18] sm:$0xff]   ;;  %v3033_v9 = vld [vmem:[%s3131_s17 + $0x20] sm:$0xff]   ;;  %v3035_v11 = vld [vmem:[%s3131_s17 + $0x28] sm:$0xff]  }
  0x13   : > { %2951 = vmatmul.mubr.msk.bf16.vlgmr.msra.gmra.mrb[0].mxu1 %vm604_vm0, %v3028_v4  ;;  %2890 = vmatprep.mubr.msk.bf16.mxu0 %vm604_vm0, %v3029_v5  ;;  %v3032_v8 = vld [vmem:[%s3131_s17 + $0x118] sm:$0xff]   ;;  %v3034_v10 = vld [vmem:[%s3131_s17 + $0x120] sm:$0xff]   ;;  %v3036_v12 = vld [vmem:[%s3131_s17 + $0x128] sm:$0xff]  }
  0x14   : > { %2954 = vmatprep.mubr.msk.bf16.mxu1 %vm604_vm0, %v3030_v6  ;;  %v3037_v13 = vld [vmem:[%s3131_s17 + $0x30] sm:$0xff]   ;;  %v3039_v15 = vld [vmem:[%s3131_s17 + $0x38] sm:$0xff]   ;;  %v3041_v17 = vld [vmem:[%s3131_s17 + $0x40] sm:$0xff]  }
  0x15   : > { %v3038_v14 = vld [vmem:[%s3131_s17 + $0x130] sm:$0xff]   ;;  %v3040_v16 = vld [vmem:[%s3131_s17 + $0x138] sm:$0xff]   ;;  %v3042_v18 = vld [vmem:[%s3131_s17 + $0x140] sm:$0xff]  }
  0x16   : > { %v3043_v19 = vld [vmem:[%s3131_s17 + $0x48] sm:$0xff]   ;;  %v3045_v21 = vld [vmem:[%s3131_s17 + $0x50] sm:$0xff]   ;;  %v3047_v23 = vld [vmem:[%s3131_s17 + $0x58] sm:$0xff]  }
  0x17   : > { %v3044_v20 = vld [vmem:[%s3131_s17 + $0x148] sm:$0xff]   ;;  %v3046_v22 = vld [vmem:[%s3131_s17 + $0x150] sm:$0xff]   ;;  %v3048_v24 = vld [vmem:[%s3131_s17 + $0x158] sm:$0xff]  }
  0x18   : > { %v3049_v25 = vld [vmem:[%s3131_s17 + $0x60] sm:$0xff]   ;;  %v3051_v27 = vld [vmem:[%s3131_s17 + $0x68] sm:$0xff]   ;;  %v3053_v29 = vld [vmem:[%s3131_s17 + $0x70] sm:$0xff]  }
  0x19   : > { %v3050_v26 = vld [vmem:[%s3131_s17 + $0x160] sm:$0xff]   ;;  %v3052_v28 = vld [vmem:[%s3131_s17 + $0x168] sm:$0xff]   ;;  %v3054_v30 = vld [vmem:[%s3131_s17 + $0x170] sm:$0xff]  }
  0x1a   : > { %2891 = vmatmul.mubr.msk.bf16.gmra.mrb[4].mxu0 %vm604_vm0, %v3031_v7  ;;  %v3055_v31 = vld [vmem:[%s3131_s17 + $0x78] sm:$0xff]   ;;  %v3057_v33 = vld [vmem:[%s3131_s17 + $0x80] sm:$0xff]   ;;  %v3059_v35 = vld [vmem:[%s3131_s17 + $0x88] sm:$0xff]  }
  0x1b   : > { %2955 = vmatmul.mubr.msk.bf16.gmra.mrb[4].mxu1 %vm604_vm0, %v3032_v8  ;;  %2894 = vmatprep.mubr.msk.bf16.mxu0 %vm604_vm0, %v3033_v9  ;;  %v3056_v32 = vld [vmem:[%s3131_s17 + $0x178] sm:$0xff]   ;;  %v3058_v34 = vld [vmem:[%s3131_s17 + $0x180] sm:$0xff]   ;;  %v3060_v36 = vld [vmem:[%s3131_s17 + $0x188] sm:$0xff]  }
  0x1c   : > { %2958 = vmatprep.mubr.msk.bf16.mxu1 %vm604_vm0, %v3034_v10  ;;  %v3061_v37 = vld [vmem:[%s3131_s17 + $0x90] sm:$0xff]   ;;  %v3063_v39 = vld [vmem:[%s3131_s17 + $0x98] sm:$0xff]   ;;  %v3065_v41 = vld [vmem:[%s3131_s17 + $0xa0] sm:$0xff]  }
  0x1d   : > { %v3062_v38 = vld [vmem:[%s3131_s17 + $0x190] sm:$0xff]   ;;  %v3064_v40 = vld [vmem:[%s3131_s17 + $0x198] sm:$0xff]   ;;  %v3066_v42 = vld [vmem:[%s3131_s17 + $0x1a0] sm:$0xff]  }
  0x1e   : > { %v3067_v43 = vld [vmem:[%s3131_s17 + $0xa8] sm:$0xff]   ;;  %v3069_v45 = vld [vmem:[%s3131_s17 + $0xb0] sm:$0xff]   ;;  %v3071_v47 = vld [vmem:[%s3131_s17 + $0xb8] sm:$0xff]  }
  0x1f   : > { %v3068_v44 = vld [vmem:[%s3131_s17 + $0x1a8] sm:$0xff]   ;;  %v3070_v46 = vld [vmem:[%s3131_s17 + $0x1b0] sm:$0xff]   ;;  %v3072_v48 = vld [vmem:[%s3131_s17 + $0x1b8] sm:$0xff]  }
  0x20   : > { %v3073_v49 = vld [vmem:[%s3131_s17 + $0xc0] sm:$0xff]   ;;  %v3075_v51 = vld [vmem:[%s3131_s17 + $0xc8] sm:$0xff]   ;;  %v3077_v53 = vld [vmem:[%s3131_s17 + $0xd0] sm:$0xff]  }
  0x21   : > { %v3074_v50 = vld [vmem:[%s3131_s17 + $0x1c0] sm:$0xff]   ;;  %v3076_v52 = vld [vmem:[%s3131_s17 + $0x1c8] sm:$0xff]   ;;  %v3078_v54 = vld [vmem:[%s3131_s17 + $0x1d0] sm:$0xff]  }
  0x22   : > { %2895 = vmatmul.mubr.msk.bf16.gmra.mrb[8].mxu0 %vm604_vm0, %v3035_v11  ;;  %v3079_v55 = vld [vmem:[%s3131_s17 + $0xd8] sm:$0xff]   ;;  %v3081_v57 = vld [vmem:[%s3131_s17 + $0xe0] sm:$0xff]   ;;  %v3083_v59 = vld [vmem:[%s3131_s17 + $0xe8] sm:$0xff]  }
  0x23   : > { %2959 = vmatmul.mubr.msk.bf16.gmra.mrb[8].mxu1 %vm604_vm0, %v3036_v12  ;;  %2898 = vmatprep.mubr.msk.bf16.mxu0 %vm604_vm0, %v3037_v13  ;;  %v3080_v56 = vld [vmem:[%s3131_s17 + $0x1d8] sm:$0xff]   ;;  %v3082_v58 = vld [vmem:[%s3131_s17 + $0x1e0] sm:$0xff]   ;;  %v3084_v60 = vld [vmem:[%s3131_s17 + $0x1e8] sm:$0xff]  }
  0x24   : > { %2962 = vmatprep.mubr.msk.bf16.mxu1 %vm604_vm0, %v3038_v14  ;;  %v3085_v61 = vld [vmem:[%s3131_s17 + $0xf0] sm:$0xff]   ;;  %v3087_v63 = vld [vmem:[%s3131_s17 + $0xf8] sm:$0xff]  }
  0x25   : > { %v3086_v62 = vld [vmem:[%s3131_s17 + $0x1f0] sm:$0xff]   ;;  %v3088_v0 = vld [vmem:[%s3131_s17 + $0x1f8] sm:$0xff]  }
  0x2a   : > { %2899 = vmatmul.mubr.msk.bf16.gmra.mrb[12].mxu0 %vm604_vm0, %v3039_v15 }
  0x2b   : > { %2963 = vmatmul.mubr.msk.bf16.gmra.mrb[12].mxu1 %vm604_vm0, %v3040_v16  ;;  %2902 = vmatprep.mubr.msk.bf16.mxu0 %vm604_vm0, %v3041_v17 }
  0x2c   : > { %2966 = vmatprep.mubr.msk.bf16.mxu1 %vm604_vm0, %v3042_v18 }
  0x32   : > { %2903 = vmatmul.mubr.msk.bf16.gmra.mrb[16].mxu0 %vm604_vm0, %v3043_v19 }
  0x33   : > { %2967 = vmatmul.mubr.msk.bf16.gmra.mrb[16].mxu1 %vm604_vm0, %v3044_v20  ;;  %2906 = vmatprep.mubr.msk.bf16.mxu0 %vm604_vm0, %v3045_v21 }
  0x34   : > { %2970 = vmatprep.mubr.msk.bf16.mxu1 %vm604_vm0, %v3046_v22 }
  0x3a   : > { %2907 = vmatmul.mubr.msk.bf16.gmra.mrb[20].mxu0 %vm604_vm0, %v3047_v23 }
  0x3b   : > { %2971 = vmatmul.mubr.msk.bf16.gmra.mrb[20].mxu1 %vm604_vm0, %v3048_v24  ;;  %2910 = vmatprep.mubr.msk.bf16.mxu0 %vm604_vm0, %v3049_v25 }
  0x3c   : > { %2974 = vmatprep.mubr.msk.bf16.mxu1 %vm604_vm0, %v3050_v26 }
  0x42   : > { %2911 = vmatmul.mubr.msk.bf16.gmra.mrb[24].mxu0 %vm604_vm0, %v3051_v27 }
  0x43   : > { %2975 = vmatmul.mubr.msk.bf16.gmra.mrb[24].mxu1 %vm604_vm0, %v3052_v28  ;;  %2914 = vmatprep.mubr.msk.bf16.mxu0 %vm604_vm0, %v3053_v29 }
  0x44   : > { %2978 = vmatprep.mubr.msk.bf16.mxu1 %vm604_vm0, %v3054_v30 }
  0x4a   : > { %2915 = vmatmul.mubr.msk.bf16.gmra.mrb[28].mxu0 %vm604_vm0, %v3055_v31 }
  0x4b   : > { %2979 = vmatmul.mubr.msk.bf16.gmra.mrb[28].mxu1 %vm604_vm0, %v3056_v32  ;;  %2918 = vmatprep.mubr.msk.bf16.mxu0 %vm604_vm0, %v3057_v33 }
  0x4c   : > { %2982 = vmatprep.mubr.msk.bf16.mxu1 %vm604_vm0, %v3058_v34 }
  0x52   : > { %2919 = vmatmul.mubr.msk.bf16.gmra.mrb[32].mxu0 %vm604_vm0, %v3059_v35 }
  0x53   : > { %2983 = vmatmul.mubr.msk.bf16.gmra.mrb[32].mxu1 %vm604_vm0, %v3060_v36  ;;  %2922 = vmatprep.mubr.msk.bf16.mxu0 %vm604_vm0, %v3061_v37 }
  0x54   : > { %2986 = vmatprep.mubr.msk.bf16.mxu1 %vm604_vm0, %v3062_v38 }
  0x5a   : > { %2923 = vmatmul.mubr.msk.bf16.gmra.mrb[36].mxu0 %vm604_vm0, %v3063_v39 }
  0x5b   : > { %2987 = vmatmul.mubr.msk.bf16.gmra.mrb[36].mxu1 %vm604_vm0, %v3064_v40  ;;  %2926 = vmatprep.mubr.msk.bf16.mxu0 %vm604_vm0, %v3065_v41 }
  0x5c   : > { %2990 = vmatprep.mubr.msk.bf16.mxu1 %vm604_vm0, %v3066_v42 }
  0x62   : > { %2927 = vmatmul.mubr.msk.bf16.gmra.mrb[40].mxu0 %vm604_vm0, %v3067_v43 }
  0x63   : > { %2991 = vmatmul.mubr.msk.bf16.gmra.mrb[40].mxu1 %vm604_vm0, %v3068_v44  ;;  %2930 = vmatprep.mubr.msk.bf16.mxu0 %vm604_vm0, %v3069_v45 }
  0x64   : > { %2994 = vmatprep.mubr.msk.bf16.mxu1 %vm604_vm0, %v3070_v46 }
  0x6a   : > { %2931 = vmatmul.mubr.msk.bf16.gmra.mrb[44].mxu0 %vm604_vm0, %v3071_v47 }
  0x6b   : > { %2995 = vmatmul.mubr.msk.bf16.gmra.mrb[44].mxu1 %vm604_vm0, %v3072_v48  ;;  %2934 = vmatprep.mubr.msk.bf16.mxu0 %vm604_vm0, %v3073_v49 }
  0x6c   : > { %2998 = vmatprep.mubr.msk.bf16.mxu1 %vm604_vm0, %v3074_v50 }
  0x72   : > { %2935 = vmatmul.mubr.msk.bf16.gmra.mrb[48].mxu0 %vm604_vm0, %v3075_v51 }
  0x73   : > { %2999 = vmatmul.mubr.msk.bf16.gmra.mrb[48].mxu1 %vm604_vm0, %v3076_v52  ;;  %2938 = vmatprep.mubr.msk.bf16.mxu0 %vm604_vm0, %v3077_v53 }
  0x74   : > { %3002 = vmatprep.mubr.msk.bf16.mxu1 %vm604_vm0, %v3078_v54 }
  0x7a   : > { %2939 = vmatmul.mubr.msk.bf16.gmra.mrb[52].mxu0 %vm604_vm0, %v3079_v55 }
  0x7b   : > { %3003 = vmatmul.mubr.msk.bf16.gmra.mrb[52].mxu1 %vm604_vm0, %v3080_v56  ;;  %2942 = vmatprep.mubr.msk.bf16.mxu0 %vm604_vm0, %v3081_v57 }
  0x7c   : > { %3006 = vmatprep.mubr.msk.bf16.mxu1 %vm604_vm0, %v3082_v58 }
  0x82   : > { %2943 = vmatmul.mubr.msk.bf16.gmra.mrb[56].mxu0 %vm604_vm0, %v3083_v59 }
  0x83   : > { %3007 = vmatmul.mubr.msk.bf16.gmra.mrb[56].mxu1 %vm604_vm0, %v3084_v60  ;;  %2946 = vmatprep.mubr.msk.bf16.mxu0 %vm604_vm0, %v3085_v61 }
  0x84   : > { %3010 = vmatprep.mubr.msk.bf16.mxu1 %vm604_vm0, %v3086_v62 }
  0x8a   : > { %2947 = vmatmul.mubr.msk.bf16.gmra.mrb[60].mxu0 %vm604_vm0, %v3087_v63 }
  0x8b   : > { %3011 = vmatmul.mubr.msk.bf16.gmra.mrb[60].mxu1 %vm604_vm0, %v3088_v0 }
  0xe5   : > { %v2888_v1 = vpop.f32.mrb[0].mxu0 }
  0xe6   : > { %vm1344_vm1 = vcmp.ge.f32.partialorder %v2888_v1, 0.0  ;;  %v1472_v2 = vmul.f32 0.2, %v2888_v1  ;;  %v2952_v3 = vpop.f32.mrb[0].mxu1  ;;  %v831_v4 = vpop.f32.mrb[1].mxu0 }
  0xe7   : > { %vm1408_vm2 = vcmp.ge.f32.partialorder %v2952_v3, 0.0  ;;  %v1536_v5 = vmul.f32 0.2, %v2952_v3  ;;  %vm1342_vm3 = vcmp.ge.f32.partialorder %v831_v4, 0.0  ;;  %v1470_v6 = vmul.f32 0.2, %v831_v4 }
  0xe8   : > { %v1600_v7 = vsel %vm1344_vm1, %v2888_v1, %v1472_v2  ;;  %v1087_v8 = vpop.f32.mrb[1].mxu1  ;;  %v2889_v9 = vpop.f32.mrb[2].mxu0 }
  0xe9   : > { %v2693_v10 = vpack.c.bf16 %v1600_v7, %v1600_v7  ;;  %v1664_v11 = vsel %vm1408_vm2, %v2952_v3, %v1536_v5  ;;  %v1598_v12 = vsel %vm1342_vm3, %v831_v4, %v1470_v6  ;;  %vm1406_vm5 = vcmp.ge.f32.partialorder %v1087_v8, 0.0  ;;  %v2953_v13 = vpop.f32.mrb[2].mxu1  ;;  %v834_v14 = vpop.f32.mrb[3].mxu0 }
  0xea   : > { %v2757_v15 = vpack.c.bf16 %v1664_v11, %v1664_v11  ;;  %v2691_v16 = vpack.c.bf16 %v1598_v12, %v1598_v12  ;;  %v1534_v17 = vmul.f32 0.2, %v1087_v8  ;;  %vm1345_vm6 = vcmp.ge.f32.partialorder %v2889_v9, 0.0  ;;  %v1090_v18 = vpop.f32.mrb[3].mxu1 }
  0xeb   : > { %2241 = vst.msk [vmem:[%s3266_s20 + $0x8] sm:$0xf] %vm2238_vm4, %v2693_v10  ;;  %v1473_v19 = vmul.f32 0.2, %v2889_v9  ;;  %vm1409_vm7 = vcmp.ge.f32.partialorder %v2953_v13, 0.0  ;;  %vm1343_vm8 = vcmp.ge.f32.partialorder %v834_v14, 0.0 }
  0xec   : > { %v1537_v20 = vmul.f32 0.2, %v2953_v13  ;;  %2305 = vst.msk [vmem:[%s3266_s20 + $0x108] sm:$0xf] %vm2238_vm4, %v2757_v15  ;;  %2239 = vst.msk [vmem:[%s3266_s20] sm:$0xf] %vm2238_vm4, %v2691_v16  ;;  %v1662_v21 = vsel %vm1406_vm5, %v1087_v8, %v1534_v17 }
  0xed   : > { %v1471_v22 = vmul.f32 0.2, %v834_v14  ;;  %vm1407_vm9 = vcmp.ge.f32.partialorder %v1090_v18, 0.0  ;;  %v1535_v23 = vmul.f32 0.2, %v1090_v18  ;;  %v2755_v24 = vpack.c.bf16 %v1662_v21, %v1662_v21  ;;  %v2892_v27 = vpop.f32.mrb[4].mxu0 }
  0xee   : > { %v1601_v25 = vsel %vm1345_vm6, %v2889_v9, %v1473_v19  ;;  %v1665_v26 = vsel %vm1409_vm7, %v2953_v13, %v1537_v20  ;;  %v2956_v32 = vpop.f32.mrb[4].mxu1  ;;  %v847_v33 = vpop.f32.mrb[5].mxu0  ;;  %vm1348_vm10 = vcmp.ge.f32.partialorder %v2892_v27, 0.0  ;;  %v1476_v36 = vmul.f32 0.2, %v2892_v27 }
  0xef   : > { %v2694_v28 = vpack.c.bf16 %v1601_v25, %v1601_v25  ;;  %v2758_v29 = vpack.c.bf16 %v1665_v26, %v1665_v26  ;;  %v1599_v30 = vsel %vm1343_vm8, %v834_v14, %v1471_v22  ;;  %v1663_v31 = vsel %vm1407_vm9, %v1090_v18, %v1535_v23  ;;  %2303 = vst.msk [vmem:[%s3266_s20 + $0x100] sm:$0xf] %vm2238_vm4, %v2755_v24  ;;  %v1103_v37 = vpop.f32.mrb[5].mxu1  ;;  %v2893_v38 = vpop.f32.mrb[6].mxu0 }
  0xf0   : > { %v2692_v34 = vpack.c.bf16 %v1599_v30, %v1599_v30  ;;  %v2756_v35 = vpack.c.bf16 %v1663_v31, %v1663_v31  ;;  %vm1412_vm11 = vcmp.ge.f32.partialorder %v2956_v32, 0.0  ;;  %v1540_v39 = vmul.f32 0.2, %v2956_v32  ;;  %v2957_v43 = vpop.f32.mrb[6].mxu1  ;;  %v850_v44 = vpop.f32.mrb[7].mxu0 }
  0xf1   : > { %2242 = vst.msk [vmem:[%s3266_s20 + $0xc] sm:$0xf] %vm2238_vm4, %v2694_v28  ;;  %2306 = vst.msk [vmem:[%s3266_s20 + $0x10c] sm:$0xf] %vm2238_vm4, %v2758_v29  ;;  %vm1346_vm12 = vcmp.ge.f32.partialorder %v847_v33, 0.0  ;;  %v1604_v41 = vsel %vm1348_vm10, %v2892_v27, %v1476_v36  ;;  %vm1410_vm13 = vcmp.ge.f32.partialorder %v1103_v37, 0.0 }
  0xf2   : > { %v1474_v40 = vmul.f32 0.2, %v847_v33  ;;  %2240 = vst.msk [vmem:[%s3266_s20 + $0x4] sm:$0xf] %vm2238_vm4, %v2692_v34  ;;  %2304 = vst.msk [vmem:[%s3266_s20 + $0x104] sm:$0xf] %vm2238_vm4, %v2756_v35  ;;  %v2697_v45 = vpack.c.bf16 %v1604_v41, %v1604_v41  ;;  %v1668_v46 = vsel %vm1412_vm11, %v2956_v32, %v1540_v39 }
  0xf3   : > { %v1538_v42 = vmul.f32 0.2, %v1103_v37  ;;  %vm1349_vm14 = vcmp.ge.f32.partialorder %v2893_v38, 0.0  ;;  %v1477_v48 = vmul.f32 0.2, %v2893_v38  ;;  %v1106_v49 = vpop.f32.mrb[7].mxu1  ;;  %v2761_v50 = vpack.c.bf16 %v1668_v46, %v1668_v46 }
  0xf4   : > { %v1602_v47 = vsel %vm1346_vm12, %v847_v33, %v1474_v40  ;;  %vm1413_vm15 = vcmp.ge.f32.partialorder %v2957_v43, 0.0  ;;  %2245 = vst.msk [vmem:[%s3266_s20 + $0x18] sm:$0xf] %vm2238_vm4, %v2697_v45  ;;  %v1541_v55 = vmul.f32 0.2, %v2957_v43  ;;  %vm1347_vm0 = vcmp.ge.f32.partialorder %v850_v44, 0.0 }
  0xf5   : > { %v2695_v51 = vpack.c.bf16 %v1602_v47, %v1602_v47  ;;  %v1666_v52 = vsel %vm1410_vm13, %v1103_v37, %v1538_v42  ;;  %v1605_v54 = vsel %vm1349_vm14, %v2893_v38, %v1477_v48  ;;  %2309 = vst.msk [vmem:[%s3266_s20 + $0x118] sm:$0xf] %vm2238_vm4, %v2761_v50  ;;  %v1475_v57 = vmul.f32 0.2, %v850_v44  ;;  %v2896_v59 = vpop.f32.mrb[8].mxu0 }
  0xf6   : > { %v2759_v53 = vpack.c.bf16 %v1666_v52, %v1666_v52  ;;  %v2698_v56 = vpack.c.bf16 %v1605_v54, %v1605_v54  ;;  %vm1411_vm1 = vcmp.ge.f32.partialorder %v1106_v49, 0.0  ;;  %v1539_v58 = vmul.f32 0.2, %v1106_v49  ;;  %v2960_v62 = vpop.f32.mrb[8].mxu1  ;;  %v863_v63 = vpop.f32.mrb[9].mxu0 }
  0xf7   : > { %2243 = vst.msk [vmem:[%s3266_s20 + $0x10] sm:$0xf] %vm2238_vm4, %v2695_v51  ;;  %v1669_v60 = vsel %vm1413_vm15, %v2957_v43, %v1541_v55  ;;  %vm1352_vm2 = vcmp.ge.f32.partialorder %v2896_v59, 0.0  ;;  %v1480_v61 = vmul.f32 0.2, %v2896_v59  ;;  %v1603_v1 = vsel %vm1347_vm0, %v850_v44, %v1475_v57  ;;  %v1119_v3 = vpop.f32.mrb[9].mxu1 }
  0xf8   : > { %2307 = vst.msk [vmem:[%s3266_s20 + $0x110] sm:$0xf] %vm2238_vm4, %v2759_v53  ;;  %2246 = vst.msk [vmem:[%s3266_s20 + $0x1c] sm:$0xf] %vm2238_vm4, %v2698_v56  ;;  %v2762_v0 = vpack.c.bf16 %v1669_v60, %v1669_v60  ;;  %v1667_v2 = vsel %vm1411_vm1, %v1106_v49, %v1539_v58  ;;  %vm1416_vm3 = vcmp.ge.f32.partialorder %v2960_v62, 0.0  ;;  %v2897_v4 = vpop.f32.mrb[10].mxu0  ;;  %v2696_v5 = vpack.c.bf16 %v1603_v1, %v1603_v1 }
  0xf9   : > { %v2760_v6 = vpack.c.bf16 %v1667_v2, %v1667_v2  ;;  %v1608_v7 = vsel %vm1352_vm2, %v2896_v59, %v1480_v61  ;;  %v1544_v8 = vmul.f32 0.2, %v2960_v62  ;;  %v2961_v9 = vpop.f32.mrb[10].mxu1  ;;  %v866_v10 = vpop.f32.mrb[11].mxu0  ;;  %vm1350_vm5 = vcmp.ge.f32.partialorder %v863_v63, 0.0 }
  0xfa   : > { %2310 = vst.msk [vmem:[%s3266_s20 + $0x11c] sm:$0xf] %vm2238_vm4, %v2762_v0  ;;  %v2701_v11 = vpack.c.bf16 %v1608_v7, %v1608_v7  ;;  %v1478_v12 = vmul.f32 0.2, %v863_v63  ;;  %vm1414_vm6 = vcmp.ge.f32.partialorder %v1119_v3, 0.0  ;;  %v1122_v13 = vpop.f32.mrb[11].mxu1 }
  0xfb   : > { %2244 = vst.msk [vmem:[%s3266_s20 + $0x14] sm:$0xf] %vm2238_vm4, %v2696_v5  ;;  %2308 = vst.msk [vmem:[%s3266_s20 + $0x114] sm:$0xf] %vm2238_vm4, %v2760_v6  ;;  %v1672_v14 = vsel %vm1416_vm3, %v2960_v62, %v1544_v8  ;;  %v1542_v15 = vmul.f32 0.2, %v1119_v3 }
  0xfc   : > { %vm1353_vm7 = vcmp.ge.f32.partialorder %v2897_v4, 0.0  ;;  %v1481_v16 = vmul.f32 0.2, %v2897_v4  ;;  %2249 = vst.msk [vmem:[%s3266_s20 + $0x28] sm:$0xf] %vm2238_vm4, %v2701_v11  ;;  %v2765_v17 = vpack.c.bf16 %v1672_v14, %v1672_v14  ;;  %v1606_v18 = vsel %vm1350_vm5, %v863_v63, %v1478_v12 }
  0xfd   : > { %vm1417_vm8 = vcmp.ge.f32.partialorder %v2961_v9, 0.0  ;;  %v1545_v19 = vmul.f32 0.2, %v2961_v9  ;;  %v2699_v20 = vpack.c.bf16 %v1606_v18, %v1606_v18  ;;  %v1670_v21 = vsel %vm1414_vm6, %v1119_v3, %v1542_v15  ;;  %v2900_v27 = vpop.f32.mrb[12].mxu0 }
  0xfe   : > { %v1609_v22 = vsel %vm1353_vm7, %v2897_v4, %v1481_v16  ;;  %vm1351_vm9 = vcmp.ge.f32.partialorder %v866_v10, 0.0  ;;  %2313 = vst.msk [vmem:[%s3266_s20 + $0x128] sm:$0xf] %vm2238_vm4, %v2765_v17  ;;  %v2763_v23 = vpack.c.bf16 %v1670_v21, %v1670_v21  ;;  %v1479_v26 = vmul.f32 0.2, %v866_v10  ;;  %v2964_v30 = vpop.f32.mrb[12].mxu1 }
  0xff   : > { %v2702_v24 = vpack.c.bf16 %v1609_v22, %v1609_v22  ;;  %v1673_v25 = vsel %vm1417_vm8, %v2961_v9, %v1545_v19  ;;  %2247 = vst.msk [vmem:[%s3266_s20 + $0x20] sm:$0xf] %vm2238_vm4, %v2699_v20  ;;  %vm1415_vm10 = vcmp.ge.f32.partialorder %v1122_v13, 0.0  ;;  %v1543_v29 = vmul.f32 0.2, %v1122_v13  ;;  %v879_v31 = vpop.f32.mrb[13].mxu0 }
 0x100   : > { %v2766_v28 = vpack.c.bf16 %v1673_v25, %v1673_v25  ;;  %vm1356_vm11 = vcmp.ge.f32.partialorder %v2900_v27, 0.0  ;;  %2311 = vst.msk [vmem:[%s3266_s20 + $0x120] sm:$0xf] %vm2238_vm4, %v2763_v23  ;;  %v1607_v32 = vsel %vm1351_vm9, %v866_v10, %v1479_v26  ;;  %v1484_v33 = vmul.f32 0.2, %v2900_v27  ;;  %v1135_v35 = vpop.f32.mrb[13].mxu1 }
 0x101   : > { %2250 = vst.msk [vmem:[%s3266_s20 + $0x2c] sm:$0xf] %vm2238_vm4, %v2702_v24  ;;  %vm1420_vm12 = vcmp.ge.f32.partialorder %v2964_v30, 0.0  ;;  %v1548_v34 = vmul.f32 0.2, %v2964_v30  ;;  %v2700_v36 = vpack.c.bf16 %v1607_v32, %v1607_v32  ;;  %v1671_v37 = vsel %vm1415_vm10, %v1122_v13, %v1543_v29  ;;  %v2901_v39 = vpop.f32.mrb[14].mxu0 }
 0x102   : > { %2314 = vst.msk [vmem:[%s3266_s20 + $0x12c] sm:$0xf] %vm2238_vm4, %v2766_v28  ;;  %vm1354_vm13 = vcmp.ge.f32.partialorder %v879_v31, 0.0  ;;  %v1482_v38 = vmul.f32 0.2, %v879_v31  ;;  %v2965_v40 = vpop.f32.mrb[14].mxu1  ;;  %v2764_v41 = vpack.c.bf16 %v1671_v37, %v1671_v37  ;;  %v1612_v42 = vsel %vm1356_vm11, %v2900_v27, %v1484_v33 }
 0x103   : > { %v1676_v43 = vsel %vm1420_vm12, %v2964_v30, %v1548_v34  ;;  %vm1418_vm14 = vcmp.ge.f32.partialorder %v1135_v35, 0.0  ;;  %v882_v44 = vpop.f32.mrb[15].mxu0  ;;  %v1138_v45 = vpop.f32.mrb[15].mxu1  ;;  %2248 = vst.msk [vmem:[%s3266_s20 + $0x24] sm:$0xf] %vm2238_vm4, %v2700_v36  ;;  %v2705_v46 = vpack.c.bf16 %v1612_v42, %v1612_v42  ;;  %vm1357_vm15 = vcmp.ge.f32.partialorder %v2901_v39, 0.0 }
 0x104   : > { %v2769_v47 = vpack.c.bf16 %v1676_v43, %v1676_v43  ;;  %v1610_v48 = vsel %vm1354_vm13, %v879_v31, %v1482_v38  ;;  %v1546_v49 = vmul.f32 0.2, %v1135_v35  ;;  %2312 = vst.msk [vmem:[%s3266_s20 + $0x124] sm:$0xf] %vm2238_vm4, %v2764_v41  ;;  %v1485_v51 = vmul.f32 0.2, %v2901_v39 }
 0x105   : > { %v2703_v50 = vpack.c.bf16 %v1610_v48, %v1610_v48  ;;  %vm1421_vm0 = vcmp.ge.f32.partialorder %v2965_v40, 0.0  ;;  %2253 = vst.msk [vmem:[%s3266_s20 + $0x38] sm:$0xf] %vm2238_vm4, %v2705_v46  ;;  %v1549_v53 = vmul.f32 0.2, %v2965_v40  ;;  %vm1355_vm1 = vcmp.ge.f32.partialorder %v882_v44, 0.0 }
 0x106   : > { %2317 = vst.msk [vmem:[%s3266_s20 + $0x138] sm:$0xf] %vm2238_vm4, %v2769_v47  ;;  %v1674_v52 = vsel %vm1418_vm14, %v1135_v35, %v1546_v49  ;;  %v1483_v54 = vmul.f32 0.2, %v882_v44  ;;  %v1613_v56 = vsel %vm1357_vm15, %v2901_v39, %v1485_v51  ;;  %vm1419_vm2 = vcmp.ge.f32.partialorder %v1138_v45, 0.0  ;;  %v2904_v58 = vpop.f32.mrb[16].mxu0 }
 0x107   : > { %2251 = vst.msk [vmem:[%s3266_s20 + $0x30] sm:$0xf] %vm2238_vm4, %v2703_v50  ;;  %v2767_v55 = vpack.c.bf16 %v1674_v52, %v1674_v52  ;;  %v1547_v57 = vmul.f32 0.2, %v1138_v45  ;;  %v2706_v59 = vpack.c.bf16 %v1613_v56, %v1613_v56  ;;  %v1677_v60 = vsel %vm1421_vm0, %v2965_v40, %v1549_v53  ;;  %v2968_v62 = vpop.f32.mrb[16].mxu1  ;;  %v895_v63 = vpop.f32.mrb[17].mxu0 }
 0x108   : > { %v1611_v61 = vsel %vm1355_vm1, %v882_v44, %v1483_v54  ;;  %vm1360_vm3 = vcmp.ge.f32.partialorder %v2904_v58, 0.0  ;;  %v2770_v0 = vpack.c.bf16 %v1677_v60, %v1677_v60  ;;  %v1488_v3 = vmul.f32 0.2, %v2904_v58  ;;  %v1151_v4 = vpop.f32.mrb[17].mxu1  ;;  %v2905_v5 = vpop.f32.mrb[18].mxu0 }
 0x109   : > { %2315 = vst.msk [vmem:[%s3266_s20 + $0x130] sm:$0xf] %vm2238_vm4, %v2767_v55  ;;  %v2704_v1 = vpack.c.bf16 %v1611_v61, %v1611_v61  ;;  %v1675_v2 = vsel %vm1419_vm2, %v1138_v45, %v1547_v57  ;;  %2254 = vst.msk [vmem:[%s3266_s20 + $0x3c] sm:$0xf] %vm2238_vm4, %v2706_v59  ;;  %vm1424_vm5 = vcmp.ge.f32.partialorder %v2968_v62, 0.0  ;;  %vm1358_vm6 = vcmp.ge.f32.partialorder %v895_v63, 0.0 }
 0x10a   : > { %v2768_v6 = vpack.c.bf16 %v1675_v2, %v1675_v2  ;;  %v1552_v7 = vmul.f32 0.2, %v2968_v62  ;;  %v2969_v8 = vpop.f32.mrb[18].mxu1  ;;  %v898_v9 = vpop.f32.mrb[19].mxu0  ;;  %2318 = vst.msk [vmem:[%s3266_s20 + $0x13c] sm:$0xf] %vm2238_vm4, %v2770_v0  ;;  %v1616_v10 = vsel %vm1360_vm3, %v2904_v58, %v1488_v3 }
 0x10b   : > { %2252 = vst.msk [vmem:[%s3266_s20 + $0x34] sm:$0xf] %vm2238_vm4, %v2704_v1  ;;  %v1486_v11 = vmul.f32 0.2, %v895_v63  ;;  %vm1422_vm7 = vcmp.ge.f32.partialorder %v1151_v4, 0.0  ;;  %v1154_v13 = vpop.f32.mrb[19].mxu1  ;;  %v2709_v14 = vpack.c.bf16 %v1616_v10, %v1616_v10 }
 0x10c   : > { %v1550_v12 = vmul.f32 0.2, %v1151_v4  ;;  %2316 = vst.msk [vmem:[%s3266_s20 + $0x134] sm:$0xf] %vm2238_vm4, %v2768_v6  ;;  %v1680_v15 = vsel %vm1424_vm5, %v2968_v62, %v1552_v7  ;;  %vm1361_vm8 = vcmp.ge.f32.partialorder %v2905_v5, 0.0  ;;  %vm1425_vm9 = vcmp.ge.f32.partialorder %v2969_v8, 0.0 }
 0x10d   : > { %v1489_v16 = vmul.f32 0.2, %v2905_v5  ;;  %v2773_v17 = vpack.c.bf16 %v1680_v15, %v1680_v15  ;;  %v1614_v18 = vsel %vm1358_vm6, %v895_v63, %v1486_v11  ;;  %2257 = vst.msk [vmem:[%s3266_s20 + $0x48] sm:$0xf] %vm2238_vm4, %v2709_v14  ;;  %v1553_v23 = vmul.f32 0.2, %v2969_v8 }
 0x10e   : > { %v1678_v19 = vsel %vm1422_vm7, %v1151_v4, %v1550_v12  ;;  %v2707_v20 = vpack.c.bf16 %v1614_v18, %v1614_v18  ;;  %vm1359_vm10 = vcmp.ge.f32.partialorder %v898_v9, 0.0  ;;  %v1487_v25 = vmul.f32 0.2, %v898_v9  ;;  %v2908_v26 = vpop.f32.mrb[20].mxu0  ;;  %v2972_v30 = vpop.f32.mrb[20].mxu1 }
 0x10f   : > { %v2771_v21 = vpack.c.bf16 %v1678_v19, %v1678_v19  ;;  %v1617_v22 = vsel %vm1361_vm8, %v2905_v5, %v1489_v16  ;;  %2321 = vst.msk [vmem:[%s3266_s20 + $0x148] sm:$0xf] %vm2238_vm4, %v2773_v17  ;;  %vm1423_vm11 = vcmp.ge.f32.partialorder %v1154_v13, 0.0  ;;  %v1681_v27 = vsel %vm1425_vm9, %v2969_v8, %v1553_v23  ;;  %v911_v34 = vpop.f32.mrb[21].mxu0  ;;  %v1167_v35 = vpop.f32.mrb[21].mxu1 }
 0x110   : > { %v2710_v24 = vpack.c.bf16 %v1617_v22, %v1617_v22  ;;  %2255 = vst.msk [vmem:[%s3266_s20 + $0x40] sm:$0xf] %vm2238_vm4, %v2707_v20  ;;  %v1551_v28 = vmul.f32 0.2, %v1154_v13  ;;  %vm1364_vm12 = vcmp.ge.f32.partialorder %v2908_v26, 0.0  ;;  %v2774_v31 = vpack.c.bf16 %v1681_v27, %v1681_v27  ;;  %v2909_v39 = vpop.f32.mrb[22].mxu0 }
 0x111   : > { %2319 = vst.msk [vmem:[%s3266_s20 + $0x140] sm:$0xf] %vm2238_vm4, %v2771_v21  ;;  %v1492_v29 = vmul.f32 0.2, %v2908_v26  ;;  %v1615_v32 = vsel %vm1359_vm10, %v898_v9, %v1487_v25  ;;  %vm1428_vm13 = vcmp.ge.f32.partialorder %v2972_v30, 0.0  ;;  %vm1362_vm14 = vcmp.ge.f32.partialorder %v911_v34, 0.0 }
 0x112   : > { %2258 = vst.msk [vmem:[%s3266_s20 + $0x4c] sm:$0xf] %vm2238_vm4, %v2710_v24  ;;  %v1556_v33 = vmul.f32 0.2, %v2972_v30  ;;  %v2708_v36 = vpack.c.bf16 %v1615_v32, %v1615_v32  ;;  %v1679_v37 = vsel %vm1423_vm11, %v1154_v13, %v1551_v28  ;;  %v2973_v40 = vpop.f32.mrb[22].mxu1  ;;  %v914_v45 = vpop.f32.mrb[23].mxu0 }
 0x113   : > { %v1620_v38 = vsel %vm1364_vm12, %v2908_v26, %v1492_v29  ;;  %2322 = vst.msk [vmem:[%s3266_s20 + $0x14c] sm:$0xf] %vm2238_vm4, %v2774_v31  ;;  %v2772_v41 = vpack.c.bf16 %v1679_v37, %v1679_v37  ;;  %v1490_v44 = vmul.f32 0.2, %v911_v34  ;;  %v1170_v46 = vpop.f32.mrb[23].mxu1  ;;  %vm1426_vm15 = vcmp.ge.f32.partialorder %v1167_v35, 0.0 }
 0x114   : > { %v2713_v42 = vpack.c.bf16 %v1620_v38, %v1620_v38  ;;  %v1684_v43 = vsel %vm1428_vm13, %v2972_v30, %v1556_v33  ;;  %2256 = vst.msk [vmem:[%s3266_s20 + $0x44] sm:$0xf] %vm2238_vm4, %v2708_v36  ;;  %v1554_v48 = vmul.f32 0.2, %v1167_v35  ;;  %vm1365_vm0 = vcmp.ge.f32.partialorder %v2909_v39, 0.0 }
 0x115   : > { %v2777_v47 = vpack.c.bf16 %v1684_v43, %v1684_v43  ;;  %2320 = vst.msk [vmem:[%s3266_s20 + $0x144] sm:$0xf] %vm2238_vm4, %v2772_v41  ;;  %v1618_v49 = vsel %vm1362_vm14, %v911_v34, %v1490_v44  ;;  %v1493_v50 = vmul.f32 0.2, %v2909_v39  ;;  %vm1429_vm1 = vcmp.ge.f32.partialorder %v2973_v40, 0.0  ;;  %v2912_v58 = vpop.f32.mrb[24].mxu0 }
 0x116   : > { %2261 = vst.msk [vmem:[%s3266_s20 + $0x58] sm:$0xf] %vm2238_vm4, %v2713_v42  ;;  %v1557_v51 = vmul.f32 0.2, %v2973_v40  ;;  %v2711_v52 = vpack.c.bf16 %v1618_v49, %v1618_v49  ;;  %v1682_v53 = vsel %vm1426_vm15, %v1167_v35, %v1554_v48  ;;  %vm1363_vm2 = vcmp.ge.f32.partialorder %v914_v45, 0.0  ;;  %v2976_v63 = vpop.f32.mrb[24].mxu1 }
 0x117   : > { %2325 = vst.msk [vmem:[%s3266_s20 + $0x158] sm:$0xf] %vm2238_vm4, %v2777_v47  ;;  %v1491_v54 = vmul.f32 0.2, %v914_v45  ;;  %v2775_v55 = vpack.c.bf16 %v1682_v53, %v1682_v53  ;;  %v1621_v56 = vsel %vm1365_vm0, %v2909_v39, %v1493_v50  ;;  %vm1427_vm3 = vcmp.ge.f32.partialorder %v1170_v46, 0.0  ;;  %v927_v0 = vpop.f32.mrb[25].mxu0 }
 0x118   : > { %v1685_v57 = vsel %vm1429_vm1, %v2973_v40, %v1557_v51  ;;  %2259 = vst.msk [vmem:[%s3266_s20 + $0x50] sm:$0xf] %vm2238_vm4, %v2711_v52  ;;  %v2714_v59 = vpack.c.bf16 %v1621_v56, %v1621_v56  ;;  %v1555_v62 = vmul.f32 0.2, %v1170_v46  ;;  %vm1368_vm5 = vcmp.ge.f32.partialorder %v2912_v58, 0.0  ;;  %v1183_v3 = vpop.f32.mrb[25].mxu1 }
 0x119   : > { %v2778_v60 = vpack.c.bf16 %v1685_v57, %v1685_v57  ;;  %v1619_v61 = vsel %vm1363_vm2, %v914_v45, %v1491_v54  ;;  %2323 = vst.msk [vmem:[%s3266_s20 + $0x150] sm:$0xf] %vm2238_vm4, %v2775_v55  ;;  %v1496_v2 = vmul.f32 0.2, %v2912_v58  ;;  %vm1432_vm6 = vcmp.ge.f32.partialorder %v2976_v63, 0.0  ;;  %v2913_v4 = vpop.f32.mrb[26].mxu0 }
 0x11a   : > { %v2712_v1 = vpack.c.bf16 %v1619_v61, %v1619_v61  ;;  %2262 = vst.msk [vmem:[%s3266_s20 + $0x5c] sm:$0xf] %vm2238_vm4, %v2714_v59  ;;  %v1683_v5 = vsel %vm1427_vm3, %v1170_v46, %v1555_v62  ;;  %v1560_v6 = vmul.f32 0.2, %v2976_v63  ;;  %vm1366_vm7 = vcmp.ge.f32.partialorder %v927_v0, 0.0  ;;  %v2977_v8 = vpop.f32.mrb[26].mxu1 }
 0x11b   : > { %2326 = vst.msk [vmem:[%s3266_s20 + $0x15c] sm:$0xf] %vm2238_vm4, %v2778_v60  ;;  %v1494_v7 = vmul.f32 0.2, %v927_v0  ;;  %v2776_v9 = vpack.c.bf16 %v1683_v5, %v1683_v5  ;;  %v1624_v10 = vsel %vm1368_vm5, %v2912_v58, %v1496_v2  ;;  %vm1430_vm8 = vcmp.ge.f32.partialorder %v1183_v3, 0.0  ;;  %v930_v12 = vpop.f32.mrb[27].mxu0 }
 0x11c   : > { %2260 = vst.msk [vmem:[%s3266_s20 + $0x54] sm:$0xf] %vm2238_vm4, %v2712_v1  ;;  %v1558_v11 = vmul.f32 0.2, %v1183_v3  ;;  %v1186_v13 = vpop.f32.mrb[27].mxu1  ;;  %v2717_v14 = vpack.c.bf16 %v1624_v10, %v1624_v10  ;;  %v1688_v15 = vsel %vm1432_vm6, %v2976_v63, %v1560_v6  ;;  %vm1369_vm9 = vcmp.ge.f32.partialorder %v2913_v4, 0.0 }
 0x11d   : > { %v1622_v16 = vsel %vm1366_vm7, %v927_v0, %v1494_v7  ;;  %2324 = vst.msk [vmem:[%s3266_s20 + $0x154] sm:$0xf] %vm2238_vm4, %v2776_v9  ;;  %v2781_v17 = vpack.c.bf16 %v1688_v15, %v1688_v15  ;;  %v1497_v20 = vmul.f32 0.2, %v2913_v4  ;;  %vm1433_vm10 = vcmp.ge.f32.partialorder %v2977_v8, 0.0  ;;  %v2916_v26 = vpop.f32.mrb[28].mxu0 }
 0x11e   : > { %v2715_v18 = vpack.c.bf16 %v1622_v16, %v1622_v16  ;;  %v1686_v19 = vsel %vm1430_vm8, %v1183_v3, %v1558_v11  ;;  %2265 = vst.msk [vmem:[%s3266_s20 + $0x68] sm:$0xf] %vm2238_vm4, %v2717_v14  ;;  %v1561_v22 = vmul.f32 0.2, %v2977_v8  ;;  %vm1367_vm11 = vcmp.ge.f32.partialorder %v930_v12, 0.0  ;;  %v2980_v30 = vpop.f32.mrb[28].mxu1 }
 0x11f   : > { %v2779_v21 = vpack.c.bf16 %v1686_v19, %v1686_v19  ;;  %2329 = vst.msk [vmem:[%s3266_s20 + $0x168] sm:$0xf] %vm2238_vm4, %v2781_v17  ;;  %v1625_v23 = vsel %vm1369_vm9, %v2913_v4, %v1497_v20  ;;  %v1495_v24 = vmul.f32 0.2, %v930_v12  ;;  %vm1431_vm12 = vcmp.ge.f32.partialorder %v1186_v13, 0.0  ;;  %v943_v31 = vpop.f32.mrb[29].mxu0 }
 0x120   : > { %2263 = vst.msk [vmem:[%s3266_s20 + $0x60] sm:$0xf] %vm2238_vm4, %v2715_v18  ;;  %v1559_v25 = vmul.f32 0.2, %v1186_v13  ;;  %v2718_v27 = vpack.c.bf16 %v1625_v23, %v1625_v23  ;;  %v1689_v28 = vsel %vm1433_vm10, %v2977_v8, %v1561_v22  ;;  %vm1372_vm13 = vcmp.ge.f32.partialorder %v2916_v26, 0.0  ;;  %v1199_v35 = vpop.f32.mrb[29].mxu1 }
 0x121   : > { %2327 = vst.msk [vmem:[%s3266_s20 + $0x160] sm:$0xf] %vm2238_vm4, %v2779_v21  ;;  %v1500_v29 = vmul.f32 0.2, %v2916_v26  ;;  %v2782_v32 = vpack.c.bf16 %v1689_v28, %v1689_v28  ;;  %v1623_v33 = vsel %vm1367_vm11, %v930_v12, %v1495_v24  ;;  %vm1436_vm14 = vcmp.ge.f32.partialorder %v2980_v30, 0.0  ;;  %v2917_v36 = vpop.f32.mrb[30].mxu0 }
 0x122   : > { %v1687_v34 = vsel %vm1431_vm12, %v1186_v13, %v1559_v25  ;;  %2266 = vst.msk [vmem:[%s3266_s20 + $0x6c] sm:$0xf] %vm2238_vm4, %v2718_v27  ;;  %v2716_v37 = vpack.c.bf16 %v1623_v33, %v1623_v33  ;;  %v1564_v40 = vmul.f32 0.2, %v2980_v30  ;;  %v2981_v41 = vpop.f32.mrb[30].mxu1  ;;  %v946_v42 = vpop.f32.mrb[31].mxu0 }
 0x123   : > { %v2780_v38 = vpack.c.bf16 %v1687_v34, %v1687_v34  ;;  %v1628_v39 = vsel %vm1372_vm13, %v2916_v26, %v1500_v29  ;;  %2330 = vst.msk [vmem:[%s3266_s20 + $0x16c] sm:$0xf] %vm2238_vm4, %v2782_v32  ;;  %vm1370_vm15 = vcmp.ge.f32.partialorder %v943_v31, 0.0  ;;  %v1498_v44 = vmul.f32 0.2, %v943_v31  ;;  %v1202_v45 = vpop.f32.mrb[31].mxu1 }
 0x124   : > { %v2721_v43 = vpack.c.bf16 %v1628_v39, %v1628_v39  ;;  %vm1434_vm0 = vcmp.ge.f32.partialorder %v1199_v35, 0.0  ;;  %2264 = vst.msk [vmem:[%s3266_s20 + $0x64] sm:$0xf] %vm2238_vm4, %v2716_v37  ;;  %v1692_v46 = vsel %vm1436_vm14, %v2980_v30, %v1564_v40  ;;  %v1562_v47 = vmul.f32 0.2, %v1199_v35 }
 0x125   : > { %2328 = vst.msk [vmem:[%s3266_s20 + $0x164] sm:$0xf] %vm2238_vm4, %v2780_v38  ;;  %vm1373_vm1 = vcmp.ge.f32.partialorder %v2917_v36, 0.0  ;;  %v1501_v48 = vmul.f32 0.2, %v2917_v36  ;;  %v2785_v49 = vpack.c.bf16 %v1692_v46, %v1692_v46  ;;  %v1626_v50 = vsel %vm1370_vm15, %v943_v31, %v1498_v44  ;;  %v2920_v59 = vpop.f32.mrb[32].mxu0 }
 0x126   : > { %2269 = vst.msk [vmem:[%s3266_s20 + $0x78] sm:$0xf] %vm2238_vm4, %v2721_v43  ;;  %vm1437_vm2 = vcmp.ge.f32.partialorder %v2981_v41, 0.0  ;;  %v1565_v51 = vmul.f32 0.2, %v2981_v41  ;;  %v2719_v52 = vpack.c.bf16 %v1626_v50, %v1626_v50  ;;  %v1690_v53 = vsel %vm1434_vm0, %v1199_v35, %v1562_v47  ;;  %v2984_v62 = vpop.f32.mrb[32].mxu1 }
 0x127   : > { %v1629_v54 = vsel %vm1373_vm1, %v2917_v36, %v1501_v48  ;;  %vm1371_vm3 = vcmp.ge.f32.partialorder %v946_v42, 0.0  ;;  %2333 = vst.msk [vmem:[%s3266_s20 + $0x178] sm:$0xf] %vm2238_vm4, %v2785_v49  ;;  %v2783_v55 = vpack.c.bf16 %v1690_v53, %v1690_v53  ;;  %v1499_v58 = vmul.f32 0.2, %v946_v42  ;;  %v959_v63 = vpop.f32.mrb[33].mxu0 }
 0x128   : > { %v2722_v56 = vpack.c.bf16 %v1629_v54, %v1629_v54  ;;  %v1693_v57 = vsel %vm1437_vm2, %v2981_v41, %v1565_v51  ;;  %2267 = vst.msk [vmem:[%s3266_s20 + $0x70] sm:$0xf] %vm2238_vm4, %v2719_v52  ;;  %vm1435_vm5 = vcmp.ge.f32.partialorder %v1202_v45, 0.0  ;;  %v1563_v61 = vmul.f32 0.2, %v1202_v45  ;;  %v1215_v3 = vpop.f32.mrb[33].mxu1 }
 0x129   : > { %v2786_v60 = vpack.c.bf16 %v1693_v57, %v1693_v57  ;;  %vm1376_vm6 = vcmp.ge.f32.partialorder %v2920_v59, 0.0  ;;  %2331 = vst.msk [vmem:[%s3266_s20 + $0x170] sm:$0xf] %vm2238_vm4, %v2783_v55  ;;  %v1627_v0 = vsel %vm1371_vm3, %v946_v42, %v1499_v58  ;;  %v1504_v1 = vmul.f32 0.2, %v2920_v59  ;;  %v2921_v7 = vpop.f32.mrb[34].mxu0 }
 0x12a   : > { %2270 = vst.msk [vmem:[%s3266_s20 + $0x7c] sm:$0xf] %vm2238_vm4, %v2722_v56  ;;  %vm1440_vm7 = vcmp.ge.f32.partialorder %v2984_v62, 0.0  ;;  %v1568_v2 = vmul.f32 0.2, %v2984_v62  ;;  %v2720_v4 = vpack.c.bf16 %v1627_v0, %v1627_v0  ;;  %v1691_v5 = vsel %vm1435_vm5, %v1202_v45, %v1563_v61  ;;  %v2985_v8 = vpop.f32.mrb[34].mxu1 }
 0x12b   : > { %2334 = vst.msk [vmem:[%s3266_s20 + $0x17c] sm:$0xf] %vm2238_vm4, %v2786_v60  ;;  %vm1374_vm8 = vcmp.ge.f32.partialorder %v959_v63, 0.0  ;;  %v1502_v6 = vmul.f32 0.2, %v959_v63  ;;  %v2784_v9 = vpack.c.bf16 %v1691_v5, %v1691_v5  ;;  %v1632_v10 = vsel %vm1376_vm6, %v2920_v59, %v1504_v1  ;;  %v962_v12 = vpop.f32.mrb[35].mxu0 }
 0x12c   : > { %v1696_v11 = vsel %vm1440_vm7, %v2984_v62, %v1568_v2  ;;  %vm1438_vm9 = vcmp.ge.f32.partialorder %v1215_v3, 0.0  ;;  %v1218_v13 = vpop.f32.mrb[35].mxu1  ;;  %2268 = vst.msk [vmem:[%s3266_s20 + $0x74] sm:$0xf] %vm2238_vm4, %v2720_v4  ;;  %v2725_v14 = vpack.c.bf16 %v1632_v10, %v1632_v10  ;;  %v1566_v17 = vmul.f32 0.2, %v1215_v3 }
 0x12d   : > { %v2789_v15 = vpack.c.bf16 %v1696_v11, %v1696_v11  ;;  %v1630_v16 = vsel %vm1374_vm8, %v959_v63, %v1502_v6  ;;  %2332 = vst.msk [vmem:[%s3266_s20 + $0x174] sm:$0xf] %vm2238_vm4, %v2784_v9  ;;  %vm1377_vm10 = vcmp.ge.f32.partialorder %v2921_v7, 0.0  ;;  %v1505_v19 = vmul.f32 0.2, %v2921_v7  ;;  %v2924_v26 = vpop.f32.mrb[36].mxu0 }
 0x12e   : > { %v2723_v18 = vpack.c.bf16 %v1630_v16, %v1630_v16  ;;  %vm1441_vm11 = vcmp.ge.f32.partialorder %v2985_v8, 0.0  ;;  %2273 = vst.msk [vmem:[%s3266_s20 + $0x88] sm:$0xf] %vm2238_vm4, %v2725_v14  ;;  %v1694_v20 = vsel %vm1438_vm9, %v1215_v3, %v1566_v17  ;;  %v1569_v21 = vmul.f32 0.2, %v2985_v8  ;;  %v2988_v30 = vpop.f32.mrb[36].mxu1 }
 0x12f   : > { %2337 = vst.msk [vmem:[%s3266_s20 + $0x188] sm:$0xf] %vm2238_vm4, %v2789_v15  ;;  %vm1375_vm12 = vcmp.ge.f32.partialorder %v962_v12, 0.0  ;;  %v1503_v22 = vmul.f32 0.2, %v962_v12  ;;  %v2787_v23 = vpack.c.bf16 %v1694_v20, %v1694_v20  ;;  %v1633_v24 = vsel %vm1377_vm10, %v2921_v7, %v1505_v19  ;;  %v975_v31 = vpop.f32.mrb[37].mxu0 }
 0x130   : > { %2271 = vst.msk [vmem:[%s3266_s20 + $0x80] sm:$0xf] %vm2238_vm4, %v2723_v18  ;;  %vm1439_vm13 = vcmp.ge.f32.partialorder %v1218_v13, 0.0  ;;  %v1567_v25 = vmul.f32 0.2, %v1218_v13  ;;  %v2726_v27 = vpack.c.bf16 %v1633_v24, %v1633_v24  ;;  %v1697_v28 = vsel %vm1441_vm11, %v2985_v8, %v1569_v21  ;;  %v1231_v36 = vpop.f32.mrb[37].mxu1 }
 0x131   : > { %v1631_v29 = vsel %vm1375_vm12, %v962_v12, %v1503_v22  ;;  %vm1380_vm14 = vcmp.ge.f32.partialorder %v2924_v26, 0.0  ;;  %2335 = vst.msk [vmem:[%s3266_s20 + $0x180] sm:$0xf] %vm2238_vm4, %v2787_v23  ;;  %v2790_v32 = vpack.c.bf16 %v1697_v28, %v1697_v28  ;;  %v1508_v35 = vmul.f32 0.2, %v2924_v26  ;;  %v2925_v37 = vpop.f32.mrb[38].mxu0 }
 0x132   : > { %v2724_v33 = vpack.c.bf16 %v1631_v29, %v1631_v29  ;;  %v1695_v34 = vsel %vm1439_vm13, %v1218_v13, %v1567_v25  ;;  %2274 = vst.msk [vmem:[%s3266_s20 + $0x8c] sm:$0xf] %vm2238_vm4, %v2726_v27  ;;  %vm1444_vm15 = vcmp.ge.f32.partialorder %v2988_v30, 0.0  ;;  %v1572_v39 = vmul.f32 0.2, %v2988_v30  ;;  %v2989_v40 = vpop.f32.mrb[38].mxu1 }
 0x133   : > { %v2788_v38 = vpack.c.bf16 %v1695_v34, %v1695_v34  ;;  %vm1378_vm0 = vcmp.ge.f32.partialorder %v975_v31, 0.0  ;;  %v978_v41 = vpop.f32.mrb[39].mxu0  ;;  %2338 = vst.msk [vmem:[%s3266_s20 + $0x18c] sm:$0xf] %vm2238_vm4, %v2790_v32  ;;  %v1636_v42 = vsel %vm1380_vm14, %v2924_v26, %v1508_v35  ;;  %v1506_v43 = vmul.f32 0.2, %v975_v31 }
 0x134   : > { %2272 = vst.msk [vmem:[%s3266_s20 + $0x84] sm:$0xf] %vm2238_vm4, %v2724_v33  ;;  %vm1442_vm1 = vcmp.ge.f32.partialorder %v1231_v36, 0.0  ;;  %v1570_v44 = vmul.f32 0.2, %v1231_v36  ;;  %v1234_v45 = vpop.f32.mrb[39].mxu1  ;;  %v2729_v46 = vpack.c.bf16 %v1636_v42, %v1636_v42  ;;  %v1700_v47 = vsel %vm1444_vm15, %v2988_v30, %v1572_v39 }
 0x135   : > { %2336 = vst.msk [vmem:[%s3266_s20 + $0x184] sm:$0xf] %vm2238_vm4, %v2788_v38  ;;  %vm1381_vm2 = vcmp.ge.f32.partialorder %v2925_v37, 0.0  ;;  %v1509_v48 = vmul.f32 0.2, %v2925_v37  ;;  %v2793_v49 = vpack.c.bf16 %v1700_v47, %v1700_v47  ;;  %v1634_v50 = vsel %vm1378_vm0, %v975_v31, %v1506_v43  ;;  %v2928_v58 = vpop.f32.mrb[40].mxu0 }
 0x136   : > { %v1698_v51 = vsel %vm1442_vm1, %v1231_v36, %v1570_v44  ;;  %vm1445_vm3 = vcmp.ge.f32.partialorder %v2989_v40, 0.0  ;;  %2277 = vst.msk [vmem:[%s3266_s20 + $0x98] sm:$0xf] %vm2238_vm4, %v2729_v46  ;;  %v2727_v52 = vpack.c.bf16 %v1634_v50, %v1634_v50  ;;  %v1573_v55 = vmul.f32 0.2, %v2989_v40  ;;  %v2992_v62 = vpop.f32.mrb[40].mxu1 }
 0x137   : > { %v2791_v53 = vpack.c.bf16 %v1698_v51, %v1698_v51  ;;  %v1637_v54 = vsel %vm1381_vm2, %v2925_v37, %v1509_v48  ;;  %2341 = vst.msk [vmem:[%s3266_s20 + $0x198] sm:$0xf] %vm2238_vm4, %v2793_v49  ;;  %vm1379_vm5 = vcmp.ge.f32.partialorder %v978_v41, 0.0  ;;  %v1507_v57 = vmul.f32 0.2, %v978_v41  ;;  %v991_v2 = vpop.f32.mrb[41].mxu0 }
 0x138   : > { %v2730_v56 = vpack.c.bf16 %v1637_v54, %v1637_v54  ;;  %vm1443_vm6 = vcmp.ge.f32.partialorder %v1234_v45, 0.0  ;;  %2275 = vst.msk [vmem:[%s3266_s20 + $0x90] sm:$0xf] %vm2238_vm4, %v2727_v52  ;;  %v1701_v59 = vsel %vm1445_vm3, %v2989_v40, %v1573_v55  ;;  %v1571_v60 = vmul.f32 0.2, %v1234_v45  ;;  %v1247_v3 = vpop.f32.mrb[41].mxu1 }
 0x139   : > { %2339 = vst.msk [vmem:[%s3266_s20 + $0x190] sm:$0xf] %vm2238_vm4, %v2791_v53  ;;  %vm1384_vm7 = vcmp.ge.f32.partialorder %v2928_v58, 0.0  ;;  %v1512_v61 = vmul.f32 0.2, %v2928_v58  ;;  %v2794_v63 = vpack.c.bf16 %v1701_v59, %v1701_v59  ;;  %v1635_v0 = vsel %vm1379_vm5, %v978_v41, %v1507_v57  ;;  %v2929_v7 = vpop.f32.mrb[42].mxu0 }
 0x13a   : > { %2278 = vst.msk [vmem:[%s3266_s20 + $0x9c] sm:$0xf] %vm2238_vm4, %v2730_v56  ;;  %vm1448_vm8 = vcmp.ge.f32.partialorder %v2992_v62, 0.0  ;;  %v1576_v1 = vmul.f32 0.2, %v2992_v62  ;;  %v2728_v4 = vpack.c.bf16 %v1635_v0, %v1635_v0  ;;  %v1699_v5 = vsel %vm1443_vm6, %v1234_v45, %v1571_v60  ;;  %v2993_v8 = vpop.f32.mrb[42].mxu1 }
 0x13b   : > { %v1640_v6 = vsel %vm1384_vm7, %v2928_v58, %v1512_v61  ;;  %vm1382_vm9 = vcmp.ge.f32.partialorder %v991_v2, 0.0  ;;  %2342 = vst.msk [vmem:[%s3266_s20 + $0x19c] sm:$0xf] %vm2238_vm4, %v2794_v63  ;;  %v2792_v9 = vpack.c.bf16 %v1699_v5, %v1699_v5  ;;  %v1510_v12 = vmul.f32 0.2, %v991_v2  ;;  %v994_v13 = vpop.f32.mrb[43].mxu0 }
 0x13c   : > { %v2733_v10 = vpack.c.bf16 %v1640_v6, %v1640_v6  ;;  %v1704_v11 = vsel %vm1448_vm8, %v2992_v62, %v1576_v1  ;;  %v1250_v14 = vpop.f32.mrb[43].mxu1  ;;  %2276 = vst.msk [vmem:[%s3266_s20 + $0x94] sm:$0xf] %vm2238_vm4, %v2728_v4  ;;  %vm1446_vm10 = vcmp.ge.f32.partialorder %v1247_v3, 0.0  ;;  %v1574_v16 = vmul.f32 0.2, %v1247_v3 }
 0x13d   : > { %v2797_v15 = vpack.c.bf16 %v1704_v11, %v1704_v11  ;;  %vm1385_vm11 = vcmp.ge.f32.partialorder %v2929_v7, 0.0  ;;  %2340 = vst.msk [vmem:[%s3266_s20 + $0x194] sm:$0xf] %vm2238_vm4, %v2792_v9  ;;  %v1638_v17 = vsel %vm1382_vm9, %v991_v2, %v1510_v12  ;;  %v1513_v18 = vmul.f32 0.2, %v2929_v7  ;;  %v2932_v26 = vpop.f32.mrb[44].mxu0 }
 0x13e   : > { %2281 = vst.msk [vmem:[%s3266_s20 + $0xa8] sm:$0xf] %vm2238_vm4, %v2733_v10  ;;  %vm1449_vm12 = vcmp.ge.f32.partialorder %v2993_v8, 0.0  ;;  %v1577_v19 = vmul.f32 0.2, %v2993_v8  ;;  %v2731_v20 = vpack.c.bf16 %v1638_v17, %v1638_v17  ;;  %v1702_v21 = vsel %vm1446_vm10, %v1247_v3, %v1574_v16  ;;  %v2996_v31 = vpop.f32.mrb[44].mxu1 }
 0x13f   : > { %2345 = vst.msk [vmem:[%s3266_s20 + $0x1a8] sm:$0xf] %vm2238_vm4, %v2797_v15  ;;  %vm1383_vm13 = vcmp.ge.f32.partialorder %v994_v13, 0.0  ;;  %v1511_v22 = vmul.f32 0.2, %v994_v13  ;;  %v2795_v23 = vpack.c.bf16 %v1702_v21, %v1702_v21  ;;  %v1641_v24 = vsel %vm1385_vm11, %v2929_v7, %v1513_v18  ;;  %v1007_v32 = vpop.f32.mrb[45].mxu0 }
 0x140   : > { %v1705_v25 = vsel %vm1449_vm12, %v2993_v8, %v1577_v19  ;;  %vm1447_vm14 = vcmp.ge.f32.partialorder %v1250_v14, 0.0  ;;  %2279 = vst.msk [vmem:[%s3266_s20 + $0xa0] sm:$0xf] %vm2238_vm4, %v2731_v20  ;;  %v2734_v27 = vpack.c.bf16 %v1641_v24, %v1641_v24  ;;  %v1575_v30 = vmul.f32 0.2, %v1250_v14  ;;  %v1263_v35 = vpop.f32.mrb[45].mxu1 }
 0x141   : > { %v2798_v28 = vpack.c.bf16 %v1705_v25, %v1705_v25  ;;  %v1639_v29 = vsel %vm1383_vm13, %v994_v13, %v1511_v22  ;;  %2343 = vst.msk [vmem:[%s3266_s20 + $0x1a0] sm:$0xf] %vm2238_vm4, %v2795_v23  ;;  %vm1388_vm15 = vcmp.ge.f32.partialorder %v2932_v26, 0.0  ;;  %v1516_v34 = vmul.f32 0.2, %v2932_v26  ;;  %v2933_v36 = vpop.f32.mrb[46].mxu0 }
 0x142   : > { %v2732_v33 = vpack.c.bf16 %v1639_v29, %v1639_v29  ;;  %vm1452_vm0 = vcmp.ge.f32.partialorder %v2996_v31, 0.0  ;;  %2282 = vst.msk [vmem:[%s3266_s20 + $0xac] sm:$0xf] %vm2238_vm4, %v2734_v27  ;;  %v1703_v37 = vsel %vm1447_vm14, %v1250_v14, %v1575_v30  ;;  %v1580_v38 = vmul.f32 0.2, %v2996_v31  ;;  %v2997_v40 = vpop.f32.mrb[46].mxu1 }
 0x143   : > { %2346 = vst.msk [vmem:[%s3266_s20 + $0x1ac] sm:$0xf] %vm2238_vm4, %v2798_v28  ;;  %vm1386_vm1 = vcmp.ge.f32.partialorder %v1007_v32, 0.0  ;;  %v1514_v39 = vmul.f32 0.2, %v1007_v32  ;;  %v2796_v41 = vpack.c.bf16 %v1703_v37, %v1703_v37  ;;  %v1644_v42 = vsel %vm1388_vm15, %v2932_v26, %v1516_v34  ;;  %v1010_v44 = vpop.f32.mrb[47].mxu0 }
 0x144   : > { %2280 = vst.msk [vmem:[%s3266_s20 + $0xa4] sm:$0xf] %vm2238_vm4, %v2732_v33  ;;  %vm1450_vm2 = vcmp.ge.f32.partialorder %v1263_v35, 0.0  ;;  %v1578_v43 = vmul.f32 0.2, %v1263_v35  ;;  %v1266_v45 = vpop.f32.mrb[47].mxu1  ;;  %v2737_v46 = vpack.c.bf16 %v1644_v42, %v1644_v42  ;;  %v1708_v47 = vsel %vm1452_vm0, %v2996_v31, %v1580_v38 }
 0x145   : > { %v1642_v48 = vsel %vm1386_vm1, %v1007_v32, %v1514_v39  ;;  %vm1389_vm3 = vcmp.ge.f32.partialorder %v2933_v36, 0.0  ;;  %2344 = vst.msk [vmem:[%s3266_s20 + $0x1a4] sm:$0xf] %vm2238_vm4, %v2796_v41  ;;  %v2801_v49 = vpack.c.bf16 %v1708_v47, %v1708_v47  ;;  %v1517_v52 = vmul.f32 0.2, %v2933_v36  ;;  %v2936_v58 = vpop.f32.mrb[48].mxu0 }
 0x146   : > { %v2735_v50 = vpack.c.bf16 %v1642_v48, %v1642_v48  ;;  %v1706_v51 = vsel %vm1450_vm2, %v1263_v35, %v1578_v43  ;;  %2285 = vst.msk [vmem:[%s3266_s20 + $0xb8] sm:$0xf] %vm2238_vm4, %v2737_v46  ;;  %vm1453_vm5 = vcmp.ge.f32.partialorder %v2997_v40, 0.0  ;;  %v1581_v54 = vmul.f32 0.2, %v2997_v40  ;;  %v3000_v62 = vpop.f32.mrb[48].mxu1 }
 0x147   : > { %v2799_v53 = vpack.c.bf16 %v1706_v51, %v1706_v51  ;;  %vm1387_vm6 = vcmp.ge.f32.partialorder %v1010_v44, 0.0  ;;  %2349 = vst.msk [vmem:[%s3266_s20 + $0x1b8] sm:$0xf] %vm2238_vm4, %v2801_v49  ;;  %v1645_v55 = vsel %vm1389_vm3, %v2933_v36, %v1517_v52  ;;  %v1515_v56 = vmul.f32 0.2, %v1010_v44  ;;  %v1023_v63 = vpop.f32.mrb[49].mxu0 }
 0x148   : > { %2283 = vst.msk [vmem:[%s3266_s20 + $0xb0] sm:$0xf] %vm2238_vm4, %v2735_v50  ;;  %vm1451_vm7 = vcmp.ge.f32.partialorder %v1266_v45, 0.0  ;;  %v1579_v57 = vmul.f32 0.2, %v1266_v45  ;;  %v2738_v59 = vpack.c.bf16 %v1645_v55, %v1645_v55  ;;  %v1709_v60 = vsel %vm1453_vm5, %v2997_v40, %v1581_v54  ;;  %v1279_v3 = vpop.f32.mrb[49].mxu1 }
 0x149   : > { %2347 = vst.msk [vmem:[%s3266_s20 + $0x1b0] sm:$0xf] %vm2238_vm4, %v2799_v53  ;;  %vm1392_vm8 = vcmp.ge.f32.partialorder %v2936_v58, 0.0  ;;  %v1520_v61 = vmul.f32 0.2, %v2936_v58  ;;  %v2802_v0 = vpack.c.bf16 %v1709_v60, %v1709_v60  ;;  %v1643_v1 = vsel %vm1387_vm6, %v1010_v44, %v1515_v56  ;;  %v2937_v4 = vpop.f32.mrb[50].mxu0 }
 0x14a   : > { %v1707_v2 = vsel %vm1451_vm7, %v1266_v45, %v1579_v57  ;;  %vm1456_vm9 = vcmp.ge.f32.partialorder %v3000_v62, 0.0  ;;  %2286 = vst.msk [vmem:[%s3266_s20 + $0xbc] sm:$0xf] %vm2238_vm4, %v2738_v59  ;;  %v2736_v5 = vpack.c.bf16 %v1643_v1, %v1643_v1  ;;  %v1584_v8 = vmul.f32 0.2, %v3000_v62  ;;  %v3001_v9 = vpop.f32.mrb[50].mxu1 }
 0x14b   : > { %v2800_v6 = vpack.c.bf16 %v1707_v2, %v1707_v2  ;;  %v1648_v7 = vsel %vm1392_vm8, %v2936_v58, %v1520_v61  ;;  %v1026_v10 = vpop.f32.mrb[51].mxu0  ;;  %2350 = vst.msk [vmem:[%s3266_s20 + $0x1bc] sm:$0xf] %vm2238_vm4, %v2802_v0  ;;  %vm1390_vm10 = vcmp.ge.f32.partialorder %v1023_v63, 0.0  ;;  %v1518_v12 = vmul.f32 0.2, %v1023_v63 }
 0x14c   : > { %v2741_v11 = vpack.c.bf16 %v1648_v7, %v1648_v7  ;;  %vm1454_vm11 = vcmp.ge.f32.partialorder %v1279_v3, 0.0  ;;  %v1282_v13 = vpop.f32.mrb[51].mxu1  ;;  %2284 = vst.msk [vmem:[%s3266_s20 + $0xb4] sm:$0xf] %vm2238_vm4, %v2736_v5  ;;  %v1712_v14 = vsel %vm1456_vm9, %v3000_v62, %v1584_v8  ;;  %v1582_v15 = vmul.f32 0.2, %v1279_v3 }
 0x14d   : > { %2348 = vst.msk [vmem:[%s3266_s20 + $0x1b4] sm:$0xf] %vm2238_vm4, %v2800_v6  ;;  %vm1393_vm12 = vcmp.ge.f32.partialorder %v2937_v4, 0.0  ;;  %v1521_v16 = vmul.f32 0.2, %v2937_v4  ;;  %v2805_v17 = vpack.c.bf16 %v1712_v14, %v1712_v14  ;;  %v1646_v18 = vsel %vm1390_vm10, %v1023_v63, %v1518_v12  ;;  %v2940_v27 = vpop.f32.mrb[52].mxu0 }
 0x14e   : > { %2289 = vst.msk [vmem:[%s3266_s20 + $0xc8] sm:$0xf] %vm2238_vm4, %v2741_v11  ;;  %vm1457_vm13 = vcmp.ge.f32.partialorder %v3001_v9, 0.0  ;;  %v1585_v19 = vmul.f32 0.2, %v3001_v9  ;;  %v2739_v20 = vpack.c.bf16 %v1646_v18, %v1646_v18  ;;  %v1710_v21 = vsel %vm1454_vm11, %v1279_v3, %v1582_v15  ;;  %v3004_v30 = vpop.f32.mrb[52].mxu1 }
 0x14f   : > { %v1649_v22 = vsel %vm1393_vm12, %v2937_v4, %v1521_v16  ;;  %vm1391_vm14 = vcmp.ge.f32.partialorder %v1026_v10, 0.0  ;;  %2353 = vst.msk [vmem:[%s3266_s20 + $0x1c8] sm:$0xf] %vm2238_vm4, %v2805_v17  ;;  %v2803_v23 = vpack.c.bf16 %v1710_v21, %v1710_v21  ;;  %v1519_v26 = vmul.f32 0.2, %v1026_v10  ;;  %v1039_v31 = vpop.f32.mrb[53].mxu0 }
 0x150   : > { %v2742_v24 = vpack.c.bf16 %v1649_v22, %v1649_v22  ;;  %v1713_v25 = vsel %vm1457_vm13, %v3001_v9, %v1585_v19  ;;  %2287 = vst.msk [vmem:[%s3266_s20 + $0xc0] sm:$0xf] %vm2238_vm4, %v2739_v20  ;;  %vm1455_vm15 = vcmp.ge.f32.partialorder %v1282_v13, 0.0  ;;  %v1583_v29 = vmul.f32 0.2, %v1282_v13  ;;  %v1295_v35 = vpop.f32.mrb[53].mxu1 }
 0x151   : > { %v2806_v28 = vpack.c.bf16 %v1713_v25, %v1713_v25  ;;  %vm1396_vm0 = vcmp.ge.f32.partialorder %v2940_v27, 0.0  ;;  %2351 = vst.msk [vmem:[%s3266_s20 + $0x1c0] sm:$0xf] %vm2238_vm4, %v2803_v23  ;;  %v1647_v32 = vsel %vm1391_vm14, %v1026_v10, %v1519_v26  ;;  %v1524_v33 = vmul.f32 0.2, %v2940_v27  ;;  %v2941_v39 = vpop.f32.mrb[54].mxu0 }
 0x152   : > { %2290 = vst.msk [vmem:[%s3266_s20 + $0xcc] sm:$0xf] %vm2238_vm4, %v2742_v24  ;;  %vm1460_vm1 = vcmp.ge.f32.partialorder %v3004_v30, 0.0  ;;  %v1588_v34 = vmul.f32 0.2, %v3004_v30  ;;  %v2740_v36 = vpack.c.bf16 %v1647_v32, %v1647_v32  ;;  %v1711_v37 = vsel %vm1455_vm15, %v1282_v13, %v1583_v29  ;;  %v3005_v40 = vpop.f32.mrb[54].mxu1 }
 0x153   : > { %2354 = vst.msk [vmem:[%s3266_s20 + $0x1cc] sm:$0xf] %vm2238_vm4, %v2806_v28  ;;  %vm1394_vm2 = vcmp.ge.f32.partialorder %v1039_v31, 0.0  ;;  %v1522_v38 = vmul.f32 0.2, %v1039_v31  ;;  %v2804_v41 = vpack.c.bf16 %v1711_v37, %v1711_v37  ;;  %v1652_v42 = vsel %vm1396_vm0, %v2940_v27, %v1524_v33  ;;  %v1042_v44 = vpop.f32.mrb[55].mxu0 }
 0x154   : > { %v1716_v43 = vsel %vm1460_vm1, %v3004_v30, %v1588_v34  ;;  %vm1458_vm3 = vcmp.ge.f32.partialorder %v1295_v35, 0.0  ;;  %v1298_v45 = vpop.f32.mrb[55].mxu1  ;;  %2288 = vst.msk [vmem:[%s3266_s20 + $0xc4] sm:$0xf] %vm2238_vm4, %v2740_v36  ;;  %v2745_v46 = vpack.c.bf16 %v1652_v42, %v1652_v42  ;;  %v1586_v49 = vmul.f32 0.2, %v1295_v35 }
 0x155   : > { %v2809_v47 = vpack.c.bf16 %v1716_v43, %v1716_v43  ;;  %v1650_v48 = vsel %vm1394_vm2, %v1039_v31, %v1522_v38  ;;  %2352 = vst.msk [vmem:[%s3266_s20 + $0x1c4] sm:$0xf] %vm2238_vm4, %v2804_v41  ;;  %vm1397_vm5 = vcmp.ge.f32.partialorder %v2941_v39, 0.0  ;;  %v1525_v51 = vmul.f32 0.2, %v2941_v39  ;;  %v2944_v58 = vpop.f32.mrb[56].mxu0 }
 0x156   : > { %v2743_v50 = vpack.c.bf16 %v1650_v48, %v1650_v48  ;;  %vm1461_vm6 = vcmp.ge.f32.partialorder %v3005_v40, 0.0  ;;  %2293 = vst.msk [vmem:[%s3266_s20 + $0xd8] sm:$0xf] %vm2238_vm4, %v2745_v46  ;;  %v1714_v52 = vsel %vm1458_vm3, %v1295_v35, %v1586_v49  ;;  %v1589_v53 = vmul.f32 0.2, %v3005_v40  ;;  %v3008_v62 = vpop.f32.mrb[56].mxu1 }
 0x157   : > { %2357 = vst.msk [vmem:[%s3266_s20 + $0x1d8] sm:$0xf] %vm2238_vm4, %v2809_v47  ;;  %vm1395_vm7 = vcmp.ge.f32.partialorder %v1042_v44, 0.0  ;;  %v1523_v54 = vmul.f32 0.2, %v1042_v44  ;;  %v2807_v55 = vpack.c.bf16 %v1714_v52, %v1714_v52  ;;  %v1653_v56 = vsel %vm1397_vm5, %v2941_v39, %v1525_v51  ;;  %v1055_v63 = vpop.f32.mrb[57].mxu0 }
 0x158   : > { %2291 = vst.msk [vmem:[%s3266_s20 + $0xd0] sm:$0xf] %vm2238_vm4, %v2743_v50  ;;  %vm1459_vm8 = vcmp.ge.f32.partialorder %v1298_v45, 0.0  ;;  %v1587_v57 = vmul.f32 0.2, %v1298_v45  ;;  %v2746_v59 = vpack.c.bf16 %v1653_v56, %v1653_v56  ;;  %v1717_v60 = vsel %vm1461_vm6, %v3005_v40, %v1589_v53  ;;  %v1311_v4 = vpop.f32.mrb[57].mxu1 }
 0x159   : > { %v1651_v61 = vsel %vm1395_vm7, %v1042_v44, %v1523_v54  ;;  %vm1400_vm9 = vcmp.ge.f32.partialorder %v2944_v58, 0.0  ;;  %2355 = vst.msk [vmem:[%s3266_s20 + $0x1d0] sm:$0xf] %vm2238_vm4, %v2807_v55  ;;  %v2810_v0 = vpack.c.bf16 %v1717_v60, %v1717_v60  ;;  %v1528_v3 = vmul.f32 0.2, %v2944_v58  ;;  %v2945_v5 = vpop.f32.mrb[58].mxu0 }
 0x15a   : > { %v2744_v1 = vpack.c.bf16 %v1651_v61, %v1651_v61  ;;  %v1715_v2 = vsel %vm1459_vm8, %v1298_v45, %v1587_v57  ;;  %2294 = vst.msk [vmem:[%s3266_s20 + $0xdc] sm:$0xf] %vm2238_vm4, %v2746_v59  ;;  %vm1464_vm10 = vcmp.ge.f32.partialorder %v3008_v62, 0.0  ;;  %v1592_v7 = vmul.f32 0.2, %v3008_v62  ;;  %v3009_v8 = vpop.f32.mrb[58].mxu1 }
 0x15b   : > { %v2808_v6 = vpack.c.bf16 %v1715_v2, %v1715_v2  ;;  %vm1398_vm11 = vcmp.ge.f32.partialorder %v1055_v63, 0.0  ;;  %v1058_v9 = vpop.f32.mrb[59].mxu0  ;;  %2358 = vst.msk [vmem:[%s3266_s20 + $0x1dc] sm:$0xf] %vm2238_vm4, %v2810_v0  ;;  %v1656_v10 = vsel %vm1400_vm9, %v2944_v58, %v1528_v3  ;;  %v1526_v11 = vmul.f32 0.2, %v1055_v63 }
 0x15c   : > { %2292 = vst.msk [vmem:[%s3266_s20 + $0xd4] sm:$0xf] %vm2238_vm4, %v2744_v1  ;;  %vm1462_vm12 = vcmp.ge.f32.partialorder %v1311_v4, 0.0  ;;  %v1590_v12 = vmul.f32 0.2, %v1311_v4  ;;  %v1314_v13 = vpop.f32.mrb[59].mxu1  ;;  %v2749_v14 = vpack.c.bf16 %v1656_v10, %v1656_v10  ;;  %v1720_v15 = vsel %vm1464_vm10, %v3008_v62, %v1592_v7 }
 0x15d   : > { %2356 = vst.msk [vmem:[%s3266_s20 + $0x1d4] sm:$0xf] %vm2238_vm4, %v2808_v6  ;;  %vm1401_vm13 = vcmp.ge.f32.partialorder %v2945_v5, 0.0  ;;  %v1529_v16 = vmul.f32 0.2, %v2945_v5  ;;  %v2813_v17 = vpack.c.bf16 %v1720_v15, %v1720_v15  ;;  %v1654_v18 = vsel %vm1398_vm11, %v1055_v63, %v1526_v11  ;;  %v2948_v26 = vpop.f32.mrb[60].mxu0 }
 0x15e   : > { %v1718_v19 = vsel %vm1462_vm12, %v1311_v4, %v1590_v12  ;;  %vm1465_vm14 = vcmp.ge.f32.partialorder %v3009_v8, 0.0  ;;  %2297 = vst.msk [vmem:[%s3266_s20 + $0xe8] sm:$0xf] %vm2238_vm4, %v2749_v14  ;;  %v2747_v20 = vpack.c.bf16 %v1654_v18, %v1654_v18  ;;  %v1593_v23 = vmul.f32 0.2, %v3009_v8  ;;  %v3012_v30 = vpop.f32.mrb[60].mxu1 }
 0x15f   : > { %v2811_v21 = vpack.c.bf16 %v1718_v19, %v1718_v19  ;;  %v1657_v22 = vsel %vm1401_vm13, %v2945_v5, %v1529_v16  ;;  %2361 = vst.msk [vmem:[%s3266_s20 + $0x1e8] sm:$0xf] %vm2238_vm4, %v2813_v17  ;;  %vm1399_vm15 = vcmp.ge.f32.partialorder %v1058_v9, 0.0  ;;  %v1527_v25 = vmul.f32 0.2, %v1058_v9  ;;  %v1071_v34 = vpop.f32.mrb[61].mxu0 }
 0x160   : > { %v2750_v24 = vpack.c.bf16 %v1657_v22, %v1657_v22  ;;  %vm1463_vm0 = vcmp.ge.f32.partialorder %v1314_v13, 0.0  ;;  %2295 = vst.msk [vmem:[%s3266_s20 + $0xe0] sm:$0xf] %vm2238_vm4, %v2747_v20  ;;  %v1721_v27 = vsel %vm1465_vm14, %v3009_v8, %v1593_v23  ;;  %v1591_v28 = vmul.f32 0.2, %v1314_v13  ;;  %v1327_v35 = vpop.f32.mrb[61].mxu1 }
 0x161   : > { %2359 = vst.msk [vmem:[%s3266_s20 + $0x1e0] sm:$0xf] %vm2238_vm4, %v2811_v21  ;;  %vm1404_vm1 = vcmp.ge.f32.partialorder %v2948_v26, 0.0  ;;  %v1532_v29 = vmul.f32 0.2, %v2948_v26  ;;  %v2814_v31 = vpack.c.bf16 %v1721_v27, %v1721_v27  ;;  %v1655_v32 = vsel %vm1399_vm15, %v1058_v9, %v1527_v25  ;;  %v2949_v39 = vpop.f32.mrb[62].mxu0 }
 0x162   : > { %2298 = vst.msk [vmem:[%s3266_s20 + $0xec] sm:$0xf] %vm2238_vm4, %v2750_v24  ;;  %vm1468_vm2 = vcmp.ge.f32.partialorder %v3012_v30, 0.0  ;;  %v1596_v33 = vmul.f32 0.2, %v3012_v30  ;;  %v2748_v36 = vpack.c.bf16 %v1655_v32, %v1655_v32  ;;  %v1719_v37 = vsel %vm1463_vm0, %v1314_v13, %v1591_v28  ;;  %v3013_v40 = vpop.f32.mrb[62].mxu1 }
 0x163   : > { %v1660_v38 = vsel %vm1404_vm1, %v2948_v26, %v1532_v29  ;;  %vm1402_vm3 = vcmp.ge.f32.partialorder %v1071_v34, 0.0  ;;  %2362 = vst.msk [vmem:[%s3266_s20 + $0x1ec] sm:$0xf] %vm2238_vm4, %v2814_v31  ;;  %v2812_v41 = vpack.c.bf16 %v1719_v37, %v1719_v37  ;;  %v1530_v44 = vmul.f32 0.2, %v1071_v34  ;;  %v1074_v45 = vpop.f32.mrb[63].mxu0 }
 0x164   : > { %v2753_v42 = vpack.c.bf16 %v1660_v38, %v1660_v38  ;;  %v1724_v43 = vsel %vm1468_vm2, %v3012_v30, %v1596_v33  ;;  %v1330_v46 = vpop.f32.mrb[63].mxu1  ;;  %2296 = vst.msk [vmem:[%s3266_s20 + $0xe4] sm:$0xf] %vm2238_vm4, %v2748_v36  ;;  %vm1466_vm5 = vcmp.ge.f32.partialorder %v1327_v35, 0.0  ;;  %v1594_v48 = vmul.f32 0.2, %v1327_v35 }
 0x165   : > { %v2817_v47 = vpack.c.bf16 %v1724_v43, %v1724_v43  ;;  %vm1405_vm6 = vcmp.ge.f32.partialorder %v2949_v39, 0.0  ;;  %2360 = vst.msk [vmem:[%s3266_s20 + $0x1e4] sm:$0xf] %vm2238_vm4, %v2812_v41  ;;  %v1658_v49 = vsel %vm1402_vm3, %v1071_v34, %v1530_v44  ;;  %v1533_v50 = vmul.f32 0.2, %v2949_v39 }
 0x166   : > { %2301 = vst.msk [vmem:[%s3266_s20 + $0xf8] sm:$0xf] %vm2238_vm4, %v2753_v42  ;;  %vm1469_vm7 = vcmp.ge.f32.partialorder %v3013_v40, 0.0  ;;  %v1597_v51 = vmul.f32 0.2, %v3013_v40  ;;  %v2751_v52 = vpack.c.bf16 %v1658_v49, %v1658_v49  ;;  %v1722_v53 = vsel %vm1466_vm5, %v1327_v35, %v1594_v48 }
 0x167   : > { %2365 = vst.msk [vmem:[%s3266_s20 + $0x1f8] sm:$0xf] %vm2238_vm4, %v2817_v47  ;;  %vm1403_vm8 = vcmp.ge.f32.partialorder %v1074_v45, 0.0  ;;  %v1531_v54 = vmul.f32 0.2, %v1074_v45  ;;  %v2815_v55 = vpack.c.bf16 %v1722_v53, %v1722_v53  ;;  %v1661_v56 = vsel %vm1405_vm6, %v2949_v39, %v1533_v50 }
 0x168   : > { %v1725_v57 = vsel %vm1469_vm7, %v3013_v40, %v1597_v51  ;;  %vm1467_vm9 = vcmp.ge.f32.partialorder %v1330_v46, 0.0  ;;  %2299 = vst.msk [vmem:[%s3266_s20 + $0xf0] sm:$0xf] %vm2238_vm4, %v2751_v52  ;;  %v2754_v58 = vpack.c.bf16 %v1661_v56, %v1661_v56  ;;  %v1595_v61 = vmul.f32 0.2, %v1330_v46 }
 0x169   : > { %v2818_v59 = vpack.c.bf16 %v1725_v57, %v1725_v57  ;;  %v1659_v60 = vsel %vm1403_vm8, %v1074_v45, %v1531_v54  ;;  %2363 = vst.msk [vmem:[%s3266_s20 + $0x1f0] sm:$0xf] %vm2238_vm4, %v2815_v55 }
 0x16a   : > { %v2752_v62 = vpack.c.bf16 %v1659_v60, %v1659_v60  ;;  %2302 = vst.msk [vmem:[%s3266_s20 + $0xfc] sm:$0xf] %vm2238_vm4, %v2754_v58  ;;  %v1723_v63 = vsel %vm1467_vm9, %v1330_v46, %v1595_v61 }
 0x16b   : > { %2366 = vst.msk [vmem:[%s3266_s20 + $0x1fc] sm:$0xf] %vm2238_vm4, %v2818_v59  ;;  %v2816_v0 = vpack.c.bf16 %v1723_v63, %v1723_v63 }
 0x16c   : > { %2300 = vst.msk [vmem:[%s3266_s20 + $0xf4] sm:$0xf] %vm2238_vm4, %v2752_v62 }
 0x16d   : > { %2364 = vst.msk [vmem:[%s3266_s20 + $0x1f4] sm:$0xf] %vm2238_vm4, %v2816_v0 }
 0x16e PF: > { %s12_s9 = sadd.s32 1, %s3095_s9  }
 0x16f   : > { %p9_p4 = scmp.ge.s32.totalorder %s12_s9, 4  }
 0x171   :  { %11 = sbr.rel (!%p9_p4) target bundleno = 1 (0x1), region = 58 }

// kernel: discriminator_forward.5
= control target key start
LH: loop header
LB: loop body
LE: loop exit
PB: predicated region body
PF: predicated region fallthrough
CT: control target
= control target key end

     0   :  { %v5178_v0 = vmov 0   ;;  %s7879_s1 = inlined_call_operand.vmem [shape: bf16[1024,128], index: 1, kind: input, shape index: {}]   ;;  %s7880_s0 = inlined_call_operand.vmem [shape: bf16[512,1024], index: 0, kind: input, shape index: {}]   ;;  %s7881_s2 = inlined_call_operand.vmem [shape: f32[1,128], index: 2, kind: input, shape index: {}]   ;;  %s7882_s3 = inlined_call_operand.vmem [shape: f32[1,128], index: 3, kind: input, shape index: {}]   ;;  %s7883_s4 = inlined_call_operand.vmem [shape: bf16[512,128], index: 4, kind: output, shape index: {}]  }
   0x1   :  { %2066 = vmatprep.subr.bf16.mxu1 %v5178_v0  ;;  %2644 = vmatprep.subr.bf16.mxu0 %v5178_v0  ;;  %v5112_v1 = vld [vmem:[%s7879_s1] sm:$0xff]   ;;  %v5114_v3 = vld [vmem:[%s7879_s1 + $0x8] sm:$0xff]   ;;  %v5116_v5 = vld [vmem:[%s7879_s1 + $0x10] sm:$0xff]  }
   0x2   :  { %v5113_v2 = vld [vmem:[%s7879_s1 + $0x100] sm:$0xff]   ;;  %2067 = vmatpush1.bf16.msra.mxu1 %v5112_v1  ;;  %v5115_v4 = vld [vmem:[%s7879_s1 + $0x108] sm:$0xff]   ;;  %v5117_v6 = vld [vmem:[%s7879_s1 + $0x110] sm:$0xff]  }
   0x3   :  { %2645 = vmatpush1.bf16.msra.mxu0 %v5113_v2  ;;  %2068 = vmatprep.subr.bf16.mxu1 %v5178_v0  ;;  %v5118_v7 = vld [vmem:[%s7879_s1 + $0x18] sm:$0xff]   ;;  %v5120_v9 = vld [vmem:[%s7879_s1 + $0x20] sm:$0xff]   ;;  %v5122_v11 = vld [vmem:[%s7879_s1 + $0x28] sm:$0xff]  }
   0x4   :  { %2646 = vmatprep.subr.bf16.mxu0 %v5178_v0  ;;  %v5119_v8 = vld [vmem:[%s7879_s1 + $0x118] sm:$0xff]   ;;  %v5121_v10 = vld [vmem:[%s7879_s1 + $0x120] sm:$0xff]   ;;  %v5123_v12 = vld [vmem:[%s7879_s1 + $0x128] sm:$0xff]  }
   0x5   :  { %v5124_v13 = vld [vmem:[%s7879_s1 + $0x30] sm:$0xff]   ;;  %v5126_v15 = vld [vmem:[%s7879_s1 + $0x38] sm:$0xff]   ;;  %v5128_v17 = vld [vmem:[%s7879_s1 + $0x40] sm:$0xff]  }
   0x6   :  { %2069 = vmatpush1.bf16.msra.mxu1 %v5114_v3  ;;  %v5125_v14 = vld [vmem:[%s7879_s1 + $0x130] sm:$0xff]   ;;  %v5127_v16 = vld [vmem:[%s7879_s1 + $0x138] sm:$0xff]   ;;  %v5129_v18 = vld [vmem:[%s7879_s1 + $0x140] sm:$0xff]  }
   0x7   :  { %2647 = vmatpush1.bf16.msra.mxu0 %v5115_v4  ;;  %2070 = vmatprep.subr.bf16.mxu1 %v5178_v0  ;;  %v5279_v19 = vld [vmem:[%s7880_s0] sm:$0xff]  ;;  %v5289_v21 = vld [vmem:[%s7880_s0 + $0x10] sm:$0xff]  ;;  %v5130_v24 = vld [vmem:[%s7879_s1 + $0x48] sm:$0xff]  }
   0x8   :  { %2648 = vmatprep.subr.bf16.mxu0 %v5178_v0  ;;  %v5284_v20 = vld [vmem:[%s7880_s0 + $0x20] sm:$0xff]  ;;  %v5296_v23 = vld [vmem:[%s7880_s0 + $0x30] sm:$0xff]  ;;  %v5131_v26 = vld [vmem:[%s7879_s1 + $0x148] sm:$0xff]  }
   0x9   :  { %v4152_v22 = vcombine.high %v5279_v19, %v5284_v20  ;;  %v4156_v25 = vcombine.high %v5289_v21, %v5296_v23  ;;  %v5132_v27 = vld [vmem:[%s7879_s1 + $0x50] sm:$0xff]   ;;  %v5134_v29 = vld [vmem:[%s7879_s1 + $0x58] sm:$0xff]   ;;  %v5136_v31 = vld [vmem:[%s7879_s1 + $0x60] sm:$0xff]   ;;  %v4151_v42 = vcombine.low %v5279_v19, %v5284_v20  ;;  %v4155_v44 = vcombine.low %v5289_v21, %v5296_v23 }
   0xa   :  { %2071 = vmatpush1.bf16.msra.mxu1 %v5116_v5  ;;  %v5133_v28 = vld [vmem:[%s7879_s1 + $0x150] sm:$0xff]   ;;  %v5135_v30 = vld [vmem:[%s7879_s1 + $0x158] sm:$0xff]   ;;  %v5137_v32 = vld [vmem:[%s7879_s1 + $0x160] sm:$0xff]  }
   0xb   :  { %2649 = vmatpush1.bf16.msra.mxu0 %v5117_v6  ;;  %2072 = vmatprep.subr.bf16.mxu1 %v5178_v0  ;;  %v5138_v33 = vld [vmem:[%s7879_s1 + $0x68] sm:$0xff]   ;;  %v5140_v35 = vld [vmem:[%s7879_s1 + $0x70] sm:$0xff]   ;;  %v5142_v37 = vld [vmem:[%s7879_s1 + $0x78] sm:$0xff]  }
   0xc   :  { %2650 = vmatprep.subr.bf16.mxu0 %v5178_v0  ;;  %2098 = vmatprep.mubr.bf16.mxu1 %v4152_v22  ;;  %v5139_v34 = vld [vmem:[%s7879_s1 + $0x168] sm:$0xff]   ;;  %v5141_v36 = vld [vmem:[%s7879_s1 + $0x170] sm:$0xff]   ;;  %v5143_v38 = vld [vmem:[%s7879_s1 + $0x178] sm:$0xff]  }
   0xd   :  { %2676 = vmatprep.mubr.bf16.mxu0 %v4156_v25  ;;  %v26_v39 = vld [vmem:[%s7880_s0 + $0x40] sm:$0xff]  ;;  %v28_v41 = vld [vmem:[%s7880_s0 + $0x50] sm:$0xff]  ;;  %v5146_v51 = vld [vmem:[%s7879_s1 + $0x88] sm:$0xff]  }
   0xe   :  { %2073 = vmatpush1.bf16.msra.mxu1 %v5118_v7  ;;  %v30_v40 = vld [vmem:[%s7880_s0 + $0x60] sm:$0xff]  ;;  %v32_v43 = vld [vmem:[%s7880_s0 + $0x70] sm:$0xff]  ;;  %v5147_v52 = vld [vmem:[%s7879_s1 + $0x188] sm:$0xff]  }
   0xf   :  { %2651 = vmatpush1.bf16.msra.mxu0 %v5119_v8  ;;  %2074 = vmatprep.subr.bf16.mxu1 %v5178_v0  ;;  %v5144_v45 = vld [vmem:[%s7879_s1 + $0x80] sm:$0xff]   ;;  %v4160_v47 = vcombine.high %v26_v39, %v30_v40  ;;  %v4164_v48 = vcombine.high %v28_v41, %v32_v43  ;;  %v36_v53 = vld [vmem:[%s7880_s0 + $0x90] sm:$0xff]  ;;  %v4159_v55 = vcombine.low %v26_v39, %v30_v40  ;;  %v5150_v2 = vld [vmem:[%s7879_s1 + $0x98] sm:$0xff]  }
  0x10   :  { %2652 = vmatprep.subr.bf16.mxu0 %v5178_v0  ;;  %v5145_v46 = vld [vmem:[%s7879_s1 + $0x180] sm:$0xff]   ;;  %v40_v54 = vld [vmem:[%s7880_s0 + $0xb0] sm:$0xff]  ;;  %v4163_v56 = vcombine.low %v28_v41, %v32_v43  ;;  %v5151_v3 = vld [vmem:[%s7879_s1 + $0x198] sm:$0xff]  }
  0x11   :  { %v34_v49 = vld [vmem:[%s7880_s0 + $0x80] sm:$0xff]  ;;  %v4172_v58 = vcombine.high %v36_v53, %v40_v54  ;;  %v5148_v59 = vld [vmem:[%s7879_s1 + $0x90] sm:$0xff]   ;;  %v4171_v6 = vcombine.low %v36_v53, %v40_v54  ;;  %v5163_v39 = vld [vmem:[%s7879_s1 + $0x1c8] sm:$0xff]  }
  0x12   :  { %2075 = vmatpush1.bf16.msra.mxu1 %v5120_v9  ;;  %v38_v50 = vld [vmem:[%s7880_s0 + $0xa0] sm:$0xff]  ;;  %v5149_v60 = vld [vmem:[%s7879_s1 + $0x190] sm:$0xff]   ;;  %v5166_v54 = vld [vmem:[%s7879_s1 + $0xd8] sm:$0xff]  }
  0x13   :  { %2653 = vmatpush1.bf16.msra.mxu0 %v5121_v10  ;;  %2076 = vmatprep.subr.bf16.mxu1 %v5178_v0  ;;  %v4168_v57 = vcombine.high %v34_v49, %v38_v50  ;;  %v42_v61 = vld [vmem:[%s7880_s0 + $0xc0] sm:$0xff]  ;;  %v44_v63 = vld [vmem:[%s7880_s0 + $0xd0] sm:$0xff]  ;;  %v4167_v4 = vcombine.low %v34_v49, %v38_v50 }
  0x14   :  { %2654 = vmatprep.subr.bf16.mxu0 %v5178_v0  ;;  %v46_v62 = vld [vmem:[%s7880_s0 + $0xe0] sm:$0xff]  ;;  %v48_v1 = vld [vmem:[%s7880_s0 + $0xf0] sm:$0xff] }
  0x15   :  { %v5152_v5 = vld [vmem:[%s7879_s1 + $0xa0] sm:$0xff]   ;;  %v4176_v7 = vcombine.high %v42_v61, %v46_v62  ;;  %v4180_v9 = vcombine.high %v44_v63, %v48_v1  ;;  %v5156_v20 = vld [vmem:[%s7879_s1 + $0xb0] sm:$0xff]  }
  0x16   :  { %2077 = vmatpush1.bf16.msra.mxu1 %v5122_v11  ;;  %v5153_v8 = vld [vmem:[%s7879_s1 + $0x1a0] sm:$0xff]   ;;  %v5157_v21 = vld [vmem:[%s7879_s1 + $0x1b0] sm:$0xff]  }
  0x17   :  { %2655 = vmatpush1.bf16.msra.mxu0 %v5123_v12  ;;  %2078 = vmatprep.subr.bf16.mxu1 %v5178_v0  ;;  %v50_v10 = vld [vmem:[%s7880_s0 + $0x100] sm:$0xff]  ;;  %v52_v12 = vld [vmem:[%s7880_s0 + $0x110] sm:$0xff] }
  0x18   :  { %2656 = vmatprep.subr.bf16.mxu0 %v5178_v0  ;;  %v54_v11 = vld [vmem:[%s7880_s0 + $0x120] sm:$0xff]  ;;  %v60_v25 = vld [vmem:[%s7880_s0 + $0x150] sm:$0xff] }
  0x19   :  { %v58_v22 = vld [vmem:[%s7880_s0 + $0x140] sm:$0xff]  ;;  %v80_v49 = vld [vmem:[%s7880_s0 + $0x1f0] sm:$0xff] }
  0x1a   :  { %2079 = vmatpush1.bf16.msra.mxu1 %v5124_v13  ;;  %v56_v13 = vld [vmem:[%s7880_s0 + $0x130] sm:$0xff]  ;;  %v62_v23 = vld [vmem:[%s7880_s0 + $0x160] sm:$0xff] }
  0x1b   :  { %2657 = vmatpush1.bf16.msra.mxu0 %v5125_v14  ;;  %2080 = vmatprep.subr.bf16.mxu1 %v5178_v0  ;;  %v5154_v14 = vld [vmem:[%s7879_s1 + $0xa8] sm:$0xff]   ;;  %v4188_v19 = vcombine.high %v52_v12, %v56_v13  ;;  %v4191_v40 = vcombine.low %v58_v22, %v62_v23 }
  0x1c   :  { %2658 = vmatprep.subr.bf16.mxu0 %v5178_v0 }
  0x1e   :  { %2081 = vmatpush1.bf16.msra.mxu1 %v5126_v15  ;;  %v5155_v15 = vld [vmem:[%s7879_s1 + $0x1a8] sm:$0xff]  }
  0x1f   :  { %2659 = vmatpush1.bf16.msra.mxu0 %v5127_v16  ;;  %2082 = vmatprep.subr.bf16.mxu1 %v5178_v0  ;;  %v4175_v16 = vcombine.low %v42_v61, %v46_v62 }
  0x20   :  { %2660 = vmatprep.subr.bf16.mxu0 %v5178_v0 }
  0x22   :  { %2083 = vmatpush1.bf16.msra.mxu1 %v5128_v17  ;;  %v4179_v17 = vcombine.low %v44_v63, %v48_v1  ;;  %v90_v1 = vld [vmem:[%s7880_s0 + $0x240] sm:$0xff] }
  0x23   :  { %2661 = vmatpush1.bf16.msra.mxu0 %v5129_v18  ;;  %2084 = vmatprep.subr.bf16.mxu1 %v5178_v0  ;;  %v4184_v18 = vcombine.high %v50_v10, %v54_v11 }
  0x24   :  { %2662 = vmatprep.subr.bf16.mxu0 %v5178_v0 }
  0x26   :  { %2085 = vmatpush1.bf16.msra.mxu1 %v5130_v24  ;;  %v5158_v24 = vld [vmem:[%s7879_s1 + $0xb8] sm:$0xff]  }
  0x27   :  { %2663 = vmatpush1.bf16.msra.mxu0 %v5131_v26  ;;  %2086 = vmatprep.subr.bf16.mxu1 %v5178_v0  ;;  %v64_v26 = vld [vmem:[%s7880_s0 + $0x170] sm:$0xff] }
  0x28   :  { %2664 = vmatprep.subr.bf16.mxu0 %v5178_v0  ;;  %v4195_v41 = vcombine.low %v60_v25, %v64_v26 }
  0x2a   :  { %2087 = vmatpush1.bf16.msra.mxu1 %v5132_v27  ;;  %v5159_v27 = vld [vmem:[%s7879_s1 + $0x1b8] sm:$0xff]  }
  0x2b   :  { %2665 = vmatpush1.bf16.msra.mxu0 %v5133_v28  ;;  %2088 = vmatprep.subr.bf16.mxu1 %v5178_v0  ;;  %v4183_v28 = vcombine.low %v50_v10, %v54_v11  ;;  %v5169_v10 = vld [vmem:[%s7879_s1 + $0x1e0] sm:$0xff]  }
  0x2c   :  { %2666 = vmatprep.subr.bf16.mxu0 %v5178_v0  ;;  %v98_v11 = vld [vmem:[%s7880_s0 + $0x280] sm:$0xff] }
  0x2e   :  { %2089 = vmatpush1.bf16.msra.mxu1 %v5134_v29  ;;  %v4187_v29 = vcombine.low %v52_v12, %v56_v13  ;;  %v102_v12 = vld [vmem:[%s7880_s0 + $0x2a0] sm:$0xff]  ;;  %v100_v13 = vld [vmem:[%s7880_s0 + $0x290] sm:$0xff] }
  0x2f   :  { %2667 = vmatpush1.bf16.msra.mxu0 %v5135_v30  ;;  %2090 = vmatprep.subr.bf16.mxu1 %v5178_v0  ;;  %v4192_v30 = vcombine.high %v58_v22, %v62_v23  ;;  %v112_v22 = vld [vmem:[%s7880_s0 + $0x2f0] sm:$0xff]  ;;  %v4231_v23 = vcombine.low %v98_v11, %v102_v12 }
  0x30   :  { %2668 = vmatprep.subr.bf16.mxu0 %v5178_v0 }
  0x32   :  { %2091 = vmatpush1.bf16.msra.mxu1 %v5136_v31  ;;  %v4196_v31 = vcombine.high %v60_v25, %v64_v26 }
  0x33   :  { %2669 = vmatpush1.bf16.msra.mxu0 %v5137_v32  ;;  %2092 = vmatprep.subr.bf16.mxu1 %v5178_v0  ;;  %v5160_v32 = vld [vmem:[%s7879_s1 + $0xc0] sm:$0xff]  }
  0x34   :  { %2670 = vmatprep.subr.bf16.mxu0 %v5178_v0 }
  0x36   :  { %2093 = vmatpush1.bf16.msra.mxu1 %v5138_v33  ;;  %v5161_v33 = vld [vmem:[%s7879_s1 + $0x1c0] sm:$0xff]  }
  0x37   :  { %2671 = vmatpush1.bf16.msra.mxu0 %v5139_v34  ;;  %2094 = vmatprep.subr.bf16.mxu1 %v5178_v0  ;;  %v66_v34 = vld [vmem:[%s7880_s0 + $0x180] sm:$0xff] }
  0x38   :  { %2672 = vmatprep.subr.bf16.mxu0 %v5178_v0 }
  0x3a   :  { %2095 = vmatpush1.bf16.msra.mxu1 %v5140_v35  ;;  %v70_v35 = vld [vmem:[%s7880_s0 + $0x1a0] sm:$0xff] }
  0x3b   :  { %2673 = vmatpush1.bf16.msra.mxu0 %v5141_v36  ;;  %2096 = vmatprep.subr.bf16.mxu1 %v5178_v0  ;;  %v5162_v36 = vld [vmem:[%s7879_s1 + $0xc8] sm:$0xff]   ;;  %v4199_v50 = vcombine.low %v66_v34, %v70_v35 }
  0x3c   :  { %2674 = vmatprep.subr.bf16.mxu0 %v5178_v0 }
  0x3e   :  { %2097 = vmatpush1.bf16.msra.mxu1 %v5142_v37  ;;  %v68_v37 = vld [vmem:[%s7880_s0 + $0x190] sm:$0xff] }
  0x3f   :  { %2675 = vmatpush1.bf16.msra.mxu0 %v5143_v38  ;;  %2355 = vmatprep.subr.bf16.mxu1 %v5178_v0  ;;  %v72_v38 = vld [vmem:[%s7880_s0 + $0x1b0] sm:$0xff] }
  0x40   :  { %2933 = vmatprep.subr.bf16.mxu0 %v5178_v0  ;;  %v4204_v43 = vcombine.high %v68_v37, %v72_v38 }
  0x41   :  { %2099 = vmatmul.mubr.bf16.vlgmr.msra.gmra.mrb[0].mxu1 %v4151_v42  ;;  %v4200_v42 = vcombine.high %v66_v34, %v70_v35 }
  0x42   :  { %2677 = vmatmul.mubr.bf16.vlgmr.msra.gmra.mrb[0].mxu0 %v4155_v44  ;;  %2356 = vmatpush1.bf16.msra.mxu1 %v5144_v45  ;;  %v5164_v44 = vld [vmem:[%s7879_s1 + $0xd0] sm:$0xff]  }
  0x43   :  { %2934 = vmatpush1.bf16.msra.mxu0 %v5145_v46  ;;  %2106 = vmatprep.mubr.bf16.mxu1 %v4160_v47  ;;  %v5165_v45 = vld [vmem:[%s7879_s1 + $0x1d0] sm:$0xff]   ;;  %v74_v46 = vld [vmem:[%s7880_s0 + $0x1c0] sm:$0xff] }
  0x44   :  { %2684 = vmatprep.mubr.bf16.mxu0 %v4164_v48  ;;  %2357 = vmatprep.subr.bf16.mxu1 %v5178_v0  ;;  %v78_v47 = vld [vmem:[%s7880_s0 + $0x1e0] sm:$0xff]  ;;  %v76_v48 = vld [vmem:[%s7880_s0 + $0x1d0] sm:$0xff] }
  0x45   :  { %2935 = vmatprep.subr.bf16.mxu0 %v5178_v0  ;;  %v4212_v53 = vcombine.high %v76_v48, %v80_v49  ;;  %v4211_v61 = vcombine.low %v76_v48, %v80_v49  ;;  %v134_v48 = vld [vmem:[%s7880_s0 + $0x3a0] sm:$0xff]  ;;  %v132_v49 = vld [vmem:[%s7880_s0 + $0x390] sm:$0xff] }
  0x46   :  { %2358 = vmatpush1.bf16.msra.mxu1 %v5146_v51  ;;  %v4203_v51 = vcombine.low %v68_v37, %v72_v38  ;;  %v122_v37 = vld [vmem:[%s7880_s0 + $0x340] sm:$0xff] }
  0x47   :  { %2936 = vmatpush1.bf16.msra.mxu0 %v5147_v52  ;;  %2359 = vmatprep.subr.bf16.mxu1 %v5178_v0  ;;  %v4208_v52 = vcombine.high %v74_v46, %v78_v47  ;;  %v126_v38 = vld [vmem:[%s7880_s0 + $0x360] sm:$0xff] }
  0x48   :  { %2937 = vmatprep.subr.bf16.mxu0 %v5178_v0 }
  0x49   :  { %2107 = vmatmul.mubr.bf16.gmra.mrb[4].mxu1 %v4159_v55  ;;  %v5167_v55 = vld [vmem:[%s7879_s1 + $0x1d8] sm:$0xff]  }
  0x4a   :  { %2685 = vmatmul.mubr.bf16.gmra.mrb[4].mxu0 %v4163_v56  ;;  %2114 = vmatprep.mubr.bf16.mxu1 %v4168_v57  ;;  %v82_v56 = vld [vmem:[%s7880_s0 + $0x200] sm:$0xff] }
  0x4b   :  { %2692 = vmatprep.mubr.bf16.mxu0 %v4172_v58  ;;  %2360 = vmatpush1.bf16.msra.mxu1 %v5148_v59  ;;  %v86_v57 = vld [vmem:[%s7880_s0 + $0x220] sm:$0xff]  ;;  %v84_v58 = vld [vmem:[%s7880_s0 + $0x210] sm:$0xff] }
  0x4c   :  { %2938 = vmatpush1.bf16.msra.mxu0 %v5149_v60  ;;  %2361 = vmatprep.subr.bf16.mxu1 %v5178_v0  ;;  %v88_v59 = vld [vmem:[%s7880_s0 + $0x230] sm:$0xff]  ;;  %v4207_v60 = vcombine.low %v74_v46, %v78_v47  ;;  %v4216_v62 = vcombine.high %v82_v56, %v86_v57  ;;  %v130_v47 = vld [vmem:[%s7880_s0 + $0x380] sm:$0xff] }
  0x4d   :  { %2939 = vmatprep.subr.bf16.mxu0 %v5178_v0  ;;  %v4220_v63 = vcombine.high %v84_v58, %v88_v59  ;;  %v5173_v46 = vld [vmem:[%s7879_s1 + $0x1f0] sm:$0xff]  }
  0x4f   :  { %2362 = vmatpush1.bf16.msra.mxu1 %v5150_v2  ;;  %v94_v2 = vld [vmem:[%s7880_s0 + $0x260] sm:$0xff] }
  0x50   :  { %2940 = vmatpush1.bf16.msra.mxu0 %v5151_v3  ;;  %2363 = vmatprep.subr.bf16.mxu1 %v5178_v0  ;;  %v92_v3 = vld [vmem:[%s7880_s0 + $0x250] sm:$0xff] }
  0x51   :  { %2115 = vmatmul.mubr.bf16.gmra.mrb[8].mxu1 %v4167_v4  ;;  %2941 = vmatprep.subr.bf16.mxu0 %v5178_v0  ;;  %v96_v4 = vld [vmem:[%s7880_s0 + $0x270] sm:$0xff] }
  0x52   :  { %2693 = vmatmul.mubr.bf16.gmra.mrb[8].mxu0 %v4171_v6  ;;  %2122 = vmatprep.mubr.bf16.mxu1 %v4176_v7  ;;  %v4219_v6 = vcombine.low %v84_v58, %v88_v59  ;;  %v4224_v7 = vcombine.high %v90_v1, %v94_v2  ;;  %v4263_v58 = vcombine.low %v130_v47, %v134_v48 }
  0x53   :  { %2700 = vmatprep.mubr.bf16.mxu0 %v4180_v9  ;;  %2364 = vmatpush1.bf16.msra.mxu1 %v5152_v5  ;;  %v4215_v5 = vcombine.low %v82_v56, %v86_v57  ;;  %v5168_v9 = vld [vmem:[%s7879_s1 + $0xe0] sm:$0xff]   ;;  %v140_v57 = vld [vmem:[%s7880_s0 + $0x3d0] sm:$0xff] }
  0x54   :  { %2942 = vmatpush1.bf16.msra.mxu0 %v5153_v8  ;;  %2365 = vmatprep.subr.bf16.mxu1 %v5178_v0  ;;  %v4228_v8 = vcombine.high %v92_v3, %v96_v4  ;;  %v142_v56 = vld [vmem:[%s7880_s0 + $0x3e0] sm:$0xff] }
  0x55   :  { %2943 = vmatprep.subr.bf16.mxu0 %v5178_v0 }
  0x57   :  { %2366 = vmatpush1.bf16.msra.mxu1 %v5154_v14  ;;  %v104_v14 = vld [vmem:[%s7880_s0 + $0x2b0] sm:$0xff] }
  0x58   :  { %2944 = vmatpush1.bf16.msra.mxu0 %v5155_v15  ;;  %2367 = vmatprep.subr.bf16.mxu1 %v5178_v0  ;;  %v4223_v15 = vcombine.low %v90_v1, %v94_v2  ;;  %v146_v1 = vld [vmem:[%s7880_s0 + $0x400] sm:$0xff] }
  0x59   :  { %2123 = vmatmul.mubr.bf16.gmra.mrb[12].mxu1 %v4175_v16  ;;  %2945 = vmatprep.subr.bf16.mxu0 %v5178_v0  ;;  %v4227_v16 = vcombine.low %v92_v3, %v96_v4  ;;  %v150_v2 = vld [vmem:[%s7880_s0 + $0x420] sm:$0xff]  ;;  %v148_v3 = vld [vmem:[%s7880_s0 + $0x410] sm:$0xff] }
  0x5a   :  { %2701 = vmatmul.mubr.bf16.gmra.mrb[12].mxu0 %v4179_v17  ;;  %2130 = vmatprep.mubr.bf16.mxu1 %v4184_v18  ;;  %v4232_v17 = vcombine.high %v98_v11, %v102_v12  ;;  %v4236_v18 = vcombine.high %v100_v13, %v104_v14  ;;  %v152_v4 = vld [vmem:[%s7880_s0 + $0x430] sm:$0xff] }
  0x5b   :  { %2708 = vmatprep.mubr.bf16.mxu0 %v4188_v19  ;;  %2368 = vmatpush1.bf16.msra.mxu1 %v5156_v20  ;;  %v106_v19 = vld [vmem:[%s7880_s0 + $0x2c0] sm:$0xff]  ;;  %v156_v11 = vld [vmem:[%s7880_s0 + $0x450] sm:$0xff] }
  0x5c   :  { %2946 = vmatpush1.bf16.msra.mxu0 %v5157_v21  ;;  %2369 = vmatprep.subr.bf16.mxu1 %v5178_v0  ;;  %v110_v20 = vld [vmem:[%s7880_s0 + $0x2e0] sm:$0xff]  ;;  %v108_v21 = vld [vmem:[%s7880_s0 + $0x2d0] sm:$0xff] }
  0x5d   :  { %2947 = vmatprep.subr.bf16.mxu0 %v5178_v0  ;;  %v4240_v25 = vcombine.high %v106_v19, %v110_v20  ;;  %v4244_v26 = vcombine.high %v108_v21, %v112_v22  ;;  %v4243_v34 = vcombine.low %v108_v21, %v112_v22  ;;  %v160_v12 = vld [vmem:[%s7880_s0 + $0x470] sm:$0xff] }
  0x5e   :  { %v4291_v22 = vcombine.low %v156_v11, %v160_v12 }
  0x5f   :  { %2370 = vmatpush1.bf16.msra.mxu1 %v5158_v24  ;;  %v4235_v24 = vcombine.low %v100_v13, %v104_v14  ;;  %v4279_v13 = vcombine.low %v146_v1, %v150_v2  ;;  %v4283_v14 = vcombine.low %v148_v3, %v152_v4 }
  0x60   :  { %2948 = vmatpush1.bf16.msra.mxu0 %v5159_v27  ;;  %2371 = vmatprep.subr.bf16.mxu1 %v5178_v0  ;;  %v5170_v27 = vld [vmem:[%s7879_s1 + $0xe8] sm:$0xff]  }
  0x61   :  { %2131 = vmatmul.mubr.bf16.gmra.mrb[16].mxu1 %v4183_v28  ;;  %2949 = vmatprep.subr.bf16.mxu0 %v5178_v0  ;;  %v5171_v28 = vld [vmem:[%s7879_s1 + $0x1e8] sm:$0xff]  }
  0x62   :  { %2709 = vmatmul.mubr.bf16.gmra.mrb[16].mxu0 %v4187_v29  ;;  %2138 = vmatprep.mubr.bf16.mxu1 %v4192_v30  ;;  %v114_v29 = vld [vmem:[%s7880_s0 + $0x300] sm:$0xff] }
  0x63   :  { %2716 = vmatprep.mubr.bf16.mxu0 %v4196_v31  ;;  %2372 = vmatpush1.bf16.msra.mxu1 %v5160_v32  ;;  %v118_v30 = vld [vmem:[%s7880_s0 + $0x320] sm:$0xff]  ;;  %v116_v31 = vld [vmem:[%s7880_s0 + $0x310] sm:$0xff] }
  0x64   :  { %2950 = vmatpush1.bf16.msra.mxu0 %v5161_v33  ;;  %2373 = vmatprep.subr.bf16.mxu1 %v5178_v0  ;;  %v120_v32 = vld [vmem:[%s7880_s0 + $0x330] sm:$0xff]  ;;  %v4239_v33 = vcombine.low %v106_v19, %v110_v20  ;;  %v4248_v35 = vcombine.high %v114_v29, %v118_v30 }
  0x65   :  { %2951 = vmatprep.subr.bf16.mxu0 %v5178_v0  ;;  %v164_v19 = vld [vmem:[%s7880_s0 + $0x490] sm:$0xff] }
  0x66   :  { %v168_v20 = vld [vmem:[%s7880_s0 + $0x4b0] sm:$0xff] }
  0x67   :  { %2374 = vmatpush1.bf16.msra.mxu1 %v5162_v36  ;;  %v4252_v36 = vcombine.high %v116_v31, %v120_v32 }
  0x68   :  { %2952 = vmatpush1.bf16.msra.mxu0 %v5163_v39  ;;  %2375 = vmatprep.subr.bf16.mxu1 %v5178_v0  ;;  %v124_v39 = vld [vmem:[%s7880_s0 + $0x350] sm:$0xff] }
  0x69   :  { %2139 = vmatmul.mubr.bf16.gmra.mrb[20].mxu1 %v4191_v40  ;;  %2953 = vmatprep.subr.bf16.mxu0 %v5178_v0  ;;  %v128_v40 = vld [vmem:[%s7880_s0 + $0x370] sm:$0xff] }
  0x6a   :  { %2717 = vmatmul.mubr.bf16.gmra.mrb[20].mxu0 %v4195_v41  ;;  %2146 = vmatprep.mubr.bf16.mxu1 %v4200_v42  ;;  %v4247_v41 = vcombine.low %v114_v29, %v118_v30  ;;  %v4251_v42 = vcombine.low %v116_v31, %v120_v32  ;;  %v4299_v30 = vcombine.low %v164_v19, %v168_v20 }
  0x6b   :  { %2724 = vmatprep.mubr.bf16.mxu0 %v4204_v43  ;;  %2376 = vmatpush1.bf16.msra.mxu1 %v5164_v44  ;;  %v4256_v43 = vcombine.high %v122_v37, %v126_v38  ;;  %v4260_v44 = vcombine.high %v124_v39, %v128_v40 }
  0x6c   :  { %2954 = vmatpush1.bf16.msra.mxu0 %v5165_v45  ;;  %2377 = vmatprep.subr.bf16.mxu1 %v5178_v0  ;;  %v5172_v45 = vld [vmem:[%s7879_s1 + $0xf0] sm:$0xff]  }
  0x6d   :  { %2955 = vmatprep.subr.bf16.mxu0 %v5178_v0 }
  0x6f   :  { %2378 = vmatpush1.bf16.msra.mxu1 %v5166_v54 }
  0x70   :  { %2956 = vmatpush1.bf16.msra.mxu0 %v5167_v55  ;;  %2379 = vmatprep.subr.bf16.mxu1 %v5178_v0  ;;  %v138_v55 = vld [vmem:[%s7880_s0 + $0x3c0] sm:$0xff] }
  0x71   :  { %2147 = vmatmul.mubr.bf16.gmra.mrb[24].mxu1 %v4199_v50  ;;  %2957 = vmatprep.subr.bf16.mxu0 %v5178_v0  ;;  %v136_v50 = vld [vmem:[%s7880_s0 + $0x3b0] sm:$0xff] }
  0x72   :  { %2725 = vmatmul.mubr.bf16.gmra.mrb[24].mxu0 %v4203_v51  ;;  %2154 = vmatprep.mubr.bf16.mxu1 %v4208_v52  ;;  %v4255_v51 = vcombine.low %v122_v37, %v126_v38  ;;  %v4259_v52 = vcombine.low %v124_v39, %v128_v40  ;;  %v4268_v54 = vcombine.high %v132_v49, %v136_v50 }
  0x73   :  { %2732 = vmatprep.mubr.bf16.mxu0 %v4212_v53  ;;  %2380 = vmatpush1.bf16.msra.mxu1 %v5168_v9  ;;  %v4264_v53 = vcombine.high %v130_v47, %v134_v48  ;;  %v4267_v59 = vcombine.low %v132_v49, %v136_v50  ;;  %v154_v9 = vld [vmem:[%s7880_s0 + $0x440] sm:$0xff] }
  0x74   :  { %2958 = vmatpush1.bf16.msra.mxu0 %v5169_v10  ;;  %2381 = vmatprep.subr.bf16.mxu1 %v5178_v0  ;;  %v158_v10 = vld [vmem:[%s7880_s0 + $0x460] sm:$0xff] }
  0x75   :  { %2959 = vmatprep.subr.bf16.mxu0 %v5178_v0  ;;  %v4287_v21 = vcombine.low %v154_v9, %v158_v10  ;;  %v194_v49 = vld [vmem:[%s7880_s0 + $0x580] sm:$0xff] }
  0x76   :  { %v198_v50 = vld [vmem:[%s7880_s0 + $0x5a0] sm:$0xff] }
  0x77   :  { %2382 = vmatpush1.bf16.msra.mxu1 %v5170_v27  ;;  %v172_v27 = vld [vmem:[%s7880_s0 + $0x4d0] sm:$0xff] }
  0x78   :  { %2960 = vmatpush1.bf16.msra.mxu0 %v5171_v28  ;;  %2383 = vmatprep.subr.bf16.mxu1 %v5178_v0  ;;  %v176_v28 = vld [vmem:[%s7880_s0 + $0x4f0] sm:$0xff] }
  0x79   :  { %2155 = vmatmul.mubr.bf16.gmra.mrb[28].mxu1 %v4207_v60  ;;  %2961 = vmatprep.subr.bf16.mxu0 %v5178_v0  ;;  %v4272_v60 = vcombine.high %v138_v55, %v142_v56  ;;  %v4308_v32 = vcombine.high %v172_v27, %v176_v28  ;;  %v4307_v38 = vcombine.low %v172_v27, %v176_v28  ;;  %v236_v27 = vld [vmem:[%s7880_s0 + $0x6d0] sm:$0xff] }
  0x7a   :  { %2733 = vmatmul.mubr.bf16.gmra.mrb[28].mxu0 %v4211_v61  ;;  %2162 = vmatprep.mubr.bf16.mxu1 %v4216_v62  ;;  %v5174_v62 = vld [vmem:[%s7879_s1 + $0xf8] sm:$0xff]   ;;  %v240_v28 = vld [vmem:[%s7880_s0 + $0x6f0] sm:$0xff] }
  0x7b   :  { %2740 = vmatprep.mubr.bf16.mxu0 %v4220_v63  ;;  %2384 = vmatpush1.bf16.msra.mxu1 %v5172_v45  ;;  %v5175_v63 = vld [vmem:[%s7879_s1 + $0x1f8] sm:$0xff]  }
  0x7c   :  { %2962 = vmatpush1.bf16.msra.mxu0 %v5173_v46  ;;  %2385 = vmatprep.subr.bf16.mxu1 %v5178_v0 }
  0x7d   :  { %2963 = vmatprep.subr.bf16.mxu0 %v5178_v0  ;;  %v144_v0 = vld [vmem:[%s7880_s0 + $0x3f0] sm:$0xff] }
  0x7e   :  { %v4276_v61 = vcombine.high %v140_v57, %v144_v0 }
  0x7f   :  { %2386 = vmatpush1.bf16.msra.mxu1 %v5174_v62 }
  0x80   :  { %2964 = vmatpush1.bf16.msra.mxu0 %v5175_v63 }
  0x81   :  { %2163 = vmatmul.mubr.bf16.gmra.mrb[32].mxu1 %v4215_v5  ;;  %v4271_v5 = vcombine.low %v138_v55, %v142_v56  ;;  %v4328_v55 = vcombine.high %v194_v49, %v198_v50 }
  0x82   :  { %2741 = vmatmul.mubr.bf16.gmra.mrb[32].mxu0 %v4219_v6  ;;  %2170 = vmatprep.mubr.bf16.mxu1 %v4224_v7  ;;  %v4275_v6 = vcombine.low %v140_v57, %v144_v0  ;;  %v4280_v7 = vcombine.high %v146_v1, %v150_v2  ;;  %v202_v57 = vld [vmem:[%s7880_s0 + $0x5c0] sm:$0xff] }
  0x83   :  { %2748 = vmatprep.mubr.bf16.mxu0 %v4228_v8  ;;  %v4284_v8 = vcombine.high %v148_v3, %v152_v4  ;;  %v206_v0 = vld [vmem:[%s7880_s0 + $0x5e0] sm:$0xff]  ;;  %v212_v3 = vld [vmem:[%s7880_s0 + $0x610] sm:$0xff] }
  0x84   :  { %v4336_v62 = vcombine.high %v202_v57, %v206_v0  ;;  %v210_v1 = vld [vmem:[%s7880_s0 + $0x600] sm:$0xff]  ;;  %v216_v4 = vld [vmem:[%s7880_s0 + $0x630] sm:$0xff] }
  0x85   :  { %v214_v2 = vld [vmem:[%s7880_s0 + $0x620] sm:$0xff] }
  0x89   :  { %2171 = vmatmul.mubr.bf16.gmra.mrb[36].mxu1 %v4223_v15  ;;  %v4288_v15 = vcombine.high %v154_v9, %v158_v10  ;;  %v218_v9 = vld [vmem:[%s7880_s0 + $0x640] sm:$0xff] }
  0x8a   :  { %2749 = vmatmul.mubr.bf16.gmra.mrb[36].mxu0 %v4227_v16  ;;  %2178 = vmatprep.mubr.bf16.mxu1 %v4232_v17  ;;  %v4292_v16 = vcombine.high %v156_v11, %v160_v12  ;;  %v162_v17 = vld [vmem:[%s7880_s0 + $0x480] sm:$0xff]  ;;  %v220_v11 = vld [vmem:[%s7880_s0 + $0x650] sm:$0xff] }
  0x8b   :  { %2756 = vmatprep.mubr.bf16.mxu0 %v4236_v18  ;;  %v166_v18 = vld [vmem:[%s7880_s0 + $0x4a0] sm:$0xff]  ;;  %v224_v12 = vld [vmem:[%s7880_s0 + $0x670] sm:$0xff] }
  0x8c   :  { %v4295_v29 = vcombine.low %v162_v17, %v166_v18  ;;  %v222_v10 = vld [vmem:[%s7880_s0 + $0x660] sm:$0xff] }
  0x91   :  { %2179 = vmatmul.mubr.bf16.gmra.mrb[40].mxu1 %v4231_v23  ;;  %v4296_v23 = vcombine.high %v162_v17, %v166_v18  ;;  %v226_v17 = vld [vmem:[%s7880_s0 + $0x680] sm:$0xff] }
  0x92   :  { %2757 = vmatmul.mubr.bf16.gmra.mrb[40].mxu0 %v4235_v24  ;;  %2186 = vmatprep.mubr.bf16.mxu1 %v4240_v25  ;;  %v4300_v24 = vcombine.high %v164_v19, %v168_v20  ;;  %v170_v25 = vld [vmem:[%s7880_s0 + $0x4c0] sm:$0xff]  ;;  %v228_v19 = vld [vmem:[%s7880_s0 + $0x690] sm:$0xff] }
  0x93   :  { %2764 = vmatprep.mubr.bf16.mxu0 %v4244_v26  ;;  %v174_v26 = vld [vmem:[%s7880_s0 + $0x4e0] sm:$0xff]  ;;  %v232_v20 = vld [vmem:[%s7880_s0 + $0x6b0] sm:$0xff] }
  0x94   :  { %v4304_v31 = vcombine.high %v170_v25, %v174_v26  ;;  %v4303_v37 = vcombine.low %v170_v25, %v174_v26  ;;  %v230_v18 = vld [vmem:[%s7880_s0 + $0x6a0] sm:$0xff] }
  0x95   :  { %v234_v25 = vld [vmem:[%s7880_s0 + $0x6c0] sm:$0xff] }
  0x96   :  { %v238_v26 = vld [vmem:[%s7880_s0 + $0x6e0] sm:$0xff] }
  0x99   :  { %2187 = vmatmul.mubr.bf16.gmra.mrb[44].mxu1 %v4239_v33  ;;  %v178_v33 = vld [vmem:[%s7880_s0 + $0x500] sm:$0xff] }
  0x9a   :  { %2765 = vmatmul.mubr.bf16.gmra.mrb[44].mxu0 %v4243_v34  ;;  %2194 = vmatprep.mubr.bf16.mxu1 %v4248_v35  ;;  %v182_v34 = vld [vmem:[%s7880_s0 + $0x520] sm:$0xff]  ;;  %v180_v35 = vld [vmem:[%s7880_s0 + $0x510] sm:$0xff] }
  0x9b   :  { %2772 = vmatprep.mubr.bf16.mxu0 %v4252_v36  ;;  %v184_v36 = vld [vmem:[%s7880_s0 + $0x530] sm:$0xff]  ;;  %v4312_v39 = vcombine.high %v178_v33, %v182_v34  ;;  %v4311_v45 = vcombine.low %v178_v33, %v182_v34  ;;  %v242_v33 = vld [vmem:[%s7880_s0 + $0x700] sm:$0xff] }
  0x9c   :  { %v4316_v40 = vcombine.high %v180_v35, %v184_v36  ;;  %v4315_v46 = vcombine.low %v180_v35, %v184_v36  ;;  %v246_v34 = vld [vmem:[%s7880_s0 + $0x720] sm:$0xff]  ;;  %v244_v35 = vld [vmem:[%s7880_s0 + $0x710] sm:$0xff] }
  0x9d   :  { %v248_v36 = vld [vmem:[%s7880_s0 + $0x730] sm:$0xff] }
  0xa1   :  { %2195 = vmatmul.mubr.bf16.gmra.mrb[48].mxu1 %v4247_v41  ;;  %v186_v41 = vld [vmem:[%s7880_s0 + $0x540] sm:$0xff] }
  0xa2   :  { %2773 = vmatmul.mubr.bf16.gmra.mrb[48].mxu0 %v4251_v42  ;;  %2202 = vmatprep.mubr.bf16.mxu1 %v4256_v43  ;;  %v190_v42 = vld [vmem:[%s7880_s0 + $0x560] sm:$0xff]  ;;  %v188_v43 = vld [vmem:[%s7880_s0 + $0x550] sm:$0xff] }
  0xa3   :  { %2780 = vmatprep.mubr.bf16.mxu0 %v4260_v44  ;;  %v192_v44 = vld [vmem:[%s7880_s0 + $0x570] sm:$0xff]  ;;  %v4320_v47 = vcombine.high %v186_v41, %v190_v42 }
  0xa4   :  { %v4324_v48 = vcombine.high %v188_v43, %v192_v44 }
  0xa9   :  { %2203 = vmatmul.mubr.bf16.gmra.mrb[52].mxu1 %v4255_v51  ;;  %v196_v51 = vld [vmem:[%s7880_s0 + $0x590] sm:$0xff] }
  0xaa   :  { %2781 = vmatmul.mubr.bf16.gmra.mrb[52].mxu0 %v4259_v52  ;;  %2210 = vmatprep.mubr.bf16.mxu1 %v4264_v53  ;;  %v200_v52 = vld [vmem:[%s7880_s0 + $0x5b0] sm:$0xff]  ;;  %v4319_v53 = vcombine.low %v186_v41, %v190_v42  ;;  %v250_v41 = vld [vmem:[%s7880_s0 + $0x740] sm:$0xff] }
  0xab   :  { %2788 = vmatprep.mubr.bf16.mxu0 %v4268_v54  ;;  %v4323_v54 = vcombine.low %v188_v43, %v192_v44  ;;  %v4332_v56 = vcombine.high %v196_v51, %v200_v52  ;;  %v254_v42 = vld [vmem:[%s7880_s0 + $0x760] sm:$0xff]  ;;  %v252_v43 = vld [vmem:[%s7880_s0 + $0x750] sm:$0xff] }
  0xac   :  { %v256_v44 = vld [vmem:[%s7880_s0 + $0x770] sm:$0xff] }
  0xb1   :  { %2211 = vmatmul.mubr.bf16.gmra.mrb[56].mxu1 %v4263_v58  ;;  %v204_v58 = vld [vmem:[%s7880_s0 + $0x5d0] sm:$0xff] }
  0xb2   :  { %2789 = vmatmul.mubr.bf16.gmra.mrb[56].mxu0 %v4267_v59  ;;  %2218 = vmatprep.mubr.bf16.mxu1 %v4272_v60  ;;  %v208_v59 = vld [vmem:[%s7880_s0 + $0x5f0] sm:$0xff]  ;;  %v4327_v60 = vcombine.low %v194_v49, %v198_v50  ;;  %v258_v49 = vld [vmem:[%s7880_s0 + $0x780] sm:$0xff] }
  0xb3   :  { %2796 = vmatprep.mubr.bf16.mxu0 %v4276_v61  ;;  %v4331_v61 = vcombine.low %v196_v51, %v200_v52  ;;  %v4340_v63 = vcombine.high %v204_v58, %v208_v59  ;;  %v262_v50 = vld [vmem:[%s7880_s0 + $0x7a0] sm:$0xff]  ;;  %v260_v51 = vld [vmem:[%s7880_s0 + $0x790] sm:$0xff] }
  0xb4   :  { %v264_v52 = vld [vmem:[%s7880_s0 + $0x7b0] sm:$0xff] }
  0xb9   :  { %2219 = vmatmul.mubr.bf16.gmra.mrb[60].mxu1 %v4271_v5  ;;  %v4335_v5 = vcombine.low %v202_v57, %v206_v0  ;;  %v266_v57 = vld [vmem:[%s7880_s0 + $0x7c0] sm:$0xff] }
  0xba   :  { %2797 = vmatmul.mubr.bf16.gmra.mrb[60].mxu0 %v4275_v6  ;;  %2226 = vmatprep.mubr.bf16.mxu1 %v4280_v7  ;;  %v4339_v6 = vcombine.low %v204_v58, %v208_v59  ;;  %v4344_v7 = vcombine.high %v210_v1, %v214_v2  ;;  %v270_v0 = vld [vmem:[%s7880_s0 + $0x7e0] sm:$0xff]  ;;  %v268_v58 = vld [vmem:[%s7880_s0 + $0x7d0] sm:$0xff] }
  0xbb   :  { %2804 = vmatprep.mubr.bf16.mxu0 %v4284_v8  ;;  %v4348_v8 = vcombine.high %v212_v3, %v216_v4  ;;  %v272_v59 = vld [vmem:[%s7880_s0 + $0x7f0] sm:$0xff] }
  0xc1   :  { %2227 = vmatmul.mubr.bf16.gmra.mrb[64].mxu1 %v4279_v13  ;;  %v4343_v13 = vcombine.low %v210_v1, %v214_v2  ;;  %v19_v1 = vld [vmem:[%s7880_s0 + $0x8] sm:$0xff] }
  0xc2   :  { %2805 = vmatmul.mubr.bf16.gmra.mrb[64].mxu0 %v4283_v14  ;;  %2234 = vmatprep.mubr.bf16.mxu1 %v4288_v15  ;;  %v4347_v14 = vcombine.low %v212_v3, %v216_v4  ;;  %v4352_v15 = vcombine.high %v218_v9, %v222_v10  ;;  %v23_v2 = vld [vmem:[%s7880_s0 + $0x28] sm:$0xff]  ;;  %v21_v3 = vld [vmem:[%s7880_s0 + $0x18] sm:$0xff] }
  0xc3   :  { %2812 = vmatprep.mubr.bf16.mxu0 %v4292_v16  ;;  %v4356_v16 = vcombine.high %v220_v11, %v224_v12  ;;  %v25_v4 = vld [vmem:[%s7880_s0 + $0x38] sm:$0xff] }
  0xc9   :  { %2235 = vmatmul.mubr.bf16.gmra.mrb[68].mxu1 %v4287_v21  ;;  %v4351_v21 = vcombine.low %v218_v9, %v222_v10  ;;  %v27_v9 = vld [vmem:[%s7880_s0 + $0x48] sm:$0xff] }
  0xca   :  { %2813 = vmatmul.mubr.bf16.gmra.mrb[68].mxu0 %v4291_v22  ;;  %2242 = vmatprep.mubr.bf16.mxu1 %v4296_v23  ;;  %v4355_v22 = vcombine.low %v220_v11, %v224_v12  ;;  %v4360_v23 = vcombine.high %v226_v17, %v230_v18  ;;  %v31_v10 = vld [vmem:[%s7880_s0 + $0x68] sm:$0xff]  ;;  %v29_v11 = vld [vmem:[%s7880_s0 + $0x58] sm:$0xff] }
  0xcb   :  { %2820 = vmatprep.mubr.bf16.mxu0 %v4300_v24  ;;  %v4364_v24 = vcombine.high %v228_v19, %v232_v20  ;;  %v33_v12 = vld [vmem:[%s7880_s0 + $0x78] sm:$0xff] }
  0xd1   :  { %2243 = vmatmul.mubr.bf16.gmra.mrb[72].mxu1 %v4295_v29  ;;  %v4359_v29 = vcombine.low %v226_v17, %v230_v18  ;;  %v35_v17 = vld [vmem:[%s7880_s0 + $0x88] sm:$0xff] }
  0xd2   :  { %2821 = vmatmul.mubr.bf16.gmra.mrb[72].mxu0 %v4299_v30  ;;  %2250 = vmatprep.mubr.bf16.mxu1 %v4304_v31  ;;  %v4363_v30 = vcombine.low %v228_v19, %v232_v20  ;;  %v4368_v31 = vcombine.high %v234_v25, %v238_v26  ;;  %v39_v18 = vld [vmem:[%s7880_s0 + $0xa8] sm:$0xff]  ;;  %v37_v19 = vld [vmem:[%s7880_s0 + $0x98] sm:$0xff] }
  0xd3   :  { %2828 = vmatprep.mubr.bf16.mxu0 %v4308_v32  ;;  %v4372_v32 = vcombine.high %v236_v27, %v240_v28  ;;  %v41_v20 = vld [vmem:[%s7880_s0 + $0xb8] sm:$0xff] }
  0xd9   :  { %2251 = vmatmul.mubr.bf16.gmra.mrb[76].mxu1 %v4303_v37  ;;  %v4367_v37 = vcombine.low %v234_v25, %v238_v26  ;;  %v43_v25 = vld [vmem:[%s7880_s0 + $0xc8] sm:$0xff] }
  0xda   :  { %2829 = vmatmul.mubr.bf16.gmra.mrb[76].mxu0 %v4307_v38  ;;  %2258 = vmatprep.mubr.bf16.mxu1 %v4312_v39  ;;  %v4371_v38 = vcombine.low %v236_v27, %v240_v28  ;;  %v4376_v39 = vcombine.high %v242_v33, %v246_v34  ;;  %v47_v26 = vld [vmem:[%s7880_s0 + $0xe8] sm:$0xff]  ;;  %v45_v27 = vld [vmem:[%s7880_s0 + $0xd8] sm:$0xff] }
  0xdb   :  { %2836 = vmatprep.mubr.bf16.mxu0 %v4316_v40  ;;  %v4380_v40 = vcombine.high %v244_v35, %v248_v36  ;;  %v49_v28 = vld [vmem:[%s7880_s0 + $0xf8] sm:$0xff] }
  0xe1   :  { %2259 = vmatmul.mubr.bf16.gmra.mrb[80].mxu1 %v4311_v45  ;;  %v4375_v45 = vcombine.low %v242_v33, %v246_v34  ;;  %v51_v33 = vld [vmem:[%s7880_s0 + $0x108] sm:$0xff] }
  0xe2   :  { %2837 = vmatmul.mubr.bf16.gmra.mrb[80].mxu0 %v4315_v46  ;;  %2266 = vmatprep.mubr.bf16.mxu1 %v4320_v47  ;;  %v4379_v46 = vcombine.low %v244_v35, %v248_v36  ;;  %v4384_v47 = vcombine.high %v250_v41, %v254_v42  ;;  %v55_v34 = vld [vmem:[%s7880_s0 + $0x128] sm:$0xff]  ;;  %v53_v35 = vld [vmem:[%s7880_s0 + $0x118] sm:$0xff] }
  0xe3   :  { %2844 = vmatprep.mubr.bf16.mxu0 %v4324_v48  ;;  %v4388_v48 = vcombine.high %v252_v43, %v256_v44  ;;  %v57_v36 = vld [vmem:[%s7880_s0 + $0x138] sm:$0xff] }
  0xe9   :  { %2267 = vmatmul.mubr.bf16.gmra.mrb[84].mxu1 %v4319_v53  ;;  %v4383_v53 = vcombine.low %v250_v41, %v254_v42  ;;  %v59_v41 = vld [vmem:[%s7880_s0 + $0x148] sm:$0xff] }
  0xea   :  { %2845 = vmatmul.mubr.bf16.gmra.mrb[84].mxu0 %v4323_v54  ;;  %2274 = vmatprep.mubr.bf16.mxu1 %v4328_v55  ;;  %v4387_v54 = vcombine.low %v252_v43, %v256_v44  ;;  %v4392_v55 = vcombine.high %v258_v49, %v262_v50  ;;  %v63_v42 = vld [vmem:[%s7880_s0 + $0x168] sm:$0xff]  ;;  %v61_v43 = vld [vmem:[%s7880_s0 + $0x158] sm:$0xff] }
  0xeb   :  { %2852 = vmatprep.mubr.bf16.mxu0 %v4332_v56  ;;  %v4396_v56 = vcombine.high %v260_v51, %v264_v52  ;;  %v65_v44 = vld [vmem:[%s7880_s0 + $0x178] sm:$0xff] }
  0xf1   :  { %2275 = vmatmul.mubr.bf16.gmra.mrb[88].mxu1 %v4327_v60  ;;  %v4391_v60 = vcombine.low %v258_v49, %v262_v50  ;;  %v67_v49 = vld [vmem:[%s7880_s0 + $0x188] sm:$0xff] }
  0xf2   :  { %2853 = vmatmul.mubr.bf16.gmra.mrb[88].mxu0 %v4331_v61  ;;  %2282 = vmatprep.mubr.bf16.mxu1 %v4336_v62  ;;  %v4395_v61 = vcombine.low %v260_v51, %v264_v52  ;;  %v4400_v62 = vcombine.high %v266_v57, %v270_v0  ;;  %v71_v50 = vld [vmem:[%s7880_s0 + $0x1a8] sm:$0xff]  ;;  %v69_v51 = vld [vmem:[%s7880_s0 + $0x198] sm:$0xff] }
  0xf3   :  { %2860 = vmatprep.mubr.bf16.mxu0 %v4340_v63  ;;  %v4404_v63 = vcombine.high %v268_v58, %v272_v59  ;;  %v73_v52 = vld [vmem:[%s7880_s0 + $0x1b8] sm:$0xff] }
  0xf9   :  { %2283 = vmatmul.mubr.bf16.gmra.mrb[92].mxu1 %v4335_v5  ;;  %v4399_v5 = vcombine.low %v266_v57, %v270_v0  ;;  %v75_v57 = vld [vmem:[%s7880_s0 + $0x1c8] sm:$0xff] }
  0xfa   :  { %2861 = vmatmul.mubr.bf16.gmra.mrb[92].mxu0 %v4339_v6  ;;  %2290 = vmatprep.mubr.bf16.mxu1 %v4344_v7  ;;  %v4403_v6 = vcombine.low %v268_v58, %v272_v59  ;;  %v4154_v7 = vcombine.high %v19_v1, %v23_v2  ;;  %v79_v0 = vld [vmem:[%s7880_s0 + $0x1e8] sm:$0xff]  ;;  %v77_v58 = vld [vmem:[%s7880_s0 + $0x1d8] sm:$0xff] }
  0xfb   :  { %2868 = vmatprep.mubr.bf16.mxu0 %v4348_v8  ;;  %v4158_v8 = vcombine.high %v21_v3, %v25_v4  ;;  %v81_v59 = vld [vmem:[%s7880_s0 + $0x1f8] sm:$0xff] }
 0x101   :  { %2291 = vmatmul.mubr.bf16.gmra.mrb[96].mxu1 %v4343_v13  ;;  %v4153_v13 = vcombine.low %v19_v1, %v23_v2  ;;  %v83_v1 = vld [vmem:[%s7880_s0 + $0x208] sm:$0xff] }
 0x102   :  { %2869 = vmatmul.mubr.bf16.gmra.mrb[96].mxu0 %v4347_v14  ;;  %2298 = vmatprep.mubr.bf16.mxu1 %v4352_v15  ;;  %v4157_v14 = vcombine.low %v21_v3, %v25_v4  ;;  %v4162_v15 = vcombine.high %v27_v9, %v31_v10  ;;  %v87_v2 = vld [vmem:[%s7880_s0 + $0x228] sm:$0xff]  ;;  %v85_v3 = vld [vmem:[%s7880_s0 + $0x218] sm:$0xff] }
 0x103   :  { %2876 = vmatprep.mubr.bf16.mxu0 %v4356_v16  ;;  %v4166_v16 = vcombine.high %v29_v11, %v33_v12  ;;  %v89_v4 = vld [vmem:[%s7880_s0 + $0x238] sm:$0xff] }
 0x109   :  { %2299 = vmatmul.mubr.bf16.gmra.mrb[100].mxu1 %v4351_v21  ;;  %v4161_v21 = vcombine.low %v27_v9, %v31_v10  ;;  %v91_v9 = vld [vmem:[%s7880_s0 + $0x248] sm:$0xff] }
 0x10a   :  { %2877 = vmatmul.mubr.bf16.gmra.mrb[100].mxu0 %v4355_v22  ;;  %2306 = vmatprep.mubr.bf16.mxu1 %v4360_v23  ;;  %v4165_v22 = vcombine.low %v29_v11, %v33_v12  ;;  %v4170_v23 = vcombine.high %v35_v17, %v39_v18  ;;  %v95_v10 = vld [vmem:[%s7880_s0 + $0x268] sm:$0xff]  ;;  %v93_v11 = vld [vmem:[%s7880_s0 + $0x258] sm:$0xff] }
 0x10b   :  { %2884 = vmatprep.mubr.bf16.mxu0 %v4364_v24  ;;  %v4174_v24 = vcombine.high %v37_v19, %v41_v20  ;;  %v97_v12 = vld [vmem:[%s7880_s0 + $0x278] sm:$0xff] }
 0x111   :  { %2307 = vmatmul.mubr.bf16.gmra.mrb[104].mxu1 %v4359_v29  ;;  %v4169_v29 = vcombine.low %v35_v17, %v39_v18  ;;  %v99_v17 = vld [vmem:[%s7880_s0 + $0x288] sm:$0xff] }
 0x112   :  { %2885 = vmatmul.mubr.bf16.gmra.mrb[104].mxu0 %v4363_v30  ;;  %2314 = vmatprep.mubr.bf16.mxu1 %v4368_v31  ;;  %v4173_v30 = vcombine.low %v37_v19, %v41_v20  ;;  %v4178_v31 = vcombine.high %v43_v25, %v47_v26  ;;  %v103_v18 = vld [vmem:[%s7880_s0 + $0x2a8] sm:$0xff]  ;;  %v101_v19 = vld [vmem:[%s7880_s0 + $0x298] sm:$0xff] }
 0x113   :  { %2892 = vmatprep.mubr.bf16.mxu0 %v4372_v32  ;;  %v4182_v32 = vcombine.high %v45_v27, %v49_v28  ;;  %v105_v20 = vld [vmem:[%s7880_s0 + $0x2b8] sm:$0xff] }
 0x119   :  { %2315 = vmatmul.mubr.bf16.gmra.mrb[108].mxu1 %v4367_v37  ;;  %v4177_v37 = vcombine.low %v43_v25, %v47_v26  ;;  %v107_v25 = vld [vmem:[%s7880_s0 + $0x2c8] sm:$0xff] }
 0x11a   :  { %2893 = vmatmul.mubr.bf16.gmra.mrb[108].mxu0 %v4371_v38  ;;  %2322 = vmatprep.mubr.bf16.mxu1 %v4376_v39  ;;  %v4181_v38 = vcombine.low %v45_v27, %v49_v28  ;;  %v4186_v39 = vcombine.high %v51_v33, %v55_v34  ;;  %v111_v26 = vld [vmem:[%s7880_s0 + $0x2e8] sm:$0xff]  ;;  %v109_v27 = vld [vmem:[%s7880_s0 + $0x2d8] sm:$0xff] }
 0x11b   :  { %2900 = vmatprep.mubr.bf16.mxu0 %v4380_v40  ;;  %v4190_v40 = vcombine.high %v53_v35, %v57_v36  ;;  %v113_v28 = vld [vmem:[%s7880_s0 + $0x2f8] sm:$0xff] }
 0x121   :  { %2323 = vmatmul.mubr.bf16.gmra.mrb[112].mxu1 %v4375_v45  ;;  %v4185_v45 = vcombine.low %v51_v33, %v55_v34  ;;  %v115_v33 = vld [vmem:[%s7880_s0 + $0x308] sm:$0xff] }
 0x122   :  { %2901 = vmatmul.mubr.bf16.gmra.mrb[112].mxu0 %v4379_v46  ;;  %2330 = vmatprep.mubr.bf16.mxu1 %v4384_v47  ;;  %v4189_v46 = vcombine.low %v53_v35, %v57_v36  ;;  %v4194_v47 = vcombine.high %v59_v41, %v63_v42  ;;  %v119_v34 = vld [vmem:[%s7880_s0 + $0x328] sm:$0xff]  ;;  %v117_v35 = vld [vmem:[%s7880_s0 + $0x318] sm:$0xff] }
 0x123   :  { %2908 = vmatprep.mubr.bf16.mxu0 %v4388_v48  ;;  %v4198_v48 = vcombine.high %v61_v43, %v65_v44  ;;  %v121_v36 = vld [vmem:[%s7880_s0 + $0x338] sm:$0xff] }
 0x129   :  { %2331 = vmatmul.mubr.bf16.gmra.mrb[116].mxu1 %v4383_v53  ;;  %v4193_v53 = vcombine.low %v59_v41, %v63_v42  ;;  %v123_v41 = vld [vmem:[%s7880_s0 + $0x348] sm:$0xff] }
 0x12a   :  { %2909 = vmatmul.mubr.bf16.gmra.mrb[116].mxu0 %v4387_v54  ;;  %2338 = vmatprep.mubr.bf16.mxu1 %v4392_v55  ;;  %v4197_v54 = vcombine.low %v61_v43, %v65_v44  ;;  %v4202_v55 = vcombine.high %v67_v49, %v71_v50  ;;  %v127_v42 = vld [vmem:[%s7880_s0 + $0x368] sm:$0xff]  ;;  %v125_v43 = vld [vmem:[%s7880_s0 + $0x358] sm:$0xff] }
 0x12b   :  { %2916 = vmatprep.mubr.bf16.mxu0 %v4396_v56  ;;  %v4206_v56 = vcombine.high %v69_v51, %v73_v52  ;;  %v129_v44 = vld [vmem:[%s7880_s0 + $0x378] sm:$0xff] }
 0x131   :  { %2339 = vmatmul.mubr.bf16.gmra.mrb[120].mxu1 %v4391_v60  ;;  %v4201_v60 = vcombine.low %v67_v49, %v71_v50  ;;  %v131_v49 = vld [vmem:[%s7880_s0 + $0x388] sm:$0xff] }
 0x132   :  { %2917 = vmatmul.mubr.bf16.gmra.mrb[120].mxu0 %v4395_v61  ;;  %2346 = vmatprep.mubr.bf16.mxu1 %v4400_v62  ;;  %v4205_v61 = vcombine.low %v69_v51, %v73_v52  ;;  %v4210_v62 = vcombine.high %v75_v57, %v79_v0  ;;  %v135_v50 = vld [vmem:[%s7880_s0 + $0x3a8] sm:$0xff]  ;;  %v133_v51 = vld [vmem:[%s7880_s0 + $0x398] sm:$0xff] }
 0x133   :  { %2924 = vmatprep.mubr.bf16.mxu0 %v4404_v63  ;;  %v4214_v63 = vcombine.high %v77_v58, %v81_v59  ;;  %v137_v52 = vld [vmem:[%s7880_s0 + $0x3b8] sm:$0xff] }
 0x139   :  { %2347 = vmatmul.mubr.bf16.gmra.mrb[124].mxu1 %v4399_v5  ;;  %v4209_v5 = vcombine.low %v75_v57, %v79_v0  ;;  %v139_v57 = vld [vmem:[%s7880_s0 + $0x3c8] sm:$0xff] }
 0x13a   :  { %2925 = vmatmul.mubr.bf16.gmra.mrb[124].mxu0 %v4403_v6  ;;  %2387 = vmatprep.mubr.bf16.mxu1 %v4154_v7  ;;  %v4213_v6 = vcombine.low %v77_v58, %v81_v59  ;;  %v4218_v7 = vcombine.high %v83_v1, %v87_v2  ;;  %v143_v0 = vld [vmem:[%s7880_s0 + $0x3e8] sm:$0xff]  ;;  %v141_v58 = vld [vmem:[%s7880_s0 + $0x3d8] sm:$0xff] }
 0x13b   :  { %2965 = vmatprep.mubr.bf16.mxu0 %v4158_v8  ;;  %v4222_v8 = vcombine.high %v85_v3, %v89_v4  ;;  %v145_v59 = vld [vmem:[%s7880_s0 + $0x3f8] sm:$0xff] }
 0x141   :  { %2388 = vmatmul.mubr.bf16.vlgmr.msra.gmra.mrb[0].mxu1 %v4153_v13  ;;  %v4217_v13 = vcombine.low %v83_v1, %v87_v2  ;;  %v147_v1 = vld [vmem:[%s7880_s0 + $0x408] sm:$0xff] }
 0x142   :  { %2966 = vmatmul.mubr.bf16.vlgmr.msra.gmra.mrb[0].mxu0 %v4157_v14  ;;  %2395 = vmatprep.mubr.bf16.mxu1 %v4162_v15  ;;  %v4221_v14 = vcombine.low %v85_v3, %v89_v4  ;;  %v4226_v15 = vcombine.high %v91_v9, %v95_v10  ;;  %v151_v2 = vld [vmem:[%s7880_s0 + $0x428] sm:$0xff]  ;;  %v149_v3 = vld [vmem:[%s7880_s0 + $0x418] sm:$0xff] }
 0x143   :  { %2973 = vmatprep.mubr.bf16.mxu0 %v4166_v16  ;;  %v4230_v16 = vcombine.high %v93_v11, %v97_v12  ;;  %v153_v4 = vld [vmem:[%s7880_s0 + $0x438] sm:$0xff] }
 0x149   :  { %2396 = vmatmul.mubr.bf16.gmra.mrb[4].mxu1 %v4161_v21  ;;  %v4225_v21 = vcombine.low %v91_v9, %v95_v10  ;;  %v155_v9 = vld [vmem:[%s7880_s0 + $0x448] sm:$0xff] }
 0x14a   :  { %2974 = vmatmul.mubr.bf16.gmra.mrb[4].mxu0 %v4165_v22  ;;  %2403 = vmatprep.mubr.bf16.mxu1 %v4170_v23  ;;  %v4229_v22 = vcombine.low %v93_v11, %v97_v12  ;;  %v4234_v23 = vcombine.high %v99_v17, %v103_v18  ;;  %v159_v10 = vld [vmem:[%s7880_s0 + $0x468] sm:$0xff]  ;;  %v157_v11 = vld [vmem:[%s7880_s0 + $0x458] sm:$0xff] }
 0x14b   :  { %2981 = vmatprep.mubr.bf16.mxu0 %v4174_v24  ;;  %v4238_v24 = vcombine.high %v101_v19, %v105_v20  ;;  %v161_v12 = vld [vmem:[%s7880_s0 + $0x478] sm:$0xff] }
 0x151   :  { %2404 = vmatmul.mubr.bf16.gmra.mrb[8].mxu1 %v4169_v29  ;;  %v4233_v29 = vcombine.low %v99_v17, %v103_v18  ;;  %v163_v17 = vld [vmem:[%s7880_s0 + $0x488] sm:$0xff] }
 0x152   :  { %2982 = vmatmul.mubr.bf16.gmra.mrb[8].mxu0 %v4173_v30  ;;  %2411 = vmatprep.mubr.bf16.mxu1 %v4178_v31  ;;  %v4237_v30 = vcombine.low %v101_v19, %v105_v20  ;;  %v4242_v31 = vcombine.high %v107_v25, %v111_v26  ;;  %v167_v18 = vld [vmem:[%s7880_s0 + $0x4a8] sm:$0xff]  ;;  %v165_v19 = vld [vmem:[%s7880_s0 + $0x498] sm:$0xff] }
 0x153   :  { %2989 = vmatprep.mubr.bf16.mxu0 %v4182_v32  ;;  %v4246_v32 = vcombine.high %v109_v27, %v113_v28  ;;  %v169_v20 = vld [vmem:[%s7880_s0 + $0x4b8] sm:$0xff] }
 0x159   :  { %2412 = vmatmul.mubr.bf16.gmra.mrb[12].mxu1 %v4177_v37  ;;  %v4241_v37 = vcombine.low %v107_v25, %v111_v26  ;;  %v171_v25 = vld [vmem:[%s7880_s0 + $0x4c8] sm:$0xff] }
 0x15a   :  { %2990 = vmatmul.mubr.bf16.gmra.mrb[12].mxu0 %v4181_v38  ;;  %2419 = vmatprep.mubr.bf16.mxu1 %v4186_v39  ;;  %v4245_v38 = vcombine.low %v109_v27, %v113_v28  ;;  %v4250_v39 = vcombine.high %v115_v33, %v119_v34  ;;  %v175_v26 = vld [vmem:[%s7880_s0 + $0x4e8] sm:$0xff]  ;;  %v173_v27 = vld [vmem:[%s7880_s0 + $0x4d8] sm:$0xff] }
 0x15b   :  { %2997 = vmatprep.mubr.bf16.mxu0 %v4190_v40  ;;  %v4254_v40 = vcombine.high %v117_v35, %v121_v36  ;;  %v177_v28 = vld [vmem:[%s7880_s0 + $0x4f8] sm:$0xff] }
 0x161   :  { %2420 = vmatmul.mubr.bf16.gmra.mrb[16].mxu1 %v4185_v45  ;;  %v4249_v45 = vcombine.low %v115_v33, %v119_v34  ;;  %v179_v33 = vld [vmem:[%s7880_s0 + $0x508] sm:$0xff] }
 0x162   :  { %2998 = vmatmul.mubr.bf16.gmra.mrb[16].mxu0 %v4189_v46  ;;  %2427 = vmatprep.mubr.bf16.mxu1 %v4194_v47  ;;  %v4253_v46 = vcombine.low %v117_v35, %v121_v36  ;;  %v4258_v47 = vcombine.high %v123_v41, %v127_v42  ;;  %v183_v34 = vld [vmem:[%s7880_s0 + $0x528] sm:$0xff]  ;;  %v181_v35 = vld [vmem:[%s7880_s0 + $0x518] sm:$0xff] }
 0x163   :  { %3005 = vmatprep.mubr.bf16.mxu0 %v4198_v48  ;;  %v4262_v48 = vcombine.high %v125_v43, %v129_v44  ;;  %v185_v36 = vld [vmem:[%s7880_s0 + $0x538] sm:$0xff] }
 0x169   :  { %2428 = vmatmul.mubr.bf16.gmra.mrb[20].mxu1 %v4193_v53  ;;  %v4257_v53 = vcombine.low %v123_v41, %v127_v42  ;;  %v187_v41 = vld [vmem:[%s7880_s0 + $0x548] sm:$0xff] }
 0x16a   :  { %3006 = vmatmul.mubr.bf16.gmra.mrb[20].mxu0 %v4197_v54  ;;  %2435 = vmatprep.mubr.bf16.mxu1 %v4202_v55  ;;  %v4261_v54 = vcombine.low %v125_v43, %v129_v44  ;;  %v4266_v55 = vcombine.high %v131_v49, %v135_v50  ;;  %v191_v42 = vld [vmem:[%s7880_s0 + $0x568] sm:$0xff]  ;;  %v189_v43 = vld [vmem:[%s7880_s0 + $0x558] sm:$0xff] }
 0x16b   :  { %3013 = vmatprep.mubr.bf16.mxu0 %v4206_v56  ;;  %v4270_v56 = vcombine.high %v133_v51, %v137_v52  ;;  %v193_v44 = vld [vmem:[%s7880_s0 + $0x578] sm:$0xff] }
 0x171   :  { %2436 = vmatmul.mubr.bf16.gmra.mrb[24].mxu1 %v4201_v60  ;;  %v4265_v60 = vcombine.low %v131_v49, %v135_v50  ;;  %v195_v49 = vld [vmem:[%s7880_s0 + $0x588] sm:$0xff] }
 0x172   :  { %3014 = vmatmul.mubr.bf16.gmra.mrb[24].mxu0 %v4205_v61  ;;  %2443 = vmatprep.mubr.bf16.mxu1 %v4210_v62  ;;  %v4269_v61 = vcombine.low %v133_v51, %v137_v52  ;;  %v4274_v62 = vcombine.high %v139_v57, %v143_v0  ;;  %v199_v50 = vld [vmem:[%s7880_s0 + $0x5a8] sm:$0xff]  ;;  %v197_v51 = vld [vmem:[%s7880_s0 + $0x598] sm:$0xff] }
 0x173   :  { %3021 = vmatprep.mubr.bf16.mxu0 %v4214_v63  ;;  %v4278_v63 = vcombine.high %v141_v58, %v145_v59  ;;  %v201_v52 = vld [vmem:[%s7880_s0 + $0x5b8] sm:$0xff] }
 0x179   :  { %2444 = vmatmul.mubr.bf16.gmra.mrb[28].mxu1 %v4209_v5  ;;  %v4273_v5 = vcombine.low %v139_v57, %v143_v0  ;;  %v203_v57 = vld [vmem:[%s7880_s0 + $0x5c8] sm:$0xff] }
 0x17a   :  { %3022 = vmatmul.mubr.bf16.gmra.mrb[28].mxu0 %v4213_v6  ;;  %2451 = vmatprep.mubr.bf16.mxu1 %v4218_v7  ;;  %v4277_v6 = vcombine.low %v141_v58, %v145_v59  ;;  %v4282_v7 = vcombine.high %v147_v1, %v151_v2  ;;  %v207_v0 = vld [vmem:[%s7880_s0 + $0x5e8] sm:$0xff]  ;;  %v205_v58 = vld [vmem:[%s7880_s0 + $0x5d8] sm:$0xff] }
 0x17b   :  { %3029 = vmatprep.mubr.bf16.mxu0 %v4222_v8  ;;  %v4286_v8 = vcombine.high %v149_v3, %v153_v4  ;;  %v209_v59 = vld [vmem:[%s7880_s0 + $0x5f8] sm:$0xff] }
 0x181   :  { %2452 = vmatmul.mubr.bf16.gmra.mrb[32].mxu1 %v4217_v13  ;;  %v4281_v13 = vcombine.low %v147_v1, %v151_v2  ;;  %v211_v1 = vld [vmem:[%s7880_s0 + $0x608] sm:$0xff] }
 0x182   :  { %3030 = vmatmul.mubr.bf16.gmra.mrb[32].mxu0 %v4221_v14  ;;  %2459 = vmatprep.mubr.bf16.mxu1 %v4226_v15  ;;  %v4285_v14 = vcombine.low %v149_v3, %v153_v4  ;;  %v4290_v15 = vcombine.high %v155_v9, %v159_v10  ;;  %v215_v2 = vld [vmem:[%s7880_s0 + $0x628] sm:$0xff]  ;;  %v213_v3 = vld [vmem:[%s7880_s0 + $0x618] sm:$0xff] }
 0x183   :  { %3037 = vmatprep.mubr.bf16.mxu0 %v4230_v16  ;;  %v4294_v16 = vcombine.high %v157_v11, %v161_v12  ;;  %v217_v4 = vld [vmem:[%s7880_s0 + $0x638] sm:$0xff] }
 0x189   :  { %2460 = vmatmul.mubr.bf16.gmra.mrb[36].mxu1 %v4225_v21  ;;  %v4289_v21 = vcombine.low %v155_v9, %v159_v10  ;;  %v219_v9 = vld [vmem:[%s7880_s0 + $0x648] sm:$0xff] }
 0x18a   :  { %3038 = vmatmul.mubr.bf16.gmra.mrb[36].mxu0 %v4229_v22  ;;  %2467 = vmatprep.mubr.bf16.mxu1 %v4234_v23  ;;  %v4293_v22 = vcombine.low %v157_v11, %v161_v12  ;;  %v4298_v23 = vcombine.high %v163_v17, %v167_v18  ;;  %v223_v10 = vld [vmem:[%s7880_s0 + $0x668] sm:$0xff]  ;;  %v221_v11 = vld [vmem:[%s7880_s0 + $0x658] sm:$0xff] }
 0x18b   :  { %3045 = vmatprep.mubr.bf16.mxu0 %v4238_v24  ;;  %v4302_v24 = vcombine.high %v165_v19, %v169_v20  ;;  %v225_v12 = vld [vmem:[%s7880_s0 + $0x678] sm:$0xff] }
 0x191   :  { %2468 = vmatmul.mubr.bf16.gmra.mrb[40].mxu1 %v4233_v29  ;;  %v4297_v29 = vcombine.low %v163_v17, %v167_v18  ;;  %v227_v17 = vld [vmem:[%s7880_s0 + $0x688] sm:$0xff] }
 0x192   :  { %3046 = vmatmul.mubr.bf16.gmra.mrb[40].mxu0 %v4237_v30  ;;  %2475 = vmatprep.mubr.bf16.mxu1 %v4242_v31  ;;  %v4301_v30 = vcombine.low %v165_v19, %v169_v20  ;;  %v4306_v31 = vcombine.high %v171_v25, %v175_v26  ;;  %v231_v18 = vld [vmem:[%s7880_s0 + $0x6a8] sm:$0xff]  ;;  %v229_v19 = vld [vmem:[%s7880_s0 + $0x698] sm:$0xff] }
 0x193   :  { %3053 = vmatprep.mubr.bf16.mxu0 %v4246_v32  ;;  %v4310_v32 = vcombine.high %v173_v27, %v177_v28  ;;  %v233_v20 = vld [vmem:[%s7880_s0 + $0x6b8] sm:$0xff] }
 0x199   :  { %2476 = vmatmul.mubr.bf16.gmra.mrb[44].mxu1 %v4241_v37  ;;  %v4305_v37 = vcombine.low %v171_v25, %v175_v26  ;;  %v235_v25 = vld [vmem:[%s7880_s0 + $0x6c8] sm:$0xff] }
 0x19a   :  { %3054 = vmatmul.mubr.bf16.gmra.mrb[44].mxu0 %v4245_v38  ;;  %2483 = vmatprep.mubr.bf16.mxu1 %v4250_v39  ;;  %v4309_v38 = vcombine.low %v173_v27, %v177_v28  ;;  %v4314_v39 = vcombine.high %v179_v33, %v183_v34  ;;  %v239_v26 = vld [vmem:[%s7880_s0 + $0x6e8] sm:$0xff]  ;;  %v237_v27 = vld [vmem:[%s7880_s0 + $0x6d8] sm:$0xff] }
 0x19b   :  { %3061 = vmatprep.mubr.bf16.mxu0 %v4254_v40  ;;  %v4318_v40 = vcombine.high %v181_v35, %v185_v36  ;;  %v241_v28 = vld [vmem:[%s7880_s0 + $0x6f8] sm:$0xff] }
 0x1a1   :  { %2484 = vmatmul.mubr.bf16.gmra.mrb[48].mxu1 %v4249_v45  ;;  %v4313_v45 = vcombine.low %v179_v33, %v183_v34  ;;  %v243_v33 = vld [vmem:[%s7880_s0 + $0x708] sm:$0xff] }
 0x1a2   :  { %3062 = vmatmul.mubr.bf16.gmra.mrb[48].mxu0 %v4253_v46  ;;  %2491 = vmatprep.mubr.bf16.mxu1 %v4258_v47  ;;  %v4317_v46 = vcombine.low %v181_v35, %v185_v36  ;;  %v4322_v47 = vcombine.high %v187_v41, %v191_v42  ;;  %v247_v34 = vld [vmem:[%s7880_s0 + $0x728] sm:$0xff]  ;;  %v245_v36 = vld [vmem:[%s7880_s0 + $0x718] sm:$0xff] }
 0x1a3   :  { %3069 = vmatprep.mubr.bf16.mxu0 %v4262_v48  ;;  %v4326_v48 = vcombine.high %v189_v43, %v193_v44 }
 0x1a9   :  { %2492 = vmatmul.mubr.bf16.gmra.mrb[52].mxu1 %v4257_v53  ;;  %v4321_v53 = vcombine.low %v187_v41, %v191_v42 }
 0x1aa   :  { %3070 = vmatmul.mubr.bf16.gmra.mrb[52].mxu0 %v4261_v54  ;;  %2499 = vmatprep.mubr.bf16.mxu1 %v4266_v55  ;;  %v4325_v54 = vcombine.low %v189_v43, %v193_v44  ;;  %v4330_v55 = vcombine.high %v195_v49, %v199_v50  ;;  %v4373_v44 = vcombine.low %v237_v27, %v241_v28 }
 0x1ab   :  { %3077 = vmatprep.mubr.bf16.mxu0 %v4270_v56  ;;  %v4334_v56 = vcombine.high %v197_v51, %v201_v52 }
 0x1b1   :  { %2500 = vmatmul.mubr.bf16.gmra.mrb[56].mxu1 %v4265_v60  ;;  %v4329_v60 = vcombine.low %v195_v49, %v199_v50 }
 0x1b2   :  { %3078 = vmatmul.mubr.bf16.gmra.mrb[56].mxu0 %v4269_v61  ;;  %2507 = vmatprep.mubr.bf16.mxu1 %v4274_v62  ;;  %v4333_v61 = vcombine.low %v197_v51, %v201_v52  ;;  %v4338_v62 = vcombine.high %v203_v57, %v207_v0  ;;  %v251_v51 = vld [vmem:[%s7880_s0 + $0x748] sm:$0xff] }
 0x1b3   :  { %3085 = vmatprep.mubr.bf16.mxu0 %v4278_v63  ;;  %v4342_v63 = vcombine.high %v205_v58, %v209_v59  ;;  %v255_v52 = vld [vmem:[%s7880_s0 + $0x768] sm:$0xff] }
 0x1b9   :  { %2508 = vmatmul.mubr.bf16.gmra.mrb[60].mxu1 %v4273_v5  ;;  %v4337_v5 = vcombine.low %v203_v57, %v207_v0  ;;  %v4377_v0 = vcombine.low %v243_v33, %v247_v34 }
 0x1ba   :  { %3086 = vmatmul.mubr.bf16.gmra.mrb[60].mxu0 %v4277_v6  ;;  %2515 = vmatprep.mubr.bf16.mxu1 %v4282_v7  ;;  %v4341_v6 = vcombine.low %v205_v58, %v209_v59  ;;  %v4346_v7 = vcombine.high %v211_v1, %v215_v2 }
 0x1bb   :  { %3093 = vmatprep.mubr.bf16.mxu0 %v4286_v8  ;;  %v4350_v8 = vcombine.high %v213_v3, %v217_v4 }
 0x1c1   :  { %2516 = vmatmul.mubr.bf16.gmra.mrb[64].mxu1 %v4281_v13  ;;  %v4345_v13 = vcombine.low %v211_v1, %v215_v2 }
 0x1c2   :  { %3094 = vmatmul.mubr.bf16.gmra.mrb[64].mxu0 %v4285_v14  ;;  %2523 = vmatprep.mubr.bf16.mxu1 %v4290_v15  ;;  %v4349_v14 = vcombine.low %v213_v3, %v217_v4  ;;  %v4354_v15 = vcombine.high %v219_v9, %v223_v10 }
 0x1c3   :  { %3101 = vmatprep.mubr.bf16.mxu0 %v4294_v16  ;;  %v4358_v16 = vcombine.high %v221_v11, %v225_v12 }
 0x1c9   :  { %2524 = vmatmul.mubr.bf16.gmra.mrb[68].mxu1 %v4289_v21  ;;  %v4353_v21 = vcombine.low %v219_v9, %v223_v10  ;;  %v265_v9 = vld [vmem:[%s7880_s0 + $0x7b8] sm:$0xff] }
 0x1ca   :  { %3102 = vmatmul.mubr.bf16.gmra.mrb[68].mxu0 %v4293_v22  ;;  %2531 = vmatprep.mubr.bf16.mxu1 %v4298_v23  ;;  %v4357_v22 = vcombine.low %v221_v11, %v225_v12  ;;  %v4362_v23 = vcombine.high %v227_v17, %v231_v18  ;;  %v4385_v12 = vcombine.low %v251_v51, %v255_v52 }
 0x1cb   :  { %3109 = vmatprep.mubr.bf16.mxu0 %v4302_v24  ;;  %v4366_v24 = vcombine.high %v229_v19, %v233_v20 }
 0x1d1   :  { %2532 = vmatmul.mubr.bf16.gmra.mrb[72].mxu1 %v4297_v29  ;;  %v4361_v29 = vcombine.low %v227_v17, %v231_v18 }
 0x1d2   :  { %3110 = vmatmul.mubr.bf16.gmra.mrb[72].mxu0 %v4301_v30  ;;  %2539 = vmatprep.mubr.bf16.mxu1 %v4306_v31  ;;  %v4365_v30 = vcombine.low %v229_v19, %v233_v20  ;;  %v4370_v31 = vcombine.high %v235_v25, %v239_v26 }
 0x1d3   :  { %3117 = vmatprep.mubr.bf16.mxu0 %v4310_v32  ;;  %v4374_v32 = vcombine.high %v237_v27, %v241_v28  ;;  %v273_v27 = vld [vmem:[%s7880_s0 + $0x7f8] sm:$0xff] }
 0x1d9   :  { %2540 = vmatmul.mubr.bf16.gmra.mrb[76].mxu1 %v4305_v37  ;;  %v249_v37 = vld [vmem:[%s7880_s0 + $0x738] sm:$0xff] }
 0x1da   :  { %3118 = vmatmul.mubr.bf16.gmra.mrb[76].mxu0 %v4309_v38  ;;  %2547 = vmatprep.mubr.bf16.mxu1 %v4314_v39 }
 0x1db   :  { %3125 = vmatprep.mubr.bf16.mxu0 %v4318_v40  ;;  %v4369_v40 = vcombine.low %v235_v25, %v239_v26  ;;  %v269_v26 = vld [vmem:[%s7880_s0 + $0x7d8] sm:$0xff] }
 0x1e1   :  { %2548 = vmatmul.mubr.bf16.gmra.mrb[80].mxu1 %v4313_v45  ;;  %v4378_v45 = vcombine.high %v243_v33, %v247_v34 }
 0x1e2   :  { %3126 = vmatmul.mubr.bf16.gmra.mrb[80].mxu0 %v4317_v46  ;;  %2555 = vmatprep.mubr.bf16.mxu1 %v4322_v47 }
 0x1e3   :  { %3133 = vmatprep.mubr.bf16.mxu0 %v4326_v48  ;;  %v4382_v48 = vcombine.high %v245_v36, %v249_v37 }
 0x1e9   :  { %2556 = vmatmul.mubr.bf16.gmra.mrb[84].mxu1 %v4321_v53 }
 0x1ea   :  { %3134 = vmatmul.mubr.bf16.gmra.mrb[84].mxu0 %v4325_v54  ;;  %2563 = vmatprep.mubr.bf16.mxu1 %v4330_v55  ;;  %v253_v54 = vld [vmem:[%s7880_s0 + $0x758] sm:$0xff] }
 0x1eb   :  { %3141 = vmatprep.mubr.bf16.mxu0 %v4334_v56  ;;  %v257_v55 = vld [vmem:[%s7880_s0 + $0x778] sm:$0xff] }
 0x1ec   :  { %v4390_v2 = vcombine.high %v253_v54, %v257_v55 }
 0x1f1   :  { %2564 = vmatmul.mubr.bf16.gmra.mrb[88].mxu1 %v4329_v60 }
 0x1f2   :  { %3142 = vmatmul.mubr.bf16.gmra.mrb[88].mxu0 %v4333_v61  ;;  %2571 = vmatprep.mubr.bf16.mxu1 %v4338_v62  ;;  %v4381_v61 = vcombine.low %v245_v36, %v249_v37  ;;  %v4386_v62 = vcombine.high %v251_v51, %v255_v52 }
 0x1f3   :  { %3149 = vmatprep.mubr.bf16.mxu0 %v4342_v63 }
 0x1f9   :  { %2572 = vmatmul.mubr.bf16.gmra.mrb[92].mxu1 %v4337_v5  ;;  %v259_v5 = vld [vmem:[%s7880_s0 + $0x788] sm:$0xff] }
 0x1fa   :  { %3150 = vmatmul.mubr.bf16.gmra.mrb[92].mxu0 %v4341_v6  ;;  %2579 = vmatprep.mubr.bf16.mxu1 %v4346_v7  ;;  %v263_v6 = vld [vmem:[%s7880_s0 + $0x7a8] sm:$0xff] }
 0x1fb   :  { %3157 = vmatprep.mubr.bf16.mxu0 %v4350_v8  ;;  %v261_v8 = vld [vmem:[%s7880_s0 + $0x798] sm:$0xff]  ;;  %v4394_v17 = vcombine.high %v259_v5, %v263_v6 }
 0x1fc   :  { %v4398_v20 = vcombine.high %v261_v8, %v265_v9  ;;  %v4397_v34 = vcombine.low %v261_v8, %v265_v9 }
 0x201   :  { %2580 = vmatmul.mubr.bf16.gmra.mrb[96].mxu1 %v4345_v13 }
 0x202   :  { %3158 = vmatmul.mubr.bf16.gmra.mrb[96].mxu0 %v4349_v14  ;;  %2587 = vmatprep.mubr.bf16.mxu1 %v4354_v15 }
 0x203   :  { %3165 = vmatprep.mubr.bf16.mxu0 %v4358_v16  ;;  %v4389_v16 = vcombine.low %v253_v54, %v257_v55 }
 0x209   :  { %2588 = vmatmul.mubr.bf16.gmra.mrb[100].mxu1 %v4353_v21 }
 0x20a   :  { %3166 = vmatmul.mubr.bf16.gmra.mrb[100].mxu0 %v4357_v22  ;;  %2595 = vmatprep.mubr.bf16.mxu1 %v4362_v23  ;;  %v267_v23 = vld [vmem:[%s7880_s0 + $0x7c8] sm:$0xff] }
 0x20b   :  { %3173 = vmatprep.mubr.bf16.mxu0 %v4366_v24  ;;  %v271_v24 = vld [vmem:[%s7880_s0 + $0x7e8] sm:$0xff] }
 0x211   :  { %2596 = vmatmul.mubr.bf16.gmra.mrb[104].mxu1 %v4361_v29 }
 0x212   :  { %3174 = vmatmul.mubr.bf16.gmra.mrb[104].mxu0 %v4365_v30  ;;  %2603 = vmatprep.mubr.bf16.mxu1 %v4370_v31  ;;  %v4393_v30 = vcombine.low %v259_v5, %v263_v6 }
 0x213   :  { %3181 = vmatprep.mubr.bf16.mxu0 %v4374_v32 }
 0x214   :  { %v2389_v35 = vpop.f32.mrb[0].mxu1 }
 0x215   :  { %v2967_v38 = vpop.f32.mrb[0].mxu0  ;;  %v2391_v39 = vpop.f32.mrb[1].mxu1 }
 0x216   :  { %v6208_v41 = vadd.f32 %v2967_v38, %v2389_v35  ;;  %v2969_v42 = vpop.f32.mrb[1].mxu0  ;;  %v2392_v43 = vpop.f32.mrb[2].mxu1  ;;  %v4402_v35 = vcombine.high %v267_v23, %v271_v24  ;;  %v4406_v38 = vcombine.high %v269_v26, %v273_v27 }
 0x217   :  { %v2970_v46 = vpop.f32.mrb[2].mxu0  ;;  %v2394_v47 = vpop.f32.mrb[3].mxu1 }
 0x218   :  { %v6210_v49 = vadd.f32 %v2970_v46, %v2392_v43  ;;  %v2972_v50 = vpop.f32.mrb[3].mxu0 }
 0x219   :  { %2604 = vmatmul.mubr.bf16.gmra.mrb[108].mxu1 %v4369_v40  ;;  %v4405_v50 = vcombine.low %v269_v26, %v273_v27 }
 0x21a   :  { %3182 = vmatmul.mubr.bf16.gmra.mrb[108].mxu0 %v4373_v44  ;;  %2611 = vmatprep.mubr.bf16.mxu1 %v4378_v45  ;;  %v4401_v45 = vcombine.low %v267_v23, %v271_v24 }
 0x21b   :  { %3189 = vmatprep.mubr.bf16.mxu0 %v4382_v48 }
 0x21c   :  { %v2397_v53 = vpop.f32.mrb[4].mxu1 }
 0x21d   :  { %v2975_v56 = vpop.f32.mrb[4].mxu0  ;;  %v2399_v57 = vpop.f32.mrb[5].mxu1 }
 0x21e   :  { %v6224_v58 = vadd.f32 %v2975_v56, %v2397_v53  ;;  %v2977_v59 = vpop.f32.mrb[5].mxu0  ;;  %v2400_v60 = vpop.f32.mrb[6].mxu1 }
 0x21f   :  { %v2978_v63 = vpop.f32.mrb[6].mxu0  ;;  %v2402_v1 = vpop.f32.mrb[7].mxu1 }
 0x220   :  { %v6226_v3 = vadd.f32 %v2978_v63, %v2400_v60  ;;  %v2980_v4 = vpop.f32.mrb[7].mxu0 }
 0x221   :  { %2612 = vmatmul.mubr.bf16.gmra.mrb[112].mxu1 %v4377_v0 }
 0x222   :  { %3190 = vmatmul.mubr.bf16.gmra.mrb[112].mxu0 %v4381_v61  ;;  %2619 = vmatprep.mubr.bf16.mxu1 %v4386_v62 }
 0x223   :  { %3197 = vmatprep.mubr.bf16.mxu0 %v4390_v2 }
 0x224   :  { %v2405_v7 = vpop.f32.mrb[8].mxu1 }
 0x225   :  { %v2983_v10 = vpop.f32.mrb[8].mxu0  ;;  %v2407_v11 = vpop.f32.mrb[9].mxu1 }
 0x226   :  { %v6240_v13 = vadd.f32 %v2983_v10, %v2405_v7  ;;  %v2985_v14 = vpop.f32.mrb[9].mxu0  ;;  %v2408_v15 = vpop.f32.mrb[10].mxu1 }
 0x227   :  { %v2986_v18 = vpop.f32.mrb[10].mxu0  ;;  %v2410_v19 = vpop.f32.mrb[11].mxu1 }
 0x228   :  { %v6242_v21 = vadd.f32 %v2986_v18, %v2408_v15  ;;  %v2988_v22 = vpop.f32.mrb[11].mxu0 }
 0x229   :  { %2620 = vmatmul.mubr.bf16.gmra.mrb[116].mxu1 %v4385_v12 }
 0x22a   :  { %3198 = vmatmul.mubr.bf16.gmra.mrb[116].mxu0 %v4389_v16  ;;  %2627 = vmatprep.mubr.bf16.mxu1 %v4394_v17 }
 0x22b   :  { %3205 = vmatprep.mubr.bf16.mxu0 %v4398_v20 }
 0x22c   :  { %v2413_v25 = vpop.f32.mrb[12].mxu1 }
 0x22d   :  { %v2991_v28 = vpop.f32.mrb[12].mxu0  ;;  %v2415_v29 = vpop.f32.mrb[13].mxu1 }
 0x22e   :  { %v6256_v31 = vadd.f32 %v2991_v28, %v2413_v25  ;;  %v2993_v32 = vpop.f32.mrb[13].mxu0  ;;  %v2416_v33 = vpop.f32.mrb[14].mxu1  ;;  %v3222_v25 = vadd.f32 %v6210_v49, %v6208_v41 }
 0x22f   :  { %v2994_v36 = vpop.f32.mrb[14].mxu0  ;;  %v2418_v37 = vpop.f32.mrb[15].mxu1 }
 0x230   :  { %v6258_v39 = vadd.f32 %v2994_v36, %v2416_v33  ;;  %v2996_v40 = vpop.f32.mrb[15].mxu0  ;;  %v3223_v26 = vadd.f32 %v6224_v58, %v3222_v25 }
 0x231   :  { %2628 = vmatmul.mubr.bf16.gmra.mrb[120].mxu1 %v4393_v30 }
 0x232   :  { %3206 = vmatmul.mubr.bf16.gmra.mrb[120].mxu0 %v4397_v34  ;;  %2635 = vmatprep.mubr.bf16.mxu1 %v4402_v35  ;;  %v3224_v36 = vadd.f32 %v6226_v3, %v3223_v26 }
 0x233   :  { %3213 = vmatprep.mubr.bf16.mxu0 %v4406_v38 }
 0x234   :  { %v2421_v42 = vpop.f32.mrb[16].mxu1  ;;  %v3225_v40 = vadd.f32 %v6240_v13, %v3224_v36 }
 0x235   :  { %v2999_v43 = vpop.f32.mrb[16].mxu0  ;;  %v2423_v44 = vpop.f32.mrb[17].mxu1 }
 0x236   :  { %v6260_v46 = vadd.f32 %v2999_v43, %v2421_v42  ;;  %v3001_v47 = vpop.f32.mrb[17].mxu0  ;;  %v2424_v48 = vpop.f32.mrb[18].mxu1 }
 0x237   :  { %v3002_v51 = vpop.f32.mrb[18].mxu0  ;;  %v2426_v52 = vpop.f32.mrb[19].mxu1 }
 0x238   :  { %v6262_v53 = vadd.f32 %v3002_v51, %v2424_v48  ;;  %v3004_v54 = vpop.f32.mrb[19].mxu0 }
 0x239   :  { %2636 = vmatmul.mubr.bf16.gmra.mrb[124].mxu1 %v4401_v45  ;;  %v3226_v45 = vadd.f32 %v6242_v21, %v3225_v40 }
 0x23a   :  { %3214 = vmatmul.mubr.bf16.gmra.mrb[124].mxu0 %v4405_v50 }
 0x23b   :  { %v3227_v54 = vadd.f32 %v6256_v31, %v3226_v45 }
 0x23c   :  { %v2429_v55 = vpop.f32.mrb[20].mxu1 }
 0x23d   :  { %v3007_v56 = vpop.f32.mrb[20].mxu0  ;;  %v2431_v57 = vpop.f32.mrb[21].mxu1 }
 0x23e   :  { %v6264_v0 = vadd.f32 %v3007_v56, %v2429_v55  ;;  %v3009_v59 = vpop.f32.mrb[21].mxu0  ;;  %v2432_v60 = vpop.f32.mrb[22].mxu1  ;;  %v3228_v57 = vadd.f32 %v6258_v39, %v3227_v54 }
 0x23f   :  { %v3010_v61 = vpop.f32.mrb[22].mxu0  ;;  %v2434_v62 = vpop.f32.mrb[23].mxu1 }
 0x240   :  { %v6266_v63 = vadd.f32 %v3010_v61, %v2432_v60  ;;  %v3012_v1 = vpop.f32.mrb[23].mxu0  ;;  %v3229_v62 = vadd.f32 %v6260_v46, %v3228_v57 }
 0x244   :  { %v2437_v2 = vpop.f32.mrb[24].mxu1 }
 0x245   :  { %v3015_v4 = vpop.f32.mrb[24].mxu0  ;;  %v2439_v5 = vpop.f32.mrb[25].mxu1 }
 0x246   :  { %v6268_v6 = vadd.f32 %v3015_v4, %v2437_v2  ;;  %v3017_v7 = vpop.f32.mrb[25].mxu0  ;;  %v2440_v8 = vpop.f32.mrb[26].mxu1 }
 0x247   :  { %v3018_v9 = vpop.f32.mrb[26].mxu0  ;;  %v2442_v10 = vpop.f32.mrb[27].mxu1 }
 0x248   :  { %v6270_v11 = vadd.f32 %v3018_v9, %v2440_v8  ;;  %v3020_v12 = vpop.f32.mrb[27].mxu0  ;;  %v3230_v10 = vadd.f32 %v6262_v53, %v3229_v62 }
 0x24a   :  { %v3231_v12 = vadd.f32 %v6264_v0, %v3230_v10 }
 0x24c   :  { %v2445_v14 = vpop.f32.mrb[28].mxu1  ;;  %v3232_v25 = vadd.f32 %v6266_v63, %v3231_v12 }
 0x24d   :  { %v3023_v15 = vpop.f32.mrb[28].mxu0  ;;  %v2447_v16 = vpop.f32.mrb[29].mxu1 }
 0x24e   :  { %v6272_v17 = vadd.f32 %v3023_v15, %v2445_v14  ;;  %v3025_v18 = vpop.f32.mrb[29].mxu0  ;;  %v2448_v19 = vpop.f32.mrb[30].mxu1 }
 0x24f   :  { %v3026_v20 = vpop.f32.mrb[30].mxu0  ;;  %v2450_v22 = vpop.f32.mrb[31].mxu1 }
 0x250   :  { %v6274_v23 = vadd.f32 %v3026_v20, %v2448_v19  ;;  %v3028_v24 = vpop.f32.mrb[31].mxu0 }
 0x254   :  { %v2453_v27 = vpop.f32.mrb[32].mxu1 }
 0x255   :  { %v3031_v28 = vpop.f32.mrb[32].mxu0  ;;  %v2455_v29 = vpop.f32.mrb[33].mxu1 }
 0x256   :  { %v6279_v30 = vadd.f32 %v3031_v28, %v2453_v27  ;;  %v3033_v32 = vpop.f32.mrb[33].mxu0  ;;  %v2456_v33 = vpop.f32.mrb[34].mxu1  ;;  %v3233_v28 = vadd.f32 %v6268_v6, %v3232_v25 }
 0x257   :  { %v3034_v34 = vpop.f32.mrb[34].mxu0  ;;  %v2458_v35 = vpop.f32.mrb[35].mxu1 }
 0x258   :  { %v6282_v37 = vadd.f32 %v3034_v34, %v2456_v33  ;;  %v3036_v38 = vpop.f32.mrb[35].mxu0  ;;  %v3234_v34 = vadd.f32 %v6270_v11, %v3233_v28 }
 0x25c   :  { %v2461_v42 = vpop.f32.mrb[36].mxu1 }
 0x25d   :  { %v3039_v43 = vpop.f32.mrb[36].mxu0  ;;  %v2463_v44 = vpop.f32.mrb[37].mxu1 }
 0x25e   :  { %v6286_v47 = vadd.f32 %v3039_v43, %v2461_v42  ;;  %v3041_v48 = vpop.f32.mrb[37].mxu0  ;;  %v2464_v50 = vpop.f32.mrb[38].mxu1  ;;  %v3235_v43 = vadd.f32 %v6272_v17, %v3234_v34 }
 0x25f   :  { %v3042_v51 = vpop.f32.mrb[38].mxu0  ;;  %v2466_v52 = vpop.f32.mrb[39].mxu1 }
 0x260   :  { %v6289_v55 = vadd.f32 %v3042_v51, %v2464_v50  ;;  %v3044_v56 = vpop.f32.mrb[39].mxu0  ;;  %v3236_v48 = vadd.f32 %v6274_v23, %v3235_v43 }
 0x262   :  { %v3237_v54 = vadd.f32 %v6279_v30, %v3236_v48 }
 0x264   :  { %v2469_v59 = vpop.f32.mrb[40].mxu1 }
 0x265   :  { %v3047_v60 = vpop.f32.mrb[40].mxu0  ;;  %v2471_v61 = vpop.f32.mrb[41].mxu1 }
 0x266   :  { %v6293_v1 = vadd.f32 %v3047_v60, %v2469_v59  ;;  %v3049_v2 = vpop.f32.mrb[41].mxu0  ;;  %v2472_v4 = vpop.f32.mrb[42].mxu1 }
 0x267   :  { %v3050_v5 = vpop.f32.mrb[42].mxu0  ;;  %v2474_v7 = vpop.f32.mrb[43].mxu1 }
 0x268   :  { %v6295_v8 = vadd.f32 %v3050_v5, %v2472_v4  ;;  %v3052_v9 = vpop.f32.mrb[43].mxu0  ;;  %v3238_v4 = vadd.f32 %v6282_v37, %v3237_v54 }
 0x26a   :  { %v3239_v5 = vadd.f32 %v6286_v47, %v3238_v4 }
 0x26c   :  { %v2477_v14 = vpop.f32.mrb[44].mxu1 }
 0x26d   :  { %v3055_v15 = vpop.f32.mrb[44].mxu0  ;;  %v2479_v16 = vpop.f32.mrb[45].mxu1 }
 0x26e   :  { %v6299_v18 = vadd.f32 %v3055_v15, %v2477_v14  ;;  %v3057_v19 = vpop.f32.mrb[45].mxu0  ;;  %v2480_v20 = vpop.f32.mrb[46].mxu1 }
 0x26f   :  { %v3058_v22 = vpop.f32.mrb[46].mxu0  ;;  %v2482_v24 = vpop.f32.mrb[47].mxu1 }
 0x270   :  { %v6302_v26 = vadd.f32 %v3058_v22, %v2480_v20  ;;  %v3060_v27 = vpop.f32.mrb[47].mxu0  ;;  %v3240_v20 = vadd.f32 %v6289_v55, %v3239_v5 }
 0x272   :  { %v3241_v25 = vadd.f32 %v6293_v1, %v3240_v20 }
 0x274   :  { %v2485_v29 = vpop.f32.mrb[48].mxu1 }
 0x275   :  { %v3063_v32 = vpop.f32.mrb[48].mxu0  ;;  %v2487_v33 = vpop.f32.mrb[49].mxu1 }
 0x276   :  { %v6306_v35 = vadd.f32 %v3063_v32, %v2485_v29  ;;  %v3065_v36 = vpop.f32.mrb[49].mxu0  ;;  %v2488_v38 = vpop.f32.mrb[50].mxu1  ;;  %v3242_v32 = vadd.f32 %v6295_v8, %v3241_v25 }
 0x277   :  { %v3066_v40 = vpop.f32.mrb[50].mxu0  ;;  %v2490_v42 = vpop.f32.mrb[51].mxu1 }
 0x278   :  { %v6309_v44 = vadd.f32 %v3066_v40, %v2488_v38  ;;  %v3068_v45 = vpop.f32.mrb[51].mxu0  ;;  %v3243_v42 = vadd.f32 %v6299_v18, %v3242_v32 }
 0x27a   :  { %v3244_v48 = vadd.f32 %v6302_v26, %v3243_v42 }
 0x27c   :  { %v2493_v50 = vpop.f32.mrb[52].mxu1  ;;  %v3245_v54 = vadd.f32 %v6306_v35, %v3244_v48 }
 0x27d   :  { %v3071_v51 = vpop.f32.mrb[52].mxu0  ;;  %v2495_v52 = vpop.f32.mrb[53].mxu1 }
 0x27e   :  { %v6313_v56 = vadd.f32 %v3071_v51, %v2493_v50  ;;  %v3073_v57 = vpop.f32.mrb[53].mxu0  ;;  %v2496_v59 = vpop.f32.mrb[54].mxu1 }
 0x27f   :  { %v3074_v60 = vpop.f32.mrb[54].mxu0  ;;  %v2498_v61 = vpop.f32.mrb[55].mxu1 }
 0x280   :  { %v6315_v62 = vadd.f32 %v3074_v60, %v2496_v59  ;;  %v3076_v2 = vpop.f32.mrb[55].mxu0 }
 0x284   :  { %v2501_v7 = vpop.f32.mrb[56].mxu1 }
 0x285   :  { %v3079_v9 = vpop.f32.mrb[56].mxu0  ;;  %v2503_v10 = vpop.f32.mrb[57].mxu1 }
 0x286   :  { %v6319_v12 = vadd.f32 %v3079_v9, %v2501_v7  ;;  %v3081_v14 = vpop.f32.mrb[57].mxu0  ;;  %v2504_v15 = vpop.f32.mrb[58].mxu1  ;;  %v3246_v7 = vadd.f32 %v6309_v44, %v3245_v54 }
 0x287   :  { %v3082_v16 = vpop.f32.mrb[58].mxu0  ;;  %v2506_v19 = vpop.f32.mrb[59].mxu1 }
 0x288   :  { %v6322_v22 = vadd.f32 %v3082_v16, %v2504_v15  ;;  %v3084_v24 = vpop.f32.mrb[59].mxu0  ;;  %v3247_v9 = vadd.f32 %v6313_v56, %v3246_v7 }
 0x28c   :  { %v2509_v27 = vpop.f32.mrb[60].mxu1 }
 0x28d   :  { %v3087_v28 = vpop.f32.mrb[60].mxu0  ;;  %v2511_v29 = vpop.f32.mrb[61].mxu1 }
 0x28e   :  { %v6326_v33 = vadd.f32 %v3087_v28, %v2509_v27  ;;  %v3089_v34 = vpop.f32.mrb[61].mxu0  ;;  %v2512_v36 = vpop.f32.mrb[62].mxu1  ;;  %v3248_v27 = vadd.f32 %v6315_v62, %v3247_v9 }
 0x28f   :  { %v3090_v38 = vpop.f32.mrb[62].mxu0  ;;  %v2514_v40 = vpop.f32.mrb[63].mxu1 }
 0x290   :  { %v6329_v43 = vadd.f32 %v3090_v38, %v2512_v36  ;;  %v3092_v45 = vpop.f32.mrb[63].mxu0  ;;  %v3249_v32 = vadd.f32 %v6319_v12, %v3248_v27 }
 0x292   :  { %v3250_v40 = vadd.f32 %v6322_v22, %v3249_v32 }
 0x294   :  { %v2517_v50 = vpop.f32.mrb[64].mxu1 }
 0x295   :  { %v3095_v51 = vpop.f32.mrb[64].mxu0  ;;  %v2519_v52 = vpop.f32.mrb[65].mxu1 }
 0x296   :  { %v6333_v57 = vadd.f32 %v3095_v51, %v2517_v50  ;;  %v3097_v59 = vpop.f32.mrb[65].mxu0  ;;  %v2520_v60 = vpop.f32.mrb[66].mxu1  ;;  %v3251_v52 = vadd.f32 %v6326_v33, %v3250_v40 }
 0x297   :  { %v3098_v61 = vpop.f32.mrb[66].mxu0  ;;  %v2522_v2 = vpop.f32.mrb[67].mxu1 }
 0x298   :  { %v6335_v4 = vadd.f32 %v3098_v61, %v2520_v60  ;;  %v3100_v5 = vpop.f32.mrb[67].mxu0  ;;  %v3252_v60 = vadd.f32 %v6329_v43, %v3251_v52 }
 0x29a   :  { %v3253_v7 = vadd.f32 %v6333_v57, %v3252_v60 }
 0x29c   :  { %v2525_v10 = vpop.f32.mrb[68].mxu1 }
 0x29d   :  { %v3103_v14 = vpop.f32.mrb[68].mxu0  ;;  %v2527_v15 = vpop.f32.mrb[69].mxu1 }
 0x29e   :  { %v6339_v16 = vadd.f32 %v3103_v14, %v2525_v10  ;;  %v3105_v19 = vpop.f32.mrb[69].mxu0  ;;  %v2528_v20 = vpop.f32.mrb[70].mxu1 }
 0x29f   :  { %v3106_v24 = vpop.f32.mrb[70].mxu0  ;;  %v2530_v25 = vpop.f32.mrb[71].mxu1 }
 0x2a0   :  { %7954 = vst [vmem:[#allocation2_spill] sm:$0xff] %v6339_v16  ;;  %v6342_v28 = vadd.f32 %v3106_v24, %v2528_v20  ;;  %v3108_v29 = vpop.f32.mrb[71].mxu0  ;;  %v3254_v25 = vadd.f32 %v6335_v4, %v3253_v7 }
 0x2a2   :  { %7955 = vst [vmem:[#allocation3_spill] sm:$0xff] %v6342_v28  ;;  %v3255_v27 = vadd.f32 %v6339_v16, %v3254_v25 }
 0x2a4   :  { %v2533_v34 = vpop.f32.mrb[72].mxu1 }
 0x2a5   :  { %v3111_v36 = vpop.f32.mrb[72].mxu0  ;;  %v2535_v38 = vpop.f32.mrb[73].mxu1 }
 0x2a6   :  { %v6346_v42 = vadd.f32 %v3111_v36, %v2533_v34  ;;  %v3113_v45 = vpop.f32.mrb[73].mxu0  ;;  %v2536_v48 = vpop.f32.mrb[74].mxu1 }
 0x2a7   :  { %v3114_v50 = vpop.f32.mrb[74].mxu0  ;;  %v2538_v51 = vpop.f32.mrb[75].mxu1 }
 0x2a8   :  { %7956 = vst [vmem:[#allocation4_spill] sm:$0xff] %v6346_v42  ;;  %v6349_v54 = vadd.f32 %v3114_v50, %v2536_v48  ;;  %v3116_v59 = vpop.f32.mrb[75].mxu0  ;;  %v3256_v50 = vadd.f32 %v6342_v28, %v3255_v27 }
 0x2aa   :  { %7957 = vst [vmem:[#allocation5_spill] sm:$0xff] %v6349_v54  ;;  %v3257_v59 = vadd.f32 %v6346_v42, %v3256_v50 }
 0x2ac   :  { %v2541_v61 = vpop.f32.mrb[76].mxu1 }
 0x2ad   :  { %v3119_v2 = vpop.f32.mrb[76].mxu0  ;;  %v2543_v5 = vpop.f32.mrb[77].mxu1 }
 0x2ae   :  { %v6353_v9 = vadd.f32 %v3119_v2, %v2541_v61  ;;  %v3121_v10 = vpop.f32.mrb[77].mxu0  ;;  %v2544_v14 = vpop.f32.mrb[78].mxu1  ;;  %v3258_v5 = vadd.f32 %v6349_v54, %v3257_v59 }
 0x2af   :  { %v3122_v15 = vpop.f32.mrb[78].mxu0  ;;  %v2546_v19 = vpop.f32.mrb[79].mxu1 }
 0x2b0   :  { %7958 = vst [vmem:[#allocation6_spill] sm:$0xff] %v6353_v9  ;;  %v6355_v20 = vadd.f32 %v3122_v15, %v2544_v14  ;;  %v3124_v24 = vpop.f32.mrb[79].mxu0 }
 0x2b1   :  { %v3259_v24 = vadd.f32 %v6353_v9, %v3258_v5 }
 0x2b2   :  { %7959 = vst [vmem:[#allocation7_spill] sm:$0xff] %v6355_v20 }
 0x2b4   :  { %v2549_v29 = vpop.f32.mrb[80].mxu1 }
 0x2b5   :  { %v3127_v32 = vpop.f32.mrb[80].mxu0  ;;  %v2551_v34 = vpop.f32.mrb[81].mxu1 }
 0x2b6   :  { %v6359_v36 = vadd.f32 %v3127_v32, %v2549_v29  ;;  %v3129_v38 = vpop.f32.mrb[81].mxu0  ;;  %v2552_v40 = vpop.f32.mrb[82].mxu1  ;;  %v3260_v29 = vadd.f32 %v6355_v20, %v3259_v24 }
 0x2b7   :  { %v3130_v45 = vpop.f32.mrb[82].mxu0  ;;  %v2554_v48 = vpop.f32.mrb[83].mxu1 }
 0x2b8   :  { %7960 = vst [vmem:[#allocation8_spill] sm:$0xff] %v6359_v36  ;;  %v6362_v51 = vadd.f32 %v3130_v45, %v2552_v40  ;;  %v3132_v52 = vpop.f32.mrb[83].mxu0  ;;  %v3261_v40 = vadd.f32 %v6359_v36, %v3260_v29 }
 0x2ba   :  { %7961 = vst [vmem:[#allocation9_spill] sm:$0xff] %v6362_v51 }
 0x2bc   :  { %v2557_v60 = vpop.f32.mrb[84].mxu1 }
 0x2bd   :  { %v3135_v61 = vpop.f32.mrb[84].mxu0  ;;  %v2559_v2 = vpop.f32.mrb[85].mxu1 }
 0x2be   :  { %v6366_v7 = vadd.f32 %v3135_v61, %v2557_v60  ;;  %v3137_v10 = vpop.f32.mrb[85].mxu0  ;;  %v2560_v14 = vpop.f32.mrb[86].mxu1  ;;  %v3262_v2 = vadd.f32 %v6362_v51, %v3261_v40 }
 0x2bf   :  { %v3138_v15 = vpop.f32.mrb[86].mxu0  ;;  %v2562_v19 = vpop.f32.mrb[87].mxu1 }
 0x2c0   :  { %7962 = vst [vmem:[#allocation10_spill] sm:$0xff] %v6366_v7  ;;  %v6369_v25 = vadd.f32 %v3138_v15, %v2560_v14  ;;  %v3140_v27 = vpop.f32.mrb[87].mxu0  ;;  %v3263_v5 = vadd.f32 %v6366_v7, %v3262_v2 }
 0x2c2   :  { %7963 = vst [vmem:[#allocation11_spill] sm:$0xff] %v6369_v25 }
 0x2c4   :  { %v2565_v32 = vpop.f32.mrb[88].mxu1 }
 0x2c5   :  { %v3143_v34 = vpop.f32.mrb[88].mxu0  ;;  %v2567_v38 = vpop.f32.mrb[89].mxu1 }
 0x2c6   :  { %v6373_v45 = vadd.f32 %v3143_v34, %v2565_v32  ;;  %v3145_v48 = vpop.f32.mrb[89].mxu0  ;;  %v2568_v50 = vpop.f32.mrb[90].mxu1  ;;  %v3264_v34 = vadd.f32 %v6369_v25, %v3263_v5 }
 0x2c7   :  { %v3146_v52 = vpop.f32.mrb[90].mxu0  ;;  %v2570_v59 = vpop.f32.mrb[91].mxu1 }
 0x2c8   :  { %7964 = vst [vmem:[#allocation12_spill] sm:$0xff] %v6373_v45  ;;  %v6375_v60 = vadd.f32 %v3146_v52, %v2568_v50  ;;  %v3148_v61 = vpop.f32.mrb[91].mxu0  ;;  %v3265_v50 = vadd.f32 %v6373_v45, %v3264_v34 }
 0x2ca   :  { %7965 = vst [vmem:[#allocation13_spill] sm:$0xff] %v6375_v60  ;;  %v3266_v61 = vadd.f32 %v6375_v60, %v3265_v50 }
 0x2cc   :  { %v2573_v10 = vpop.f32.mrb[92].mxu1 }
 0x2cd   :  { %v3151_v14 = vpop.f32.mrb[92].mxu0  ;;  %v2575_v15 = vpop.f32.mrb[93].mxu1 }
 0x2ce   :  { %v6379_v19 = vadd.f32 %v3151_v14, %v2573_v10  ;;  %v3153_v24 = vpop.f32.mrb[93].mxu0  ;;  %v2576_v27 = vpop.f32.mrb[94].mxu1 }
 0x2cf   :  { %v3154_v29 = vpop.f32.mrb[94].mxu0  ;;  %v2578_v32 = vpop.f32.mrb[95].mxu1 }
 0x2d0   :  { %7966 = vst [vmem:[#allocation14_spill] sm:$0xff] %v6379_v19  ;;  %v6382_v38 = vadd.f32 %v3154_v29, %v2576_v27  ;;  %v3156_v48 = vpop.f32.mrb[95].mxu0  ;;  %v3267_v32 = vadd.f32 %v6379_v19, %v3266_v61 }
 0x2d2   :  { %7967 = vst [vmem:[#allocation15_spill] sm:$0xff] %v6382_v38  ;;  %v3268_v27 = vadd.f32 %v6382_v38, %v3267_v32 }
 0x2d4   :  { %v2581_v52 = vpop.f32.mrb[96].mxu1 }
 0x2d5   :  { %v3159_v40 = vpop.f32.mrb[96].mxu0  ;;  %v2583_v59 = vpop.f32.mrb[97].mxu1 }
 0x2d6   :  { %v6386_v2 = vadd.f32 %v3159_v40, %v2581_v52  ;;  %v3161_v10 = vpop.f32.mrb[97].mxu0  ;;  %v2584_v14 = vpop.f32.mrb[98].mxu1 }
 0x2d7   :  { %v3162_v15 = vpop.f32.mrb[98].mxu0  ;;  %v2586_v24 = vpop.f32.mrb[99].mxu1 }
 0x2d8   :  { %7968 = vst [vmem:[#allocation16_spill] sm:$0xff] %v6386_v2  ;;  %v6389_v7 = vadd.f32 %v3162_v15, %v2584_v14  ;;  %v3164_v5 = vpop.f32.mrb[99].mxu0  ;;  %v3269_v59 = vadd.f32 %v6386_v2, %v3268_v27 }
 0x2da   :  { %7969 = vst [vmem:[#allocation17_spill] sm:$0xff] %v6389_v7  ;;  %v3270_v61 = vadd.f32 %v6389_v7, %v3269_v59 }
 0x2dc   :  { %v2589_v29 = vpop.f32.mrb[100].mxu1 }
 0x2dd   :  { %v3167_v34 = vpop.f32.mrb[100].mxu0  ;;  %v2591_v48 = vpop.f32.mrb[101].mxu1 }
 0x2de   :  { %v6393_v45 = vadd.f32 %v3167_v34, %v2589_v29  ;;  %v3169_v50 = vpop.f32.mrb[101].mxu0  ;;  %v2592_v52 = vpop.f32.mrb[102].mxu1 }
 0x2df   :  { %v3170_v40 = vpop.f32.mrb[102].mxu0  ;;  %v2594_v10 = vpop.f32.mrb[103].mxu1 }
 0x2e0   :  { %7970 = vst [vmem:[#allocation18_spill] sm:$0xff] %v6393_v45  ;;  %v6395_v60 = vadd.f32 %v3170_v40, %v2592_v52  ;;  %v3172_v24 = vpop.f32.mrb[103].mxu0  ;;  %v3271_v14 = vadd.f32 %v6393_v45, %v3270_v61 }
 0x2e2   :  { %7971 = vst [vmem:[#allocation19_spill] sm:$0xff] %v6395_v60  ;;  %v3272_v50 = vadd.f32 %v6395_v60, %v3271_v14 }
 0x2e4   :  { %v2597_v15 = vpop.f32.mrb[104].mxu1 }
 0x2e5   :  { %v3175_v32 = vpop.f32.mrb[104].mxu0  ;;  %v2599_v5 = vpop.f32.mrb[105].mxu1 }
 0x2e6   :  { %v6399_v38 = vadd.f32 %v3175_v32, %v2597_v15  ;;  %v3177_v48 = vpop.f32.mrb[105].mxu0  ;;  %v2600_v27 = vpop.f32.mrb[106].mxu1 }
 0x2e7   :  { %v3178_v29 = vpop.f32.mrb[106].mxu0  ;;  %v2602_v34 = vpop.f32.mrb[107].mxu1 }
 0x2e8   :  { %7972 = vst [vmem:[#allocation20_spill] sm:$0xff] %v6399_v38  ;;  %v6402_v2 = vadd.f32 %v3178_v29, %v2600_v27  ;;  %v3180_v52 = vpop.f32.mrb[107].mxu0  ;;  %v3273_v40 = vadd.f32 %v6399_v38, %v3272_v50 }
 0x2ea   :  { %7973 = vst [vmem:[#allocation21_spill] sm:$0xff] %v6402_v2  ;;  %v3274_v61 = vadd.f32 %v6402_v2, %v3273_v40 }
 0x2ec   :  { %v2605_v10 = vpop.f32.mrb[108].mxu1 }
 0x2ed   :  { %v3183_v59 = vpop.f32.mrb[108].mxu0  ;;  %v2607_v24 = vpop.f32.mrb[109].mxu1 }
 0x2ee   :  { %v6406_v45 = vadd.f32 %v3183_v59, %v2605_v10  ;;  %v3185_v15 = vpop.f32.mrb[109].mxu0  ;;  %v2608_v32 = vpop.f32.mrb[110].mxu1 }
 0x2ef   :  { %v3186_v5 = vpop.f32.mrb[110].mxu0  ;;  %v2610_v48 = vpop.f32.mrb[111].mxu1 }
 0x2f0   :  { %v3275_v34 = vadd.f32 %v6406_v45, %v3274_v61  ;;  %v4846_v7 = vadd.f32 %v3186_v5, %v2608_v32  ;;  %v3188_v14 = vpop.f32.mrb[111].mxu0 }
 0x2f2   :  { %v3276_v27 = vadd.f32 %v4846_v7, %v3275_v34 }
 0x2f4   :  { %v2613_v29 = vpop.f32.mrb[112].mxu1 }
 0x2f5   :  { %v3191_v52 = vpop.f32.mrb[112].mxu0  ;;  %v2615_v60 = vpop.f32.mrb[113].mxu1 }
 0x2f6   :  { %v4847_v50 = vadd.f32 %v3191_v52, %v2613_v29  ;;  %v3193_v38 = vpop.f32.mrb[113].mxu0  ;;  %v2616_v19 = vpop.f32.mrb[114].mxu1 }
 0x2f7   :  { %v3194_v24 = vpop.f32.mrb[114].mxu0  ;;  %v2618_v25 = vpop.f32.mrb[115].mxu1 }
 0x2f8   :  { %v3277_v40 = vadd.f32 %v4847_v50, %v3276_v27  ;;  %v4848_v10 = vadd.f32 %v3194_v24, %v2616_v19  ;;  %v3196_v59 = vpop.f32.mrb[115].mxu0 }
 0x2fa   :  { %v3278_v15 = vadd.f32 %v4848_v10, %v3277_v40 }
 0x2fc   :  { %v2621_v2 = vpop.f32.mrb[116].mxu1 }
 0x2fd   :  { %v3199_v51 = vpop.f32.mrb[116].mxu0  ;;  %v2623_v48 = vpop.f32.mrb[117].mxu1 }
 0x2fe   :  { %v4849_v36 = vadd.f32 %v3199_v51, %v2621_v2  ;;  %v3201_v61 = vpop.f32.mrb[117].mxu0  ;;  %v2624_v32 = vpop.f32.mrb[118].mxu1 }
 0x2ff   :  { %v3202_v5 = vpop.f32.mrb[118].mxu0  ;;  %v2626_v34 = vpop.f32.mrb[119].mxu1 }
 0x300   :  { %v3279_v14 = vadd.f32 %v4849_v36, %v3278_v15  ;;  %v4850_v20 = vadd.f32 %v3202_v5, %v2624_v32  ;;  %v3204_v60 = vpop.f32.mrb[119].mxu0 }
 0x302   :  { %v3280_v29 = vadd.f32 %v4850_v20, %v3279_v14 }
 0x304   :  { %v2629_v38 = vpop.f32.mrb[120].mxu1 }
 0x305   :  { %v3207_v52 = vpop.f32.mrb[120].mxu0  ;;  %v2631_v9 = vpop.f32.mrb[121].mxu1 }
 0x306   :  { %v4851_v25 = vadd.f32 %v3207_v52, %v2629_v38  ;;  %v3209_v27 = vpop.f32.mrb[121].mxu0  ;;  %v2632_v19 = vpop.f32.mrb[122].mxu1 }
 0x307   :  { %v3210_v24 = vpop.f32.mrb[122].mxu0  ;;  %v2634_v40 = vpop.f32.mrb[123].mxu1 }
 0x308   :  { %v3281_v59 = vadd.f32 %v4851_v25, %v3280_v29  ;;  %v4852_v54 = vadd.f32 %v3210_v24, %v2632_v19  ;;  %v3212_v48 = vpop.f32.mrb[123].mxu0 }
 0x30a   :  { %v3282_v51 = vadd.f32 %v4852_v54, %v3281_v59 }
 0x30c   :  { %v2637_v2 = vpop.f32.mrb[124].mxu1 }
 0x30d   :  { %v3215_v61 = vpop.f32.mrb[124].mxu0  ;;  %v2639_v42 = vpop.f32.mrb[125].mxu1 }
 0x30e   :  { %v4853_v34 = vadd.f32 %v3215_v61, %v2637_v2  ;;  %v3217_v15 = vpop.f32.mrb[125].mxu0  ;;  %v2640_v32 = vpop.f32.mrb[126].mxu1 }
 0x30f   :  { %v3218_v5 = vpop.f32.mrb[126].mxu0  ;;  %v2642_v14 = vpop.f32.mrb[127].mxu1 }
 0x310   :  { %v3283_v60 = vadd.f32 %v4853_v34, %v3282_v51  ;;  %v4854_v28 = vadd.f32 %v3218_v5, %v2640_v32  ;;  %v3220_v9 = vpop.f32.mrb[127].mxu0 }
 0x312   :  { %v3284_v38 = vadd.f32 %v4854_v28, %v3283_v60 }
 0x314   :  { %v3285_v52 = vrot.slane %v3284_v38, 4 }
 0x316   :  { %v3286_v27 = vadd.f32 %v3285_v52, %v3284_v38 }
 0x318   :  { %v3287_v16 = vrot.slane %v3286_v27, 2 }
 0x31a   :  { %v3288_v40 = vadd.f32 %v3287_v16, %v3286_v27 }
 0x31c   :  { %v3289_v29 = vrot.slane %v3288_v40, 1 }
 0x31e   :  { %v3290_v19 = vadd.f32 %v3289_v29, %v3288_v40 }
 0x320   :  { %v6409_v24 = vmul.f32 0.001953125, %v3290_v19 }
 0x322   :  { %v6413_v42 = vsub.f32 %v6406_v45, %v6409_v24  ;;  %v6416_v59 = vsub.f32 %v4846_v7, %v6409_v24  ;;  %v6419_v48 = vsub.f32 %v4847_v50, %v6409_v24  ;;  %v6422_v51 = vsub.f32 %v4848_v10, %v6409_v24 }
 0x323   :  { %v6425_v2 = vsub.f32 %v4849_v36, %v6409_v24  ;;  %v6428_v16 = vsub.f32 %v4850_v20, %v6409_v24  ;;  %v6431_v61 = vsub.f32 %v4851_v25, %v6409_v24  ;;  %v6434_v45 = vsub.f32 %v4852_v54, %v6409_v24 }
 0x324   :  { %v6437_v7 = vsub.f32 %v4853_v34, %v6409_v24  ;;  %v6440_v50 = vsub.f32 %v4854_v28, %v6409_v24  ;;  %v6444_v10 = vsub.f32 %v6208_v41, %v6409_v24  ;;  %v6448_v20 = vsub.f32 %v6210_v49, %v6409_v24 }
 0x325   :  { %v6452_v36 = vsub.f32 %v6224_v58, %v6409_v24  ;;  %v6460_v28 = vsub.f32 %v6226_v3, %v6409_v24  ;;  %v6464_v41 = vsub.f32 %v6240_v13, %v6409_v24  ;;  %v6470_v58 = vsub.f32 %v6242_v21, %v6409_v24 }
 0x326   :  { %v3356_v54 = vmul.f32 %v6444_v10, %v6444_v10  ;;  %v3357_v25 = vmul.f32 %v6448_v20, %v6448_v20  ;;  %v6476_v3 = vsub.f32 %v6256_v31, %v6409_v24  ;;  %v6482_v14 = vsub.f32 %v6258_v39, %v6409_v24 }
 0x327   :  { %v3358_v49 = vmul.f32 %v6452_v36, %v6452_v36  ;;  %v3359_v15 = vmul.f32 %v6460_v28, %v6460_v28  ;;  %v3360_v13 = vmul.f32 %v6464_v41, %v6464_v41  ;;  %v3361_v21 = vmul.f32 %v6470_v58, %v6470_v58 }
 0x328   :  { %v3420_v34 = vadd.f32 %v3357_v25, %v3356_v54  ;;  %v6488_v9 = vsub.f32 %v6260_v46, %v6409_v24  ;;  %v3362_v31 = vmul.f32 %v6476_v3, %v6476_v3  ;;  %v6494_v52 = vsub.f32 %v6262_v53, %v6409_v24 }
 0x329   :  { %v3363_v39 = vmul.f32 %v6482_v14, %v6482_v14  ;;  %v6500_v40 = vsub.f32 %v6264_v0, %v6409_v24  ;;  %v6506_v19 = vsub.f32 %v6266_v63, %v6409_v24  ;;  %v6512_v25 = vsub.f32 %v6268_v6, %v6409_v24 }
 0x32a   :  { %v3421_v32 = vadd.f32 %v3420_v34, %v3358_v49  ;;  %v3364_v46 = vmul.f32 %v6488_v9, %v6488_v9  ;;  %v3365_v53 = vmul.f32 %v6494_v52, %v6494_v52  ;;  %v6518_v34 = vsub.f32 %v6270_v11, %v6409_v24 }
 0x32b   :  { %v3366_v0 = vmul.f32 %v6500_v40, %v6500_v40  ;;  %v3367_v63 = vmul.f32 %v6506_v19, %v6506_v19  ;;  %v3368_v6 = vmul.f32 %v6512_v25, %v6512_v25 }
 0x32c   :  { %v3422_v5 = vadd.f32 %v3421_v32, %v3359_v15  ;;  %v6524_v32 = vsub.f32 %v6272_v17, %v6409_v24  ;;  %v3369_v11 = vmul.f32 %v6518_v34, %v6518_v34 }
 0x32e   :  { %v3423_v60 = vadd.f32 %v3422_v5, %v3360_v13  ;;  %v6530_v5 = vsub.f32 %v6274_v23, %v6409_v24  ;;  %v3370_v17 = vmul.f32 %v6524_v32, %v6524_v32 }
 0x330   :  { %v3424_v38 = vadd.f32 %v3423_v60, %v3361_v21  ;;  %v6536_v60 = vsub.f32 %v6279_v30, %v6409_v24  ;;  %v3371_v23 = vmul.f32 %v6530_v5, %v6530_v5 }
 0x332   :  { %v3425_v27 = vadd.f32 %v3424_v38, %v3362_v31  ;;  %v6542_v38 = vsub.f32 %v6282_v37, %v6409_v24  ;;  %v3372_v30 = vmul.f32 %v6536_v60, %v6536_v60 }
 0x334   :  { %v3426_v29 = vadd.f32 %v3425_v27, %v3363_v39  ;;  %v6548_v27 = vsub.f32 %v6286_v47, %v6409_v24  ;;  %v3373_v37 = vmul.f32 %v6542_v38, %v6542_v38 }
 0x336   :  { %v3427_v54 = vadd.f32 %v3426_v29, %v3364_v46  ;;  %v6554_v29 = vsub.f32 %v6289_v55, %v6409_v24  ;;  %v3374_v47 = vmul.f32 %v6548_v27, %v6548_v27 }
 0x338   :  { %v3428_v49 = vadd.f32 %v3427_v54, %v3365_v53  ;;  %v6560_v54 = vsub.f32 %v6293_v1, %v6409_v24  ;;  %v3375_v55 = vmul.f32 %v6554_v29, %v6554_v29 }
 0x33a   :  { %v3429_v15 = vadd.f32 %v3428_v49, %v3366_v0  ;;  %v6566_v49 = vsub.f32 %v6295_v8, %v6409_v24  ;;  %v3376_v1 = vmul.f32 %v6560_v54, %v6560_v54 }
 0x33c   :  { %v3430_v13 = vadd.f32 %v3429_v15, %v3367_v63  ;;  %v6572_v15 = vsub.f32 %v6299_v18, %v6409_v24  ;;  %v3377_v8 = vmul.f32 %v6566_v49, %v6566_v49 }
 0x33e   :  { %v3431_v21 = vadd.f32 %v3430_v13, %v3368_v6  ;;  %v6578_v13 = vsub.f32 %v6302_v26, %v6409_v24  ;;  %v3378_v18 = vmul.f32 %v6572_v15, %v6572_v15 }
 0x340   :  { %v3432_v31 = vadd.f32 %v3431_v21, %v3369_v11  ;;  %v6584_v21 = vsub.f32 %v6306_v35, %v6409_v24  ;;  %v3379_v26 = vmul.f32 %v6578_v13, %v6578_v13 }
 0x342   :  { %v3433_v39 = vadd.f32 %v3432_v31, %v3370_v17  ;;  %v6590_v31 = vsub.f32 %v6309_v44, %v6409_v24  ;;  %v3380_v35 = vmul.f32 %v6584_v21, %v6584_v21 }
 0x344   :  { %v3434_v46 = vadd.f32 %v3433_v39, %v3371_v23  ;;  %v6596_v39 = vsub.f32 %v6313_v56, %v6409_v24  ;;  %v3381_v44 = vmul.f32 %v6590_v31, %v6590_v31 }
 0x346   :  { %v3435_v53 = vadd.f32 %v3434_v46, %v3372_v30  ;;  %v6602_v46 = vsub.f32 %v6315_v62, %v6409_v24  ;;  %v3382_v56 = vmul.f32 %v6596_v39, %v6596_v39 }
 0x348   :  { %v3436_v0 = vadd.f32 %v3435_v53, %v3373_v37  ;;  %v6608_v53 = vsub.f32 %v6319_v12, %v6409_v24  ;;  %v3383_v62 = vmul.f32 %v6602_v46, %v6602_v46 }
 0x34a   :  { %v3437_v63 = vadd.f32 %v3436_v0, %v3374_v47  ;;  %v6614_v0 = vsub.f32 %v6322_v22, %v6409_v24  ;;  %v3384_v12 = vmul.f32 %v6608_v53, %v6608_v53 }
 0x34c   :  { %v3438_v6 = vadd.f32 %v3437_v63, %v3375_v55  ;;  %v6620_v63 = vsub.f32 %v6326_v33, %v6409_v24  ;;  %v3385_v22 = vmul.f32 %v6614_v0, %v6614_v0 }
 0x34e   :  { %v3439_v11 = vadd.f32 %v3438_v6, %v3376_v1  ;;  %v6626_v6 = vsub.f32 %v6329_v43, %v6409_v24  ;;  %v3386_v33 = vmul.f32 %v6620_v63, %v6620_v63 }
 0x350   :  { %v3440_v17 = vadd.f32 %v3439_v11, %v3377_v8  ;;  %v6632_v11 = vsub.f32 %v6333_v57, %v6409_v24  ;;  %v3387_v43 = vmul.f32 %v6626_v6, %v6626_v6 }
 0x352   :  { %v3441_v23 = vadd.f32 %v3440_v17, %v3378_v18  ;;  %v6638_v17 = vsub.f32 %v6335_v4, %v6409_v24  ;;  %v3388_v57 = vmul.f32 %v6632_v11, %v6632_v11 }
 0x354   :  { %v3442_v30 = vadd.f32 %v3441_v23, %v3379_v26  ;;  %7974 = vst [vmem:[#allocation22_spill] sm:$0xff] %v6638_v17  ;;  %v7975_v23 = vld [vmem:[#allocation2_spill] sm:$0xff]  ;;  %v3389_v4 = vmul.f32 %v6638_v17, %v6638_v17 }
 0x356   :  { %v3443_v37 = vadd.f32 %v3442_v30, %v3380_v35  ;;  %v6644_v35 = vsub.f32 %v7975_v23, %v6409_v24 }
 0x358   :  { %v3444_v47 = vadd.f32 %v3443_v37, %v3381_v44  ;;  %7976 = vst [vmem:[#allocation2_spill] sm:$0xff] %v6644_v35  ;;  %v7977_v44 = vld [vmem:[#allocation3_spill] sm:$0xff] }
 0x359   :  { %v6650_v37 = vsub.f32 %v7977_v44, %v6409_v24 }
 0x35a   :  { %v3445_v55 = vadd.f32 %v3444_v47, %v3382_v56  ;;  %v7979_v47 = vld [vmem:[#allocation4_spill] sm:$0xff] }
 0x35b   :  { %7978 = vst [vmem:[#allocation3_spill] sm:$0xff] %v6650_v37 }
 0x35c   :  { %v3446_v1 = vadd.f32 %v3445_v55, %v3383_v62  ;;  %v6656_v62 = vsub.f32 %v7979_v47, %v6409_v24  ;;  %v3390_v55 = vmul.f32 %v6644_v35, %v6644_v35 }
 0x35e   :  { %v3447_v8 = vadd.f32 %v3446_v1, %v3384_v12  ;;  %7980 = vst [vmem:[#allocation4_spill] sm:$0xff] %v6656_v62  ;;  %v7981_v1 = vld [vmem:[#allocation5_spill] sm:$0xff] }
 0x360   :  { %v3448_v18 = vadd.f32 %v3447_v8, %v3385_v22  ;;  %v6662_v22 = vsub.f32 %v7981_v1, %v6409_v24  ;;  %v3391_v8 = vmul.f32 %v6650_v37, %v6650_v37  ;;  %v7989_v1 = vld [vmem:[#allocation9_spill] sm:$0xff] }
 0x362   :  { %v3449_v26 = vadd.f32 %v3448_v18, %v3386_v33  ;;  %7982 = vst [vmem:[#allocation5_spill] sm:$0xff] %v6662_v22  ;;  %v7983_v18 = vld [vmem:[#allocation6_spill] sm:$0xff]  ;;  %v3393_v44 = vmul.f32 %v6662_v22, %v6662_v22 }
 0x364   :  { %v3450_v30 = vadd.f32 %v3449_v26, %v3387_v43  ;;  %v6668_v43 = vsub.f32 %v7983_v18, %v6409_v24  ;;  %v3392_v26 = vmul.f32 %v6656_v62, %v6656_v62  ;;  %v6686_v18 = vsub.f32 %v7989_v1, %v6409_v24  ;;  %v7995_v1 = vld [vmem:[#allocation12_spill] sm:$0xff] }
 0x366   :  { %v3451_v56 = vadd.f32 %v3450_v30, %v3388_v57  ;;  %7984 = vst [vmem:[#allocation6_spill] sm:$0xff] %v6668_v43  ;;  %v7985_v57 = vld [vmem:[#allocation7_spill] sm:$0xff]  ;;  %7990 = vst [vmem:[#allocation9_spill] sm:$0xff] %v6686_v18 }
 0x367   :  { %v6674_v30 = vsub.f32 %v7985_v57, %v6409_v24  ;;  %v7991_v57 = vld [vmem:[#allocation10_spill] sm:$0xff] }
 0x368   :  { %v3452_v12 = vadd.f32 %v3451_v56, %v3389_v4  ;;  %v7987_v56 = vld [vmem:[#allocation8_spill] sm:$0xff]  ;;  %v6692_v22 = vsub.f32 %v7991_v57, %v6409_v24  ;;  %v7997_v57 = vld [vmem:[#allocation13_spill] sm:$0xff] }
 0x369   :  { %7986 = vst [vmem:[#allocation7_spill] sm:$0xff] %v6674_v30  ;;  %v6680_v47 = vsub.f32 %v7987_v56, %v6409_v24  ;;  %v7993_v56 = vld [vmem:[#allocation11_spill] sm:$0xff] }
 0x36a   :  { %v3453_v33 = vadd.f32 %v3452_v12, %v3390_v55  ;;  %v3394_v55 = vmul.f32 %v6668_v43, %v6668_v43  ;;  %7992 = vst [vmem:[#allocation10_spill] sm:$0xff] %v6692_v22  ;;  %v6698_v43 = vsub.f32 %v7993_v56, %v6409_v24  ;;  %v7999_v56 = vld [vmem:[#allocation14_spill] sm:$0xff] }
 0x36b   :  { %7988 = vst [vmem:[#allocation8_spill] sm:$0xff] %v6680_v47 }
 0x36c   :  { %v3454_v23 = vadd.f32 %v3453_v33, %v3391_v8  ;;  %v3395_v8 = vmul.f32 %v6674_v30, %v6674_v30  ;;  %7994 = vst [vmem:[#allocation11_spill] sm:$0xff] %v6698_v43  ;;  %v6704_v30 = vsub.f32 %v7995_v1, %v6409_v24  ;;  %v8001_v1 = vld [vmem:[#allocation15_spill] sm:$0xff] }
 0x36e   :  { %v3455_v4 = vadd.f32 %v3454_v23, %v3392_v26  ;;  %v3396_v26 = vmul.f32 %v6680_v47, %v6680_v47  ;;  %7996 = vst [vmem:[#allocation12_spill] sm:$0xff] %v6704_v30  ;;  %v6710_v47 = vsub.f32 %v7997_v57, %v6409_v24  ;;  %v8003_v57 = vld [vmem:[#allocation16_spill] sm:$0xff] }
 0x370   :  { %v3456_v12 = vadd.f32 %v3455_v4, %v3393_v44  ;;  %v3397_v44 = vmul.f32 %v6686_v18, %v6686_v18  ;;  %7998 = vst [vmem:[#allocation13_spill] sm:$0xff] %v6710_v47  ;;  %v6716_v18 = vsub.f32 %v7999_v56, %v6409_v24  ;;  %v8005_v56 = vld [vmem:[#allocation17_spill] sm:$0xff] }
 0x372   :  { %v3457_v33 = vadd.f32 %v3456_v12, %v3394_v55  ;;  %v3398_v55 = vmul.f32 %v6692_v22, %v6692_v22  ;;  %8000 = vst [vmem:[#allocation14_spill] sm:$0xff] %v6716_v18  ;;  %v6722_v22 = vsub.f32 %v8001_v1, %v6409_v24  ;;  %v8007_v1 = vld [vmem:[#allocation18_spill] sm:$0xff] }
 0x374   :  { %v3458_v23 = vadd.f32 %v3457_v33, %v3395_v8  ;;  %v3399_v8 = vmul.f32 %v6698_v43, %v6698_v43  ;;  %8002 = vst [vmem:[#allocation15_spill] sm:$0xff] %v6722_v22  ;;  %v6728_v43 = vsub.f32 %v8003_v57, %v6409_v24  ;;  %v8009_v57 = vld [vmem:[#allocation19_spill] sm:$0xff] }
 0x376   :  { %v3459_v4 = vadd.f32 %v3458_v23, %v3396_v26  ;;  %v3400_v26 = vmul.f32 %v6704_v30, %v6704_v30  ;;  %8004 = vst [vmem:[#allocation16_spill] sm:$0xff] %v6728_v43  ;;  %v6734_v30 = vsub.f32 %v8005_v56, %v6409_v24  ;;  %v8011_v56 = vld [vmem:[#allocation20_spill] sm:$0xff] }
 0x378   :  { %v3460_v12 = vadd.f32 %v3459_v4, %v3397_v44  ;;  %v3401_v44 = vmul.f32 %v6710_v47, %v6710_v47  ;;  %8006 = vst [vmem:[#allocation17_spill] sm:$0xff] %v6734_v30  ;;  %v6740_v47 = vsub.f32 %v8007_v1, %v6409_v24  ;;  %v8012_v1 = vld [vmem:[#allocation21_spill] sm:$0xff] }
 0x379   :  { %v3345_v62 = vsub.f32 %v8012_v1, %v6409_v24  ;;  %v3415_v1 = vmul.f32 %v6428_v16, %v6428_v16 }
 0x37a   :  { %v3461_v33 = vadd.f32 %v3460_v12, %v3398_v55  ;;  %v3402_v55 = vmul.f32 %v6716_v18, %v6716_v18  ;;  %8008 = vst [vmem:[#allocation18_spill] sm:$0xff] %v6740_v47  ;;  %v6746_v18 = vsub.f32 %v8009_v57, %v6409_v24 }
 0x37b   :  { %v3409_v37 = vmul.f32 %v3345_v62, %v3345_v62 }
 0x37c   :  { %v3462_v23 = vadd.f32 %v3461_v33, %v3399_v8  ;;  %v3403_v8 = vmul.f32 %v6722_v22, %v6722_v22  ;;  %8010 = vst [vmem:[#allocation19_spill] sm:$0xff] %v6746_v18  ;;  %v3344_v22 = vsub.f32 %v8011_v56, %v6409_v24  ;;  %v3411_v56 = vmul.f32 %v6416_v59, %v6416_v59 }
 0x37e   :  { %v3463_v4 = vadd.f32 %v3462_v23, %v3400_v26  ;;  %v3404_v26 = vmul.f32 %v6728_v43, %v6728_v43  ;;  %v3408_v57 = vmul.f32 %v3344_v22, %v3344_v22 }
 0x380   :  { %v3464_v12 = vadd.f32 %v3463_v4, %v3401_v44  ;;  %v3405_v44 = vmul.f32 %v6734_v30, %v6734_v30  ;;  %v3495_v30 = vlaneseq }
 0x382   :  { %v3465_v33 = vadd.f32 %v3464_v12, %v3402_v55  ;;  %v3406_v55 = vmul.f32 %v6740_v47, %v6740_v47 }
 0x384   :  { %v3466_v23 = vadd.f32 %v3465_v33, %v3403_v8  ;;  %v3407_v8 = vmul.f32 %v6746_v18, %v6746_v18 }
 0x386   :  { %v3467_v4 = vadd.f32 %v3466_v23, %v3404_v26  ;;  %v3410_v26 = vmul.f32 %v6413_v42, %v6413_v42 }
 0x388   :  { %v3468_v12 = vadd.f32 %v3467_v4, %v3405_v44  ;;  %v3412_v44 = vmul.f32 %v6419_v48, %v6419_v48  ;;  %v3413_v4 = vmul.f32 %v6422_v51, %v6422_v51 }
 0x38a   :  { %v3469_v33 = vadd.f32 %v3468_v12, %v3406_v55  ;;  %v3414_v12 = vmul.f32 %v6425_v2, %v6425_v2 }
 0x38c   :  { %v3470_v43 = vadd.f32 %v3469_v33, %v3407_v8  ;;  %v3417_v33 = vmul.f32 %v6434_v45, %v6434_v45 }
 0x38e   :  { %v3471_v35 = vadd.f32 %v3470_v43, %v3408_v57  ;;  %v3418_v57 = vmul.f32 %v6437_v7, %v6437_v7 }
 0x390   :  { %v3472_v23 = vadd.f32 %v3471_v35, %v3409_v37  ;;  %v3416_v37 = vmul.f32 %v6431_v61, %v6431_v61 }
 0x392   :  { %v3473_v47 = vadd.f32 %v3472_v23, %v3410_v26  ;;  %v3419_v23 = vmul.f32 %v6440_v50, %v6440_v50 }
 0x394   :  { %v3474_v24 = vadd.f32 %v3473_v47, %v3411_v56 }
 0x396   :  { %v3475_v55 = vadd.f32 %v3474_v24, %v3412_v44 }
 0x398   :  { %v3476_v43 = vadd.f32 %v3475_v55, %v3413_v4 }
 0x39a   :  { %v3477_v35 = vadd.f32 %v3476_v43, %v3414_v12 }
 0x39c   :  { %v3478_v8 = vadd.f32 %v3477_v35, %v3415_v1 }
 0x39e   :  { %v3479_v47 = vadd.f32 %v3478_v8, %v3416_v37  ;;  %v3496_v37 = vshrl.u32 %v3495_v30, 7 }
 0x3a0   :  { %v3480_v26 = vadd.f32 %v3479_v47, %v3417_v33  ;;  %v3490_v33 = vld [vmem:[%s7881_s2] sm:$0x1]  ;;  %v3497_v17 = vsub.s32 0, %v3496_v37  ;;  %v8029_v37 = vld [vmem:[#allocation8_spill] sm:$0xff] }
 0x3a2   :  { %v3481_v56 = vadd.f32 %v3480_v26, %v3418_v57 }
 0x3a4   :  { %v3482_v44 = vadd.f32 %v3481_v56, %v3419_v23 }
 0x3a6   :  { %v3483_v24 = vrot.slane %v3482_v44, 4 }
 0x3a8   :  { %v3484_v4 = vadd.f32 %v3483_v24, %v3482_v44  ;;  %v8022_v24 = vld [vmem:[#allocation22_spill] sm:$0xff] }
 0x3aa   :  { %v3485_v55 = vrot.slane %v3484_v4, 2 }
 0x3ac   :  { %v3486_v12 = vadd.f32 %v3485_v55, %v3484_v4  ;;  %v8023_v4 = vld [vmem:[#allocation2_spill] sm:$0xff]  ;;  %v8024_v55 = vld [vmem:[#allocation3_spill] sm:$0xff] }
 0x3ae   :  { %v3487_v43 = vrot.slane %v3486_v12, 1 }
 0x3b0   :  { %v3488_v18 = vadd.f32 %v3487_v43, %v3486_v12  ;;  %v8025_v12 = vld [vmem:[#allocation4_spill] sm:$0xff]  ;;  %v8026_v43 = vld [vmem:[#allocation5_spill] sm:$0xff] }
 0x3b2   :  { %v3489_v1 = vmul.f32 0.001953125, %v3488_v18 }
 0x3b4   :  { %v3491_v35 = vadd.f32 1e-05, %v3489_v1  ;;  %v8027_v1 = vld [vmem:[#allocation6_spill] sm:$0xff] }
 0x3b6   :  { %5176 = vrsqrt.f32 %v3491_v35  ;;  %v8028_v35 = vld [vmem:[#allocation7_spill] sm:$0xff] }
 0x3c0   :  { %v5177_v8 = vpop.eup %5176 }
 0x3c1   :  { %v3493_v47 = vmul.f32 %v5177_v8, %v3490_v33  ;;  %v8030_v33 = vld [vmem:[#allocation9_spill] sm:$0xff] }
 0x3c3   :  { %v6781_v57 = vrot.slane %v3493_v47, %v3497_v17 }
 0x3c5   :  { %v6784_v26 = vmul.f32 %v6781_v57, %v3344_v22  ;;  %v6787_v23 = vmul.f32 %v6781_v57, %v3345_v62  ;;  %v6791_v18 = vmul.f32 %v6781_v57, %v6413_v42  ;;  %v6795_v30 = vmul.f32 %v6781_v57, %v6416_v59 }
 0x3c6   :  { %v6799_v56 = vmul.f32 %v6781_v57, %v6419_v48  ;;  %v6803_v17 = vmul.f32 %v6781_v57, %v6422_v51  ;;  %v6807_v62 = vmul.f32 %v6781_v57, %v6425_v2  ;;  %v6811_v42 = vmul.f32 %v6781_v57, %v6428_v16 }
 0x3c7   :  { %8013 = vst [vmem:[#allocation20_spill] sm:$0xff] %v6795_v30  ;;  %v6815_v59 = vmul.f32 %v6781_v57, %v6431_v61  ;;  %v6819_v48 = vmul.f32 %v6781_v57, %v6434_v45  ;;  %v6823_v51 = vmul.f32 %v6781_v57, %v6437_v7  ;;  %v6827_v2 = vmul.f32 %v6781_v57, %v6440_v50  ;;  %v8040_v30 = vld [vmem:[#allocation19_spill] sm:$0xff] }
 0x3c8   :  { %8014 = vst [vmem:[#allocation21_spill] sm:$0xff] %v6799_v56  ;;  %8015 = vst [vmem:[#allocation23_spill] sm:$0xff] %v6803_v17  ;;  %v3500_v16 = vmul.f32 %v6781_v57, %v6444_v10  ;;  %v3501_v22 = vmul.f32 %v6781_v57, %v6448_v20  ;;  %v3502_v61 = vmul.f32 %v6781_v57, %v6452_v36  ;;  %v8039_v56 = vld [vmem:[#allocation18_spill] sm:$0xff] }
 0x3c9   :  { %8016 = vst [vmem:[#allocation24_spill] sm:$0xff] %v6807_v62  ;;  %8017 = vst [vmem:[#allocation25_spill] sm:$0xff] %v6811_v42  ;;  %v3503_v45 = vmul.f32 %v6781_v57, %v6460_v28  ;;  %v3504_v7 = vmul.f32 %v6781_v57, %v6464_v41  ;;  %v3505_v44 = vmul.f32 %v6781_v57, %v6470_v58  ;;  %v8038_v62 = vld [vmem:[#allocation17_spill] sm:$0xff] }
 0x3ca   :  { %8018 = vst [vmem:[#allocation26_spill] sm:$0xff] %v6815_v59  ;;  %8019 = vst [vmem:[#allocation27_spill] sm:$0xff] %v6819_v48  ;;  %v3506_v50 = vmul.f32 %v6781_v57, %v6476_v3  ;;  %v3507_v10 = vmul.f32 %v6781_v57, %v6482_v14  ;;  %v3508_v20 = vmul.f32 %v6781_v57, %v6488_v9  ;;  %v8036_v48 = vld [vmem:[#allocation15_spill] sm:$0xff]  ;;  %v8037_v59 = vld [vmem:[#allocation16_spill] sm:$0xff] }
 0x3cb   :  { %8020 = vst [vmem:[#allocation28_spill] sm:$0xff] %v6823_v51  ;;  %8021 = vst [vmem:[#allocation29_spill] sm:$0xff] %v6827_v2  ;;  %v3509_v36 = vmul.f32 %v6781_v57, %v6494_v52  ;;  %v3510_v28 = vmul.f32 %v6781_v57, %v6500_v40  ;;  %v3511_v41 = vmul.f32 %v6781_v57, %v6506_v19  ;;  %v8034_v2 = vld [vmem:[#allocation13_spill] sm:$0xff]  ;;  %v8035_v51 = vld [vmem:[#allocation14_spill] sm:$0xff] }
 0x3cc   :  { %v3512_v58 = vmul.f32 %v6781_v57, %v6512_v25  ;;  %v3513_v3 = vmul.f32 %v6781_v57, %v6518_v34  ;;  %v3514_v14 = vmul.f32 %v6781_v57, %v6524_v32  ;;  %v3515_v9 = vmul.f32 %v6781_v57, %v6530_v5 }
 0x3cd   :  { %v3516_v52 = vmul.f32 %v6781_v57, %v6536_v60  ;;  %v3517_v40 = vmul.f32 %v6781_v57, %v6542_v38  ;;  %v3518_v19 = vmul.f32 %v6781_v57, %v6548_v27  ;;  %v3519_v25 = vmul.f32 %v6781_v57, %v6554_v29 }
 0x3ce   :  { %v3520_v34 = vmul.f32 %v6781_v57, %v6560_v54  ;;  %v3521_v32 = vmul.f32 %v6781_v57, %v6566_v49  ;;  %v3522_v5 = vmul.f32 %v6781_v57, %v6572_v15  ;;  %v3523_v60 = vmul.f32 %v6781_v57, %v6578_v13 }
 0x3cf   :  { %v3524_v38 = vmul.f32 %v6781_v57, %v6584_v21  ;;  %v3525_v27 = vmul.f32 %v6781_v57, %v6590_v31  ;;  %v3526_v29 = vmul.f32 %v6781_v57, %v6596_v39  ;;  %v3527_v54 = vmul.f32 %v6781_v57, %v6602_v46 }
 0x3d0   :  { %v3528_v49 = vmul.f32 %v6781_v57, %v6608_v53  ;;  %v3529_v15 = vmul.f32 %v6781_v57, %v6614_v0  ;;  %v3530_v13 = vmul.f32 %v6781_v57, %v6620_v63  ;;  %v3531_v21 = vmul.f32 %v6781_v57, %v6626_v6 }
 0x3d1   :  { %v3532_v31 = vmul.f32 %v6781_v57, %v6632_v11  ;;  %v3533_v39 = vmul.f32 %v6781_v57, %v8022_v24  ;;  %v3534_v46 = vmul.f32 %v6781_v57, %v8023_v4  ;;  %v3535_v53 = vmul.f32 %v6781_v57, %v8024_v55  ;;  %v8031_v24 = vld [vmem:[#allocation10_spill] sm:$0xff] }
 0x3d2   :  { %v3536_v0 = vmul.f32 %v6781_v57, %v8025_v12  ;;  %v3537_v63 = vmul.f32 %v6781_v57, %v8026_v43  ;;  %v3538_v6 = vmul.f32 %v6781_v57, %v8027_v1  ;;  %v3539_v11 = vmul.f32 %v6781_v57, %v8028_v35  ;;  %v6918_v55 = vld [vmem:[%s7882_s3] ss:$0 sm:$0xff]  ;;  %v8032_v12 = vld [vmem:[#allocation11_spill] sm:$0xff]  ;;  %v8033_v1 = vld [vmem:[#allocation12_spill] sm:$0xff] }
 0x3d3   :  { %v3540_v8 = vmul.f32 %v6781_v57, %v8029_v37  ;;  %v3541_v47 = vmul.f32 %v6781_v57, %v8030_v33  ;;  %v3542_v4 = vmul.f32 %v6781_v57, %v8031_v24  ;;  %v3543_v43 = vmul.f32 %v6781_v57, %v8032_v12 }
 0x3d4   :  { %v3544_v35 = vmul.f32 %v6781_v57, %v8033_v1  ;;  %v3545_v37 = vmul.f32 %v6781_v57, %v8034_v2  ;;  %v3546_v33 = vmul.f32 %v6781_v57, %v8035_v51  ;;  %v3547_v24 = vmul.f32 %v6781_v57, %v8036_v48 }
 0x3d5   :  { %v3548_v42 = vmul.f32 %v6781_v57, %v8037_v59  ;;  %v3549_v17 = vmul.f32 %v6781_v57, %v8038_v62  ;;  %v3550_v12 = vmul.f32 %v6781_v57, %v8039_v56  ;;  %v3551_v1 = vmul.f32 %v6781_v57, %v8040_v30 }
 0x3d6   :  { %v6939_v2 = vadd.f32 %v6918_v55, %v3500_v16  ;;  %v6942_v51 = vadd.f32 %v6918_v55, %v3501_v22  ;;  %v6945_v48 = vadd.f32 %v6918_v55, %v3502_v61  ;;  %v6948_v59 = vadd.f32 %v6918_v55, %v3503_v45 }
 0x3d7   :  { %v6951_v62 = vadd.f32 %v6918_v55, %v3504_v7  ;;  %v6954_v56 = vadd.f32 %v6918_v55, %v3505_v44  ;;  %v6957_v57 = vadd.f32 %v6918_v55, %v3506_v50  ;;  %v6960_v30 = vadd.f32 %v6918_v55, %v3507_v10 }
 0x3d8   :  { %v6963_v16 = vadd.f32 %v6918_v55, %v3508_v20  ;;  %v6966_v22 = vadd.f32 %v6918_v55, %v3509_v36  ;;  %v6969_v61 = vadd.f32 %v6918_v55, %v3510_v28  ;;  %v6972_v45 = vadd.f32 %v6918_v55, %v3511_v41 }
 0x3d9   :  { %v6975_v7 = vadd.f32 %v6918_v55, %v3512_v58  ;;  %v6978_v44 = vadd.f32 %v6918_v55, %v3513_v3  ;;  %v6981_v50 = vadd.f32 %v6918_v55, %v3514_v14  ;;  %v6984_v10 = vadd.f32 %v6918_v55, %v3515_v9 }
 0x3da   :  { %v6987_v20 = vadd.f32 %v6918_v55, %v3516_v52  ;;  %v6990_v36 = vadd.f32 %v6918_v55, %v3517_v40  ;;  %v6993_v28 = vadd.f32 %v6918_v55, %v3518_v19  ;;  %v6996_v41 = vadd.f32 %v6918_v55, %v3519_v25 }
 0x3db   :  { %v6999_v58 = vadd.f32 %v6918_v55, %v3520_v34  ;;  %v7002_v3 = vadd.f32 %v6918_v55, %v3521_v32  ;;  %v7005_v14 = vadd.f32 %v6918_v55, %v3522_v5  ;;  %v7008_v9 = vadd.f32 %v6918_v55, %v3523_v60 }
 0x3dc   :  { %v7011_v52 = vadd.f32 %v6918_v55, %v3524_v38  ;;  %v7014_v40 = vadd.f32 %v6918_v55, %v3525_v27  ;;  %v7017_v19 = vadd.f32 %v6918_v55, %v3526_v29  ;;  %v7020_v25 = vadd.f32 %v6918_v55, %v3527_v54 }
 0x3dd   :  { %v7023_v34 = vadd.f32 %v6918_v55, %v3528_v49  ;;  %v7026_v32 = vadd.f32 %v6918_v55, %v3529_v15  ;;  %v7029_v5 = vadd.f32 %v6918_v55, %v3530_v13  ;;  %v7032_v60 = vadd.f32 %v6918_v55, %v3531_v21 }
 0x3de   :  { %v7035_v38 = vadd.f32 %v6918_v55, %v3532_v31  ;;  %v7038_v27 = vadd.f32 %v6918_v55, %v3533_v39  ;;  %v7041_v29 = vadd.f32 %v6918_v55, %v3534_v46  ;;  %v7044_v54 = vadd.f32 %v6918_v55, %v3535_v53 }
 0x3df   :  { %v7047_v49 = vadd.f32 %v6918_v55, %v3536_v0  ;;  %v7050_v15 = vadd.f32 %v6918_v55, %v3537_v63  ;;  %v7053_v13 = vadd.f32 %v6918_v55, %v3538_v6  ;;  %v7056_v21 = vadd.f32 %v6918_v55, %v3539_v11 }
 0x3e0   :  { %v7059_v31 = vadd.f32 %v6918_v55, %v3540_v8  ;;  %v7062_v39 = vadd.f32 %v6918_v55, %v3541_v47  ;;  %v7065_v46 = vadd.f32 %v6918_v55, %v3542_v4  ;;  %v7068_v53 = vadd.f32 %v6918_v55, %v3543_v43 }
 0x3e1   :  { %v7071_v0 = vadd.f32 %v6918_v55, %v3544_v35  ;;  %v7074_v63 = vadd.f32 %v6918_v55, %v3545_v37  ;;  %v7077_v6 = vadd.f32 %v6918_v55, %v3546_v33  ;;  %v7080_v11 = vadd.f32 %v6918_v55, %v3547_v24  ;;  %v8051_v24 = vld [vmem:[#allocation21_spill] sm:$0xff] }
 0x3e2   :  { %v7083_v8 = vadd.f32 %v6918_v55, %v3548_v42  ;;  %v7086_v47 = vadd.f32 %v6918_v55, %v3549_v17  ;;  %v7089_v4 = vadd.f32 %v6918_v55, %v3550_v12  ;;  %v7092_v43 = vadd.f32 %v6918_v55, %v3551_v1  ;;  %v8049_v17 = vld [vmem:[#allocation20_spill] sm:$0xff]  ;;  %v8053_v1 = vld [vmem:[#allocation23_spill] sm:$0xff] }
 0x3e3   :  { %8041 = vst [vmem:[#allocation22_spill] sm:$0xff] %v7074_v63  ;;  %v7096_v35 = vadd.f32 %v6918_v55, %v6784_v26  ;;  %v7100_v37 = vadd.f32 %v6918_v55, %v6787_v23  ;;  %v7104_v42 = vadd.f32 %v6918_v55, %v6791_v18  ;;  %v7108_v33 = vadd.f32 %v6918_v55, %v8049_v17 }
 0x3e4   :  { %8042 = vst [vmem:[#allocation2_spill] sm:$0xff] %v7083_v8  ;;  %8043 = vst [vmem:[#allocation3_spill] sm:$0xff] %v7086_v47  ;;  %v7112_v12 = vadd.f32 %v6918_v55, %v8051_v24  ;;  %v7116_v26 = vadd.f32 %v6918_v55, %v8053_v1  ;;  %vm3635_vm0 = vcmp.ge.f32.partialorder %v6939_v2, 0.0  ;;  %vm3636_vm1 = vcmp.ge.f32.partialorder %v6942_v51, 0.0 }
 0x3e5   :  { %8044 = vst [vmem:[#allocation4_spill] sm:$0xff] %v7089_v4  ;;  %8045 = vst [vmem:[#allocation5_spill] sm:$0xff] %v7092_v43  ;;  %vm3637_vm2 = vcmp.ge.f32.partialorder %v6945_v48, 0.0  ;;  %vm3638_vm3 = vcmp.ge.f32.partialorder %v6948_v59, 0.0  ;;  %vm3639_vm4 = vcmp.ge.f32.partialorder %v6951_v62, 0.0  ;;  %vm3640_vm5 = vcmp.ge.f32.partialorder %v6954_v56, 0.0 }
 0x3e6   :  { %8046 = vst [vmem:[#allocation6_spill] sm:$0xff] %v7096_v35  ;;  %8047 = vst [vmem:[#allocation7_spill] sm:$0xff] %v7100_v37  ;;  %v8055_v35 = vld [vmem:[#allocation24_spill] sm:$0xff]  ;;  %v8057_v37 = vld [vmem:[#allocation25_spill] sm:$0xff]  ;;  %vm3641_vm6 = vcmp.ge.f32.partialorder %v6957_v57, 0.0  ;;  %vm3642_vm7 = vcmp.ge.f32.partialorder %v6960_v30, 0.0 }
 0x3e7   :  { %8048 = vst [vmem:[#allocation8_spill] sm:$0xff] %v7104_v42  ;;  %8050 = vst [vmem:[#allocation9_spill] sm:$0xff] %v7108_v33  ;;  %v7120_v23 = vadd.f32 %v6918_v55, %v8055_v35  ;;  %v7124_v18 = vadd.f32 %v6918_v55, %v8057_v37  ;;  %v8059_v42 = vld [vmem:[#allocation26_spill] sm:$0xff]  ;;  %v8061_v33 = vld [vmem:[#allocation27_spill] sm:$0xff]  ;;  %vm3643_vm8 = vcmp.ge.f32.partialorder %v6963_v16, 0.0  ;;  %vm3644_vm9 = vcmp.ge.f32.partialorder %v6966_v22, 0.0 }
 0x3e8   :  { %8052 = vst [vmem:[#allocation10_spill] sm:$0xff] %v7112_v12  ;;  %8054 = vst [vmem:[#allocation11_spill] sm:$0xff] %v7116_v26  ;;  %v7128_v17 = vadd.f32 %v6918_v55, %v8059_v42  ;;  %v7132_v24 = vadd.f32 %v6918_v55, %v8061_v33  ;;  %v8063_v35 = vld [vmem:[#allocation28_spill] sm:$0xff]  ;;  %v3699_v42 = vmul.f32 0.2, %v6939_v2  ;;  %vm3645_vm10 = vcmp.ge.f32.partialorder %v6969_v61, 0.0 }
 0x3e9   :  { %8056 = vst [vmem:[#allocation12_spill] sm:$0xff] %v7120_v23  ;;  %8058 = vst [vmem:[#allocation13_spill] sm:$0xff] %v7124_v18  ;;  %v7145_v37 = vadd.f32 %v6918_v55, %v8063_v35  ;;  %v3700_v33 = vmul.f32 0.2, %v6942_v51  ;;  %v3701_v1 = vmul.f32 0.2, %v6945_v48 }
 0x3ea   :  { %8060 = vst [vmem:[#allocation14_spill] sm:$0xff] %v7128_v17  ;;  %8062 = vst [vmem:[#allocation15_spill] sm:$0xff] %v7132_v24  ;;  %v8065_v24 = vld [vmem:[#allocation29_spill] sm:$0xff]  ;;  %v3702_v18 = vmul.f32 0.2, %v6948_v59  ;;  %vm3646_vm11 = vcmp.ge.f32.partialorder %v6972_v45, 0.0 }
 0x3eb   :  { %8064 = vst [vmem:[#allocation16_spill] sm:$0xff] %v7145_v37  ;;  %v7153_v17 = vadd.f32 %v6918_v55, %v8065_v24  ;;  %v3703_v23 = vmul.f32 0.2, %v6951_v62  ;;  %v3704_v35 = vmul.f32 0.2, %v6954_v56  ;;  %v7166_v55 = vsel %vm3635_vm0, %v6939_v2, %v3699_v42 }
 0x3ec   :  { %v3705_v37 = vmul.f32 0.2, %v6957_v57  ;;  %v3706_v26 = vmul.f32 0.2, %v6960_v30  ;;  %v3707_v12 = vmul.f32 0.2, %v6963_v16  ;;  %v7177_v4 = vsel %vm3636_vm1, %v6942_v51, %v3700_v33 }
 0x3ed   :  { %8066 = vst [vmem:[#allocation17_spill] sm:$0xff] %v7153_v17  ;;  %8067 = vst [vmem:[#allocation18_spill] sm:$0xff] %v7166_v55  ;;  %vm3647_vm12 = vcmp.ge.f32.partialorder %v6975_v7, 0.0  ;;  %v3708_v24 = vmul.f32 0.2, %v6966_v22  ;;  %vm3648_vm13 = vcmp.ge.f32.partialorder %v6978_v44, 0.0  ;;  %v7192_v55 = vsel %vm3637_vm2, %v6945_v48, %v3701_v1 }
 0x3ee   :  { %v3709_v17 = vmul.f32 0.2, %v6969_v61  ;;  %v7172_v43 = vmul.f32 0.2, %v6972_v45  ;;  %8068 = vst [vmem:[#allocation19_spill] sm:$0xff] %v7177_v4  ;;  %8070 = vst [vmem:[#allocation21_spill] sm:$0xff] %v7192_v55 }
 0x3ef   :  { %v7181_v47 = vmul.f32 0.2, %v6975_v7  ;;  %v7184_v2 = vmul.f32 0.2, %v6978_v44  ;;  %v7187_v42 = vmul.f32 0.2, %v6981_v50 }
 0x3f0   :  { %vm3649_vm14 = vcmp.ge.f32.partialorder %v6981_v50, 0.0  ;;  %v7196_v51 = vmul.f32 0.2, %v6984_v10  ;;  %v7199_v33 = vmul.f32 0.2, %v6987_v20  ;;  %vm3650_vm15 = vcmp.ge.f32.partialorder %v6984_v10, 0.0 }
 0x3f1   :  { %8069 = vst [vmem:[#allocation20_spill] sm:$0xff] %v7187_v42  ;;  %v7202_v4 = vmul.f32 0.2, %v6990_v36  ;;  %v7207_v42 = vsel %vm3638_vm3, %v6948_v59, %v3702_v18  ;;  %v7211_v48 = vmul.f32 0.2, %v6993_v28  ;;  %vm3651_vm0 = vcmp.ge.f32.partialorder %v6987_v20, 0.0 }
 0x3f2   :  { %8072 = vst [vmem:[#allocation24_spill] sm:$0xff] %v7207_v42  ;;  %v7214_v1 = vmul.f32 0.2, %v6996_v41  ;;  %v7217_v55 = vmul.f32 0.2, %v6999_v58  ;;  %vm3652_vm1 = vcmp.ge.f32.partialorder %v6990_v36, 0.0 }
 0x3f3   :  { %8071 = vst [vmem:[#allocation23_spill] sm:$0xff] %v7202_v4  ;;  %v7222_v4 = vsel %vm3639_vm4, %v6951_v62, %v3703_v23  ;;  %v7226_v59 = vmul.f32 0.2, %v7002_v3  ;;  %v7229_v18 = vmul.f32 0.2, %v7005_v14  ;;  %vm3653_vm2 = vcmp.ge.f32.partialorder %v6993_v28, 0.0 }
 0x3f4   :  { %8073 = vst [vmem:[#allocation25_spill] sm:$0xff] %v7217_v55  ;;  %8074 = vst [vmem:[#allocation26_spill] sm:$0xff] %v7222_v4  ;;  %v7232_v42 = vmul.f32 0.2, %v7008_v9  ;;  %v7237_v55 = vsel %vm3640_vm5, %v6954_v56, %v3704_v35  ;;  %v7241_v62 = vmul.f32 0.2, %v7011_v52 }
 0x3f5   :  { %8076 = vst [vmem:[#allocation28_spill] sm:$0xff] %v7237_v55  ;;  %v7244_v23 = vmul.f32 0.2, %v7014_v40  ;;  %v7247_v4 = vmul.f32 0.2, %v7017_v19  ;;  %vm3654_vm3 = vcmp.ge.f32.partialorder %v6996_v41, 0.0 }
 0x3f6   :  { %8075 = vst [vmem:[#allocation27_spill] sm:$0xff] %v7232_v42  ;;  %v7252_v42 = vsel %vm3641_vm6, %v6957_v57, %v3705_v37  ;;  %v7256_v56 = vmul.f32 0.2, %v7020_v25  ;;  %v7259_v35 = vmul.f32 0.2, %v7023_v34  ;;  %vm3657_vm6 = vcmp.ge.f32.partialorder %v7005_v14, 0.0 }
 0x3f7   :  { %8077 = vst [vmem:[#allocation29_spill] sm:$0xff] %v7247_v4  ;;  %8078 = vst [vmem:[#allocation30_spill] sm:$0xff] %v7252_v42  ;;  %v7262_v55 = vmul.f32 0.2, %v7026_v32  ;;  %v7267_v4 = vsel %vm3642_vm7, %v6960_v30, %v3706_v26  ;;  %v7273_v57 = vmul.f32 0.2, %v7029_v5  ;;  %v7284_v30 = vsel %vm3643_vm8, %v6963_v16, %v3707_v12 }
 0x3f8   :  { %8079 = vst [vmem:[#allocation31_spill] sm:$0xff] %v7267_v4  ;;  %v7276_v37 = vmul.f32 0.2, %v7032_v60  ;;  %v7279_v42 = vmul.f32 0.2, %v7035_v38  ;;  %8081 = vst [vmem:[#allocation33_spill] sm:$0xff] %v7284_v30  ;;  %v7302_v16 = vsel %vm3644_vm9, %v6966_v22, %v3708_v24  ;;  %v7320_v22 = vsel %vm3645_vm10, %v6969_v61, %v3709_v17 }
 0x3f9   :  { %v7291_v26 = vmul.f32 0.2, %v7038_v27  ;;  %v7294_v4 = vmul.f32 0.2, %v7041_v29  ;;  %8083 = vst [vmem:[#allocation35_spill] sm:$0xff] %v7302_v16  ;;  %vm3661_vm8 = vcmp.ge.f32.partialorder %v7017_v19, 0.0  ;;  %v7339_v61 = vsel %vm3646_vm11, %v6972_v45, %v7172_v43 }
 0x3fa   :  { %8080 = vst [vmem:[#allocation32_spill] sm:$0xff] %v7279_v42  ;;  %v7297_v42 = vmul.f32 0.2, %v7044_v54  ;;  %v7309_v12 = vmul.f32 0.2, %v7047_v49  ;;  %8085 = vst [vmem:[#allocation37_spill] sm:$0xff] %v7320_v22  ;;  %v7358_v45 = vsel %vm3647_vm12, %v6975_v7, %v7181_v47  ;;  %v7377_v7 = vsel %vm3648_vm13, %v6978_v44, %v7184_v2 }
 0x3fb   :  { %v7312_v30 = vmul.f32 0.2, %v7050_v15  ;;  %vm3665_vm9 = vcmp.ge.f32.partialorder %v7029_v5, 0.0  ;;  %v7327_v24 = vmul.f32 0.2, %v7056_v21  ;;  %8087 = vst [vmem:[#allocation39_spill] sm:$0xff] %v7339_v61 }
 0x3fc   :  { %8082 = vst [vmem:[#allocation34_spill] sm:$0xff] %v7297_v42  ;;  %v7315_v42 = vmul.f32 0.2, %v7053_v13  ;;  %v7330_v16 = vmul.f32 0.2, %v7059_v31  ;;  %vm3669_vm10 = vcmp.ge.f32.partialorder %v7041_v29, 0.0 }
 0x3fd   :  { %v7346_v17 = vmul.f32 0.2, %v7065_v46  ;;  %v7349_v22 = vmul.f32 0.2, %v7068_v53  ;;  %8090 = vst [vmem:[#allocation42_spill] sm:$0xff] %v7358_v45  ;;  %vm3673_vm11 = vcmp.ge.f32.partialorder %v7053_v13, 0.0 }
 0x3fe   :  { %8084 = vst [vmem:[#allocation36_spill] sm:$0xff] %v7315_v42  ;;  %v7333_v42 = vmul.f32 0.2, %v7062_v39  ;;  %v7365_v43 = vmul.f32 0.2, %v7074_v63  ;;  %8094 = vst [vmem:[#allocation46_spill] sm:$0xff] %v7377_v7 }
 0x3ff   :  { %8088 = vst [vmem:[#allocation40_spill] sm:$0xff] %v7349_v22  ;;  %v7368_v61 = vmul.f32 0.2, %v7077_v6  ;;  %vm3677_vm12 = vcmp.ge.f32.partialorder %v7065_v46, 0.0  ;;  %v7384_v47 = vmul.f32 0.2, %v7083_v8 }
 0x400   :  { %8086 = vst [vmem:[#allocation38_spill] sm:$0xff] %v7333_v42  ;;  %v7352_v42 = vmul.f32 0.2, %v7071_v0  ;;  %8091 = vst [vmem:[#allocation43_spill] sm:$0xff] %v7365_v43  ;;  %v8096_v45 = vld [vmem:[#allocation3_spill] sm:$0xff]  ;;  %v8100_v22 = vld [vmem:[#allocation20_spill] sm:$0xff] }
 0x401   :  { %8092 = vst [vmem:[#allocation44_spill] sm:$0xff] %v7368_v61  ;;  %8095 = vst [vmem:[#allocation47_spill] sm:$0xff] %v7384_v47  ;;  %v7387_v61 = vmul.f32 0.2, %v8096_v45  ;;  %v7396_v44 = vsel %vm3649_vm14, %v6981_v50, %v8100_v22  ;;  %vm3681_vm13 = vcmp.ge.f32.partialorder %v7077_v6, 0.0  ;;  %v8102_v2 = vld [vmem:[#allocation5_spill] sm:$0xff]  ;;  %v7415_v50 = vsel %vm3650_vm15, %v6984_v10, %v7196_v51 }
 0x402   :  { %8089 = vst [vmem:[#allocation41_spill] sm:$0xff] %v7352_v42  ;;  %v7371_v42 = vmul.f32 0.2, %v7080_v11  ;;  %8101 = vst [vmem:[#allocation20_spill] sm:$0xff] %v7396_v44  ;;  %v7403_v7 = vmul.f32 0.2, %v8102_v2  ;;  %v7428_v10 = vsel %vm3651_vm0, %v6987_v20, %v7199_v33 }
 0x403   :  { %8097 = vst [vmem:[#allocation48_spill] sm:$0xff] %v7387_v61  ;;  %v8104_v61 = vld [vmem:[#allocation6_spill] sm:$0xff]  ;;  %8108 = vst [vmem:[#allocation53_spill] sm:$0xff] %v7415_v50  ;;  %v8109_v22 = vld [vmem:[#allocation8_spill] sm:$0xff]  ;;  %vm8123_vm7 = vcmp.ge.f32.partialorder %v6999_v58, 0.0 }
 0x404   :  { %8093 = vst [vmem:[#allocation45_spill] sm:$0xff] %v7371_v42  ;;  %v8098_v42 = vld [vmem:[#allocation4_spill] sm:$0xff]  ;;  %8103 = vst [vmem:[#allocation50_spill] sm:$0xff] %v7403_v7  ;;  %v7406_v47 = vmul.f32 0.2, %v8104_v61  ;;  %v8111_v45 = vld [vmem:[#allocation10_spill] sm:$0xff] }
 0x405   :  { %v7390_v43 = vmul.f32 0.2, %v8098_v42  ;;  %vm3685_vm14 = vcmp.ge.f32.partialorder %v8098_v42, 0.0  ;;  %v3753_v44 = vmul.f32 0.2, %v8109_v22  ;;  %8112 = vst [vmem:[#allocation54_spill] sm:$0xff] %v7428_v10 }
 0x406   :  { %8105 = vst [vmem:[#allocation51_spill] sm:$0xff] %v7406_v47  ;;  %v8110_v47 = vld [vmem:[#allocation9_spill] sm:$0xff]  ;;  %vm3689_vm15 = vcmp.ge.f32.partialorder %v8109_v22, 0.0  ;;  %v8113_v51 = vld [vmem:[#allocation11_spill] sm:$0xff]  ;;  %v8118_v33 = vld [vmem:[#allocation14_spill] sm:$0xff] }
 0x407   :  { %8099 = vst [vmem:[#allocation49_spill] sm:$0xff] %v7390_v43  ;;  %v8106_v43 = vld [vmem:[#allocation7_spill] sm:$0xff]  ;;  %v3754_v7 = vmul.f32 0.2, %v8110_v47  ;;  %v3756_v50 = vmul.f32 0.2, %v8113_v51 }
 0x408   :  { %v7409_v63 = vmul.f32 0.2, %v8106_v43  ;;  %v8114_v43 = vld [vmem:[#allocation12_spill] sm:$0xff]  ;;  %v8115_v2 = vld [vmem:[#allocation13_spill] sm:$0xff]  ;;  %v8116_v8 = vld [vmem:[#allocation23_spill] sm:$0xff]  ;;  %vm3695_vm4 = vcmp.ge.f32.partialorder %v8118_v33, 0.0 }
 0x409   :  { %v3757_v61 = vmul.f32 0.2, %v8114_v43  ;;  %v3758_v42 = vmul.f32 0.2, %v8115_v2  ;;  %v7441_v20 = vsel %vm3652_vm1, %v6990_v36, %v8116_v8  ;;  %vm3693_vm0 = vcmp.ge.f32.partialorder %v8114_v43, 0.0  ;;  %v8119_v10 = vld [vmem:[#allocation15_spill] sm:$0xff] }
 0x40a   :  { %8107 = vst [vmem:[#allocation52_spill] sm:$0xff] %v7409_v63  ;;  %v3755_v63 = vmul.f32 0.2, %v8111_v45  ;;  %8117 = vst [vmem:[#allocation12_spill] sm:$0xff] %v7441_v20  ;;  %v3759_v51 = vmul.f32 0.2, %v8118_v33  ;;  %v7454_v36 = vsel %vm3653_vm2, %v6993_v28, %v7211_v48  ;;  %v7463_v33 = vsel %vm3654_vm3, %v6996_v41, %v7214_v1 }
 0x40b   :  { %v3760_v45 = vmul.f32 0.2, %v8119_v10  ;;  %v8120_v47 = vld [vmem:[#allocation16_spill] sm:$0xff]  ;;  %v8121_v8 = vld [vmem:[#allocation17_spill] sm:$0xff]  ;;  %vm8124_vm2 = vcmp.ge.f32.partialorder %v7002_v3, 0.0  ;;  %v7481_v48 = vsel %vm3657_vm6, %v7005_v14, %v7229_v18  ;;  %v8125_v41 = vld [vmem:[#allocation27_spill] sm:$0xff] }
 0x40c   :  { %v3761_v22 = vmul.f32 0.2, %v8120_v47  ;;  %vm3697_vm1 = vcmp.ge.f32.partialorder %v8120_v47, 0.0  ;;  %vm3698_vm5 = vcmp.ge.f32.partialorder %v8121_v8, 0.0  ;;  %v3762_v20 = vmul.f32 0.2, %v8121_v8 }
 0x40d   :  { %v8122_v10 = vld [vmem:[#allocation25_spill] sm:$0xff]  ;;  %v7475_v28 = vsel %vm8124_vm2, %v7002_v3, %v7226_v59  ;;  %vm8126_vm3 = vcmp.ge.f32.partialorder %v7008_v9, 0.0  ;;  %vm8128_vm2 = vcmp.ge.f32.partialorder %v7014_v40, 0.0  ;;  %vm8130_vm6 = vcmp.ge.f32.partialorder %v7020_v25, 0.0 }
 0x40e   :  { %v7469_v2 = vsel %vm8123_vm7, %v6999_v58, %v8122_v10  ;;  %v7487_v1 = vsel %vm8126_vm3, %v7008_v9, %v8125_v41  ;;  %vm8127_vm7 = vcmp.ge.f32.partialorder %v7011_v52, 0.0  ;;  %v7499_v3 = vsel %vm8128_vm2, %v7014_v40, %v7244_v23  ;;  %v8129_v14 = vld [vmem:[#allocation29_spill] sm:$0xff]  ;;  %v8163_v10 = vld [vmem:[#allocation4_spill] sm:$0xff] }
 0x40f   :  { %v7493_v58 = vsel %vm8127_vm7, %v7011_v52, %v7241_v62  ;;  %v7505_v59 = vsel %vm3661_vm8, %v7017_v19, %v8129_v14  ;;  %v7511_v9 = vsel %vm8130_vm6, %v7020_v25, %v7256_v56  ;;  %vm8131_vm3 = vcmp.ge.f32.partialorder %v7023_v34, 0.0  ;;  %v8165_v14 = vld [vmem:[#allocation5_spill] sm:$0xff] }
 0x410   :  { %v7517_v52 = vsel %vm8131_vm3, %v7023_v34, %v7259_v35  ;;  %vm8132_vm7 = vcmp.ge.f32.partialorder %v7026_v32, 0.0  ;;  %v7529_v19 = vsel %vm3665_vm9, %v7029_v5, %v7273_v57  ;;  %vm8133_vm8 = vcmp.ge.f32.partialorder %v7032_v60, 0.0  ;;  %v8134_v34 = vld [vmem:[#allocation32_spill] sm:$0xff]  ;;  %v8151_v35 = vld [vmem:[#allocation22_spill] sm:$0xff] }
 0x411   :  { %v7523_v40 = vsel %vm8132_vm7, %v7026_v32, %v7262_v55  ;;  %v7535_v25 = vsel %vm8133_vm8, %v7032_v60, %v7276_v37  ;;  %vm8135_vm2 = vcmp.ge.f32.partialorder %v7035_v38, 0.0  ;;  %vm8136_vm6 = vcmp.ge.f32.partialorder %v7038_v27, 0.0  ;;  %v8137_v60 = vld [vmem:[#allocation34_spill] sm:$0xff] }
 0x412   :  { %v7541_v18 = vsel %vm8135_vm2, %v7035_v38, %v8134_v34  ;;  %v7547_v32 = vsel %vm8136_vm6, %v7038_v27, %v7291_v26  ;;  %v7553_v5 = vsel %vm3669_vm10, %v7041_v29, %v7294_v4  ;;  %vm8138_vm9 = vcmp.ge.f32.partialorder %v7044_v54, 0.0  ;;  %v8141_v29 = vld [vmem:[#allocation36_spill] sm:$0xff]  ;;  %v8157_v26 = vld [vmem:[#allocation2_spill] sm:$0xff] }
 0x413   :  { %v7559_v55 = vsel %vm8138_vm9, %v7044_v54, %v8137_v60  ;;  %vm8139_vm3 = vcmp.ge.f32.partialorder %v7047_v49, 0.0  ;;  %vm8140_vm7 = vcmp.ge.f32.partialorder %v7050_v15, 0.0  ;;  %v7577_v4 = vsel %vm3673_vm11, %v7053_v13, %v8141_v29  ;;  %v8167_v60 = vld [vmem:[#allocation51_spill] sm:$0xff]  ;;  %v8168_v29 = vld [vmem:[#allocation6_spill] sm:$0xff] }
 0x414   :  { %v7565_v38 = vsel %vm8139_vm3, %v7047_v49, %v7309_v12  ;;  %v7571_v27 = vsel %vm8140_vm7, %v7050_v15, %v7312_v30  ;;  %vm8142_vm10 = vcmp.ge.f32.partialorder %v7056_v21, 0.0  ;;  %vm8143_vm8 = vcmp.ge.f32.partialorder %v7059_v31, 0.0  ;;  %v8144_v15 = vld [vmem:[#allocation38_spill] sm:$0xff]  ;;  %v8159_v12 = vld [vmem:[#allocation48_spill] sm:$0xff] }
 0x415   :  { %v7583_v54 = vsel %vm8142_vm10, %v7056_v21, %v7327_v24  ;;  %v7589_v49 = vsel %vm8143_vm8, %v7059_v31, %v7330_v16  ;;  %vm8145_vm2 = vcmp.ge.f32.partialorder %v7062_v39, 0.0  ;;  %v7601_v13 = vsel %vm3677_vm12, %v7065_v46, %v7346_v17  ;;  %v8146_v21 = vld [vmem:[#allocation40_spill] sm:$0xff]  ;;  %v8148_v31 = vld [vmem:[#allocation41_spill] sm:$0xff]  ;;  %v8160_v24 = vld [vmem:[#allocation3_spill] sm:$0xff] }
 0x416   :  { %v7595_v62 = vsel %vm8145_vm2, %v7062_v39, %v8144_v15  ;;  %vm8147_vm11 = vcmp.ge.f32.partialorder %v7068_v53, 0.0  ;;  %vm8149_vm6 = vcmp.ge.f32.partialorder %v7071_v0, 0.0  ;;  %v8150_v39 = vld [vmem:[#allocation43_spill] sm:$0xff]  ;;  %vm8152_vm9 = vcmp.ge.f32.partialorder %v8151_v35, 0.0  ;;  %v8153_v46 = vld [vmem:[#allocation44_spill] sm:$0xff] }
 0x417   :  { %v7607_v23 = vsel %vm8147_vm11, %v7068_v53, %v8146_v21  ;;  %v7613_v56 = vsel %vm8149_vm6, %v7071_v0, %v8148_v31  ;;  %v7619_v57 = vsel %vm8152_vm9, %v8151_v35, %v8150_v39  ;;  %v7625_v37 = vsel %vm3681_vm13, %v7077_v6, %v8153_v46  ;;  %v8154_v53 = vld [vmem:[#allocation45_spill] sm:$0xff]  ;;  %v8156_v0 = vld [vmem:[#allocation47_spill] sm:$0xff]  ;;  %v8170_v21 = vld [vmem:[#allocation52_spill] sm:$0xff] }
 0x418   :  { %vm8155_vm12 = vcmp.ge.f32.partialorder %v7080_v11, 0.0  ;;  %vm8158_vm3 = vcmp.ge.f32.partialorder %v8157_v26, 0.0  ;;  %vm8161_vm7 = vcmp.ge.f32.partialorder %v8160_v24, 0.0  ;;  %v8162_v6 = vld [vmem:[#allocation49_spill] sm:$0xff]  ;;  %vm8166_vm13 = vcmp.ge.f32.partialorder %v8165_v14, 0.0  ;;  %v8171_v31 = vld [vmem:[#allocation7_spill] sm:$0xff] }
 0x419   :  { %v7631_v30 = vsel %vm8155_vm12, %v7080_v11, %v8154_v53  ;;  %v7637_v16 = vsel %vm8158_vm3, %v8157_v26, %v8156_v0  ;;  %v7643_v17 = vsel %vm8161_vm7, %v8160_v24, %v8159_v12  ;;  %v7649_v41 = vsel %vm3685_vm14, %v8163_v10, %v8162_v6  ;;  %v8164_v11 = vld [vmem:[#allocation50_spill] sm:$0xff]  ;;  %v8173_v35 = vld [vmem:[#allocation8_spill] sm:$0xff]  ;;  %v8174_v53 = vld [vmem:[#allocation9_spill] sm:$0xff] }
 0x41a   :  { %v7655_v34 = vsel %vm8166_vm13, %v8165_v14, %v8164_v11  ;;  %vm8169_vm10 = vcmp.ge.f32.partialorder %v8168_v29, 0.0  ;;  %vm8172_vm8 = vcmp.ge.f32.partialorder %v8171_v31, 0.0  ;;  %v7672_v46 = vsel %vm3689_vm15, %v8173_v35, %v3753_v44  ;;  %v8176_v26 = vld [vmem:[#allocation10_spill] sm:$0xff]  ;;  %v8178_v24 = vld [vmem:[#allocation11_spill] sm:$0xff]  ;;  %v8180_v10 = vld [vmem:[#allocation13_spill] sm:$0xff] }
 0x41b   :  { %v7661_v15 = vsel %vm8169_vm10, %v8168_v29, %v8167_v60  ;;  %v7667_v39 = vsel %vm8172_vm8, %v8171_v31, %v8170_v21  ;;  %vm8175_vm14 = vcmp.ge.f32.partialorder %v8174_v53, 0.0  ;;  %vm8177_vm2 = vcmp.ge.f32.partialorder %v8176_v26, 0.0  ;;  %v8182_v11 = vld [vmem:[#allocation14_spill] sm:$0xff]  ;;  %v8183_v14 = vld [vmem:[#allocation15_spill] sm:$0xff]  ;;  %v8190_v21 = vld [vmem:[#allocation24_spill] sm:$0xff] }
 0x41c   :  { %v7677_v0 = vsel %vm8175_vm14, %v8174_v53, %v3754_v7  ;;  %v7682_v12 = vsel %vm8177_vm2, %v8176_v26, %v3755_v63  ;;  %vm8179_vm11 = vcmp.ge.f32.partialorder %v8178_v24, 0.0  ;;  %v7692_v44 = vsel %vm3693_vm0, %v8114_v43, %v3757_v61  ;;  %v8187_v43 = vld [vmem:[#allocation18_spill] sm:$0xff]  ;;  %v8188_v60 = vld [vmem:[#allocation19_spill] sm:$0xff]  ;;  %v8192_v53 = vld [vmem:[#allocation28_spill] sm:$0xff] }
 0x41d   :  { %v7687_v6 = vsel %vm8179_vm11, %v8178_v24, %v3756_v50  ;;  %vm8181_vm15 = vcmp.ge.f32.partialorder %v8180_v10, 0.0  ;;  %v7702_v63 = vsel %vm3695_vm4, %v8182_v11, %v3759_v51  ;;  %vm8184_vm6 = vcmp.ge.f32.partialorder %v8183_v14, 0.0  ;;  %v8189_v51 = vld [vmem:[#allocation21_spill] sm:$0xff]  ;;  %v8191_v35 = vld [vmem:[#allocation26_spill] sm:$0xff]  ;;  %v8194_v24 = vld [vmem:[#allocation31_spill] sm:$0xff] }
 0x41e   :  { %v7697_v7 = vsel %vm8181_vm15, %v8180_v10, %v3758_v42  ;;  %v7707_v50 = vsel %vm8184_vm6, %v8183_v14, %v3760_v45  ;;  %v7712_v61 = vsel %vm3697_vm1, %v8120_v47, %v3761_v22  ;;  %v7717_v42 = vsel %vm3698_vm5, %v8121_v8, %v3762_v20  ;;  %v8193_v26 = vld [vmem:[#allocation30_spill] sm:$0xff]  ;;  %v8195_v11 = vld [vmem:[#allocation33_spill] sm:$0xff]  ;;  %v8196_v47 = vld [vmem:[#allocation35_spill] sm:$0xff] }
 0x41f   :  { %8185 = vst [vmem:[#allocation23_spill] sm:$0xff] %v7707_v50  ;;  %8186 = vst [vmem:[#allocation16_spill] sm:$0xff] %v7712_v61  ;;  %v4603_v29 = vpack.c.bf16 %v8188_v60, %v8187_v43  ;;  %v4608_v31 = vpack.c.bf16 %v8190_v21, %v8189_v51  ;;  %v4613_v45 = vpack.c.bf16 %v8192_v53, %v8191_v35  ;;  %v8197_v14 = vld [vmem:[#allocation37_spill] sm:$0xff]  ;;  %v8198_v61 = vld [vmem:[#allocation39_spill] sm:$0xff] }
 0x420   :  { %v4618_v10 = vpack.c.bf16 %v8194_v24, %v8193_v26  ;;  %v4623_v22 = vpack.c.bf16 %v8196_v47, %v8195_v11  ;;  %v4628_v50 = vpack.c.bf16 %v8198_v61, %v8197_v14  ;;  %v8199_v20 = vld [vmem:[#allocation42_spill] sm:$0xff]  ;;  %v8201_v60 = vld [vmem:[#allocation20_spill] sm:$0xff]  ;;  %v8202_v51 = vld [vmem:[#allocation53_spill] sm:$0xff]  ;;  %v4648_v61 = vpack.c.bf16 %v7463_v33, %v7454_v36 }
 0x421   :  { %4604 = vst [vmem:[%s7883_s4] sm:$0xff] %v4603_v29   ;;  %4760 = vst [vmem:[%s7883_s4 + $0x8] sm:$0xff] %v4608_v31   ;;  %v8200_v8 = vld [vmem:[#allocation46_spill] sm:$0xff]  ;;  %v4638_v21 = vpack.c.bf16 %v8202_v51, %v8201_v60  ;;  %v8204_v53 = vld [vmem:[#allocation12_spill] sm:$0xff]  ;;  %v4653_v29 = vpack.c.bf16 %v7475_v28, %v7469_v2  ;;  %v4658_v33 = vpack.c.bf16 %v7487_v1, %v7481_v48 }
 0x422   :  { %v4633_v43 = vpack.c.bf16 %v8200_v8, %v8199_v20  ;;  %v8203_v35 = vld [vmem:[#allocation54_spill] sm:$0xff]  ;;  %4761 = vst [vmem:[%s7883_s4 + $0x10] sm:$0xff] %v4613_v45   ;;  %4762 = vst [vmem:[%s7883_s4 + $0x18] sm:$0xff] %v4618_v10   ;;  %v4663_v36 = vpack.c.bf16 %v7499_v3, %v7493_v58  ;;  %v4668_v31 = vpack.c.bf16 %v7511_v9, %v7505_v59 }
 0x423   :  { %v4643_v26 = vpack.c.bf16 %v8204_v53, %v8203_v35  ;;  %4763 = vst [vmem:[%s7883_s4 + $0x20] sm:$0xff] %v4623_v22   ;;  %4764 = vst [vmem:[%s7883_s4 + $0x28] sm:$0xff] %v4628_v50   ;;  %v4673_v2 = vpack.c.bf16 %v7523_v40, %v7517_v52  ;;  %v4678_v28 = vpack.c.bf16 %v7535_v25, %v7529_v19 }
 0x424   :  { %4765 = vst [vmem:[%s7883_s4 + $0x30] sm:$0xff] %v4633_v43   ;;  %4766 = vst [vmem:[%s7883_s4 + $0x38] sm:$0xff] %v4638_v21   ;;  %v4683_v48 = vpack.c.bf16 %v7547_v32, %v7541_v18  ;;  %v4688_v1 = vpack.c.bf16 %v7559_v55, %v7553_v5  ;;  %v4693_v58 = vpack.c.bf16 %v7571_v27, %v7565_v38 }
 0x425   :  { %4767 = vst [vmem:[%s7883_s4 + $0x40] sm:$0xff] %v4643_v26   ;;  %4768 = vst [vmem:[%s7883_s4 + $0x48] sm:$0xff] %v4648_v61   ;;  %v4698_v3 = vpack.c.bf16 %v7583_v54, %v7577_v4  ;;  %v4703_v59 = vpack.c.bf16 %v7595_v62, %v7589_v49  ;;  %v4708_v9 = vpack.c.bf16 %v7607_v23, %v7601_v13 }
 0x426   :  { %4769 = vst [vmem:[%s7883_s4 + $0x50] sm:$0xff] %v4653_v29   ;;  %4770 = vst [vmem:[%s7883_s4 + $0x58] sm:$0xff] %v4658_v33   ;;  %v4713_v52 = vpack.c.bf16 %v7619_v57, %v7613_v56  ;;  %v4718_v40 = vpack.c.bf16 %v7631_v30, %v7625_v37  ;;  %v4723_v19 = vpack.c.bf16 %v7643_v17, %v7637_v16  ;;  %v8205_v38 = vld [vmem:[#allocation23_spill] sm:$0xff]  ;;  %v8206_v4 = vld [vmem:[#allocation16_spill] sm:$0xff] }
 0x427   :  { %4771 = vst [vmem:[%s7883_s4 + $0x60] sm:$0xff] %v4663_v36   ;;  %4772 = vst [vmem:[%s7883_s4 + $0x68] sm:$0xff] %v4668_v31   ;;  %v4728_v25 = vpack.c.bf16 %v7655_v34, %v7649_v41  ;;  %v4733_v18 = vpack.c.bf16 %v7667_v39, %v7661_v15  ;;  %v4738_v32 = vpack.c.bf16 %v7677_v0, %v7672_v46 }
 0x428   :  { %4773 = vst [vmem:[%s7883_s4 + $0x70] sm:$0xff] %v4673_v2   ;;  %4774 = vst [vmem:[%s7883_s4 + $0x78] sm:$0xff] %v4678_v28   ;;  %v4743_v5 = vpack.c.bf16 %v7687_v6, %v7682_v12  ;;  %v4748_v55 = vpack.c.bf16 %v7697_v7, %v7692_v44  ;;  %v4753_v27 = vpack.c.bf16 %v8205_v38, %v7702_v63 }
 0x429   :  { %4775 = vst [vmem:[%s7883_s4 + $0x80] sm:$0xff] %v4683_v48   ;;  %4776 = vst [vmem:[%s7883_s4 + $0x88] sm:$0xff] %v4688_v1   ;;  %v4758_v54 = vpack.c.bf16 %v7717_v42, %v8206_v4 }
 0x42a   :  { %4777 = vst [vmem:[%s7883_s4 + $0x90] sm:$0xff] %v4693_v58   ;;  %4778 = vst [vmem:[%s7883_s4 + $0x98] sm:$0xff] %v4698_v3  }
 0x42b   :  { %4779 = vst [vmem:[%s7883_s4 + $0xa0] sm:$0xff] %v4703_v59   ;;  %4780 = vst [vmem:[%s7883_s4 + $0xa8] sm:$0xff] %v4708_v9  }
 0x42c   :  { %4781 = vst [vmem:[%s7883_s4 + $0xb0] sm:$0xff] %v4713_v52   ;;  %4782 = vst [vmem:[%s7883_s4 + $0xb8] sm:$0xff] %v4718_v40  }
 0x42d   :  { %4783 = vst [vmem:[%s7883_s4 + $0xc0] sm:$0xff] %v4723_v19   ;;  %4784 = vst [vmem:[%s7883_s4 + $0xc8] sm:$0xff] %v4728_v25  }
 0x42e   :  { %4785 = vst [vmem:[%s7883_s4 + $0xd0] sm:$0xff] %v4733_v18   ;;  %4786 = vst [vmem:[%s7883_s4 + $0xd8] sm:$0xff] %v4738_v32  }
 0x42f   :  { %4787 = vst [vmem:[%s7883_s4 + $0xe0] sm:$0xff] %v4743_v5   ;;  %4788 = vst [vmem:[%s7883_s4 + $0xe8] sm:$0xff] %v4748_v55  }
 0x430   :  { %4789 = vst [vmem:[%s7883_s4 + $0xf0] sm:$0xff] %v4753_v27   ;;  %4790 = vst [vmem:[%s7883_s4 + $0xf8] sm:$0xff] %v4758_v54  }

// kernel: discriminator_forward.6
= control target key start
LH: loop header
LB: loop body
LE: loop exit
PB: predicated region body
PF: predicated region fallthrough
CT: control target
= control target key end

     0   :  { %s5349_s15 = smov 0   ;;  %s5351_s16 = smov 0   ;;  %s6776_s0 = inlined_call_operand.vmem [shape: bf16[128,2048], index: 0, kind: input, shape index: {}]   ;;  %s6777_s1 = inlined_call_operand.vmem [shape: bf16[2048,256], index: 1, kind: input, shape index: {}]   ;;  %s6778_s2 = inlined_call_operand.vmem [shape: f32[1,256], index: 2, kind: input, shape index: {}]   ;;  %s6779_s3 = inlined_call_operand.vmem [shape: f32[1,256], index: 3, kind: input, shape index: {}]   ;;  %s6780_s4 = inlined_call_operand.vmem [shape: bf16[128,256], index: 4, kind: output, shape index: {}]  }
   0x1   :  { %s5353_s17 = smov 0  }
   0x2 LB: > { %s5365_s18 = sadd.s32 4294967295, %s5322_s17   ;;  %s5368_s19 = sadd.s32 1, %s5322_s17   ;;  %s5322_s17 = sphi %s5353_s17, %s6784_s17   ;;  %s5318_s16 = sphi %s5351_s16, %s6783_s16   ;;  %s5314_s15 = sphi %s5349_s15, %s6782_s15  }
   0x3   : > { %s39_s20 = ssub.s32 %s5322_s17, %s5368_s19  ;;  %s42_s21 = sadd.s32 1, %s5318_s16 }
   0x4   : > { %p40_p0 = scmp.eq.s32.totalorder %s39_s20, 0  ;;  %p49_p1 = scmp.ne.s32.totalorder %s5318_s16, %s5314_s15 }
   0x5   : > { %p50_p2 = scmp.eq.s32.totalorder %s5322_s17, 0  ;;  %p131_p3 = scmp.eq.s32.totalorder %s5365_s18, 1 }
   0x6   : > { %s5378_s22 = scalar_select %p40_p0, %s5318_s16, %s42_s21  }
   0x7   : > { %p51_p4 = por %p50_p2, %p49_p1  ;;  %p5380_p5 = por %p131_p3, %p49_p1 }
   0x8   : > { %p4288_p6 = scmp.ge.s32.totalorder %s5322_s17, 2 }
   0xa   : > { %156 = sbr.rel (%p4288_p6) target bundleno = 191 (0xbf), region = 20 }
  0x11   : > { %159 = sbr.rel (!%p51_p4) target bundleno = 191 (0xbf), region = 24  ;;  %s161_s24 = sand.u32 (%p51_p4), 1, %s5318_s16  }
  0x12   : > { %s4290_s25 = sshll.u32 (%p51_p4), %s5322_s17, 2  ;;  %s4289_s26 = sshll.u32 (%p51_p4), %s161_s24, 10 }
  0x13   : > { %s5390_s29 = scalar_lea.vmem (%p51_p4), %s6777_s1, %s4290_s25  ;;  %s5394_s30 = scalar_lea.vmem (%p51_p4), [#allocation2], %s4289_s26 }
  0x14   : > { %v181_v0 = vld [vmem:[%s5390_s29] sm:$0xf] (%p51_p4)  ;;  %v183_v1 = vld [vmem:[%s5390_s29 + $0x8] sm:$0xf] (%p51_p4)  ;;  %v185_v2 = vld [vmem:[%s5390_s29 + $0x10] sm:$0xf] (%p51_p4) }
  0x15   : > { %182 = vst [vmem:[%s5394_s30] sm:$0xf] (%p51_p4), %v181_v0  ;;  %184 = vst [vmem:[%s5394_s30 + $0x4] sm:$0xf] (%p51_p4), %v183_v1  ;;  %v187_v3 = vld [vmem:[%s5390_s29 + $0x18] sm:$0xf] (%p51_p4) }
  0x16   : > { %v189_v4 = vld [vmem:[%s5390_s29 + $0x20] sm:$0xf] (%p51_p4)  ;;  %186 = vst [vmem:[%s5394_s30 + $0x8] sm:$0xf] (%p51_p4), %v185_v2  ;;  %188 = vst [vmem:[%s5394_s30 + $0xc] sm:$0xf] (%p51_p4), %v187_v3 }
  0x17   : > { %190 = vst [vmem:[%s5394_s30 + $0x10] sm:$0xf] (%p51_p4), %v189_v4  ;;  %v191_v5 = vld [vmem:[%s5390_s29 + $0x28] sm:$0xf] (%p51_p4)  ;;  %v193_v6 = vld [vmem:[%s5390_s29 + $0x30] sm:$0xf] (%p51_p4) }
  0x18   : > { %v195_v7 = vld [vmem:[%s5390_s29 + $0x38] sm:$0xf]  ;;  %192 = vst [vmem:[%s5394_s30 + $0x14] sm:$0xf] %v191_v5  ;;  %194 = vst [vmem:[%s5394_s30 + $0x18] sm:$0xf] %v193_v6 }
  0x19   : > { %196 = vst [vmem:[%s5394_s30 + $0x1c] sm:$0xf] %v195_v7  ;;  %v197_v8 = vld [vmem:[%s5390_s29 + $0x40] sm:$0xf]  ;;  %v199_v9 = vld [vmem:[%s5390_s29 + $0x48] sm:$0xf] }
  0x1a   : > { %v201_v10 = vld [vmem:[%s5390_s29 + $0x50] sm:$0xf]  ;;  %198 = vst [vmem:[%s5394_s30 + $0x20] sm:$0xf] %v197_v8  ;;  %200 = vst [vmem:[%s5394_s30 + $0x24] sm:$0xf] %v199_v9 }
  0x1b   : > { %202 = vst [vmem:[%s5394_s30 + $0x28] sm:$0xf] %v201_v10  ;;  %v203_v11 = vld [vmem:[%s5390_s29 + $0x58] sm:$0xf]  ;;  %v205_v12 = vld [vmem:[%s5390_s29 + $0x60] sm:$0xf] }
  0x1c   : > { %v207_v13 = vld [vmem:[%s5390_s29 + $0x68] sm:$0xf]  ;;  %204 = vst [vmem:[%s5394_s30 + $0x2c] sm:$0xf] %v203_v11  ;;  %206 = vst [vmem:[%s5394_s30 + $0x30] sm:$0xf] %v205_v12 }
  0x1d   : > { %208 = vst [vmem:[%s5394_s30 + $0x34] sm:$0xf] %v207_v13  ;;  %v209_v14 = vld [vmem:[%s5390_s29 + $0x70] sm:$0xf]  ;;  %v211_v15 = vld [vmem:[%s5390_s29 + $0x78] sm:$0xf] }
  0x1e   : > { %v213_v16 = vld [vmem:[%s5390_s29 + $0x80] sm:$0xf]  ;;  %210 = vst [vmem:[%s5394_s30 + $0x38] sm:$0xf] %v209_v14  ;;  %212 = vst [vmem:[%s5394_s30 + $0x3c] sm:$0xf] %v211_v15 }
  0x1f   : > { %214 = vst [vmem:[%s5394_s30 + $0x40] sm:$0xf] %v213_v16  ;;  %v215_v17 = vld [vmem:[%s5390_s29 + $0x88] sm:$0xf]  ;;  %v217_v18 = vld [vmem:[%s5390_s29 + $0x90] sm:$0xf] }
  0x20   : > { %v219_v19 = vld [vmem:[%s5390_s29 + $0x98] sm:$0xf]  ;;  %216 = vst [vmem:[%s5394_s30 + $0x44] sm:$0xf] %v215_v17  ;;  %218 = vst [vmem:[%s5394_s30 + $0x48] sm:$0xf] %v217_v18 }
  0x21   : > { %220 = vst [vmem:[%s5394_s30 + $0x4c] sm:$0xf] %v219_v19  ;;  %v221_v20 = vld [vmem:[%s5390_s29 + $0xa0] sm:$0xf]  ;;  %v223_v21 = vld [vmem:[%s5390_s29 + $0xa8] sm:$0xf] }
  0x22   : > { %v225_v22 = vld [vmem:[%s5390_s29 + $0xb0] sm:$0xf]  ;;  %222 = vst [vmem:[%s5394_s30 + $0x50] sm:$0xf] %v221_v20  ;;  %224 = vst [vmem:[%s5394_s30 + $0x54] sm:$0xf] %v223_v21 }
  0x23   : > { %226 = vst [vmem:[%s5394_s30 + $0x58] sm:$0xf] %v225_v22  ;;  %v227_v23 = vld [vmem:[%s5390_s29 + $0xb8] sm:$0xf]  ;;  %v229_v24 = vld [vmem:[%s5390_s29 + $0xc0] sm:$0xf] }
  0x24   : > { %v231_v25 = vld [vmem:[%s5390_s29 + $0xc8] sm:$0xf]  ;;  %228 = vst [vmem:[%s5394_s30 + $0x5c] sm:$0xf] %v227_v23  ;;  %230 = vst [vmem:[%s5394_s30 + $0x60] sm:$0xf] %v229_v24 }
  0x25   : > { %232 = vst [vmem:[%s5394_s30 + $0x64] sm:$0xf] %v231_v25  ;;  %v233_v26 = vld [vmem:[%s5390_s29 + $0xd0] sm:$0xf]  ;;  %v235_v27 = vld [vmem:[%s5390_s29 + $0xd8] sm:$0xf] }
  0x26   : > { %v237_v28 = vld [vmem:[%s5390_s29 + $0xe0] sm:$0xf]  ;;  %234 = vst [vmem:[%s5394_s30 + $0x68] sm:$0xf] %v233_v26  ;;  %236 = vst [vmem:[%s5394_s30 + $0x6c] sm:$0xf] %v235_v27 }
  0x27   : > { %238 = vst [vmem:[%s5394_s30 + $0x70] sm:$0xf] %v237_v28  ;;  %v239_v29 = vld [vmem:[%s5390_s29 + $0xe8] sm:$0xf]  ;;  %v241_v30 = vld [vmem:[%s5390_s29 + $0xf0] sm:$0xf] }
  0x28   : > { %v243_v31 = vld [vmem:[%s5390_s29 + $0xf8] sm:$0xf]  ;;  %240 = vst [vmem:[%s5394_s30 + $0x74] sm:$0xf] %v239_v29  ;;  %242 = vst [vmem:[%s5394_s30 + $0x78] sm:$0xf] %v241_v30 }
  0x29   : > { %244 = vst [vmem:[%s5394_s30 + $0x7c] sm:$0xf] %v243_v31  ;;  %v245_v32 = vld [vmem:[%s5390_s29 + $0x100] sm:$0xf]  ;;  %v247_v33 = vld [vmem:[%s5390_s29 + $0x108] sm:$0xf] }
  0x2a   : > { %v249_v34 = vld [vmem:[%s5390_s29 + $0x110] sm:$0xf]  ;;  %246 = vst [vmem:[%s5394_s30 + $0x80] sm:$0xf] %v245_v32  ;;  %248 = vst [vmem:[%s5394_s30 + $0x84] sm:$0xf] %v247_v33 }
  0x2b   : > { %250 = vst [vmem:[%s5394_s30 + $0x88] sm:$0xf] %v249_v34  ;;  %v251_v35 = vld [vmem:[%s5390_s29 + $0x118] sm:$0xf]  ;;  %v253_v36 = vld [vmem:[%s5390_s29 + $0x120] sm:$0xf] }
  0x2c   : > { %v255_v37 = vld [vmem:[%s5390_s29 + $0x128] sm:$0xf]  ;;  %252 = vst [vmem:[%s5394_s30 + $0x8c] sm:$0xf] %v251_v35  ;;  %254 = vst [vmem:[%s5394_s30 + $0x90] sm:$0xf] %v253_v36 }
  0x2d   : > { %256 = vst [vmem:[%s5394_s30 + $0x94] sm:$0xf] %v255_v37  ;;  %v257_v38 = vld [vmem:[%s5390_s29 + $0x130] sm:$0xf]  ;;  %v259_v39 = vld [vmem:[%s5390_s29 + $0x138] sm:$0xf] }
  0x2e   : > { %v261_v40 = vld [vmem:[%s5390_s29 + $0x140] sm:$0xf]  ;;  %258 = vst [vmem:[%s5394_s30 + $0x98] sm:$0xf] %v257_v38  ;;  %260 = vst [vmem:[%s5394_s30 + $0x9c] sm:$0xf] %v259_v39 }
  0x2f   : > { %262 = vst [vmem:[%s5394_s30 + $0xa0] sm:$0xf] %v261_v40  ;;  %v263_v41 = vld [vmem:[%s5390_s29 + $0x148] sm:$0xf]  ;;  %v265_v42 = vld [vmem:[%s5390_s29 + $0x150] sm:$0xf] }
  0x30   : > { %v267_v43 = vld [vmem:[%s5390_s29 + $0x158] sm:$0xf]  ;;  %264 = vst [vmem:[%s5394_s30 + $0xa4] sm:$0xf] %v263_v41  ;;  %266 = vst [vmem:[%s5394_s30 + $0xa8] sm:$0xf] %v265_v42 }
  0x31   : > { %268 = vst [vmem:[%s5394_s30 + $0xac] sm:$0xf] %v267_v43  ;;  %v269_v44 = vld [vmem:[%s5390_s29 + $0x160] sm:$0xf]  ;;  %v271_v45 = vld [vmem:[%s5390_s29 + $0x168] sm:$0xf] }
  0x32   : > { %v273_v46 = vld [vmem:[%s5390_s29 + $0x170] sm:$0xf]  ;;  %270 = vst [vmem:[%s5394_s30 + $0xb0] sm:$0xf] %v269_v44  ;;  %272 = vst [vmem:[%s5394_s30 + $0xb4] sm:$0xf] %v271_v45 }
  0x33   : > { %274 = vst [vmem:[%s5394_s30 + $0xb8] sm:$0xf] %v273_v46  ;;  %v275_v47 = vld [vmem:[%s5390_s29 + $0x178] sm:$0xf]  ;;  %v277_v48 = vld [vmem:[%s5390_s29 + $0x180] sm:$0xf] }
  0x34   : > { %v279_v49 = vld [vmem:[%s5390_s29 + $0x188] sm:$0xf]  ;;  %276 = vst [vmem:[%s5394_s30 + $0xbc] sm:$0xf] %v275_v47  ;;  %278 = vst [vmem:[%s5394_s30 + $0xc0] sm:$0xf] %v277_v48 }
  0x35   : > { %280 = vst [vmem:[%s5394_s30 + $0xc4] sm:$0xf] %v279_v49  ;;  %v281_v50 = vld [vmem:[%s5390_s29 + $0x190] sm:$0xf]  ;;  %v283_v51 = vld [vmem:[%s5390_s29 + $0x198] sm:$0xf] }
  0x36   : > { %v285_v52 = vld [vmem:[%s5390_s29 + $0x1a0] sm:$0xf]  ;;  %282 = vst [vmem:[%s5394_s30 + $0xc8] sm:$0xf] %v281_v50  ;;  %284 = vst [vmem:[%s5394_s30 + $0xcc] sm:$0xf] %v283_v51 }
  0x37   : > { %286 = vst [vmem:[%s5394_s30 + $0xd0] sm:$0xf] %v285_v52  ;;  %v287_v53 = vld [vmem:[%s5390_s29 + $0x1a8] sm:$0xf]  ;;  %v289_v54 = vld [vmem:[%s5390_s29 + $0x1b0] sm:$0xf] }
  0x38   : > { %v291_v55 = vld [vmem:[%s5390_s29 + $0x1b8] sm:$0xf]  ;;  %288 = vst [vmem:[%s5394_s30 + $0xd4] sm:$0xf] %v287_v53  ;;  %290 = vst [vmem:[%s5394_s30 + $0xd8] sm:$0xf] %v289_v54 }
  0x39   : > { %292 = vst [vmem:[%s5394_s30 + $0xdc] sm:$0xf] %v291_v55  ;;  %v293_v56 = vld [vmem:[%s5390_s29 + $0x1c0] sm:$0xf]  ;;  %v295_v57 = vld [vmem:[%s5390_s29 + $0x1c8] sm:$0xf] }
  0x3a   : > { %v297_v58 = vld [vmem:[%s5390_s29 + $0x1d0] sm:$0xf]  ;;  %294 = vst [vmem:[%s5394_s30 + $0xe0] sm:$0xf] %v293_v56  ;;  %296 = vst [vmem:[%s5394_s30 + $0xe4] sm:$0xf] %v295_v57 }
  0x3b   : > { %298 = vst [vmem:[%s5394_s30 + $0xe8] sm:$0xf] %v297_v58  ;;  %v299_v59 = vld [vmem:[%s5390_s29 + $0x1d8] sm:$0xf]  ;;  %v301_v60 = vld [vmem:[%s5390_s29 + $0x1e0] sm:$0xf] }
  0x3c   : > { %v303_v61 = vld [vmem:[%s5390_s29 + $0x1e8] sm:$0xf]  ;;  %300 = vst [vmem:[%s5394_s30 + $0xec] sm:$0xf] %v299_v59  ;;  %302 = vst [vmem:[%s5394_s30 + $0xf0] sm:$0xf] %v301_v60 }
  0x3d   : > { %304 = vst [vmem:[%s5394_s30 + $0xf4] sm:$0xf] %v303_v61  ;;  %v305_v62 = vld [vmem:[%s5390_s29 + $0x1f0] sm:$0xf]  ;;  %v307_v63 = vld [vmem:[%s5390_s29 + $0x1f8] sm:$0xf] }
  0x3e   : > { %v309_v0 = vld [vmem:[%s5390_s29 + $0x200] sm:$0xf]  ;;  %306 = vst [vmem:[%s5394_s30 + $0xf8] sm:$0xf] %v305_v62  ;;  %308 = vst [vmem:[%s5394_s30 + $0xfc] sm:$0xf] %v307_v63 }
  0x3f   : > { %310 = vst [vmem:[%s5394_s30 + $0x100] sm:$0xf] %v309_v0  ;;  %v311_v1 = vld [vmem:[%s5390_s29 + $0x208] sm:$0xf]  ;;  %v313_v2 = vld [vmem:[%s5390_s29 + $0x210] sm:$0xf] }
  0x40   : > { %v315_v3 = vld [vmem:[%s5390_s29 + $0x218] sm:$0xf]  ;;  %312 = vst [vmem:[%s5394_s30 + $0x104] sm:$0xf] %v311_v1  ;;  %314 = vst [vmem:[%s5394_s30 + $0x108] sm:$0xf] %v313_v2 }
  0x41   : > { %316 = vst [vmem:[%s5394_s30 + $0x10c] sm:$0xf] %v315_v3  ;;  %v317_v4 = vld [vmem:[%s5390_s29 + $0x220] sm:$0xf]  ;;  %v319_v5 = vld [vmem:[%s5390_s29 + $0x228] sm:$0xf] }
  0x42   : > { %v321_v6 = vld [vmem:[%s5390_s29 + $0x230] sm:$0xf]  ;;  %318 = vst [vmem:[%s5394_s30 + $0x110] sm:$0xf] %v317_v4  ;;  %320 = vst [vmem:[%s5394_s30 + $0x114] sm:$0xf] %v319_v5 }
  0x43   : > { %322 = vst [vmem:[%s5394_s30 + $0x118] sm:$0xf] %v321_v6  ;;  %v323_v7 = vld [vmem:[%s5390_s29 + $0x238] sm:$0xf]  ;;  %v325_v8 = vld [vmem:[%s5390_s29 + $0x240] sm:$0xf] }
  0x44   : > { %v327_v9 = vld [vmem:[%s5390_s29 + $0x248] sm:$0xf]  ;;  %324 = vst [vmem:[%s5394_s30 + $0x11c] sm:$0xf] %v323_v7  ;;  %326 = vst [vmem:[%s5394_s30 + $0x120] sm:$0xf] %v325_v8 }
  0x45   : > { %328 = vst [vmem:[%s5394_s30 + $0x124] sm:$0xf] %v327_v9  ;;  %v329_v10 = vld [vmem:[%s5390_s29 + $0x250] sm:$0xf]  ;;  %v331_v11 = vld [vmem:[%s5390_s29 + $0x258] sm:$0xf] }
  0x46   : > { %v333_v12 = vld [vmem:[%s5390_s29 + $0x260] sm:$0xf]  ;;  %330 = vst [vmem:[%s5394_s30 + $0x128] sm:$0xf] %v329_v10  ;;  %332 = vst [vmem:[%s5394_s30 + $0x12c] sm:$0xf] %v331_v11 }
  0x47   : > { %334 = vst [vmem:[%s5394_s30 + $0x130] sm:$0xf] %v333_v12  ;;  %v335_v13 = vld [vmem:[%s5390_s29 + $0x268] sm:$0xf]  ;;  %v337_v14 = vld [vmem:[%s5390_s29 + $0x270] sm:$0xf] }
  0x48   : > { %v339_v15 = vld [vmem:[%s5390_s29 + $0x278] sm:$0xf]  ;;  %336 = vst [vmem:[%s5394_s30 + $0x134] sm:$0xf] %v335_v13  ;;  %338 = vst [vmem:[%s5394_s30 + $0x138] sm:$0xf] %v337_v14 }
  0x49   : > { %340 = vst [vmem:[%s5394_s30 + $0x13c] sm:$0xf] %v339_v15  ;;  %v341_v16 = vld [vmem:[%s5390_s29 + $0x280] sm:$0xf]  ;;  %v343_v17 = vld [vmem:[%s5390_s29 + $0x288] sm:$0xf] }
  0x4a   : > { %v345_v18 = vld [vmem:[%s5390_s29 + $0x290] sm:$0xf]  ;;  %342 = vst [vmem:[%s5394_s30 + $0x140] sm:$0xf] %v341_v16  ;;  %344 = vst [vmem:[%s5394_s30 + $0x144] sm:$0xf] %v343_v17 }
  0x4b   : > { %346 = vst [vmem:[%s5394_s30 + $0x148] sm:$0xf] %v345_v18  ;;  %v347_v19 = vld [vmem:[%s5390_s29 + $0x298] sm:$0xf]  ;;  %v349_v20 = vld [vmem:[%s5390_s29 + $0x2a0] sm:$0xf] }
  0x4c   : > { %v351_v21 = vld [vmem:[%s5390_s29 + $0x2a8] sm:$0xf]  ;;  %348 = vst [vmem:[%s5394_s30 + $0x14c] sm:$0xf] %v347_v19  ;;  %350 = vst [vmem:[%s5394_s30 + $0x150] sm:$0xf] %v349_v20 }
  0x4d   : > { %352 = vst [vmem:[%s5394_s30 + $0x154] sm:$0xf] %v351_v21  ;;  %v353_v22 = vld [vmem:[%s5390_s29 + $0x2b0] sm:$0xf]  ;;  %v355_v23 = vld [vmem:[%s5390_s29 + $0x2b8] sm:$0xf] }
  0x4e   : > { %v357_v24 = vld [vmem:[%s5390_s29 + $0x2c0] sm:$0xf]  ;;  %354 = vst [vmem:[%s5394_s30 + $0x158] sm:$0xf] %v353_v22  ;;  %356 = vst [vmem:[%s5394_s30 + $0x15c] sm:$0xf] %v355_v23 }
  0x4f   : > { %358 = vst [vmem:[%s5394_s30 + $0x160] sm:$0xf] %v357_v24  ;;  %v359_v25 = vld [vmem:[%s5390_s29 + $0x2c8] sm:$0xf]  ;;  %v361_v26 = vld [vmem:[%s5390_s29 + $0x2d0] sm:$0xf] }
  0x50   : > { %v363_v27 = vld [vmem:[%s5390_s29 + $0x2d8] sm:$0xf]  ;;  %360 = vst [vmem:[%s5394_s30 + $0x164] sm:$0xf] %v359_v25  ;;  %362 = vst [vmem:[%s5394_s30 + $0x168] sm:$0xf] %v361_v26 }
  0x51   : > { %364 = vst [vmem:[%s5394_s30 + $0x16c] sm:$0xf] %v363_v27  ;;  %v365_v28 = vld [vmem:[%s5390_s29 + $0x2e0] sm:$0xf]  ;;  %v367_v29 = vld [vmem:[%s5390_s29 + $0x2e8] sm:$0xf] }
  0x52   : > { %v369_v30 = vld [vmem:[%s5390_s29 + $0x2f0] sm:$0xf]  ;;  %366 = vst [vmem:[%s5394_s30 + $0x170] sm:$0xf] %v365_v28  ;;  %368 = vst [vmem:[%s5394_s30 + $0x174] sm:$0xf] %v367_v29 }
  0x53   : > { %370 = vst [vmem:[%s5394_s30 + $0x178] sm:$0xf] %v369_v30  ;;  %v371_v31 = vld [vmem:[%s5390_s29 + $0x2f8] sm:$0xf]  ;;  %v373_v32 = vld [vmem:[%s5390_s29 + $0x300] sm:$0xf] }
  0x54   : > { %v375_v33 = vld [vmem:[%s5390_s29 + $0x308] sm:$0xf]  ;;  %372 = vst [vmem:[%s5394_s30 + $0x17c] sm:$0xf] %v371_v31  ;;  %374 = vst [vmem:[%s5394_s30 + $0x180] sm:$0xf] %v373_v32 }
  0x55   : > { %376 = vst [vmem:[%s5394_s30 + $0x184] sm:$0xf] %v375_v33  ;;  %v377_v34 = vld [vmem:[%s5390_s29 + $0x310] sm:$0xf]  ;;  %v379_v35 = vld [vmem:[%s5390_s29 + $0x318] sm:$0xf] }
  0x56   : > { %v381_v36 = vld [vmem:[%s5390_s29 + $0x320] sm:$0xf]  ;;  %378 = vst [vmem:[%s5394_s30 + $0x188] sm:$0xf] %v377_v34  ;;  %380 = vst [vmem:[%s5394_s30 + $0x18c] sm:$0xf] %v379_v35 }
  0x57   : > { %382 = vst [vmem:[%s5394_s30 + $0x190] sm:$0xf] %v381_v36  ;;  %v383_v37 = vld [vmem:[%s5390_s29 + $0x328] sm:$0xf]  ;;  %v385_v38 = vld [vmem:[%s5390_s29 + $0x330] sm:$0xf] }
  0x58   : > { %v387_v39 = vld [vmem:[%s5390_s29 + $0x338] sm:$0xf]  ;;  %384 = vst [vmem:[%s5394_s30 + $0x194] sm:$0xf] %v383_v37  ;;  %386 = vst [vmem:[%s5394_s30 + $0x198] sm:$0xf] %v385_v38 }
  0x59   : > { %388 = vst [vmem:[%s5394_s30 + $0x19c] sm:$0xf] %v387_v39  ;;  %v389_v40 = vld [vmem:[%s5390_s29 + $0x340] sm:$0xf]  ;;  %v391_v41 = vld [vmem:[%s5390_s29 + $0x348] sm:$0xf] }
  0x5a   : > { %v393_v42 = vld [vmem:[%s5390_s29 + $0x350] sm:$0xf]  ;;  %390 = vst [vmem:[%s5394_s30 + $0x1a0] sm:$0xf] %v389_v40  ;;  %392 = vst [vmem:[%s5394_s30 + $0x1a4] sm:$0xf] %v391_v41 }
  0x5b   : > { %394 = vst [vmem:[%s5394_s30 + $0x1a8] sm:$0xf] %v393_v42  ;;  %v395_v43 = vld [vmem:[%s5390_s29 + $0x358] sm:$0xf]  ;;  %v397_v44 = vld [vmem:[%s5390_s29 + $0x360] sm:$0xf] }
  0x5c   : > { %v399_v45 = vld [vmem:[%s5390_s29 + $0x368] sm:$0xf]  ;;  %396 = vst [vmem:[%s5394_s30 + $0x1ac] sm:$0xf] %v395_v43  ;;  %398 = vst [vmem:[%s5394_s30 + $0x1b0] sm:$0xf] %v397_v44 }
  0x5d   : > { %400 = vst [vmem:[%s5394_s30 + $0x1b4] sm:$0xf] %v399_v45  ;;  %v401_v46 = vld [vmem:[%s5390_s29 + $0x370] sm:$0xf]  ;;  %v403_v47 = vld [vmem:[%s5390_s29 + $0x378] sm:$0xf] }
  0x5e   : > { %v405_v48 = vld [vmem:[%s5390_s29 + $0x380] sm:$0xf]  ;;  %402 = vst [vmem:[%s5394_s30 + $0x1b8] sm:$0xf] %v401_v46  ;;  %404 = vst [vmem:[%s5394_s30 + $0x1bc] sm:$0xf] %v403_v47 }
  0x5f   : > { %406 = vst [vmem:[%s5394_s30 + $0x1c0] sm:$0xf] %v405_v48  ;;  %v407_v49 = vld [vmem:[%s5390_s29 + $0x388] sm:$0xf]  ;;  %v409_v50 = vld [vmem:[%s5390_s29 + $0x390] sm:$0xf] }
  0x60   : > { %v411_v51 = vld [vmem:[%s5390_s29 + $0x398] sm:$0xf]  ;;  %408 = vst [vmem:[%s5394_s30 + $0x1c4] sm:$0xf] %v407_v49  ;;  %410 = vst [vmem:[%s5394_s30 + $0x1c8] sm:$0xf] %v409_v50 }
  0x61   : > { %412 = vst [vmem:[%s5394_s30 + $0x1cc] sm:$0xf] %v411_v51  ;;  %v413_v52 = vld [vmem:[%s5390_s29 + $0x3a0] sm:$0xf]  ;;  %v415_v53 = vld [vmem:[%s5390_s29 + $0x3a8] sm:$0xf] }
  0x62   : > { %v417_v54 = vld [vmem:[%s5390_s29 + $0x3b0] sm:$0xf]  ;;  %414 = vst [vmem:[%s5394_s30 + $0x1d0] sm:$0xf] %v413_v52  ;;  %416 = vst [vmem:[%s5394_s30 + $0x1d4] sm:$0xf] %v415_v53 }
  0x63   : > { %418 = vst [vmem:[%s5394_s30 + $0x1d8] sm:$0xf] %v417_v54  ;;  %v419_v55 = vld [vmem:[%s5390_s29 + $0x3b8] sm:$0xf]  ;;  %v421_v56 = vld [vmem:[%s5390_s29 + $0x3c0] sm:$0xf] }
  0x64   : > { %v423_v57 = vld [vmem:[%s5390_s29 + $0x3c8] sm:$0xf]  ;;  %420 = vst [vmem:[%s5394_s30 + $0x1dc] sm:$0xf] %v419_v55  ;;  %422 = vst [vmem:[%s5394_s30 + $0x1e0] sm:$0xf] %v421_v56 }
  0x65   : > { %424 = vst [vmem:[%s5394_s30 + $0x1e4] sm:$0xf] %v423_v57  ;;  %v425_v58 = vld [vmem:[%s5390_s29 + $0x3d0] sm:$0xf]  ;;  %v427_v59 = vld [vmem:[%s5390_s29 + $0x3d8] sm:$0xf] }
  0x66   : > { %v429_v60 = vld [vmem:[%s5390_s29 + $0x3e0] sm:$0xf]  ;;  %426 = vst [vmem:[%s5394_s30 + $0x1e8] sm:$0xf] %v425_v58  ;;  %428 = vst [vmem:[%s5394_s30 + $0x1ec] sm:$0xf] %v427_v59 }
  0x67   : > { %430 = vst [vmem:[%s5394_s30 + $0x1f0] sm:$0xf] %v429_v60  ;;  %v431_v61 = vld [vmem:[%s5390_s29 + $0x3e8] sm:$0xf]  ;;  %v433_v62 = vld [vmem:[%s5390_s29 + $0x3f0] sm:$0xf] }
  0x68   : > { %v435_v63 = vld [vmem:[%s5390_s29 + $0x3f8] sm:$0xf]  ;;  %432 = vst [vmem:[%s5394_s30 + $0x1f4] sm:$0xf] %v431_v61  ;;  %434 = vst [vmem:[%s5394_s30 + $0x1f8] sm:$0xf] %v433_v62 }
  0x69   : > { %436 = vst [vmem:[%s5394_s30 + $0x1fc] sm:$0xf] %v435_v63  ;;  %v437_v0 = vld [vmem:[%s5390_s29 + $0x400] sm:$0xf]  ;;  %v439_v1 = vld [vmem:[%s5390_s29 + $0x408] sm:$0xf] }
  0x6a   : > { %v441_v2 = vld [vmem:[%s5390_s29 + $0x410] sm:$0xf]  ;;  %438 = vst [vmem:[%s5394_s30 + $0x200] sm:$0xf] %v437_v0  ;;  %440 = vst [vmem:[%s5394_s30 + $0x204] sm:$0xf] %v439_v1 }
  0x6b   : > { %442 = vst [vmem:[%s5394_s30 + $0x208] sm:$0xf] %v441_v2  ;;  %v443_v3 = vld [vmem:[%s5390_s29 + $0x418] sm:$0xf]  ;;  %v445_v4 = vld [vmem:[%s5390_s29 + $0x420] sm:$0xf] }
  0x6c   : > { %v447_v5 = vld [vmem:[%s5390_s29 + $0x428] sm:$0xf]  ;;  %444 = vst [vmem:[%s5394_s30 + $0x20c] sm:$0xf] %v443_v3  ;;  %446 = vst [vmem:[%s5394_s30 + $0x210] sm:$0xf] %v445_v4 }
  0x6d   : > { %448 = vst [vmem:[%s5394_s30 + $0x214] sm:$0xf] %v447_v5  ;;  %v449_v6 = vld [vmem:[%s5390_s29 + $0x430] sm:$0xf]  ;;  %v451_v7 = vld [vmem:[%s5390_s29 + $0x438] sm:$0xf] }
  0x6e   : > { %v453_v8 = vld [vmem:[%s5390_s29 + $0x440] sm:$0xf]  ;;  %450 = vst [vmem:[%s5394_s30 + $0x218] sm:$0xf] %v449_v6  ;;  %452 = vst [vmem:[%s5394_s30 + $0x21c] sm:$0xf] %v451_v7 }
  0x6f   : > { %454 = vst [vmem:[%s5394_s30 + $0x220] sm:$0xf] %v453_v8  ;;  %v455_v9 = vld [vmem:[%s5390_s29 + $0x448] sm:$0xf]  ;;  %v457_v10 = vld [vmem:[%s5390_s29 + $0x450] sm:$0xf] }
  0x70   : > { %v459_v11 = vld [vmem:[%s5390_s29 + $0x458] sm:$0xf]  ;;  %456 = vst [vmem:[%s5394_s30 + $0x224] sm:$0xf] %v455_v9  ;;  %458 = vst [vmem:[%s5394_s30 + $0x228] sm:$0xf] %v457_v10 }
  0x71   : > { %460 = vst [vmem:[%s5394_s30 + $0x22c] sm:$0xf] %v459_v11  ;;  %v461_v12 = vld [vmem:[%s5390_s29 + $0x460] sm:$0xf]  ;;  %v463_v13 = vld [vmem:[%s5390_s29 + $0x468] sm:$0xf] }
  0x72   : > { %v465_v14 = vld [vmem:[%s5390_s29 + $0x470] sm:$0xf]  ;;  %462 = vst [vmem:[%s5394_s30 + $0x230] sm:$0xf] %v461_v12  ;;  %464 = vst [vmem:[%s5394_s30 + $0x234] sm:$0xf] %v463_v13 }
  0x73   : > { %466 = vst [vmem:[%s5394_s30 + $0x238] sm:$0xf] %v465_v14  ;;  %v467_v15 = vld [vmem:[%s5390_s29 + $0x478] sm:$0xf]  ;;  %v469_v16 = vld [vmem:[%s5390_s29 + $0x480] sm:$0xf] }
  0x74   : > { %v471_v17 = vld [vmem:[%s5390_s29 + $0x488] sm:$0xf]  ;;  %468 = vst [vmem:[%s5394_s30 + $0x23c] sm:$0xf] %v467_v15  ;;  %470 = vst [vmem:[%s5394_s30 + $0x240] sm:$0xf] %v469_v16 }
  0x75   : > { %472 = vst [vmem:[%s5394_s30 + $0x244] sm:$0xf] %v471_v17  ;;  %v473_v18 = vld [vmem:[%s5390_s29 + $0x490] sm:$0xf]  ;;  %v475_v19 = vld [vmem:[%s5390_s29 + $0x498] sm:$0xf] }
  0x76   : > { %v477_v20 = vld [vmem:[%s5390_s29 + $0x4a0] sm:$0xf]  ;;  %474 = vst [vmem:[%s5394_s30 + $0x248] sm:$0xf] %v473_v18  ;;  %476 = vst [vmem:[%s5394_s30 + $0x24c] sm:$0xf] %v475_v19 }
  0x77   : > { %478 = vst [vmem:[%s5394_s30 + $0x250] sm:$0xf] %v477_v20  ;;  %v479_v21 = vld [vmem:[%s5390_s29 + $0x4a8] sm:$0xf]  ;;  %v481_v22 = vld [vmem:[%s5390_s29 + $0x4b0] sm:$0xf] }
  0x78   : > { %v483_v23 = vld [vmem:[%s5390_s29 + $0x4b8] sm:$0xf]  ;;  %480 = vst [vmem:[%s5394_s30 + $0x254] sm:$0xf] %v479_v21  ;;  %482 = vst [vmem:[%s5394_s30 + $0x258] sm:$0xf] %v481_v22 }
  0x79   : > { %484 = vst [vmem:[%s5394_s30 + $0x25c] sm:$0xf] %v483_v23  ;;  %v485_v24 = vld [vmem:[%s5390_s29 + $0x4c0] sm:$0xf]  ;;  %v487_v25 = vld [vmem:[%s5390_s29 + $0x4c8] sm:$0xf] }
  0x7a   : > { %v489_v26 = vld [vmem:[%s5390_s29 + $0x4d0] sm:$0xf]  ;;  %486 = vst [vmem:[%s5394_s30 + $0x260] sm:$0xf] %v485_v24  ;;  %488 = vst [vmem:[%s5394_s30 + $0x264] sm:$0xf] %v487_v25 }
  0x7b   : > { %490 = vst [vmem:[%s5394_s30 + $0x268] sm:$0xf] %v489_v26  ;;  %v491_v27 = vld [vmem:[%s5390_s29 + $0x4d8] sm:$0xf]  ;;  %v493_v28 = vld [vmem:[%s5390_s29 + $0x4e0] sm:$0xf] }
  0x7c   : > { %v495_v29 = vld [vmem:[%s5390_s29 + $0x4e8] sm:$0xf]  ;;  %492 = vst [vmem:[%s5394_s30 + $0x26c] sm:$0xf] %v491_v27  ;;  %494 = vst [vmem:[%s5394_s30 + $0x270] sm:$0xf] %v493_v28 }
  0x7d   : > { %496 = vst [vmem:[%s5394_s30 + $0x274] sm:$0xf] %v495_v29  ;;  %v497_v30 = vld [vmem:[%s5390_s29 + $0x4f0] sm:$0xf]  ;;  %v499_v31 = vld [vmem:[%s5390_s29 + $0x4f8] sm:$0xf] }
  0x7e   : > { %v501_v32 = vld [vmem:[%s5390_s29 + $0x500] sm:$0xf]  ;;  %498 = vst [vmem:[%s5394_s30 + $0x278] sm:$0xf] %v497_v30  ;;  %500 = vst [vmem:[%s5394_s30 + $0x27c] sm:$0xf] %v499_v31 }
  0x7f   : > { %502 = vst [vmem:[%s5394_s30 + $0x280] sm:$0xf] %v501_v32  ;;  %v503_v33 = vld [vmem:[%s5390_s29 + $0x508] sm:$0xf]  ;;  %v505_v34 = vld [vmem:[%s5390_s29 + $0x510] sm:$0xf] }
  0x80   : > { %v507_v35 = vld [vmem:[%s5390_s29 + $0x518] sm:$0xf]  ;;  %504 = vst [vmem:[%s5394_s30 + $0x284] sm:$0xf] %v503_v33  ;;  %506 = vst [vmem:[%s5394_s30 + $0x288] sm:$0xf] %v505_v34 }
  0x81   : > { %508 = vst [vmem:[%s5394_s30 + $0x28c] sm:$0xf] %v507_v35  ;;  %v509_v36 = vld [vmem:[%s5390_s29 + $0x520] sm:$0xf]  ;;  %v511_v37 = vld [vmem:[%s5390_s29 + $0x528] sm:$0xf] }
  0x82   : > { %v513_v38 = vld [vmem:[%s5390_s29 + $0x530] sm:$0xf]  ;;  %510 = vst [vmem:[%s5394_s30 + $0x290] sm:$0xf] %v509_v36  ;;  %512 = vst [vmem:[%s5394_s30 + $0x294] sm:$0xf] %v511_v37 }
  0x83   : > { %514 = vst [vmem:[%s5394_s30 + $0x298] sm:$0xf] %v513_v38  ;;  %v515_v39 = vld [vmem:[%s5390_s29 + $0x538] sm:$0xf]  ;;  %v517_v40 = vld [vmem:[%s5390_s29 + $0x540] sm:$0xf] }
  0x84   : > { %v519_v41 = vld [vmem:[%s5390_s29 + $0x548] sm:$0xf]  ;;  %516 = vst [vmem:[%s5394_s30 + $0x29c] sm:$0xf] %v515_v39  ;;  %518 = vst [vmem:[%s5394_s30 + $0x2a0] sm:$0xf] %v517_v40 }
  0x85   : > { %520 = vst [vmem:[%s5394_s30 + $0x2a4] sm:$0xf] %v519_v41  ;;  %v521_v42 = vld [vmem:[%s5390_s29 + $0x550] sm:$0xf]  ;;  %v523_v43 = vld [vmem:[%s5390_s29 + $0x558] sm:$0xf] }
  0x86   : > { %v525_v44 = vld [vmem:[%s5390_s29 + $0x560] sm:$0xf]  ;;  %522 = vst [vmem:[%s5394_s30 + $0x2a8] sm:$0xf] %v521_v42  ;;  %524 = vst [vmem:[%s5394_s30 + $0x2ac] sm:$0xf] %v523_v43 }
  0x87   : > { %526 = vst [vmem:[%s5394_s30 + $0x2b0] sm:$0xf] %v525_v44  ;;  %v527_v45 = vld [vmem:[%s5390_s29 + $0x568] sm:$0xf]  ;;  %v529_v46 = vld [vmem:[%s5390_s29 + $0x570] sm:$0xf] }
  0x88   : > { %v531_v47 = vld [vmem:[%s5390_s29 + $0x578] sm:$0xf]  ;;  %528 = vst [vmem:[%s5394_s30 + $0x2b4] sm:$0xf] %v527_v45  ;;  %530 = vst [vmem:[%s5394_s30 + $0x2b8] sm:$0xf] %v529_v46 }
  0x89   : > { %532 = vst [vmem:[%s5394_s30 + $0x2bc] sm:$0xf] %v531_v47  ;;  %v533_v48 = vld [vmem:[%s5390_s29 + $0x580] sm:$0xf]  ;;  %v535_v49 = vld [vmem:[%s5390_s29 + $0x588] sm:$0xf] }
  0x8a   : > { %v537_v50 = vld [vmem:[%s5390_s29 + $0x590] sm:$0xf]  ;;  %534 = vst [vmem:[%s5394_s30 + $0x2c0] sm:$0xf] %v533_v48  ;;  %536 = vst [vmem:[%s5394_s30 + $0x2c4] sm:$0xf] %v535_v49 }
  0x8b   : > { %538 = vst [vmem:[%s5394_s30 + $0x2c8] sm:$0xf] %v537_v50  ;;  %v539_v51 = vld [vmem:[%s5390_s29 + $0x598] sm:$0xf]  ;;  %v541_v52 = vld [vmem:[%s5390_s29 + $0x5a0] sm:$0xf] }
  0x8c   : > { %v543_v53 = vld [vmem:[%s5390_s29 + $0x5a8] sm:$0xf]  ;;  %540 = vst [vmem:[%s5394_s30 + $0x2cc] sm:$0xf] %v539_v51  ;;  %542 = vst [vmem:[%s5394_s30 + $0x2d0] sm:$0xf] %v541_v52 }
  0x8d   : > { %544 = vst [vmem:[%s5394_s30 + $0x2d4] sm:$0xf] %v543_v53  ;;  %v545_v54 = vld [vmem:[%s5390_s29 + $0x5b0] sm:$0xf]  ;;  %v547_v55 = vld [vmem:[%s5390_s29 + $0x5b8] sm:$0xf] }
  0x8e   : > { %v549_v56 = vld [vmem:[%s5390_s29 + $0x5c0] sm:$0xf]  ;;  %546 = vst [vmem:[%s5394_s30 + $0x2d8] sm:$0xf] %v545_v54  ;;  %548 = vst [vmem:[%s5394_s30 + $0x2dc] sm:$0xf] %v547_v55 }
  0x8f   : > { %550 = vst [vmem:[%s5394_s30 + $0x2e0] sm:$0xf] %v549_v56  ;;  %v551_v57 = vld [vmem:[%s5390_s29 + $0x5c8] sm:$0xf]  ;;  %v553_v58 = vld [vmem:[%s5390_s29 + $0x5d0] sm:$0xf] }
  0x90   : > { %v555_v59 = vld [vmem:[%s5390_s29 + $0x5d8] sm:$0xf]  ;;  %552 = vst [vmem:[%s5394_s30 + $0x2e4] sm:$0xf] %v551_v57  ;;  %554 = vst [vmem:[%s5394_s30 + $0x2e8] sm:$0xf] %v553_v58 }
  0x91   : > { %556 = vst [vmem:[%s5394_s30 + $0x2ec] sm:$0xf] %v555_v59  ;;  %v557_v60 = vld [vmem:[%s5390_s29 + $0x5e0] sm:$0xf]  ;;  %v559_v61 = vld [vmem:[%s5390_s29 + $0x5e8] sm:$0xf] }
  0x92   : > { %v561_v62 = vld [vmem:[%s5390_s29 + $0x5f0] sm:$0xf]  ;;  %558 = vst [vmem:[%s5394_s30 + $0x2f0] sm:$0xf] %v557_v60  ;;  %560 = vst [vmem:[%s5394_s30 + $0x2f4] sm:$0xf] %v559_v61 }
  0x93   : > { %562 = vst [vmem:[%s5394_s30 + $0x2f8] sm:$0xf] %v561_v62  ;;  %v563_v63 = vld [vmem:[%s5390_s29 + $0x5f8] sm:$0xf]  ;;  %v565_v0 = vld [vmem:[%s5390_s29 + $0x600] sm:$0xf] }
  0x94   : > { %v567_v1 = vld [vmem:[%s5390_s29 + $0x608] sm:$0xf]  ;;  %564 = vst [vmem:[%s5394_s30 + $0x2fc] sm:$0xf] %v563_v63  ;;  %566 = vst [vmem:[%s5394_s30 + $0x300] sm:$0xf] %v565_v0 }
  0x95   : > { %568 = vst [vmem:[%s5394_s30 + $0x304] sm:$0xf] %v567_v1  ;;  %v569_v2 = vld [vmem:[%s5390_s29 + $0x610] sm:$0xf]  ;;  %v571_v3 = vld [vmem:[%s5390_s29 + $0x618] sm:$0xf] }
  0x96   : > { %v573_v4 = vld [vmem:[%s5390_s29 + $0x620] sm:$0xf]  ;;  %570 = vst [vmem:[%s5394_s30 + $0x308] sm:$0xf] %v569_v2  ;;  %572 = vst [vmem:[%s5394_s30 + $0x30c] sm:$0xf] %v571_v3 }
  0x97   : > { %574 = vst [vmem:[%s5394_s30 + $0x310] sm:$0xf] %v573_v4  ;;  %v575_v5 = vld [vmem:[%s5390_s29 + $0x628] sm:$0xf]  ;;  %v577_v6 = vld [vmem:[%s5390_s29 + $0x630] sm:$0xf] }
  0x98   : > { %v579_v7 = vld [vmem:[%s5390_s29 + $0x638] sm:$0xf]  ;;  %576 = vst [vmem:[%s5394_s30 + $0x314] sm:$0xf] %v575_v5  ;;  %578 = vst [vmem:[%s5394_s30 + $0x318] sm:$0xf] %v577_v6 }
  0x99   : > { %580 = vst [vmem:[%s5394_s30 + $0x31c] sm:$0xf] %v579_v7  ;;  %v581_v8 = vld [vmem:[%s5390_s29 + $0x640] sm:$0xf]  ;;  %v583_v9 = vld [vmem:[%s5390_s29 + $0x648] sm:$0xf] }
  0x9a   : > { %v585_v10 = vld [vmem:[%s5390_s29 + $0x650] sm:$0xf]  ;;  %582 = vst [vmem:[%s5394_s30 + $0x320] sm:$0xf] %v581_v8  ;;  %584 = vst [vmem:[%s5394_s30 + $0x324] sm:$0xf] %v583_v9 }
  0x9b   : > { %586 = vst [vmem:[%s5394_s30 + $0x328] sm:$0xf] %v585_v10  ;;  %v587_v11 = vld [vmem:[%s5390_s29 + $0x658] sm:$0xf]  ;;  %v589_v12 = vld [vmem:[%s5390_s29 + $0x660] sm:$0xf] }
  0x9c   : > { %v591_v13 = vld [vmem:[%s5390_s29 + $0x668] sm:$0xf]  ;;  %588 = vst [vmem:[%s5394_s30 + $0x32c] sm:$0xf] %v587_v11  ;;  %590 = vst [vmem:[%s5394_s30 + $0x330] sm:$0xf] %v589_v12 }
  0x9d   : > { %592 = vst [vmem:[%s5394_s30 + $0x334] sm:$0xf] %v591_v13  ;;  %v593_v14 = vld [vmem:[%s5390_s29 + $0x670] sm:$0xf]  ;;  %v595_v15 = vld [vmem:[%s5390_s29 + $0x678] sm:$0xf] }
  0x9e   : > { %v597_v16 = vld [vmem:[%s5390_s29 + $0x680] sm:$0xf]  ;;  %594 = vst [vmem:[%s5394_s30 + $0x338] sm:$0xf] %v593_v14  ;;  %596 = vst [vmem:[%s5394_s30 + $0x33c] sm:$0xf] %v595_v15 }
  0x9f   : > { %598 = vst [vmem:[%s5394_s30 + $0x340] sm:$0xf] %v597_v16  ;;  %v599_v17 = vld [vmem:[%s5390_s29 + $0x688] sm:$0xf]  ;;  %v601_v18 = vld [vmem:[%s5390_s29 + $0x690] sm:$0xf] }
  0xa0   : > { %v603_v19 = vld [vmem:[%s5390_s29 + $0x698] sm:$0xf]  ;;  %600 = vst [vmem:[%s5394_s30 + $0x344] sm:$0xf] %v599_v17  ;;  %602 = vst [vmem:[%s5394_s30 + $0x348] sm:$0xf] %v601_v18 }
  0xa1   : > { %604 = vst [vmem:[%s5394_s30 + $0x34c] sm:$0xf] %v603_v19  ;;  %v605_v20 = vld [vmem:[%s5390_s29 + $0x6a0] sm:$0xf]  ;;  %v607_v21 = vld [vmem:[%s5390_s29 + $0x6a8] sm:$0xf] }
  0xa2   : > { %v609_v22 = vld [vmem:[%s5390_s29 + $0x6b0] sm:$0xf]  ;;  %606 = vst [vmem:[%s5394_s30 + $0x350] sm:$0xf] %v605_v20  ;;  %608 = vst [vmem:[%s5394_s30 + $0x354] sm:$0xf] %v607_v21 }
  0xa3   : > { %610 = vst [vmem:[%s5394_s30 + $0x358] sm:$0xf] %v609_v22  ;;  %v611_v23 = vld [vmem:[%s5390_s29 + $0x6b8] sm:$0xf]  ;;  %v613_v24 = vld [vmem:[%s5390_s29 + $0x6c0] sm:$0xf] }
  0xa4   : > { %v615_v25 = vld [vmem:[%s5390_s29 + $0x6c8] sm:$0xf]  ;;  %612 = vst [vmem:[%s5394_s30 + $0x35c] sm:$0xf] %v611_v23  ;;  %614 = vst [vmem:[%s5394_s30 + $0x360] sm:$0xf] %v613_v24 }
  0xa5   : > { %616 = vst [vmem:[%s5394_s30 + $0x364] sm:$0xf] %v615_v25  ;;  %v617_v26 = vld [vmem:[%s5390_s29 + $0x6d0] sm:$0xf]  ;;  %v619_v27 = vld [vmem:[%s5390_s29 + $0x6d8] sm:$0xf] }
  0xa6   : > { %v621_v28 = vld [vmem:[%s5390_s29 + $0x6e0] sm:$0xf]  ;;  %618 = vst [vmem:[%s5394_s30 + $0x368] sm:$0xf] %v617_v26  ;;  %620 = vst [vmem:[%s5394_s30 + $0x36c] sm:$0xf] %v619_v27 }
  0xa7   : > { %622 = vst [vmem:[%s5394_s30 + $0x370] sm:$0xf] %v621_v28  ;;  %v623_v29 = vld [vmem:[%s5390_s29 + $0x6e8] sm:$0xf]  ;;  %v625_v30 = vld [vmem:[%s5390_s29 + $0x6f0] sm:$0xf] }
  0xa8   : > { %v627_v31 = vld [vmem:[%s5390_s29 + $0x6f8] sm:$0xf]  ;;  %624 = vst [vmem:[%s5394_s30 + $0x374] sm:$0xf] %v623_v29  ;;  %626 = vst [vmem:[%s5394_s30 + $0x378] sm:$0xf] %v625_v30 }
  0xa9   : > { %628 = vst [vmem:[%s5394_s30 + $0x37c] sm:$0xf] %v627_v31  ;;  %v629_v32 = vld [vmem:[%s5390_s29 + $0x700] sm:$0xf]  ;;  %v631_v33 = vld [vmem:[%s5390_s29 + $0x708] sm:$0xf] }
  0xaa   : > { %v633_v34 = vld [vmem:[%s5390_s29 + $0x710] sm:$0xf]  ;;  %630 = vst [vmem:[%s5394_s30 + $0x380] sm:$0xf] %v629_v32  ;;  %632 = vst [vmem:[%s5394_s30 + $0x384] sm:$0xf] %v631_v33 }
  0xab   : > { %634 = vst [vmem:[%s5394_s30 + $0x388] sm:$0xf] %v633_v34  ;;  %v635_v35 = vld [vmem:[%s5390_s29 + $0x718] sm:$0xf]  ;;  %v637_v36 = vld [vmem:[%s5390_s29 + $0x720] sm:$0xf] }
  0xac   : > { %v639_v37 = vld [vmem:[%s5390_s29 + $0x728] sm:$0xf]  ;;  %636 = vst [vmem:[%s5394_s30 + $0x38c] sm:$0xf] %v635_v35  ;;  %638 = vst [vmem:[%s5394_s30 + $0x390] sm:$0xf] %v637_v36 }
  0xad   : > { %640 = vst [vmem:[%s5394_s30 + $0x394] sm:$0xf] %v639_v37  ;;  %v641_v38 = vld [vmem:[%s5390_s29 + $0x730] sm:$0xf]  ;;  %v643_v39 = vld [vmem:[%s5390_s29 + $0x738] sm:$0xf] }
  0xae   : > { %v645_v40 = vld [vmem:[%s5390_s29 + $0x740] sm:$0xf]  ;;  %642 = vst [vmem:[%s5394_s30 + $0x398] sm:$0xf] %v641_v38  ;;  %644 = vst [vmem:[%s5394_s30 + $0x39c] sm:$0xf] %v643_v39 }
  0xaf   : > { %646 = vst [vmem:[%s5394_s30 + $0x3a0] sm:$0xf] %v645_v40  ;;  %v647_v41 = vld [vmem:[%s5390_s29 + $0x748] sm:$0xf]  ;;  %v649_v42 = vld [vmem:[%s5390_s29 + $0x750] sm:$0xf] }
  0xb0   : > { %v651_v43 = vld [vmem:[%s5390_s29 + $0x758] sm:$0xf]  ;;  %648 = vst [vmem:[%s5394_s30 + $0x3a4] sm:$0xf] %v647_v41  ;;  %650 = vst [vmem:[%s5394_s30 + $0x3a8] sm:$0xf] %v649_v42 }
  0xb1   : > { %652 = vst [vmem:[%s5394_s30 + $0x3ac] sm:$0xf] %v651_v43  ;;  %v653_v44 = vld [vmem:[%s5390_s29 + $0x760] sm:$0xf]  ;;  %v655_v45 = vld [vmem:[%s5390_s29 + $0x768] sm:$0xf] }
  0xb2   : > { %v657_v46 = vld [vmem:[%s5390_s29 + $0x770] sm:$0xf]  ;;  %654 = vst [vmem:[%s5394_s30 + $0x3b0] sm:$0xf] %v653_v44  ;;  %656 = vst [vmem:[%s5394_s30 + $0x3b4] sm:$0xf] %v655_v45 }
  0xb3   : > { %658 = vst [vmem:[%s5394_s30 + $0x3b8] sm:$0xf] %v657_v46  ;;  %v659_v47 = vld [vmem:[%s5390_s29 + $0x778] sm:$0xf]  ;;  %v661_v48 = vld [vmem:[%s5390_s29 + $0x780] sm:$0xf] }
  0xb4   : > { %v663_v49 = vld [vmem:[%s5390_s29 + $0x788] sm:$0xf]  ;;  %660 = vst [vmem:[%s5394_s30 + $0x3bc] sm:$0xf] %v659_v47  ;;  %662 = vst [vmem:[%s5394_s30 + $0x3c0] sm:$0xf] %v661_v48 }
  0xb5   : > { %664 = vst [vmem:[%s5394_s30 + $0x3c4] sm:$0xf] %v663_v49  ;;  %v665_v50 = vld [vmem:[%s5390_s29 + $0x790] sm:$0xf]  ;;  %v667_v51 = vld [vmem:[%s5390_s29 + $0x798] sm:$0xf] }
  0xb6   : > { %v669_v52 = vld [vmem:[%s5390_s29 + $0x7a0] sm:$0xf]  ;;  %666 = vst [vmem:[%s5394_s30 + $0x3c8] sm:$0xf] %v665_v50  ;;  %668 = vst [vmem:[%s5394_s30 + $0x3cc] sm:$0xf] %v667_v51 }
  0xb7   : > { %670 = vst [vmem:[%s5394_s30 + $0x3d0] sm:$0xf] %v669_v52  ;;  %v671_v53 = vld [vmem:[%s5390_s29 + $0x7a8] sm:$0xf]  ;;  %v673_v54 = vld [vmem:[%s5390_s29 + $0x7b0] sm:$0xf] }
  0xb8   : > { %v675_v55 = vld [vmem:[%s5390_s29 + $0x7b8] sm:$0xf]  ;;  %672 = vst [vmem:[%s5394_s30 + $0x3d4] sm:$0xf] %v671_v53  ;;  %674 = vst [vmem:[%s5394_s30 + $0x3d8] sm:$0xf] %v673_v54 }
  0xb9   : > { %676 = vst [vmem:[%s5394_s30 + $0x3dc] sm:$0xf] %v675_v55  ;;  %v677_v56 = vld [vmem:[%s5390_s29 + $0x7c0] sm:$0xf]  ;;  %v679_v57 = vld [vmem:[%s5390_s29 + $0x7c8] sm:$0xf] }
  0xba   : > { %v681_v58 = vld [vmem:[%s5390_s29 + $0x7d0] sm:$0xf]  ;;  %678 = vst [vmem:[%s5394_s30 + $0x3e0] sm:$0xf] %v677_v56  ;;  %680 = vst [vmem:[%s5394_s30 + $0x3e4] sm:$0xf] %v679_v57 }
  0xbb   : > { %682 = vst [vmem:[%s5394_s30 + $0x3e8] sm:$0xf] %v681_v58  ;;  %v683_v59 = vld [vmem:[%s5390_s29 + $0x7d8] sm:$0xf]  ;;  %v685_v60 = vld [vmem:[%s5390_s29 + $0x7e0] sm:$0xf] }
  0xbc   : > { %v687_v61 = vld [vmem:[%s5390_s29 + $0x7e8] sm:$0xf]  ;;  %684 = vst [vmem:[%s5394_s30 + $0x3ec] sm:$0xf] %v683_v59  ;;  %686 = vst [vmem:[%s5394_s30 + $0x3f0] sm:$0xf] %v685_v60 }
  0xbd   : > { %688 = vst [vmem:[%s5394_s30 + $0x3f4] sm:$0xf] %v687_v61  ;;  %v689_v62 = vld [vmem:[%s5390_s29 + $0x7f0] sm:$0xf]  ;;  %v691_v63 = vld [vmem:[%s5390_s29 + $0x7f8] sm:$0xf] }
  0xbe   : > { %690 = vst [vmem:[%s5394_s30 + $0x3f8] sm:$0xf] %v689_v62  ;;  %692 = vst [vmem:[%s5394_s30 + $0x3fc] sm:$0xf] %v691_v63 }
  0xbf PF: > { %p4291_p7 = scmp.ge.s32.totalorder %s5322_s17, 1  ;;  %p1238_p8 = scmp.lt.s32.totalorder %s5322_s17, 3 }
  0xc1   : > { %p1239_p9 = pnand %p4291_p7, %p1238_p8 }
  0xc2   : > { %s1245_s5 = sand.u32 (!%p1239_p9), 1, %s5314_s15   ;;  %v5912_v0 = vld [vmem:[%s6776_s0] sm:$0xff] (!%p1239_p9)  ;;  %v5922_v2 = vld [vmem:[%s6776_s0 + $0x8] sm:$0xff] (!%p1239_p9)  ;;  %p1275_p10 = scmp.lt.s32.totalorder (!%p1239_p9), %s5365_s18, 1 }
  0xc3   : > { %1242 = sbr.rel (%p1239_p9) target bundleno = 823 (0x337), region = 73  ;;  %v5917_v1 = vld [vmem:[%s6776_s0 + $0x40] sm:$0xff] (!%p1239_p9)  ;;  %s4292_s12 = sshll.u32 (!%p1239_p9), %s1245_s5, 10  ;;  %v5931_v4 = vld [vmem:[%s6776_s0 + $0x48] sm:$0xff] (!%p1239_p9) }
  0xc4   : > { %v4295_v3 = vcombine.high (!%p1239_p9), %v5912_v0, %v5917_v1  ;;  %v4297_v5 = vcombine.high (!%p1239_p9), %v5922_v2, %v5931_v4  ;;  %s5935_s17 = scalar_lea.vmem (!%p1239_p9), [#allocation2], %s4292_s12  ;;  %v1298_v35 = vld [vmem:[%s6776_s0 + $0x80] sm:$0xff] (!%p1239_p9)  ;;  %v1299_v38 = vld [vmem:[%s6776_s0 + $0x88] sm:$0xff] (!%p1239_p9)  ;;  %v4294_v42 = vcombine.low (!%p1239_p9), %v5912_v0, %v5917_v1  ;;  %v4296_v43 = vcombine.low (!%p1239_p9), %v5922_v2, %v5931_v4  ;;  %s6715_s13 = sshll.u32 (!%p1239_p9), %s1245_s5, 6 }
  0xc5   : > { %v5170_v6 = vld [vmem:[%s5935_s17 + $0x40] sm:$0xff] (!%p1239_p9)   ;;  %v5174_v10 = vld [vmem:[%s5935_s17 + $0x48] sm:$0xff] (!%p1239_p9)   ;;  %v5178_v14 = vld [vmem:[%s5935_s17 + $0x50] sm:$0xff] (!%p1239_p9)   ;;  %s6734_s15 = scalar_lea.vmem (!%p1239_p9), [#allocation3], %s6715_s13 }
  0xc6   : > { %3106 = vmatprep.mubr.bf16.mxu0 (!%p1239_p9), %v4295_v3  ;;  %v5171_v7 = vld [vmem:[%s5935_s17 + $0xc0] sm:$0xff] (!%p1239_p9)   ;;  %3203 = vmatprep.mubr.bf16.mxu1 (!%p1239_p9), %v4297_v5  ;;  %v5175_v11 = vld [vmem:[%s5935_s17 + $0xc8] sm:$0xff] (!%p1239_p9)   ;;  %v5179_v15 = vld [vmem:[%s5935_s17 + $0xd0] sm:$0xff] (!%p1239_p9)  }
  0xc7   : > { %4634 = vmatprep.subr.bf16.mxu0 (!%p1239_p9), %v5170_v6  ;;  %v5172_v8 = vld [vmem:[%s5935_s17] sm:$0xff] (!%p1239_p9)   ;;  %4698 = vmatprep.subr.bf16.mxu1 (!%p1239_p9), %v5171_v7  ;;  %v5176_v12 = vld [vmem:[%s5935_s17 + $0x8] sm:$0xff] (!%p1239_p9)   ;;  %v5180_v16 = vld [vmem:[%s5935_s17 + $0x10] sm:$0xff] (!%p1239_p9)  }
  0xc8   : > { %v5173_v9 = vld [vmem:[%s5935_s17 + $0x80] sm:$0xff] (!%p1239_p9)   ;;  %4635 = vmatpush3.bf16.msra.mxu0 (!%p1239_p9), %v5172_v8  ;;  %v5177_v13 = vld [vmem:[%s5935_s17 + $0x88] sm:$0xff] (!%p1239_p9)   ;;  %v5181_v17 = vld [vmem:[%s5935_s17 + $0x90] sm:$0xff] (!%p1239_p9)  }
  0xc9   : > { %4699 = vmatpush3.bf16.msra.mxu1 (!%p1239_p9), %v5173_v9  ;;  %4636 = vmatprep.subr.bf16.mxu0 (!%p1239_p9), %v5174_v10  ;;  %v5182_v18 = vld [vmem:[%s5935_s17 + $0x58] sm:$0xff] (!%p1239_p9)   ;;  %v5186_v22 = vld [vmem:[%s5935_s17 + $0x60] sm:$0xff] (!%p1239_p9)   ;;  %v5190_v26 = vld [vmem:[%s5935_s17 + $0x68] sm:$0xff] (!%p1239_p9)  }
  0xca   : > { %4700 = vmatprep.subr.bf16.mxu1 %v5175_v11  ;;  %v5183_v19 = vld [vmem:[%s5935_s17 + $0xd8] sm:$0xff]   ;;  %v5187_v23 = vld [vmem:[%s5935_s17 + $0xe0] sm:$0xff]   ;;  %v5191_v27 = vld [vmem:[%s5935_s17 + $0xe8] sm:$0xff]   ;;  %s4568_s5 = sshll.u32 (%p5380_p5), %s5365_s18, 2 }
  0xcb   : > { %v5184_v20 = vld [vmem:[%s5935_s17 + $0x18] sm:$0xff]   ;;  %v5188_v24 = vld [vmem:[%s5935_s17 + $0x20] sm:$0xff]   ;;  %v5192_v28 = vld [vmem:[%s5935_s17 + $0x28] sm:$0xff]   ;;  %s4111_s21 = scalar_lea.vmem (%p5380_p5), %s6780_s4, %s4568_s5 }
  0xcc   : > { %4637 = vmatpush3.bf16.msra.mxu0 %v5176_v12  ;;  %v5185_v21 = vld [vmem:[%s5935_s17 + $0x98] sm:$0xff]   ;;  %v5189_v25 = vld [vmem:[%s5935_s17 + $0xa0] sm:$0xff]   ;;  %v5193_v29 = vld [vmem:[%s5935_s17 + $0xa8] sm:$0xff]  }
  0xcd   : > { %4701 = vmatpush3.bf16.msra.mxu1 %v5177_v13  ;;  %4638 = vmatprep.subr.bf16.mxu0 %v5178_v14  ;;  %v5194_v30 = vld [vmem:[%s5935_s17 + $0x70] sm:$0xff]   ;;  %v5198_v34 = vld [vmem:[%s5935_s17 + $0x78] sm:$0xff]   ;;  %v1306_v36 = vld [vmem:[%s6776_s0 + $0xc0] sm:$0xff] }
  0xce   : > { %4702 = vmatprep.subr.bf16.mxu1 %v5179_v15  ;;  %v5195_v31 = vld [vmem:[%s5935_s17 + $0xf0] sm:$0xff]   ;;  %v5199_v37 = vld [vmem:[%s5935_s17 + $0xf8] sm:$0xff]   ;;  %v1307_v39 = vld [vmem:[%s6776_s0 + $0xc8] sm:$0xff]  ;;  %v4311_v46 = vcombine.high %v1298_v35, %v1306_v36  ;;  %v4310_v54 = vcombine.low %v1298_v35, %v1306_v36 }
  0xcf   : > { %v5196_v32 = vld [vmem:[%s5935_s17 + $0x30] sm:$0xff]   ;;  %v5200_v40 = vld [vmem:[%s5935_s17 + $0x38] sm:$0xff]   ;;  %v5202_v44 = vld [vmem:[%s5935_s17 + $0x140] sm:$0xff]   ;;  %v4313_v48 = vcombine.high %v1299_v38, %v1307_v39  ;;  %v4312_v56 = vcombine.low %v1299_v38, %v1307_v39 }
  0xd0   : > { %4639 = vmatpush3.bf16.msra.mxu0 %v5180_v16  ;;  %v5197_v33 = vld [vmem:[%s5935_s17 + $0xb0] sm:$0xff]   ;;  %v5201_v41 = vld [vmem:[%s5935_s17 + $0xb8] sm:$0xff]   ;;  %v5203_v45 = vld [vmem:[%s5935_s17 + $0x100] sm:$0xff]  }
  0xd1   : > { %4703 = vmatpush3.bf16.msra.mxu1 %v5181_v17  ;;  %4640 = vmatprep.subr.bf16.mxu0 %v5182_v18  ;;  %v5204_v47 = vld [vmem:[%s5935_s17 + $0x1c0] sm:$0xff]   ;;  %v5206_v50 = vld [vmem:[%s5935_s17 + $0x148] sm:$0xff]   ;;  %v5210_v62 = vld [vmem:[%s5935_s17 + $0x150] sm:$0xff]  }
  0xd2   : > { %4704 = vmatprep.subr.bf16.mxu1 %v5183_v19  ;;  %v5205_v49 = vld [vmem:[%s5935_s17 + $0x180] sm:$0xff]   ;;  %v5207_v52 = vld [vmem:[%s5935_s17 + $0x108] sm:$0xff]   ;;  %v5211_v63 = vld [vmem:[%s5935_s17 + $0x110] sm:$0xff]  }
  0xd3   : > { %v1314_v51 = vld [vmem:[%s6776_s0 + $0x100] sm:$0xff]  ;;  %v5208_v53 = vld [vmem:[%s5935_s17 + $0x1c8] sm:$0xff]   ;;  %v5212_v0 = vld [vmem:[%s5935_s17 + $0x1d0] sm:$0xff]  }
  0xd4   : > { %4641 = vmatpush3.bf16.msra.mxu0 %v5184_v20  ;;  %v5209_v55 = vld [vmem:[%s5935_s17 + $0x188] sm:$0xff]   ;;  %v1322_v57 = vld [vmem:[%s6776_s0 + $0x140] sm:$0xff]  ;;  %v5213_v1 = vld [vmem:[%s5935_s17 + $0x190] sm:$0xff]  }
  0xd5   : > { %4705 = vmatpush3.bf16.msra.mxu1 %v5185_v21  ;;  %4642 = vmatprep.subr.bf16.mxu0 %v5186_v22  ;;  %v1315_v58 = vld [vmem:[%s6776_s0 + $0x108] sm:$0xff]  ;;  %v4327_v60 = vcombine.high %v1314_v51, %v1322_v57  ;;  %v1330_v2 = vld [vmem:[%s6776_s0 + $0x180] sm:$0xff]  ;;  %v4326_v6 = vcombine.low %v1314_v51, %v1322_v57  ;;  %v5214_v7 = vld [vmem:[%s5935_s17 + $0x158] sm:$0xff]  }
  0xd6   : > { %4706 = vmatprep.subr.bf16.mxu1 %v5187_v23  ;;  %v1323_v59 = vld [vmem:[%s6776_s0 + $0x148] sm:$0xff]  ;;  %v1338_v3 = vld [vmem:[%s6776_s0 + $0x1c0] sm:$0xff]  ;;  %v5215_v10 = vld [vmem:[%s5935_s17 + $0x118] sm:$0xff]  }
  0xd7   : > { %v4329_v61 = vcombine.high %v1315_v58, %v1323_v59  ;;  %v1331_v4 = vld [vmem:[%s6776_s0 + $0x188] sm:$0xff]  ;;  %v4328_v8 = vcombine.low %v1315_v58, %v1323_v59  ;;  %v4343_v9 = vcombine.high %v1330_v2, %v1338_v3  ;;  %v5216_v12 = vld [vmem:[%s5935_s17 + $0x1d8] sm:$0xff]   ;;  %v1346_v14 = vld [vmem:[%s6776_s0 + $0x200] sm:$0xff]  ;;  %v4342_v21 = vcombine.low %v1330_v2, %v1338_v3 }
  0xd8   : > { %4643 = vmatpush3.bf16.msra.mxu0 %v5188_v24  ;;  %v1339_v5 = vld [vmem:[%s6776_s0 + $0x1c8] sm:$0xff]  ;;  %v5217_v13 = vld [vmem:[%s5935_s17 + $0x198] sm:$0xff]   ;;  %v1354_v15 = vld [vmem:[%s6776_s0 + $0x240] sm:$0xff] }
  0xd9   : > { %4707 = vmatpush3.bf16.msra.mxu1 %v5189_v25  ;;  %4644 = vmatprep.subr.bf16.mxu0 %v5190_v26  ;;  %v4345_v11 = vcombine.high %v1331_v4, %v1339_v5  ;;  %v1347_v16 = vld [vmem:[%s6776_s0 + $0x208] sm:$0xff]  ;;  %v5218_v18 = vld [vmem:[%s5935_s17 + $0x160] sm:$0xff]   ;;  %v4344_v23 = vcombine.low %v1331_v4, %v1339_v5  ;;  %v4359_v24 = vcombine.high %v1346_v14, %v1354_v15  ;;  %v5226_v35 = vld [vmem:[%s5935_s17 + $0x170] sm:$0xff]  }
  0xda   : > { %4708 = vmatprep.subr.bf16.mxu1 %v5191_v27  ;;  %v1355_v17 = vld [vmem:[%s6776_s0 + $0x248] sm:$0xff]  ;;  %v5219_v19 = vld [vmem:[%s5935_s17 + $0x120] sm:$0xff]   ;;  %v5227_v38 = vld [vmem:[%s5935_s17 + $0x130] sm:$0xff]  }
  0xdb   : > { %v5220_v20 = vld [vmem:[%s5935_s17 + $0x1e0] sm:$0xff]   ;;  %v4361_v25 = vcombine.high %v1347_v16, %v1355_v17  ;;  %v5222_v26 = vld [vmem:[%s5935_s17 + $0x168] sm:$0xff]   ;;  %v4360_v36 = vcombine.low %v1347_v16, %v1355_v17  ;;  %v1285_v2 = vld [vmem:[%s6776_s0 + $0x18] sm:$0xff] }
  0xdc   : > { %4645 = vmatpush3.bf16.msra.mxu0 %v5192_v28  ;;  %v5221_v22 = vld [vmem:[%s5935_s17 + $0x1a0] sm:$0xff]   ;;  %v5223_v27 = vld [vmem:[%s5935_s17 + $0x128] sm:$0xff]   ;;  %v1293_v3 = vld [vmem:[%s6776_s0 + $0x58] sm:$0xff] }
  0xdd   : > { %4709 = vmatpush3.bf16.msra.mxu1 %v5193_v29  ;;  %4646 = vmatprep.subr.bf16.mxu0 %v5194_v30  ;;  %v5224_v28 = vld [vmem:[%s5935_s17 + $0x1e8] sm:$0xff]   ;;  %v1362_v30 = vld [vmem:[%s6776_s0 + $0x280] sm:$0xff] }
  0xde   : > { %4710 = vmatprep.subr.bf16.mxu1 %v5195_v31  ;;  %v5225_v29 = vld [vmem:[%s5935_s17 + $0x1a8] sm:$0xff]   ;;  %v1370_v31 = vld [vmem:[%s6776_s0 + $0x2c0] sm:$0xff] }
  0xdf   : > { %v1402_v57 = vld [vmem:[%s6776_s0 + $0x3c0] sm:$0xff]  ;;  %v1395_v58 = vld [vmem:[%s6776_s0 + $0x388] sm:$0xff] }
  0xe0   : > { %4647 = vmatpush3.bf16.msra.mxu0 %v5196_v32  ;;  %v1363_v32 = vld [vmem:[%s6776_s0 + $0x288] sm:$0xff] }
  0xe1   : > { %4711 = vmatpush3.bf16.msra.mxu1 %v5197_v33  ;;  %4648 = vmatprep.subr.bf16.mxu0 %v5198_v34  ;;  %v1371_v33 = vld [vmem:[%s6776_s0 + $0x2c8] sm:$0xff]  ;;  %v4358_v34 = vcombine.low %v1346_v14, %v1354_v15  ;;  %v5235_v14 = vld [vmem:[%s5935_s17 + $0x200] sm:$0xff]  }
  0xe2   : > { %4712 = vmatprep.subr.bf16.mxu1 %v5199_v37  ;;  %v4375_v37 = vcombine.high %v1362_v30, %v1370_v31  ;;  %v4377_v39 = vcombine.high %v1363_v32, %v1371_v33  ;;  %v4376_v51 = vcombine.low %v1363_v32, %v1371_v33  ;;  %v1403_v59 = vld [vmem:[%s6776_s0 + $0x3c8] sm:$0xff]  ;;  %v5237_v15 = vld [vmem:[%s5935_s17 + $0x280] sm:$0xff]   ;;  %v5245_v33 = vld [vmem:[%s5935_s17 + $0x290] sm:$0xff]  }
  0xe3   : > { %v4408_v5 = vcombine.low %v1395_v58, %v1403_v59 }
  0xe4   : > { %4649 = vmatpush3.bf16.msra.mxu0 %v5200_v40  ;;  %v5228_v40 = vld [vmem:[%s5935_s17 + $0x1f0] sm:$0xff]  }
  0xe5   : > { %4713 = vmatpush3.bf16.msra.mxu1 %v5201_v41  ;;  %4762 = vmatprep.subr.bf16.mxu0 %v5202_v44  ;;  %v5229_v41 = vld [vmem:[%s5935_s17 + $0x1b0] sm:$0xff]   ;;  %v1379_v44 = vld [vmem:[%s6776_s0 + $0x308] sm:$0xff] }
  0xe6   : > { %4826 = vmatprep.subr.bf16.mxu1 %v5204_v47  ;;  %v5231_v47 = vld [vmem:[%s5935_s17 + $0x138] sm:$0xff]  }
  0xe7   : > { %3107 = vmatmul.mubr.bf16.vlgmr.msra.gmra.mrb[0].mxu0 %v4294_v42  ;;  %v1378_v42 = vld [vmem:[%s6776_s0 + $0x300] sm:$0xff] }
  0xe8   : > { %3204 = vmatmul.mubr.bf16.vlgmr.msra.gmra.mrb[0].mxu1 %v4296_v43  ;;  %4763 = vmatpush3.bf16.msra.mxu0 %v5203_v45  ;;  %v1386_v43 = vld [vmem:[%s6776_s0 + $0x340] sm:$0xff]  ;;  %v1387_v45 = vld [vmem:[%s6776_s0 + $0x348] sm:$0xff] }
  0xe9   : > { %3114 = vmatprep.mubr.bf16.mxu0 %v4311_v46  ;;  %4827 = vmatpush3.bf16.msra.mxu1 %v5205_v49  ;;  %v5230_v46 = vld [vmem:[%s5935_s17 + $0x178] sm:$0xff]   ;;  %v4374_v49 = vcombine.low %v1362_v30, %v1370_v31  ;;  %v5243_v31 = vld [vmem:[%s5935_s17 + $0x210] sm:$0xff]  }
  0xea   : > { %3211 = vmatprep.mubr.bf16.mxu1 %v4313_v48  ;;  %4764 = vmatprep.subr.bf16.mxu0 %v5206_v50  ;;  %v5232_v48 = vld [vmem:[%s5935_s17 + $0x1f8] sm:$0xff]  }
  0xeb   : > { %4828 = vmatprep.subr.bf16.mxu1 %v5208_v53  ;;  %v5233_v50 = vld [vmem:[%s5935_s17 + $0x1b8] sm:$0xff]   ;;  %v4393_v53 = vcombine.high %v1379_v44, %v1387_v45 }
  0xec   : > { %4765 = vmatpush3.bf16.msra.mxu0 %v5207_v52  ;;  %v4391_v52 = vcombine.high %v1378_v42, %v1386_v43 }
  0xed   : > { %4829 = vmatpush3.bf16.msra.mxu1 %v5209_v55  ;;  %4766 = vmatprep.subr.bf16.mxu0 %v5210_v62  ;;  %v5236_v55 = vld [vmem:[%s5935_s17 + $0x2c0] sm:$0xff]  }
  0xee   : > { %4830 = vmatprep.subr.bf16.mxu1 %v5212_v0  ;;  %v1284_v0 = vld [vmem:[%s6776_s0 + $0x10] sm:$0xff] }
  0xef   : > { %3115 = vmatmul.mubr.bf16.gmra.mrb[4].mxu0 %v4310_v54  ;;  %v5234_v54 = vld [vmem:[%s5935_s17 + $0x240] sm:$0xff]  }
  0xf0   : > { %3212 = vmatmul.mubr.bf16.gmra.mrb[4].mxu1 %v4312_v56  ;;  %3122 = vmatprep.mubr.bf16.mxu0 %v4327_v60  ;;  %v1394_v56 = vld [vmem:[%s6776_s0 + $0x380] sm:$0xff]  ;;  %v4390_v60 = vcombine.low %v1378_v42, %v1386_v43 }
  0xf1   : > { %3219 = vmatprep.mubr.bf16.mxu1 %v4329_v61  ;;  %4767 = vmatpush3.bf16.msra.mxu0 %v5211_v63  ;;  %v4392_v61 = vcombine.low %v1379_v44, %v1387_v45  ;;  %v4407_v62 = vcombine.high %v1394_v56, %v1402_v57  ;;  %v4409_v63 = vcombine.high %v1395_v58, %v1403_v59  ;;  %v5250_v42 = vld [vmem:[%s5935_s17 + $0x260] sm:$0xff]   ;;  %v5258_v58 = vld [vmem:[%s5935_s17 + $0x270] sm:$0xff]  }
  0xf2   : > { %4831 = vmatpush3.bf16.msra.mxu1 %v5213_v1  ;;  %4768 = vmatprep.subr.bf16.mxu0 %v5214_v7  ;;  %v1292_v1 = vld [vmem:[%s6776_s0 + $0x50] sm:$0xff]  ;;  %v4406_v4 = vcombine.low %v1394_v56, %v1402_v57  ;;  %v4301_v7 = vcombine.high %v1285_v2, %v1293_v3  ;;  %v5252_v44 = vld [vmem:[%s5935_s17 + $0x2e0] sm:$0xff]   ;;  %v5255_v56 = vld [vmem:[%s5935_s17 + $0x228] sm:$0xff]  }
  0xf3   : > { %4832 = vmatprep.subr.bf16.mxu1 %v5216_v12  ;;  %v1309_v12 = vld [vmem:[%s6776_s0 + $0xd8] sm:$0xff]  ;;  %v5257_v57 = vld [vmem:[%s5935_s17 + $0x2a8] sm:$0xff]  }
  0xf5   : > { %4769 = vmatpush3.bf16.msra.mxu0 %v5215_v10  ;;  %v1301_v10 = vld [vmem:[%s6776_s0 + $0x98] sm:$0xff] }
  0xf6   : > { %4833 = vmatpush3.bf16.msra.mxu1 %v5217_v13  ;;  %4770 = vmatprep.subr.bf16.mxu0 %v5218_v18  ;;  %v4300_v13 = vcombine.low %v1285_v2, %v1293_v3  ;;  %v4317_v17 = vcombine.high %v1301_v10, %v1309_v12  ;;  %v5238_v18 = vld [vmem:[%s5935_s17 + $0x248] sm:$0xff]   ;;  %v5262_v2 = vld [vmem:[%s5935_s17 + $0x278] sm:$0xff]   ;;  %v1364_v3 = vld [vmem:[%s6776_s0 + $0x290] sm:$0xff] }
  0xf7   : > { %3123 = vmatmul.mubr.bf16.gmra.mrb[8].mxu0 %v4326_v6  ;;  %4834 = vmatprep.subr.bf16.mxu1 %v5220_v20  ;;  %v4299_v6 = vcombine.high %v1284_v0, %v1292_v1  ;;  %v5240_v20 = vld [vmem:[%s5935_s17 + $0x2c8] sm:$0xff]  }
  0xf8   : > { %3220 = vmatmul.mubr.bf16.gmra.mrb[8].mxu1 %v4328_v8  ;;  %3130 = vmatprep.mubr.bf16.mxu0 %v4343_v9  ;;  %v1300_v8 = vld [vmem:[%s6776_s0 + $0x90] sm:$0xff] }
  0xf9   : > { %3227 = vmatprep.mubr.bf16.mxu1 %v4345_v11  ;;  %4771 = vmatpush3.bf16.msra.mxu0 %v5219_v19  ;;  %v1308_v9 = vld [vmem:[%s6776_s0 + $0xd0] sm:$0xff]  ;;  %v4298_v11 = vcombine.low %v1284_v0, %v1292_v1  ;;  %v5239_v19 = vld [vmem:[%s5935_s17 + $0x208] sm:$0xff]  }
  0xfa   : > { %4835 = vmatpush3.bf16.msra.mxu1 %v5221_v22  ;;  %4772 = vmatprep.subr.bf16.mxu0 %v5222_v26  ;;  %v4315_v16 = vcombine.high %v1300_v8, %v1308_v9  ;;  %v1316_v22 = vld [vmem:[%s6776_s0 + $0x110] sm:$0xff] }
  0xfb   : > { %4836 = vmatprep.subr.bf16.mxu1 %v5224_v28  ;;  %v5242_v26 = vld [vmem:[%s5935_s17 + $0x250] sm:$0xff]   ;;  %v4314_v28 = vcombine.low %v1300_v8, %v1308_v9  ;;  %v5263_v8 = vld [vmem:[%s5935_s17 + $0x238] sm:$0xff]  }
  0xfc   : > { %v5261_v1 = vld [vmem:[%s5935_s17 + $0x2b0] sm:$0xff]   ;;  %v5265_v9 = vld [vmem:[%s5935_s17 + $0x2b8] sm:$0xff]  }
  0xfd   : > { %4773 = vmatpush3.bf16.msra.mxu0 %v5223_v27  ;;  %v5244_v27 = vld [vmem:[%s5935_s17 + $0x2d0] sm:$0xff]  }
  0xfe   : > { %4837 = vmatpush3.bf16.msra.mxu1 %v5225_v29  ;;  %4774 = vmatprep.subr.bf16.mxu0 %v5226_v35  ;;  %v4316_v29 = vcombine.low %v1301_v10, %v1309_v12  ;;  %v1332_v35 = vld [vmem:[%s6776_s0 + $0x190] sm:$0xff]  ;;  %v5266_v10 = vld [vmem:[%s5935_s17 + $0x340] sm:$0xff]  }
  0xff   : > { %3131 = vmatmul.mubr.bf16.gmra.mrb[12].mxu0 %v4342_v21  ;;  %4838 = vmatprep.subr.bf16.mxu1 %v5228_v40  ;;  %v5241_v21 = vld [vmem:[%s5935_s17 + $0x288] sm:$0xff]   ;;  %v5247_v40 = vld [vmem:[%s5935_s17 + $0x218] sm:$0xff]   ;;  %v5268_v12 = vld [vmem:[%s5935_s17 + $0x3c0] sm:$0xff]  }
 0x100   : > { %3228 = vmatmul.mubr.bf16.gmra.mrb[12].mxu1 %v4344_v23  ;;  %3138 = vmatprep.mubr.bf16.mxu0 %v4359_v24  ;;  %v1324_v23 = vld [vmem:[%s6776_s0 + $0x150] sm:$0xff]  ;;  %v1317_v24 = vld [vmem:[%s6776_s0 + $0x118] sm:$0xff] }
 0x101   : > { %3235 = vmatprep.mubr.bf16.mxu1 %v4361_v25  ;;  %4775 = vmatpush3.bf16.msra.mxu0 %v5227_v38  ;;  %v1325_v25 = vld [vmem:[%s6776_s0 + $0x158] sm:$0xff]  ;;  %v4331_v30 = vcombine.high %v1316_v22, %v1324_v23  ;;  %v4330_v43 = vcombine.low %v1316_v22, %v1324_v23 }
 0x102   : > { %4839 = vmatpush3.bf16.msra.mxu1 %v5229_v41  ;;  %4776 = vmatprep.subr.bf16.mxu0 %v5230_v46  ;;  %v4333_v32 = vcombine.high %v1317_v24, %v1325_v25  ;;  %v1333_v38 = vld [vmem:[%s6776_s0 + $0x198] sm:$0xff]  ;;  %v4332_v45 = vcombine.low %v1317_v24, %v1325_v25  ;;  %v1396_v24 = vld [vmem:[%s6776_s0 + $0x390] sm:$0xff] }
 0x103   : > { %4840 = vmatprep.subr.bf16.mxu1 %v5232_v48  ;;  %v5249_v41 = vld [vmem:[%s5935_s17 + $0x298] sm:$0xff]   ;;  %v5251_v48 = vld [vmem:[%s5935_s17 + $0x220] sm:$0xff]   ;;  %v1404_v25 = vld [vmem:[%s6776_s0 + $0x3d0] sm:$0xff] }
 0x105   : > { %4777 = vmatpush3.bf16.msra.mxu0 %v5231_v47 }
 0x106   : > { %4841 = vmatpush3.bf16.msra.mxu1 %v5233_v50  ;;  %4890 = vmatprep.subr.bf16.mxu0 %v5234_v54  ;;  %v5254_v50 = vld [vmem:[%s5935_s17 + $0x268] sm:$0xff]   ;;  %v1349_v54 = vld [vmem:[%s6776_s0 + $0x218] sm:$0xff] }
 0x107   : > { %3139 = vmatmul.mubr.bf16.gmra.mrb[16].mxu0 %v4358_v34  ;;  %4954 = vmatprep.subr.bf16.mxu1 %v5236_v55  ;;  %v5246_v34 = vld [vmem:[%s5935_s17 + $0x258] sm:$0xff]  }
 0x108   : > { %3236 = vmatmul.mubr.bf16.gmra.mrb[16].mxu1 %v4360_v36  ;;  %3146 = vmatprep.mubr.bf16.mxu0 %v4375_v37  ;;  %v1340_v36 = vld [vmem:[%s6776_s0 + $0x1d0] sm:$0xff]  ;;  %v5248_v37 = vld [vmem:[%s5935_s17 + $0x2d8] sm:$0xff]  }
 0x109   : > { %3243 = vmatprep.mubr.bf16.mxu1 %v4377_v39  ;;  %v1341_v39 = vld [vmem:[%s6776_s0 + $0x1d8] sm:$0xff]  ;;  %v4347_v46 = vcombine.high %v1332_v35, %v1340_v36  ;;  %v4346_v59 = vcombine.low %v1332_v35, %v1340_v36  ;;  %v1295_v35 = vld [vmem:[%s6776_s0 + $0x68] sm:$0xff]  ;;  %v4410_v36 = vcombine.low %v1396_v24, %v1404_v25 }
 0x10a   : > { %v4349_v47 = vcombine.high %v1333_v38, %v1341_v39  ;;  %v1357_v55 = vld [vmem:[%s6776_s0 + $0x258] sm:$0xff] }
 0x10b   : > { %v4365_v0 = vcombine.high %v1349_v54, %v1357_v55 }
 0x10f   : > { %3147 = vmatmul.mubr.bf16.gmra.mrb[20].mxu0 %v4374_v49  ;;  %v5253_v49 = vld [vmem:[%s5935_s17 + $0x2a0] sm:$0xff]  }
 0x110   : > { %3244 = vmatmul.mubr.bf16.gmra.mrb[20].mxu1 %v4376_v51  ;;  %3154 = vmatprep.mubr.bf16.mxu0 %v4391_v52  ;;  %v1348_v51 = vld [vmem:[%s6776_s0 + $0x210] sm:$0xff] }
 0x111   : > { %3251 = vmatprep.mubr.bf16.mxu1 %v4393_v53  ;;  %v1356_v52 = vld [vmem:[%s6776_s0 + $0x250] sm:$0xff]  ;;  %v5256_v53 = vld [vmem:[%s5935_s17 + $0x2e8] sm:$0xff]  }
 0x117   : > { %3155 = vmatmul.mubr.bf16.gmra.mrb[24].mxu0 %v4390_v60  ;;  %v5260_v60 = vld [vmem:[%s5935_s17 + $0x2f0] sm:$0xff]  }
 0x118   : > { %3252 = vmatmul.mubr.bf16.gmra.mrb[24].mxu1 %v4392_v61  ;;  %3162 = vmatprep.mubr.bf16.mxu0 %v4407_v62  ;;  %v4348_v61 = vcombine.low %v1333_v38, %v1341_v39  ;;  %v4363_v62 = vcombine.high %v1348_v51, %v1356_v52 }
 0x119   : > { %3259 = vmatprep.mubr.bf16.mxu1 %v4409_v63  ;;  %v5259_v63 = vld [vmem:[%s5935_s17 + $0x230] sm:$0xff]  }
 0x11f   : > { %3163 = vmatmul.mubr.bf16.gmra.mrb[28].mxu0 %v4406_v4  ;;  %v1372_v4 = vld [vmem:[%s6776_s0 + $0x2d0] sm:$0xff] }
 0x120   : > { %3260 = vmatmul.mubr.bf16.gmra.mrb[28].mxu1 %v4408_v5  ;;  %3300 = vmatprep.mubr.bf16.mxu0 %v4299_v6  ;;  %v5264_v5 = vld [vmem:[%s5935_s17 + $0x2f8] sm:$0xff]  }
 0x121   : > { %3397 = vmatprep.mubr.bf16.mxu1 %v4301_v7  ;;  %v1365_v6 = vld [vmem:[%s6776_s0 + $0x298] sm:$0xff] }
 0x122   : > { %v1373_v7 = vld [vmem:[%s6776_s0 + $0x2d8] sm:$0xff] }
 0x127   : > { %3301 = vmatmul.mubr.bf16.vlgmr.msra.gmra.mrb[32].mxu0 %v4298_v11  ;;  %v4362_v11 = vcombine.low %v1348_v51, %v1356_v52  ;;  %v5272_v51 = vld [vmem:[%s5935_s17 + $0x3c8] sm:$0xff]  }
 0x128   : > { %3398 = vmatmul.mubr.bf16.vlgmr.msra.gmra.mrb[32].mxu1 %v4300_v13  ;;  %4891 = vmatpush3.bf16.msra.mxu0 %v5235_v14  ;;  %v4364_v13 = vcombine.low %v1349_v54, %v1357_v55  ;;  %v4379_v14 = vcombine.high %v1364_v3, %v1372_v4  ;;  %v5271_v52 = vld [vmem:[%s5935_s17 + $0x308] sm:$0xff]   ;;  %v1318_v54 = vld [vmem:[%s6776_s0 + $0x120] sm:$0xff] }
 0x129   : > { %4955 = vmatpush3.bf16.msra.mxu1 %v5237_v15  ;;  %3308 = vmatprep.mubr.bf16.mxu0 %v4315_v16  ;;  %v4381_v15 = vcombine.high %v1365_v6, %v1373_v7  ;;  %v1380_v16 = vld [vmem:[%s6776_s0 + $0x310] sm:$0xff]  ;;  %v1326_v55 = vld [vmem:[%s6776_s0 + $0x160] sm:$0xff] }
 0x12a   : > { %3405 = vmatprep.mubr.bf16.mxu1 %v4317_v17  ;;  %4892 = vmatprep.subr.bf16.mxu0 %v5238_v18  ;;  %v1388_v17 = vld [vmem:[%s6776_s0 + $0x350] sm:$0xff]  ;;  %v1381_v18 = vld [vmem:[%s6776_s0 + $0x318] sm:$0xff] }
 0x12b   : > { %4956 = vmatprep.subr.bf16.mxu1 %v5240_v20  ;;  %v4378_v20 = vcombine.low %v1364_v3, %v1372_v4  ;;  %v4395_v22 = vcombine.high %v1380_v16, %v1388_v17  ;;  %v5280_v3 = vld [vmem:[%s5935_s17 + $0x3d8] sm:$0xff]   ;;  %v1334_v4 = vld [vmem:[%s6776_s0 + $0x1a0] sm:$0xff] }
 0x12c   : > { %4893 = vmatpush3.bf16.msra.mxu0 %v5239_v19  ;;  %v1389_v19 = vld [vmem:[%s6776_s0 + $0x358] sm:$0xff] }
 0x12d   : > { %4957 = vmatpush3.bf16.msra.mxu1 %v5241_v21  ;;  %4894 = vmatprep.subr.bf16.mxu0 %v5242_v26  ;;  %v4380_v21 = vcombine.low %v1365_v6, %v1373_v7  ;;  %v4397_v23 = vcombine.high %v1381_v18, %v1389_v19  ;;  %v1397_v26 = vld [vmem:[%s6776_s0 + $0x398] sm:$0xff]  ;;  %v1335_v6 = vld [vmem:[%s6776_s0 + $0x1a8] sm:$0xff] }
 0x12e   : > { %4958 = vmatprep.subr.bf16.mxu1 %v5244_v27  ;;  %v1405_v27 = vld [vmem:[%s6776_s0 + $0x3d8] sm:$0xff] }
 0x12f   : > { %3309 = vmatmul.mubr.bf16.gmra.mrb[36].mxu0 %v4314_v28  ;;  %v4394_v28 = vcombine.low %v1380_v16, %v1388_v17  ;;  %v5279_v7 = vld [vmem:[%s5935_s17 + $0x318] sm:$0xff]   ;;  %v5283_v16 = vld [vmem:[%s5935_s17 + $0x320] sm:$0xff]  }
 0x130   : > { %3406 = vmatmul.mubr.bf16.gmra.mrb[36].mxu1 %v4316_v29  ;;  %3316 = vmatprep.mubr.bf16.mxu0 %v4331_v30  ;;  %v4396_v29 = vcombine.low %v1381_v18, %v1389_v19  ;;  %v4411_v30 = vcombine.high %v1396_v24, %v1404_v25  ;;  %v5285_v17 = vld [vmem:[%s5935_s17 + $0x3a0] sm:$0xff]   ;;  %v5286_v18 = vld [vmem:[%s5935_s17 + $0x368] sm:$0xff]  }
 0x131   : > { %3413 = vmatprep.mubr.bf16.mxu1 %v4333_v32  ;;  %4895 = vmatpush3.bf16.msra.mxu0 %v5243_v31  ;;  %v4413_v31 = vcombine.high %v1397_v26, %v1405_v27  ;;  %v1286_v32 = vld [vmem:[%s6776_s0 + $0x20] sm:$0xff]  ;;  %v5288_v19 = vld [vmem:[%s5935_s17 + $0x3e8] sm:$0xff]  }
 0x132   : > { %4959 = vmatpush3.bf16.msra.mxu1 %v5245_v33  ;;  %4896 = vmatprep.subr.bf16.mxu0 %v5246_v34  ;;  %v1294_v33 = vld [vmem:[%s6776_s0 + $0x60] sm:$0xff]  ;;  %v1287_v34 = vld [vmem:[%s6776_s0 + $0x28] sm:$0xff] }
 0x133   : > { %4960 = vmatprep.subr.bf16.mxu1 %v5248_v37  ;;  %v4412_v37 = vcombine.low %v1397_v26, %v1405_v27  ;;  %v4303_v38 = vcombine.high %v1286_v32, %v1294_v33  ;;  %v4305_v39 = vcombine.high %v1287_v34, %v1295_v35  ;;  %v1359_v24 = vld [vmem:[%s6776_s0 + $0x268] sm:$0xff]  ;;  %v5290_v26 = vld [vmem:[%s5935_s17 + $0x370] sm:$0xff]  }
 0x134   : > { %v5289_v25 = vld [vmem:[%s5935_s17 + $0x3a8] sm:$0xff]  }
 0x135   : > { %4897 = vmatpush3.bf16.msra.mxu0 %v5247_v40  ;;  %v1302_v40 = vld [vmem:[%s6776_s0 + $0xa0] sm:$0xff] }
 0x136   : > { %4961 = vmatpush3.bf16.msra.mxu1 %v5249_v41  ;;  %4898 = vmatprep.subr.bf16.mxu0 %v5250_v42  ;;  %v1310_v41 = vld [vmem:[%s6776_s0 + $0xe0] sm:$0xff]  ;;  %v4302_v42 = vcombine.low %v1286_v32, %v1294_v33  ;;  %v5291_v32 = vld [vmem:[%s5935_s17 + $0x330] sm:$0xff]  }
 0x137   : > { %3317 = vmatmul.mubr.bf16.gmra.mrb[40].mxu0 %v4330_v43  ;;  %4962 = vmatprep.subr.bf16.mxu1 %v5252_v44  ;;  %v1303_v43 = vld [vmem:[%s6776_s0 + $0xa8] sm:$0xff]  ;;  %v5293_v33 = vld [vmem:[%s5935_s17 + $0x3b0] sm:$0xff]  }
 0x138   : > { %3414 = vmatmul.mubr.bf16.gmra.mrb[40].mxu1 %v4332_v45  ;;  %3324 = vmatprep.mubr.bf16.mxu0 %v4347_v46  ;;  %v1311_v44 = vld [vmem:[%s6776_s0 + $0xe8] sm:$0xff]  ;;  %v4304_v45 = vcombine.low %v1287_v34, %v1295_v35  ;;  %v5267_v46 = vld [vmem:[%s5935_s17 + $0x300] sm:$0xff]   ;;  %v5294_v34 = vld [vmem:[%s5935_s17 + $0x378] sm:$0xff]  }
 0x139   : > { %3421 = vmatprep.mubr.bf16.mxu1 %v4349_v47  ;;  %4899 = vmatpush3.bf16.msra.mxu0 %v5251_v48  ;;  %v5269_v47 = vld [vmem:[%s5935_s17 + $0x380] sm:$0xff]   ;;  %v4319_v48 = vcombine.high %v1302_v40, %v1310_v41  ;;  %v5296_v35 = vld [vmem:[%s5935_s17 + $0x3f8] sm:$0xff]  }
 0x13a   : > { %4963 = vmatpush3.bf16.msra.mxu1 %v5253_v49  ;;  %4900 = vmatprep.subr.bf16.mxu0 %v5254_v50  ;;  %v4321_v49 = vcombine.high %v1303_v43, %v1311_v44  ;;  %v5270_v50 = vld [vmem:[%s5935_s17 + $0x348] sm:$0xff]  }
 0x13b   : > { %4964 = vmatprep.subr.bf16.mxu1 %v5256_v53  ;;  %v5273_v53 = vld [vmem:[%s5935_s17 + $0x388] sm:$0xff]  }
 0x13d   : > { %4901 = vmatpush3.bf16.msra.mxu0 %v5255_v56  ;;  %v5274_v56 = vld [vmem:[%s5935_s17 + $0x350] sm:$0xff]  }
 0x13e   : > { %4965 = vmatpush3.bf16.msra.mxu1 %v5257_v57  ;;  %4902 = vmatprep.subr.bf16.mxu0 %v5258_v58  ;;  %v1319_v57 = vld [vmem:[%s6776_s0 + $0x128] sm:$0xff] }
 0x13f   : > { %3325 = vmatmul.mubr.bf16.gmra.mrb[44].mxu0 %v4346_v59  ;;  %4966 = vmatprep.subr.bf16.mxu1 %v5260_v60  ;;  %v1327_v58 = vld [vmem:[%s6776_s0 + $0x168] sm:$0xff]  ;;  %v5276_v59 = vld [vmem:[%s5935_s17 + $0x3d0] sm:$0xff]   ;;  %v4318_v60 = vcombine.low %v1302_v40, %v1310_v41  ;;  %v5297_v41 = vld [vmem:[%s5935_s17 + $0x3b8] sm:$0xff]  }
 0x140   : > { %3422 = vmatmul.mubr.bf16.gmra.mrb[44].mxu1 %v4348_v61  ;;  %3332 = vmatprep.mubr.bf16.mxu0 %v4363_v62  ;;  %v4320_v61 = vcombine.low %v1303_v43, %v1311_v44  ;;  %v4335_v62 = vcombine.high %v1318_v54, %v1326_v55  ;;  %v1375_v40 = vld [vmem:[%s6776_s0 + $0x2e8] sm:$0xff] }
 0x141   : > { %3429 = vmatprep.mubr.bf16.mxu1 %v4365_v0  ;;  %4903 = vmatpush3.bf16.msra.mxu0 %v5259_v63  ;;  %v4337_v63 = vcombine.high %v1319_v57, %v1327_v58  ;;  %v5275_v0 = vld [vmem:[%s5935_s17 + $0x310] sm:$0xff]  }
 0x142   : > { %4967 = vmatpush3.bf16.msra.mxu1 %v5261_v1  ;;  %4904 = vmatprep.subr.bf16.mxu0 %v5262_v2  ;;  %v5277_v1 = vld [vmem:[%s5935_s17 + $0x390] sm:$0xff]   ;;  %v5278_v2 = vld [vmem:[%s5935_s17 + $0x358] sm:$0xff]  }
 0x143   : > { %4968 = vmatprep.subr.bf16.mxu1 %v5264_v5  ;;  %v1342_v5 = vld [vmem:[%s6776_s0 + $0x1e0] sm:$0xff] }
 0x144   : > { %v4350_v27 = vcombine.low %v1334_v4, %v1342_v5 }
 0x145   : > { %4905 = vmatpush3.bf16.msra.mxu0 %v5263_v8  ;;  %v1343_v8 = vld [vmem:[%s6776_s0 + $0x1e8] sm:$0xff] }
 0x146   : > { %4969 = vmatpush3.bf16.msra.mxu1 %v5265_v9  ;;  %5018 = vmatprep.subr.bf16.mxu0 %v5266_v10  ;;  %v5281_v9 = vld [vmem:[%s5935_s17 + $0x398] sm:$0xff]   ;;  %v5282_v10 = vld [vmem:[%s5935_s17 + $0x360] sm:$0xff]  }
 0x147   : > { %3333 = vmatmul.mubr.bf16.gmra.mrb[48].mxu0 %v4362_v11  ;;  %5082 = vmatprep.subr.bf16.mxu1 %v5268_v12  ;;  %v4334_v11 = vcombine.low %v1318_v54, %v1326_v55  ;;  %v5284_v12 = vld [vmem:[%s5935_s17 + $0x3e0] sm:$0xff]  }
 0x148   : > { %3430 = vmatmul.mubr.bf16.gmra.mrb[48].mxu1 %v4364_v13  ;;  %3340 = vmatprep.mubr.bf16.mxu0 %v4379_v14  ;;  %v4336_v13 = vcombine.low %v1319_v57, %v1327_v58  ;;  %v4351_v14 = vcombine.high %v1334_v4, %v1342_v5  ;;  %v1398_v54 = vld [vmem:[%s6776_s0 + $0x3a0] sm:$0xff]  ;;  %v1407_v57 = vld [vmem:[%s6776_s0 + $0x3e8] sm:$0xff] }
 0x149   : > { %3437 = vmatprep.mubr.bf16.mxu1 %v4381_v15  ;;  %v4353_v15 = vcombine.high %v1335_v6, %v1343_v8  ;;  %v1406_v55 = vld [vmem:[%s6776_s0 + $0x3e0] sm:$0xff] }
 0x14f   : > { %3341 = vmatmul.mubr.bf16.gmra.mrb[52].mxu0 %v4378_v20  ;;  %v1350_v20 = vld [vmem:[%s6776_s0 + $0x220] sm:$0xff] }
 0x150   : > { %3438 = vmatmul.mubr.bf16.gmra.mrb[52].mxu1 %v4380_v21  ;;  %3348 = vmatprep.mubr.bf16.mxu0 %v4395_v22  ;;  %v1358_v21 = vld [vmem:[%s6776_s0 + $0x260] sm:$0xff]  ;;  %v1351_v22 = vld [vmem:[%s6776_s0 + $0x228] sm:$0xff] }
 0x151   : > { %3445 = vmatprep.mubr.bf16.mxu1 %v4397_v23  ;;  %v5287_v23 = vld [vmem:[%s5935_s17 + $0x328] sm:$0xff]   ;;  %v4368_v43 = vcombine.low %v1351_v22, %v1359_v24 }
 0x157   : > { %3349 = vmatmul.mubr.bf16.gmra.mrb[56].mxu0 %v4394_v28  ;;  %v5292_v28 = vld [vmem:[%s5935_s17 + $0x3f0] sm:$0xff]  }
 0x158   : > { %3446 = vmatmul.mubr.bf16.gmra.mrb[56].mxu1 %v4396_v29  ;;  %3356 = vmatprep.mubr.bf16.mxu0 %v4411_v30  ;;  %v4352_v29 = vcombine.low %v1335_v6, %v1343_v8  ;;  %v4367_v30 = vcombine.high %v1350_v20, %v1358_v21  ;;  %v1304_v6 = vld [vmem:[%s6776_s0 + $0xb0] sm:$0xff]  ;;  %v1305_v8 = vld [vmem:[%s6776_s0 + $0xb8] sm:$0xff] }
 0x159   : > { %3453 = vmatprep.mubr.bf16.mxu1 %v4413_v31  ;;  %v4369_v31 = vcombine.high %v1351_v22, %v1359_v24  ;;  %v1336_v22 = vld [vmem:[%s6776_s0 + $0x1b0] sm:$0xff]  ;;  %v1337_v24 = vld [vmem:[%s6776_s0 + $0x1b8] sm:$0xff] }
 0x15f   : > { %3357 = vmatmul.mubr.bf16.gmra.mrb[60].mxu0 %v4410_v36  ;;  %v1366_v36 = vld [vmem:[%s6776_s0 + $0x2a0] sm:$0xff] }
 0x160   : > { %3454 = vmatmul.mubr.bf16.gmra.mrb[60].mxu1 %v4412_v37  ;;  %3494 = vmatprep.mubr.bf16.mxu0 %v4303_v38  ;;  %v1374_v37 = vld [vmem:[%s6776_s0 + $0x2e0] sm:$0xff]  ;;  %v5295_v38 = vld [vmem:[%s5935_s17 + $0x338] sm:$0xff]   ;;  %s1276_s17 = scalar_select %p1275_p10, %s5365_s18, 1 }
 0x161   : > { %3591 = vmatprep.mubr.bf16.mxu1 %v4305_v39  ;;  %v1367_v39 = vld [vmem:[%s6776_s0 + $0x2a8] sm:$0xff]  ;;  %v4383_v44 = vcombine.high %v1366_v36, %v1374_v37 }
 0x162   : > { %s1277_s9 = scalar_lea.vmem %s6778_s2, %s1276_s17  ;;  %s1280_s12 = scalar_lea.vmem %s6779_s3, %s1276_s17 }
 0x167   : > { %3495 = vmatmul.mubr.bf16.vlgmr.msra.gmra.mrb[64].mxu0 %v4302_v42  ;;  %v4366_v42 = vcombine.low %v1350_v20, %v1358_v21 }
 0x168   : > { %3592 = vmatmul.mubr.bf16.vlgmr.msra.gmra.mrb[64].mxu1 %v4304_v45  ;;  %5019 = vmatpush3.bf16.msra.mxu0 %v5267_v46  ;;  %v4385_v45 = vcombine.high %v1367_v39, %v1375_v40  ;;  %v1382_v46 = vld [vmem:[%s6776_s0 + $0x320] sm:$0xff] }
 0x169   : > { %5083 = vmatpush3.bf16.msra.mxu1 %v5269_v47  ;;  %3502 = vmatprep.mubr.bf16.mxu0 %v4319_v48  ;;  %v1390_v47 = vld [vmem:[%s6776_s0 + $0x360] sm:$0xff]  ;;  %v1383_v48 = vld [vmem:[%s6776_s0 + $0x328] sm:$0xff] }
 0x16a   : > { %3599 = vmatprep.mubr.bf16.mxu1 %v4321_v49  ;;  %5020 = vmatprep.subr.bf16.mxu0 %v5270_v50  ;;  %v1391_v49 = vld [vmem:[%s6776_s0 + $0x368] sm:$0xff]  ;;  %v4382_v50 = vcombine.low %v1366_v36, %v1374_v37  ;;  %v4398_v58 = vcombine.low %v1382_v46, %v1390_v47 }
 0x16b   : > { %5084 = vmatprep.subr.bf16.mxu1 %v5272_v51  ;;  %v4384_v51 = vcombine.low %v1367_v39, %v1375_v40 }
 0x16c   : > { %5021 = vmatpush3.bf16.msra.mxu0 %v5271_v52  ;;  %v4399_v52 = vcombine.high %v1382_v46, %v1390_v47 }
 0x16d   : > { %5085 = vmatpush3.bf16.msra.mxu1 %v5273_v53  ;;  %5022 = vmatprep.subr.bf16.mxu0 %v5274_v56  ;;  %v4401_v53 = vcombine.high %v1383_v48, %v1391_v49  ;;  %v1399_v56 = vld [vmem:[%s6776_s0 + $0x3a8] sm:$0xff] }
 0x16e   : > { %5086 = vmatprep.subr.bf16.mxu1 %v5276_v59  ;;  %v4400_v59 = vcombine.low %v1383_v48, %v1391_v49 }
 0x16f   : > { %3503 = vmatmul.mubr.bf16.gmra.mrb[68].mxu0 %v4318_v60  ;;  %v4415_v60 = vcombine.high %v1398_v54, %v1406_v55 }
 0x170   : > { %3600 = vmatmul.mubr.bf16.gmra.mrb[68].mxu1 %v4320_v61  ;;  %3510 = vmatprep.mubr.bf16.mxu0 %v4335_v62  ;;  %v4417_v61 = vcombine.high %v1399_v56, %v1407_v57  ;;  %v1288_v62 = vld [vmem:[%s6776_s0 + $0x30] sm:$0xff] }
 0x171   : > { %3607 = vmatprep.mubr.bf16.mxu1 %v4337_v63  ;;  %5023 = vmatpush3.bf16.msra.mxu0 %v5275_v0  ;;  %v1296_v63 = vld [vmem:[%s6776_s0 + $0x70] sm:$0xff]  ;;  %v1289_v0 = vld [vmem:[%s6776_s0 + $0x38] sm:$0xff] }
 0x172   : > { %5087 = vmatpush3.bf16.msra.mxu1 %v5277_v1  ;;  %5024 = vmatprep.subr.bf16.mxu0 %v5278_v2  ;;  %v1297_v1 = vld [vmem:[%s6776_s0 + $0x78] sm:$0xff]  ;;  %v4414_v2 = vcombine.low %v1398_v54, %v1406_v55  ;;  %v4307_v4 = vcombine.high %v1288_v62, %v1296_v63 }
 0x173   : > { %5088 = vmatprep.subr.bf16.mxu1 %v5280_v3  ;;  %v4416_v3 = vcombine.low %v1399_v56, %v1407_v57  ;;  %v4309_v5 = vcombine.high %v1289_v0, %v1297_v1  ;;  %v1369_v55 = vld [vmem:[%s6776_s0 + $0x2b8] sm:$0xff] }
 0x174   : > { %v1377_v56 = vld [vmem:[%s6776_s0 + $0x2f8] sm:$0xff] }
 0x175   : > { %5025 = vmatpush3.bf16.msra.mxu0 %v5279_v7  ;;  %v1312_v7 = vld [vmem:[%s6776_s0 + $0xf0] sm:$0xff] }
 0x176   : > { %5089 = vmatpush3.bf16.msra.mxu1 %v5281_v9  ;;  %5026 = vmatprep.subr.bf16.mxu0 %v5282_v10  ;;  %v1313_v9 = vld [vmem:[%s6776_s0 + $0xf8] sm:$0xff]  ;;  %v4306_v10 = vcombine.low %v1288_v62, %v1296_v63 }
 0x177   : > { %3511 = vmatmul.mubr.bf16.gmra.mrb[72].mxu0 %v4334_v11  ;;  %5090 = vmatprep.subr.bf16.mxu1 %v5284_v12  ;;  %v4308_v11 = vcombine.low %v1289_v0, %v1297_v1  ;;  %v4323_v12 = vcombine.high %v1304_v6, %v1312_v7 }
 0x178   : > { %3608 = vmatmul.mubr.bf16.gmra.mrb[72].mxu1 %v4336_v13  ;;  %3518 = vmatprep.mubr.bf16.mxu0 %v4351_v14  ;;  %v4325_v13 = vcombine.high %v1305_v8, %v1313_v9  ;;  %v1320_v14 = vld [vmem:[%s6776_s0 + $0x130] sm:$0xff] }
 0x179   : > { %3615 = vmatprep.mubr.bf16.mxu1 %v4353_v15  ;;  %5027 = vmatpush3.bf16.msra.mxu0 %v5283_v16  ;;  %v1328_v15 = vld [vmem:[%s6776_s0 + $0x170] sm:$0xff]  ;;  %v1321_v16 = vld [vmem:[%s6776_s0 + $0x138] sm:$0xff] }
 0x17a   : > { %5091 = vmatpush3.bf16.msra.mxu1 %v5285_v17  ;;  %5028 = vmatprep.subr.bf16.mxu0 %v5286_v18  ;;  %v1329_v17 = vld [vmem:[%s6776_s0 + $0x178] sm:$0xff]  ;;  %v4322_v18 = vcombine.low %v1304_v6, %v1312_v7  ;;  %v4339_v20 = vcombine.high %v1320_v14, %v1328_v15 }
 0x17b   : > { %5092 = vmatprep.subr.bf16.mxu1 %v5288_v19  ;;  %v4324_v19 = vcombine.low %v1305_v8, %v1313_v9  ;;  %v4341_v21 = vcombine.high %v1321_v16, %v1329_v17 }
 0x17d   : > { %5029 = vmatpush3.bf16.msra.mxu0 %v5287_v23  ;;  %v1344_v23 = vld [vmem:[%s6776_s0 + $0x1f0] sm:$0xff] }
 0x17e   : > { %5093 = vmatpush3.bf16.msra.mxu1 %v5289_v25  ;;  %5030 = vmatprep.subr.bf16.mxu0 %v5290_v26  ;;  %v1345_v25 = vld [vmem:[%s6776_s0 + $0x1f8] sm:$0xff]  ;;  %v4338_v26 = vcombine.low %v1320_v14, %v1328_v15  ;;  %v4354_v37 = vcombine.low %v1336_v22, %v1344_v23 }
 0x17f   : > { %3519 = vmatmul.mubr.bf16.gmra.mrb[76].mxu0 %v4350_v27  ;;  %5094 = vmatprep.subr.bf16.mxu1 %v5292_v28  ;;  %v4340_v27 = vcombine.low %v1321_v16, %v1329_v17  ;;  %v4355_v28 = vcombine.high %v1336_v22, %v1344_v23  ;;  %v1393_v14 = vld [vmem:[%s6776_s0 + $0x378] sm:$0xff] }
 0x180   : > { %3616 = vmatmul.mubr.bf16.gmra.mrb[76].mxu1 %v4352_v29  ;;  %3526 = vmatprep.mubr.bf16.mxu0 %v4367_v30  ;;  %v4357_v29 = vcombine.high %v1337_v24, %v1345_v25  ;;  %v1352_v30 = vld [vmem:[%s6776_s0 + $0x230] sm:$0xff] }
 0x181   : > { %3623 = vmatprep.mubr.bf16.mxu1 %v4369_v31  ;;  %5031 = vmatpush3.bf16.msra.mxu0 %v5291_v32  ;;  %v1360_v31 = vld [vmem:[%s6776_s0 + $0x270] sm:$0xff] }
 0x182   : > { %5095 = vmatpush3.bf16.msra.mxu1 %v5293_v33  ;;  %5032 = vmatprep.subr.bf16.mxu0 %v5294_v34  ;;  %v1353_v33 = vld [vmem:[%s6776_s0 + $0x238] sm:$0xff] }
 0x183   : > { %5096 = vmatprep.subr.bf16.mxu1 %v5296_v35  ;;  %v1361_v34 = vld [vmem:[%s6776_s0 + $0x278] sm:$0xff] }
 0x184   : > { %v4373_v46 = vcombine.high %v1353_v33, %v1361_v34  ;;  %v4372_v63 = vcombine.low %v1353_v33, %v1361_v34  ;;  %v1408_v33 = vld [vmem:[%s6776_s0 + $0x3f0] sm:$0xff] }
 0x185   : > { %5033 = vmatpush3.bf16.msra.mxu0 %v5295_v38 }
 0x186   : > { %5097 = vmatpush3.bf16.msra.mxu1 %v5297_v41  ;;  %v4356_v41 = vcombine.low %v1337_v24, %v1345_v25 }
 0x187   : > { %3527 = vmatmul.mubr.bf16.gmra.mrb[80].mxu0 %v4366_v42  ;;  %v4371_v42 = vcombine.high %v1352_v30, %v1360_v31 }
 0x188   : > { %3624 = vmatmul.mubr.bf16.gmra.mrb[80].mxu1 %v4368_v43  ;;  %3534 = vmatprep.mubr.bf16.mxu0 %v4383_v44 }
 0x189   : > { %3631 = vmatprep.mubr.bf16.mxu1 %v4385_v45 }
 0x18f   : > { %3535 = vmatmul.mubr.bf16.gmra.mrb[84].mxu0 %v4382_v50 }
 0x190   : > { %3632 = vmatmul.mubr.bf16.gmra.mrb[84].mxu1 %v4384_v51  ;;  %3542 = vmatprep.mubr.bf16.mxu0 %v4399_v52  ;;  %v1368_v52 = vld [vmem:[%s6776_s0 + $0x2b0] sm:$0xff] }
 0x191   : > { %3639 = vmatprep.mubr.bf16.mxu1 %v4401_v53  ;;  %v1376_v53 = vld [vmem:[%s6776_s0 + $0x2f0] sm:$0xff] }
 0x192   : > { %v4387_v0 = vcombine.high %v1368_v52, %v1376_v53  ;;  %v4386_v17 = vcombine.low %v1368_v52, %v1376_v53 }
 0x197   : > { %3543 = vmatmul.mubr.bf16.gmra.mrb[88].mxu0 %v4398_v58 }
 0x198   : > { %3640 = vmatmul.mubr.bf16.gmra.mrb[88].mxu1 %v4400_v59  ;;  %3550 = vmatprep.mubr.bf16.mxu0 %v4415_v60  ;;  %v4370_v59 = vcombine.low %v1352_v30, %v1360_v31 }
 0x199   : > { %3647 = vmatprep.mubr.bf16.mxu1 %v4417_v61 }
 0x19f   : > { %3551 = vmatmul.mubr.bf16.gmra.mrb[92].mxu0 %v4414_v2 }
 0x1a0   : > { %3648 = vmatmul.mubr.bf16.gmra.mrb[92].mxu1 %v4416_v3  ;;  %3688 = vmatprep.mubr.bf16.mxu0 %v4307_v4  ;;  %v4389_v4 = vcombine.high %v1369_v55, %v1377_v56 }
 0x1a1   : > { %3785 = vmatprep.mubr.bf16.mxu1 %v4309_v5 }
 0x1a7   : > { %3689 = vmatmul.mubr.bf16.vlgmr.msra.gmra.mrb[96].mxu0 %v4306_v10  ;;  %v1384_v10 = vld [vmem:[%s6776_s0 + $0x330] sm:$0xff] }
 0x1a8   : > { %3786 = vmatmul.mubr.bf16.vlgmr.msra.gmra.mrb[96].mxu1 %v4308_v11  ;;  %3696 = vmatprep.mubr.bf16.mxu0 %v4323_v12  ;;  %v1392_v11 = vld [vmem:[%s6776_s0 + $0x370] sm:$0xff] }
 0x1a9   : > { %3793 = vmatprep.mubr.bf16.mxu1 %v4325_v13  ;;  %v1385_v13 = vld [vmem:[%s6776_s0 + $0x338] sm:$0xff]  ;;  %v4403_v22 = vcombine.high %v1384_v10, %v1392_v11 }
 0x1af   : > { %3697 = vmatmul.mubr.bf16.gmra.mrb[100].mxu0 %v4322_v18 }
 0x1b0   : > { %3794 = vmatmul.mubr.bf16.gmra.mrb[100].mxu1 %v4324_v19  ;;  %3704 = vmatprep.mubr.bf16.mxu0 %v4339_v20 }
 0x1b1   : > { %3801 = vmatprep.mubr.bf16.mxu1 %v4341_v21  ;;  %v4388_v21 = vcombine.low %v1369_v55, %v1377_v56 }
 0x1b7   : > { %3705 = vmatmul.mubr.bf16.gmra.mrb[104].mxu0 %v4338_v26  ;;  %v4405_v26 = vcombine.high %v1385_v13, %v1393_v14 }
 0x1b8   : > { %3802 = vmatmul.mubr.bf16.gmra.mrb[104].mxu1 %v4340_v27  ;;  %3712 = vmatprep.mubr.bf16.mxu0 %v4355_v28 }
 0x1b9   : > { %3809 = vmatprep.mubr.bf16.mxu1 %v4357_v29 }
 0x1ba   : > { %v4650_v32 = vpop.f32.mrb[0].mxu0 }
 0x1bb   : > { %v4714_v35 = vpop.f32.mrb[0].mxu1  ;;  %v4651_v36 = vpop.f32.mrb[1].mxu0 }
 0x1bc   : > { %v4652_v38 = vadd.f32 %v4651_v36, %v4650_v32  ;;  %v4715_v39 = vpop.f32.mrb[1].mxu1  ;;  %v4653_v40 = vpop.f32.mrb[2].mxu0  ;;  %v1400_v32 = vld [vmem:[%s6776_s0 + $0x3b0] sm:$0xff]  ;;  %v1409_v36 = vld [vmem:[%s6776_s0 + $0x3f8] sm:$0xff] }
 0x1bd   : > { %v4716_v43 = vadd.f32 %v4715_v39, %v4714_v35  ;;  %v4717_v44 = vpop.f32.mrb[2].mxu1  ;;  %v4654_v45 = vpop.f32.mrb[3].mxu0  ;;  %v1401_v35 = vld [vmem:[%s6776_s0 + $0x3b8] sm:$0xff]  ;;  %v4402_v39 = vcombine.low %v1384_v10, %v1392_v11 }
 0x1be   : > { %v4655_v47 = vadd.f32 %v4654_v45, %v4653_v40  ;;  %v4718_v48 = vpop.f32.mrb[3].mxu1 }
 0x1bf   : > { %v6405_v49 = vadd.f32 %v4716_v43, %v4652_v38  ;;  %v4719_v50 = vadd.f32 %v4718_v48, %v4717_v44  ;;  %3713 = vmatmul.mubr.bf16.gmra.mrb[108].mxu0 %v4354_v37  ;;  %v4404_v43 = vcombine.low %v1385_v13, %v1393_v14  ;;  %v4419_v44 = vcombine.high %v1400_v32, %v1408_v33 }
 0x1c0   : > { %3810 = vmatmul.mubr.bf16.gmra.mrb[108].mxu1 %v4356_v41  ;;  %3720 = vmatprep.mubr.bf16.mxu0 %v4371_v42  ;;  %v4421_v48 = vcombine.high %v1401_v35, %v1409_v36 }
 0x1c1   : > { %v6407_v51 = vadd.f32 %v4719_v50, %v4655_v47  ;;  %3817 = vmatprep.mubr.bf16.mxu1 %v4373_v46 }
 0x1c2   : > { %v4656_v54 = vpop.f32.mrb[4].mxu0 }
 0x1c3   : > { %v4720_v57 = vpop.f32.mrb[4].mxu1  ;;  %v4657_v58 = vpop.f32.mrb[5].mxu0 }
 0x1c4   : > { %v4658_v60 = vadd.f32 %v4657_v58, %v4656_v54  ;;  %v4721_v61 = vpop.f32.mrb[5].mxu1  ;;  %v4659_v62 = vpop.f32.mrb[6].mxu0 }
 0x1c5   : > { %v4722_v1 = vadd.f32 %v4721_v61, %v4720_v57  ;;  %v4723_v2 = vpop.f32.mrb[6].mxu1  ;;  %v4660_v3 = vpop.f32.mrb[7].mxu0 }
 0x1c6   : > { %v4661_v5 = vadd.f32 %v4660_v3, %v4659_v62  ;;  %v4724_v6 = vpop.f32.mrb[7].mxu1 }
 0x1c7   : > { %v6421_v7 = vadd.f32 %v4722_v1, %v4658_v60  ;;  %v4725_v8 = vadd.f32 %v4724_v6, %v4723_v2  ;;  %3721 = vmatmul.mubr.bf16.gmra.mrb[112].mxu0 %v4370_v59  ;;  %v4418_v59 = vcombine.low %v1400_v32, %v1408_v33 }
 0x1c8   : > { %3818 = vmatmul.mubr.bf16.gmra.mrb[112].mxu1 %v4372_v63  ;;  %3728 = vmatprep.mubr.bf16.mxu0 %v4387_v0  ;;  %v4420_v63 = vcombine.low %v1401_v35, %v1409_v36 }
 0x1c9   : > { %v6423_v9 = vadd.f32 %v4725_v8, %v4661_v5  ;;  %3825 = vmatprep.mubr.bf16.mxu1 %v4389_v4 }
 0x1ca   : > { %v4662_v12 = vpop.f32.mrb[8].mxu0 }
 0x1cb   : > { %v4726_v15 = vpop.f32.mrb[8].mxu1  ;;  %v4663_v16 = vpop.f32.mrb[9].mxu0 }
 0x1cc   : > { %v4664_v18 = vadd.f32 %v4663_v16, %v4662_v12  ;;  %v4727_v19 = vpop.f32.mrb[9].mxu1  ;;  %v4665_v20 = vpop.f32.mrb[10].mxu0 }
 0x1cd   : > { %v4728_v23 = vadd.f32 %v4727_v19, %v4726_v15  ;;  %v4729_v24 = vpop.f32.mrb[10].mxu1  ;;  %v4666_v25 = vpop.f32.mrb[11].mxu0 }
 0x1ce   : > { %v4667_v27 = vadd.f32 %v4666_v25, %v4665_v20  ;;  %v4730_v28 = vpop.f32.mrb[11].mxu1 }
 0x1cf   : > { %v6437_v29 = vadd.f32 %v4728_v23, %v4664_v18  ;;  %v4731_v30 = vadd.f32 %v4730_v28, %v4729_v24  ;;  %3729 = vmatmul.mubr.bf16.gmra.mrb[116].mxu0 %v4386_v17 }
 0x1d0   : > { %3826 = vmatmul.mubr.bf16.gmra.mrb[116].mxu1 %v4388_v21  ;;  %3736 = vmatprep.mubr.bf16.mxu0 %v4403_v22 }
 0x1d1   : > { %v6439_v31 = vadd.f32 %v4731_v30, %v4667_v27  ;;  %3833 = vmatprep.mubr.bf16.mxu1 %v4405_v26 }
 0x1d2   : > { %v4668_v34 = vpop.f32.mrb[12].mxu0 }
 0x1d3   : > { %v4732_v37 = vpop.f32.mrb[12].mxu1  ;;  %v4669_v38 = vpop.f32.mrb[13].mxu0 }
 0x1d4   : > { %v4670_v40 = vadd.f32 %v4669_v38, %v4668_v34  ;;  %v4733_v41 = vpop.f32.mrb[13].mxu1  ;;  %v4671_v42 = vpop.f32.mrb[14].mxu0 }
 0x1d5   : > { %v4734_v45 = vadd.f32 %v4733_v41, %v4732_v37  ;;  %v4735_v46 = vpop.f32.mrb[14].mxu1  ;;  %v4672_v47 = vpop.f32.mrb[15].mxu0 }
 0x1d6   : > { %v4673_v50 = vadd.f32 %v4672_v47, %v4671_v42  ;;  %v4736_v52 = vpop.f32.mrb[15].mxu1 }
 0x1d7   : > { %v6453_v53 = vadd.f32 %v4734_v45, %v4670_v40  ;;  %v4737_v54 = vadd.f32 %v4736_v52, %v4735_v46  ;;  %3737 = vmatmul.mubr.bf16.gmra.mrb[120].mxu0 %v4402_v39 }
 0x1d8   : > { %3834 = vmatmul.mubr.bf16.gmra.mrb[120].mxu1 %v4404_v43  ;;  %3744 = vmatprep.mubr.bf16.mxu0 %v4419_v44 }
 0x1d9   : > { %v6455_v55 = vadd.f32 %v4737_v54, %v4673_v50  ;;  %3841 = vmatprep.mubr.bf16.mxu1 %v4421_v48 }
 0x1da   : > { %v4674_v56 = vpop.f32.mrb[16].mxu0 }
 0x1db   : > { %v4738_v57 = vpop.f32.mrb[16].mxu1  ;;  %v4675_v58 = vpop.f32.mrb[17].mxu0 }
 0x1dc   : > { %v4676_v60 = vadd.f32 %v4675_v58, %v4674_v56  ;;  %v4739_v61 = vpop.f32.mrb[17].mxu1  ;;  %v4677_v62 = vpop.f32.mrb[18].mxu0 }
 0x1dd   : > { %v4740_v0 = vadd.f32 %v4739_v61, %v4738_v57  ;;  %v4741_v1 = vpop.f32.mrb[18].mxu1  ;;  %v4678_v2 = vpop.f32.mrb[19].mxu0 }
 0x1de   : > { %v4679_v3 = vadd.f32 %v4678_v2, %v4677_v62  ;;  %v4742_v4 = vpop.f32.mrb[19].mxu1 }
 0x1df   : > { %v6457_v5 = vadd.f32 %v4740_v0, %v4676_v60  ;;  %v4743_v6 = vadd.f32 %v4742_v4, %v4741_v1  ;;  %3745 = vmatmul.mubr.bf16.gmra.mrb[124].mxu0 %v4418_v59 }
 0x1e0   : > { %3842 = vmatmul.mubr.bf16.gmra.mrb[124].mxu1 %v4420_v63 }
 0x1e1   : > { %v6459_v8 = vadd.f32 %v4743_v6, %v4679_v3 }
 0x1e2   : > { %v4680_v10 = vpop.f32.mrb[20].mxu0 }
 0x1e3   : > { %v4744_v11 = vpop.f32.mrb[20].mxu1  ;;  %v4681_v12 = vpop.f32.mrb[21].mxu0 }
 0x1e4   : > { %v4682_v13 = vadd.f32 %v4681_v12, %v4680_v10  ;;  %v4745_v14 = vpop.f32.mrb[21].mxu1  ;;  %v4683_v15 = vpop.f32.mrb[22].mxu0 }
 0x1e5   : > { %v4746_v16 = vadd.f32 %v4745_v14, %v4744_v11  ;;  %v4747_v17 = vpop.f32.mrb[22].mxu1  ;;  %v4684_v18 = vpop.f32.mrb[23].mxu0 }
 0x1e6   : > { %v4685_v19 = vadd.f32 %v4684_v18, %v4683_v15  ;;  %v4748_v20 = vpop.f32.mrb[23].mxu1 }
 0x1e7   : > { %v6461_v21 = vadd.f32 %v4746_v16, %v4682_v13  ;;  %v4749_v22 = vadd.f32 %v4748_v20, %v4747_v17 }
 0x1e9   : > { %v6463_v23 = vadd.f32 %v4749_v22, %v4685_v19 }
 0x1ea   : > { %v4686_v24 = vpop.f32.mrb[24].mxu0 }
 0x1eb   : > { %v4750_v25 = vpop.f32.mrb[24].mxu1  ;;  %v4687_v26 = vpop.f32.mrb[25].mxu0 }
 0x1ec   : > { %v4688_v27 = vadd.f32 %v4687_v26, %v4686_v24  ;;  %v4751_v28 = vpop.f32.mrb[25].mxu1  ;;  %v4689_v30 = vpop.f32.mrb[26].mxu0 }
 0x1ed   : > { %v4752_v32 = vadd.f32 %v4751_v28, %v4750_v25  ;;  %v4753_v33 = vpop.f32.mrb[26].mxu1  ;;  %v4690_v34 = vpop.f32.mrb[27].mxu0 }
 0x1ee   : > { %v4691_v35 = vadd.f32 %v4690_v34, %v4689_v30  ;;  %v4754_v36 = vpop.f32.mrb[27].mxu1 }
 0x1ef   : > { %v6465_v37 = vadd.f32 %v4752_v32, %v4688_v27  ;;  %v4755_v38 = vadd.f32 %v4754_v36, %v4753_v33 }
 0x1f1   : > { %v6467_v39 = vadd.f32 %v4755_v38, %v4691_v35 }
 0x1f2   : > { %v4692_v40 = vpop.f32.mrb[28].mxu0 }
 0x1f3   : > { %v4756_v41 = vpop.f32.mrb[28].mxu1  ;;  %v4693_v42 = vpop.f32.mrb[29].mxu0 }
 0x1f4   : > { %v4694_v43 = vadd.f32 %v4693_v42, %v4692_v40  ;;  %v4757_v44 = vpop.f32.mrb[29].mxu1  ;;  %v4695_v45 = vpop.f32.mrb[30].mxu0 }
 0x1f5   : > { %v4758_v46 = vadd.f32 %v4757_v44, %v4756_v41  ;;  %v4759_v47 = vpop.f32.mrb[30].mxu1  ;;  %v4696_v48 = vpop.f32.mrb[31].mxu0 }
 0x1f6   : > { %v4697_v50 = vadd.f32 %v4696_v48, %v4695_v45  ;;  %v4760_v52 = vpop.f32.mrb[31].mxu1 }
 0x1f7   : > { %v6469_v54 = vadd.f32 %v4758_v46, %v4694_v43  ;;  %v4761_v56 = vadd.f32 %v4760_v52, %v4759_v47 }
 0x1f9   : > { %v6471_v57 = vadd.f32 %v4761_v56, %v4697_v50 }
 0x1fa   : > { %v4778_v58 = vpop.f32.mrb[32].mxu0 }
 0x1fb   : > { %v4842_v59 = vpop.f32.mrb[32].mxu1  ;;  %v4779_v60 = vpop.f32.mrb[33].mxu0 }
 0x1fc   : > { %v4780_v61 = vadd.f32 %v4779_v60, %v4778_v58  ;;  %v4843_v62 = vpop.f32.mrb[33].mxu1  ;;  %v4781_v63 = vpop.f32.mrb[34].mxu0 }
 0x1fd   : > { %v4844_v0 = vadd.f32 %v4843_v62, %v4842_v59  ;;  %v4845_v1 = vpop.f32.mrb[34].mxu1  ;;  %v4782_v2 = vpop.f32.mrb[35].mxu0 }
 0x1fe   : > { %v3303_v3 = vadd.f32 %v4780_v61, %v6405_v49  ;;  %v4783_v4 = vadd.f32 %v4782_v2, %v4781_v63  ;;  %v4846_v6 = vpop.f32.mrb[35].mxu1 }
 0x1ff   : > { %v4847_v10 = vadd.f32 %v4846_v6, %v4845_v1 }
 0x200   : > { %v6474_v11 = vadd.f32 %v4844_v0, %v3303_v3  ;;  %v3306_v12 = vadd.f32 %v4783_v4, %v6407_v51 }
 0x202   : > { %v6477_v13 = vadd.f32 %v4847_v10, %v3306_v12  ;;  %v4784_v14 = vpop.f32.mrb[36].mxu0 }
 0x203   : > { %v4848_v15 = vpop.f32.mrb[36].mxu1  ;;  %v4785_v16 = vpop.f32.mrb[37].mxu0 }
 0x204   : > { %v4786_v17 = vadd.f32 %v4785_v16, %v4784_v14  ;;  %v4849_v18 = vpop.f32.mrb[37].mxu1  ;;  %v4787_v19 = vpop.f32.mrb[38].mxu0 }
 0x205   : > { %v4850_v20 = vadd.f32 %v4849_v18, %v4848_v15  ;;  %v4851_v22 = vpop.f32.mrb[38].mxu1  ;;  %v4788_v24 = vpop.f32.mrb[39].mxu0 }
 0x206   : > { %v3311_v49 = vadd.f32 %v4786_v17, %v6421_v7  ;;  %v4789_v25 = vadd.f32 %v4788_v24, %v4787_v19  ;;  %v4852_v26 = vpop.f32.mrb[39].mxu1 }
 0x207   : > { %v4853_v27 = vadd.f32 %v4852_v26, %v4851_v22 }
 0x208   : > { %v6480_v28 = vadd.f32 %v4850_v20, %v3311_v49  ;;  %v3314_v51 = vadd.f32 %v4789_v25, %v6423_v9 }
 0x20a   : > { %v6483_v30 = vadd.f32 %v4853_v27, %v3314_v51  ;;  %v4790_v32 = vpop.f32.mrb[40].mxu0 }
 0x20b   : > { %v4854_v33 = vpop.f32.mrb[40].mxu1  ;;  %v4791_v34 = vpop.f32.mrb[41].mxu0 }
 0x20c   : > { %v4792_v35 = vadd.f32 %v4791_v34, %v4790_v32  ;;  %v4855_v36 = vpop.f32.mrb[41].mxu1  ;;  %v4793_v38 = vpop.f32.mrb[42].mxu0 }
 0x20d   : > { %v4856_v40 = vadd.f32 %v4855_v36, %v4854_v33  ;;  %v4857_v41 = vpop.f32.mrb[42].mxu1  ;;  %v4794_v42 = vpop.f32.mrb[43].mxu0 }
 0x20e   : > { %v3319_v7 = vadd.f32 %v4792_v35, %v6437_v29  ;;  %v4795_v43 = vadd.f32 %v4794_v42, %v4793_v38  ;;  %v4858_v44 = vpop.f32.mrb[43].mxu1 }
 0x20f   : > { %v4859_v45 = vadd.f32 %v4858_v44, %v4857_v41 }
 0x210   : > { %v6486_v46 = vadd.f32 %v4856_v40, %v3319_v7  ;;  %v3322_v9 = vadd.f32 %v4795_v43, %v6439_v31 }
 0x212   : > { %v6489_v47 = vadd.f32 %v4859_v45, %v3322_v9  ;;  %v4796_v48 = vpop.f32.mrb[44].mxu0 }
 0x213   : > { %v4860_v50 = vpop.f32.mrb[44].mxu1  ;;  %v4797_v52 = vpop.f32.mrb[45].mxu0 }
 0x214   : > { %v4798_v56 = vadd.f32 %v4797_v52, %v4796_v48  ;;  %v4861_v58 = vpop.f32.mrb[45].mxu1  ;;  %v4799_v59 = vpop.f32.mrb[46].mxu0 }
 0x215   : > { %v4862_v60 = vadd.f32 %v4861_v58, %v4860_v50  ;;  %v4863_v61 = vpop.f32.mrb[46].mxu1  ;;  %v4800_v62 = vpop.f32.mrb[47].mxu0 }
 0x216   : > { %v3327_v29 = vadd.f32 %v4798_v56, %v6453_v53  ;;  %v4801_v63 = vadd.f32 %v4800_v62, %v4799_v59  ;;  %v4864_v0 = vpop.f32.mrb[47].mxu1 }
 0x217   : > { %v4865_v1 = vadd.f32 %v4864_v0, %v4863_v61 }
 0x218   : > { %v6492_v2 = vadd.f32 %v4862_v60, %v3327_v29  ;;  %v3330_v31 = vadd.f32 %v4801_v63, %v6455_v55 }
 0x21a   : > { %v6495_v3 = vadd.f32 %v4865_v1, %v3330_v31  ;;  %v4802_v4 = vpop.f32.mrb[48].mxu0 }
 0x21b   : > { %v4866_v6 = vpop.f32.mrb[48].mxu1  ;;  %v4803_v10 = vpop.f32.mrb[49].mxu0 }
 0x21c   : > { %v4804_v12 = vadd.f32 %v4803_v10, %v4802_v4  ;;  %v4867_v14 = vpop.f32.mrb[49].mxu1  ;;  %v4805_v15 = vpop.f32.mrb[50].mxu0 }
 0x21d   : > { %v4868_v16 = vadd.f32 %v4867_v14, %v4866_v6  ;;  %v4869_v17 = vpop.f32.mrb[50].mxu1  ;;  %v4806_v18 = vpop.f32.mrb[51].mxu0 }
 0x21e   : > { %v3335_v53 = vadd.f32 %v4804_v12, %v6457_v5  ;;  %v4807_v19 = vadd.f32 %v4806_v18, %v4805_v15  ;;  %v4870_v20 = vpop.f32.mrb[51].mxu1 }
 0x21f   : > { %v4871_v22 = vadd.f32 %v4870_v20, %v4869_v17 }
 0x220   : > { %v6498_v24 = vadd.f32 %v4868_v16, %v3335_v53  ;;  %v3338_v55 = vadd.f32 %v4807_v19, %v6459_v8 }
 0x222   : > { %v6501_v49 = vadd.f32 %v4871_v22, %v3338_v55  ;;  %v4808_v25 = vpop.f32.mrb[52].mxu0 }
 0x223   : > { %v4872_v26 = vpop.f32.mrb[52].mxu1  ;;  %v4809_v27 = vpop.f32.mrb[53].mxu0 }
 0x224   : > { %v4810_v51 = vadd.f32 %v4809_v27, %v4808_v25  ;;  %v4873_v32 = vpop.f32.mrb[53].mxu1  ;;  %v4811_v33 = vpop.f32.mrb[54].mxu0 }
 0x225   : > { %v4874_v34 = vadd.f32 %v4873_v32, %v4872_v26  ;;  %v4875_v35 = vpop.f32.mrb[54].mxu1  ;;  %v4812_v36 = vpop.f32.mrb[55].mxu0 }
 0x226   : > { %v3343_v5 = vadd.f32 %v4810_v51, %v6461_v21  ;;  %v4813_v38 = vadd.f32 %v4812_v36, %v4811_v33  ;;  %v4876_v40 = vpop.f32.mrb[55].mxu1 }
 0x227   : > { %v4877_v41 = vadd.f32 %v4876_v40, %v4875_v35 }
 0x228   : > { %v6504_v42 = vadd.f32 %v4874_v34, %v3343_v5  ;;  %v3346_v8 = vadd.f32 %v4813_v38, %v6463_v23 }
 0x22a   : > { %v6507_v7 = vadd.f32 %v4877_v41, %v3346_v8  ;;  %v4814_v43 = vpop.f32.mrb[56].mxu0 }
 0x22b   : > { %v4878_v44 = vpop.f32.mrb[56].mxu1  ;;  %v4815_v45 = vpop.f32.mrb[57].mxu0 }
 0x22c   : > { %v4816_v9 = vadd.f32 %v4815_v45, %v4814_v43  ;;  %v4879_v48 = vpop.f32.mrb[57].mxu1  ;;  %v4817_v50 = vpop.f32.mrb[58].mxu0 }
 0x22d   : > { %v4880_v52 = vadd.f32 %v4879_v48, %v4878_v44  ;;  %v4881_v56 = vpop.f32.mrb[58].mxu1  ;;  %v4818_v58 = vpop.f32.mrb[59].mxu0 }
 0x22e   : > { %v3351_v21 = vadd.f32 %v4816_v9, %v6465_v37  ;;  %v4819_v59 = vadd.f32 %v4818_v58, %v4817_v50  ;;  %v4882_v60 = vpop.f32.mrb[59].mxu1 }
 0x22f   : > { %v4883_v61 = vadd.f32 %v4882_v60, %v4881_v56 }
 0x230   : > { %v6510_v62 = vadd.f32 %v4880_v52, %v3351_v21  ;;  %v3354_v23 = vadd.f32 %v4819_v59, %v6467_v39 }
 0x232   : > { %v6513_v29 = vadd.f32 %v4883_v61, %v3354_v23  ;;  %v4820_v63 = vpop.f32.mrb[60].mxu0 }
 0x233   : > { %v4884_v0 = vpop.f32.mrb[60].mxu1  ;;  %v4821_v1 = vpop.f32.mrb[61].mxu0 }
 0x234   : > { %v4822_v31 = vadd.f32 %v4821_v1, %v4820_v63  ;;  %v4885_v4 = vpop.f32.mrb[61].mxu1  ;;  %v4823_v6 = vpop.f32.mrb[62].mxu0 }
 0x235   : > { %v4886_v10 = vadd.f32 %v4885_v4, %v4884_v0  ;;  %v4887_v12 = vpop.f32.mrb[62].mxu1  ;;  %v4824_v14 = vpop.f32.mrb[63].mxu0 }
 0x236   : > { %v3359_v37 = vadd.f32 %v4822_v31, %v6469_v54  ;;  %v4825_v15 = vadd.f32 %v4824_v14, %v4823_v6  ;;  %v4888_v16 = vpop.f32.mrb[63].mxu1 }
 0x237   : > { %v4889_v17 = vadd.f32 %v4888_v16, %v4887_v12 }
 0x238   : > { %v6516_v18 = vadd.f32 %v4886_v10, %v3359_v37  ;;  %v3362_v39 = vadd.f32 %v4825_v15, %v6471_v57 }
 0x23a   : > { %v6519_v53 = vadd.f32 %v4889_v17, %v3362_v39  ;;  %v4906_v19 = vpop.f32.mrb[64].mxu0 }
 0x23b   : > { %v4970_v20 = vpop.f32.mrb[64].mxu1  ;;  %v4907_v22 = vpop.f32.mrb[65].mxu0 }
 0x23c   : > { %v4908_v55 = vadd.f32 %v4907_v22, %v4906_v19  ;;  %v4971_v25 = vpop.f32.mrb[65].mxu1  ;;  %v4909_v26 = vpop.f32.mrb[66].mxu0 }
 0x23d   : > { %v4972_v27 = vadd.f32 %v4971_v25, %v4970_v20  ;;  %v4973_v51 = vpop.f32.mrb[66].mxu1  ;;  %v4910_v32 = vpop.f32.mrb[67].mxu0 }
 0x23e   : > { %v3497_v54 = vadd.f32 %v4908_v55, %v6474_v11  ;;  %v4911_v33 = vadd.f32 %v4910_v32, %v4909_v26  ;;  %v4974_v34 = vpop.f32.mrb[67].mxu1 }
 0x23f   : > { %v4975_v35 = vadd.f32 %v4974_v34, %v4973_v51 }
 0x240   : > { %v6522_v36 = vadd.f32 %v4972_v27, %v3497_v54  ;;  %v3500_v57 = vadd.f32 %v4911_v33, %v6477_v13 }
 0x242   : > { %v6525_v5 = vadd.f32 %v4975_v35, %v3500_v57  ;;  %v4912_v38 = vpop.f32.mrb[68].mxu0 }
 0x243   : > { %v4976_v40 = vpop.f32.mrb[68].mxu1  ;;  %v4913_v41 = vpop.f32.mrb[69].mxu0 }
 0x244   : > { %v4914_v8 = vadd.f32 %v4913_v41, %v4912_v38  ;;  %v4977_v43 = vpop.f32.mrb[69].mxu1  ;;  %v4915_v44 = vpop.f32.mrb[70].mxu0 }
 0x245   : > { %v4978_v45 = vadd.f32 %v4977_v43, %v4976_v40  ;;  %v4979_v9 = vpop.f32.mrb[70].mxu1  ;;  %v4916_v48 = vpop.f32.mrb[71].mxu0 }
 0x246   : > { %v3505_v11 = vadd.f32 %v4914_v8, %v6480_v28  ;;  %v4917_v50 = vadd.f32 %v4916_v48, %v4915_v44  ;;  %v4980_v52 = vpop.f32.mrb[71].mxu1 }
 0x247   : > { %v4981_v56 = vadd.f32 %v4980_v52, %v4979_v9 }
 0x248   : > { %v6528_v58 = vadd.f32 %v4978_v45, %v3505_v11  ;;  %v3508_v13 = vadd.f32 %v4917_v50, %v6483_v30 }
 0x24a   : > { %v6531_v21 = vadd.f32 %v4981_v56, %v3508_v13  ;;  %v4918_v59 = vpop.f32.mrb[72].mxu0 }
 0x24b   : > { %v4982_v60 = vpop.f32.mrb[72].mxu1  ;;  %v4919_v61 = vpop.f32.mrb[73].mxu0 }
 0x24c   : > { %v4920_v23 = vadd.f32 %v4919_v61, %v4918_v59  ;;  %v4983_v63 = vpop.f32.mrb[73].mxu1  ;;  %v4921_v0 = vpop.f32.mrb[74].mxu0 }
 0x24d   : > { %v4984_v1 = vadd.f32 %v4983_v63, %v4982_v60  ;;  %v4985_v31 = vpop.f32.mrb[74].mxu1  ;;  %v4922_v4 = vpop.f32.mrb[75].mxu0 }
 0x24e   : > { %v3513_v28 = vadd.f32 %v4920_v23, %v6486_v46  ;;  %v4923_v6 = vadd.f32 %v4922_v4, %v4921_v0  ;;  %v4986_v10 = vpop.f32.mrb[75].mxu1 }
 0x24f   : > { %v4987_v12 = vadd.f32 %v4986_v10, %v4985_v31 }
 0x250   : > { %v6534_v14 = vadd.f32 %v4984_v1, %v3513_v28  ;;  %v3516_v30 = vadd.f32 %v4923_v6, %v6489_v47 }
 0x252   : > { %v6537_v37 = vadd.f32 %v4987_v12, %v3516_v30  ;;  %v4924_v15 = vpop.f32.mrb[76].mxu0 }
 0x253   : > { %v4988_v16 = vpop.f32.mrb[76].mxu1  ;;  %v4925_v17 = vpop.f32.mrb[77].mxu0 }
 0x254   : > { %v4926_v39 = vadd.f32 %v4925_v17, %v4924_v15  ;;  %v4989_v19 = vpop.f32.mrb[77].mxu1  ;;  %v4927_v20 = vpop.f32.mrb[78].mxu0 }
 0x255   : > { %v4990_v22 = vadd.f32 %v4989_v19, %v4988_v16  ;;  %v4991_v55 = vpop.f32.mrb[78].mxu1  ;;  %v4928_v25 = vpop.f32.mrb[79].mxu0 }
 0x256   : > { %v3521_v46 = vadd.f32 %v4926_v39, %v6492_v2  ;;  %v4929_v26 = vadd.f32 %v4928_v25, %v4927_v20  ;;  %v4992_v27 = vpop.f32.mrb[79].mxu1 }
 0x257   : > { %v4993_v51 = vadd.f32 %v4992_v27, %v4991_v55 }
 0x258   : > { %v6540_v32 = vadd.f32 %v4990_v22, %v3521_v46  ;;  %v3524_v47 = vadd.f32 %v4929_v26, %v6495_v3 }
 0x25a   : > { %v6543_v54 = vadd.f32 %v4993_v51, %v3524_v47  ;;  %v4930_v33 = vpop.f32.mrb[80].mxu0 }
 0x25b   : > { %v4994_v34 = vpop.f32.mrb[80].mxu1  ;;  %v4931_v35 = vpop.f32.mrb[81].mxu0 }
 0x25c   : > { %v4932_v57 = vadd.f32 %v4931_v35, %v4930_v33  ;;  %v4995_v38 = vpop.f32.mrb[81].mxu1  ;;  %v4933_v40 = vpop.f32.mrb[82].mxu0 }
 0x25d   : > { %v4996_v41 = vadd.f32 %v4995_v38, %v4994_v34  ;;  %v4997_v8 = vpop.f32.mrb[82].mxu1  ;;  %v4934_v43 = vpop.f32.mrb[83].mxu0 }
 0x25e   : > { %v3529_v2 = vadd.f32 %v4932_v57, %v6498_v24  ;;  %v4935_v44 = vadd.f32 %v4934_v43, %v4933_v40  ;;  %v4998_v45 = vpop.f32.mrb[83].mxu1 }
 0x25f   : > { %v4999_v9 = vadd.f32 %v4998_v45, %v4997_v8 }
 0x260   : > { %v6546_v48 = vadd.f32 %v4996_v41, %v3529_v2  ;;  %v3532_v3 = vadd.f32 %v4935_v44, %v6501_v49 }
 0x262   : > { %v6549_v11 = vadd.f32 %v4999_v9, %v3532_v3  ;;  %v4936_v50 = vpop.f32.mrb[84].mxu0 }
 0x263   : > { %v5000_v52 = vpop.f32.mrb[84].mxu1  ;;  %v4937_v56 = vpop.f32.mrb[85].mxu0 }
 0x264   : > { %v4938_v13 = vadd.f32 %v4937_v56, %v4936_v50  ;;  %v5001_v59 = vpop.f32.mrb[85].mxu1  ;;  %v4939_v60 = vpop.f32.mrb[86].mxu0 }
 0x265   : > { %v5002_v61 = vadd.f32 %v5001_v59, %v5000_v52  ;;  %v5003_v23 = vpop.f32.mrb[86].mxu1  ;;  %v4940_v63 = vpop.f32.mrb[87].mxu0 }
 0x266   : > { %v3537_v24 = vadd.f32 %v4938_v13, %v6504_v42  ;;  %v4941_v0 = vadd.f32 %v4940_v63, %v4939_v60  ;;  %v5004_v1 = vpop.f32.mrb[87].mxu1 }
 0x267   : > { %v5005_v31 = vadd.f32 %v5004_v1, %v5003_v23 }
 0x268   : > { %v6552_v4 = vadd.f32 %v5002_v61, %v3537_v24  ;;  %v3540_v49 = vadd.f32 %v4941_v0, %v6507_v7 }
 0x26a   : > { %v6555_v28 = vadd.f32 %v5005_v31, %v3540_v49  ;;  %v4942_v6 = vpop.f32.mrb[88].mxu0 }
 0x26b   : > { %v5006_v10 = vpop.f32.mrb[88].mxu1  ;;  %v4943_v12 = vpop.f32.mrb[89].mxu0 }
 0x26c   : > { %v4944_v30 = vadd.f32 %v4943_v12, %v4942_v6  ;;  %v5007_v15 = vpop.f32.mrb[89].mxu1  ;;  %v4945_v16 = vpop.f32.mrb[90].mxu0 }
 0x26d   : > { %v5008_v17 = vadd.f32 %v5007_v15, %v5006_v10  ;;  %v5009_v39 = vpop.f32.mrb[90].mxu1  ;;  %v4946_v19 = vpop.f32.mrb[91].mxu0 }
 0x26e   : > { %v3545_v42 = vadd.f32 %v4944_v30, %v6510_v62  ;;  %v4947_v20 = vadd.f32 %v4946_v19, %v4945_v16  ;;  %v5010_v22 = vpop.f32.mrb[91].mxu1 }
 0x26f   : > { %v5011_v55 = vadd.f32 %v5010_v22, %v5009_v39 }
 0x270   : > { %v6558_v25 = vadd.f32 %v5008_v17, %v3545_v42  ;;  %v3548_v7 = vadd.f32 %v4947_v20, %v6513_v29 }
 0x272   : > { %v6561_v46 = vadd.f32 %v5011_v55, %v3548_v7  ;;  %v4948_v26 = vpop.f32.mrb[92].mxu0 }
 0x273   : > { %v5012_v27 = vpop.f32.mrb[92].mxu1  ;;  %v4949_v51 = vpop.f32.mrb[93].mxu0 }
 0x274   : > { %v4950_v47 = vadd.f32 %v4949_v51, %v4948_v26  ;;  %v5013_v33 = vpop.f32.mrb[93].mxu1  ;;  %v4951_v34 = vpop.f32.mrb[94].mxu0 }
 0x275   : > { %v5014_v35 = vadd.f32 %v5013_v33, %v5012_v27  ;;  %v5015_v57 = vpop.f32.mrb[94].mxu1  ;;  %v4952_v38 = vpop.f32.mrb[95].mxu0 }
 0x276   : > { %v3553_v62 = vadd.f32 %v4950_v47, %v6516_v18  ;;  %v4953_v40 = vadd.f32 %v4952_v38, %v4951_v34  ;;  %v5016_v41 = vpop.f32.mrb[95].mxu1 }
 0x277   : > { %v5017_v8 = vadd.f32 %v5016_v41, %v5015_v57 }
 0x278   : > { %v6564_v43 = vadd.f32 %v5014_v35, %v3553_v62  ;;  %v3556_v29 = vadd.f32 %v4953_v40, %v6519_v53 }
 0x27a   : > { %v6567_v2 = vadd.f32 %v5017_v8, %v3556_v29  ;;  %v5034_v44 = vpop.f32.mrb[96].mxu0 }
 0x27b   : > { %v5098_v45 = vpop.f32.mrb[96].mxu1  ;;  %v5035_v9 = vpop.f32.mrb[97].mxu0 }
 0x27c   : > { %v5036_v3 = vadd.f32 %v5035_v9, %v5034_v44  ;;  %v5099_v50 = vpop.f32.mrb[97].mxu1  ;;  %v5037_v52 = vpop.f32.mrb[98].mxu0 }
 0x27d   : > { %v5100_v56 = vadd.f32 %v5099_v50, %v5098_v45  ;;  %v5101_v13 = vpop.f32.mrb[98].mxu1  ;;  %v5038_v59 = vpop.f32.mrb[99].mxu0 }
 0x27e   : > { %v3691_v18 = vadd.f32 %v5036_v3, %v6522_v36  ;;  %v5039_v60 = vadd.f32 %v5038_v59, %v5037_v52  ;;  %v5102_v61 = vpop.f32.mrb[99].mxu1 }
 0x27f   : > { %v5103_v23 = vadd.f32 %v5102_v61, %v5101_v13 }
 0x280   : > { %v6570_v63 = vadd.f32 %v5100_v56, %v3691_v18  ;;  %v3694_v53 = vadd.f32 %v5039_v60, %v6525_v5 }
 0x282   : > { %v6573_v24 = vadd.f32 %v5103_v23, %v3694_v53  ;;  %v5040_v0 = vpop.f32.mrb[100].mxu0 }
 0x283   : > { %v5104_v1 = vpop.f32.mrb[100].mxu1  ;;  %v5041_v31 = vpop.f32.mrb[101].mxu0 }
 0x284   : > { %v3850_v49 = vadd.f32 %v6573_v24, %v6570_v63  ;;  %v5042_v6 = vadd.f32 %v5041_v31, %v5040_v0  ;;  %v5105_v10 = vpop.f32.mrb[101].mxu1  ;;  %v5043_v12 = vpop.f32.mrb[102].mxu0 }
 0x285   : > { %v5106_v30 = vadd.f32 %v5105_v10, %v5104_v1  ;;  %v5107_v36 = vpop.f32.mrb[102].mxu1  ;;  %v5044_v15 = vpop.f32.mrb[103].mxu0 }
 0x286   : > { %v3699_v16 = vadd.f32 %v5042_v6, %v6528_v58  ;;  %v5045_v17 = vadd.f32 %v5044_v15, %v5043_v12  ;;  %v5108_v39 = vpop.f32.mrb[103].mxu1 }
 0x287   : > { %v5109_v19 = vadd.f32 %v5108_v39, %v5107_v36 }
 0x288   : > { %v6578_v5 = vadd.f32 %v5106_v30, %v3699_v16  ;;  %v3702_v42 = vadd.f32 %v5045_v17, %v6531_v21 }
 0x28a   : > { %v3851_v20 = vadd.f32 %v3850_v49, %v6578_v5  ;;  %v6582_v22 = vadd.f32 %v5109_v19, %v3702_v42  ;;  %v5046_v55 = vpop.f32.mrb[104].mxu0 }
 0x28b   : > { %v5110_v7 = vpop.f32.mrb[104].mxu1  ;;  %v5047_v26 = vpop.f32.mrb[105].mxu0 }
 0x28c   : > { %v3852_v27 = vadd.f32 %v3851_v20, %v6582_v22  ;;  %v5048_v51 = vadd.f32 %v5047_v26, %v5046_v55  ;;  %v5111_v47 = vpop.f32.mrb[105].mxu1  ;;  %v5049_v33 = vpop.f32.mrb[106].mxu0 }
 0x28d   : > { %v5112_v58 = vadd.f32 %v5111_v47, %v5110_v7  ;;  %v5113_v34 = vpop.f32.mrb[106].mxu1  ;;  %v5050_v35 = vpop.f32.mrb[107].mxu0 }
 0x28e   : > { %v3707_v57 = vadd.f32 %v5048_v51, %v6534_v14  ;;  %v5051_v38 = vadd.f32 %v5050_v35, %v5049_v33  ;;  %v5114_v62 = vpop.f32.mrb[107].mxu1 }
 0x28f   : > { %v5115_v21 = vadd.f32 %v5114_v62, %v5113_v34 }
 0x290   : > { %v6586_v40 = vadd.f32 %v5112_v58, %v3707_v57  ;;  %v3710_v41 = vadd.f32 %v5051_v38, %v6537_v37 }
 0x292   : > { %v3853_v8 = vadd.f32 %v3852_v27, %v6586_v40  ;;  %v6590_v29 = vadd.f32 %v5115_v21, %v3710_v41  ;;  %v5052_v44 = vpop.f32.mrb[108].mxu0 }
 0x293   : > { %v5116_v45 = vpop.f32.mrb[108].mxu1  ;;  %v5053_v9 = vpop.f32.mrb[109].mxu0 }
 0x294   : > { %v3854_v3 = vadd.f32 %v3853_v8, %v6590_v29  ;;  %v5054_v50 = vadd.f32 %v5053_v9, %v5052_v44  ;;  %v5117_v52 = vpop.f32.mrb[109].mxu1  ;;  %v5055_v56 = vpop.f32.mrb[110].mxu0 }
 0x295   : > { %v5118_v14 = vadd.f32 %v5117_v52, %v5116_v45  ;;  %v5119_v13 = vpop.f32.mrb[110].mxu1  ;;  %v5056_v59 = vpop.f32.mrb[111].mxu0 }
 0x296   : > { %v3715_v18 = vadd.f32 %v5054_v50, %v6540_v32  ;;  %v5057_v60 = vadd.f32 %v5056_v59, %v5055_v56  ;;  %v5120_v61 = vpop.f32.mrb[111].mxu1 }
 0x297   : > { %v5121_v37 = vadd.f32 %v5120_v61, %v5119_v13 }
 0x298   : > { %v6594_v23 = vadd.f32 %v5118_v14, %v3715_v18  ;;  %v3718_v53 = vadd.f32 %v5057_v60, %v6543_v54 }
 0x29a   : > { %v3855_v0 = vadd.f32 %v3854_v3, %v6594_v23  ;;  %v6598_v1 = vadd.f32 %v5121_v37, %v3718_v53  ;;  %v5058_v31 = vpop.f32.mrb[112].mxu0 }
 0x29b   : > { %v5122_v49 = vpop.f32.mrb[112].mxu1  ;;  %v5059_v6 = vpop.f32.mrb[113].mxu0 }
 0x29c   : > { %v3856_v10 = vadd.f32 %v3855_v0, %v6598_v1  ;;  %v5060_v12 = vadd.f32 %v5059_v6, %v5058_v31  ;;  %v5123_v30 = vpop.f32.mrb[113].mxu1  ;;  %v5061_v36 = vpop.f32.mrb[114].mxu0 }
 0x29d   : > { %v5124_v32 = vadd.f32 %v5123_v30, %v5122_v49  ;;  %v5125_v15 = vpop.f32.mrb[114].mxu1  ;;  %v5062_v16 = vpop.f32.mrb[115].mxu0 }
 0x29e   : > { %v3723_v17 = vadd.f32 %v5060_v12, %v6546_v48  ;;  %v5063_v39 = vadd.f32 %v5062_v16, %v5061_v36  ;;  %v5126_v19 = vpop.f32.mrb[115].mxu1 }
 0x29f   : > { %v5127_v54 = vadd.f32 %v5126_v19, %v5125_v15 }
 0x2a0   : > { %v6602_v42 = vadd.f32 %v5124_v32, %v3723_v17  ;;  %v3726_v20 = vadd.f32 %v5063_v39, %v6549_v11 }
 0x2a2   : > { %v3857_v55 = vadd.f32 %v3856_v10, %v6602_v42  ;;  %v6606_v7 = vadd.f32 %v5127_v54, %v3726_v20  ;;  %v5064_v26 = vpop.f32.mrb[116].mxu0 }
 0x2a3   : > { %v5128_v27 = vpop.f32.mrb[116].mxu1  ;;  %v5065_v51 = vpop.f32.mrb[117].mxu0 }
 0x2a4   : > { %v3858_v47 = vadd.f32 %v3857_v55, %v6606_v7  ;;  %v5066_v33 = vadd.f32 %v5065_v51, %v5064_v26  ;;  %v5129_v58 = vpop.f32.mrb[117].mxu1  ;;  %v5067_v34 = vpop.f32.mrb[118].mxu0 }
 0x2a5   : > { %v5130_v48 = vadd.f32 %v5129_v58, %v5128_v27  ;;  %v5131_v35 = vpop.f32.mrb[118].mxu1  ;;  %v5068_v57 = vpop.f32.mrb[119].mxu0 }
 0x2a6   : > { %v3731_v38 = vadd.f32 %v5066_v33, %v6552_v4  ;;  %v5069_v62 = vadd.f32 %v5068_v57, %v5067_v34  ;;  %v5132_v21 = vpop.f32.mrb[119].mxu1 }
 0x2a7   : > { %v5133_v11 = vadd.f32 %v5132_v21, %v5131_v35 }
 0x2a8   : > { %v3828_v41 = vadd.f32 %v5130_v48, %v3731_v38  ;;  %v3734_v8 = vadd.f32 %v5069_v62, %v6555_v28 }
 0x2aa   : > { %v3859_v44 = vadd.f32 %v3858_v47, %v3828_v41  ;;  %v3831_v45 = vadd.f32 %v5133_v11, %v3734_v8  ;;  %v5070_v9 = vpop.f32.mrb[120].mxu0 }
 0x2ab   : > { %v5134_v3 = vpop.f32.mrb[120].mxu1  ;;  %v5071_v50 = vpop.f32.mrb[121].mxu0 }
 0x2ac   : > { %v3860_v52 = vadd.f32 %v3859_v44, %v3831_v45  ;;  %v5072_v56 = vadd.f32 %v5071_v50, %v5070_v9  ;;  %v5135_v14 = vpop.f32.mrb[121].mxu1  ;;  %v5073_v13 = vpop.f32.mrb[122].mxu0 }
 0x2ad   : > { %v5136_v59 = vadd.f32 %v5135_v14, %v5134_v3  ;;  %v5137_v18 = vpop.f32.mrb[122].mxu1  ;;  %v5074_v60 = vpop.f32.mrb[123].mxu0 }
 0x2ae   : > { %v3739_v4 = vadd.f32 %v5072_v56, %v6558_v25  ;;  %v5075_v61 = vadd.f32 %v5074_v60, %v5073_v13  ;;  %v5138_v37 = vpop.f32.mrb[123].mxu1 }
 0x2af   : > { %v5139_v53 = vadd.f32 %v5138_v37, %v5137_v18 }
 0x2b0   : > { %v3836_v0 = vadd.f32 %v5136_v59, %v3739_v4  ;;  %v3742_v28 = vadd.f32 %v5075_v61, %v6561_v46 }
 0x2b2   : > { %v3861_v31 = vadd.f32 %v3860_v52, %v3836_v0  ;;  %v3839_v49 = vadd.f32 %v5139_v53, %v3742_v28  ;;  %v5076_v6 = vpop.f32.mrb[124].mxu0 }
 0x2b3   : > { %v5140_v10 = vpop.f32.mrb[124].mxu1  ;;  %v5077_v12 = vpop.f32.mrb[125].mxu0 }
 0x2b4   : > { %v3862_v30 = vadd.f32 %v3861_v31, %v3839_v49  ;;  %v5078_v36 = vadd.f32 %v5077_v12, %v5076_v6  ;;  %v5141_v32 = vpop.f32.mrb[125].mxu1  ;;  %v5079_v15 = vpop.f32.mrb[126].mxu0 }
 0x2b5   : > { %v5142_v16 = vadd.f32 %v5141_v32, %v5140_v10  ;;  %v5143_v17 = vpop.f32.mrb[126].mxu1  ;;  %v5080_v39 = vpop.f32.mrb[127].mxu0 }
 0x2b6   : > { %v3747_v25 = vadd.f32 %v5078_v36, %v6564_v43  ;;  %v5081_v19 = vadd.f32 %v5080_v39, %v5079_v15  ;;  %v5144_v54 = vpop.f32.mrb[127].mxu1 }
 0x2b7   : > { %v5145_v20 = vadd.f32 %v5144_v54, %v5143_v17 }
 0x2b8   : > { %v3844_v55 = vadd.f32 %v5142_v16, %v3747_v25  ;;  %v3750_v46 = vadd.f32 %v5081_v19, %v6567_v2 }
 0x2ba   : > { %v3863_v26 = vadd.f32 %v3862_v30, %v3844_v55  ;;  %v3847_v27 = vadd.f32 %v5145_v20, %v3750_v46 }
 0x2bc   : > { %v3864_v51 = vadd.f32 %v3863_v26, %v3847_v27 }
 0x2be   : > { %v3865_v47 = vrot.slane %v3864_v51, 4 }
 0x2c0   : > { %v3866_v33 = vadd.f32 %v3865_v47, %v3864_v51  ;;  %v3926_v47 = vld [vmem:[%s1277_s9] sm:$0x1] }
 0x2c2   : > { %v3867_v58 = vrot.slane %v3866_v33, 2 }
 0x2c4   : > { %v3868_v34 = vadd.f32 %v3867_v58, %v3866_v33 }
 0x2c6   : > { %v3869_v48 = vrot.slane %v3868_v34, 1 }
 0x2c8   : > { %v3870_v35 = vadd.f32 %v3869_v48, %v3868_v34 }
 0x2ca   : > { %v3871_v57 = vmul.f32 0.0078125, %v3870_v35 }
 0x2cc   : > { %v6616_v38 = vsub.f32 %v6570_v63, %v3871_v57  ;;  %v6619_v43 = vsub.f32 %v6573_v24, %v3871_v57  ;;  %v6622_v62 = vsub.f32 %v6578_v5, %v3871_v57  ;;  %v6625_v2 = vsub.f32 %v6582_v22, %v3871_v57 }
 0x2cd   : > { %v6628_v21 = vsub.f32 %v6586_v40, %v3871_v57  ;;  %v6631_v11 = vsub.f32 %v6590_v29, %v3871_v57  ;;  %v6634_v8 = vsub.f32 %v6594_v23, %v3871_v57  ;;  %v6637_v63 = vsub.f32 %v6598_v1, %v3871_v57 }
 0x2ce   : > { %v6640_v24 = vsub.f32 %v6602_v42, %v3871_v57  ;;  %v6643_v5 = vsub.f32 %v6606_v7, %v3871_v57  ;;  %v6645_v22 = vsub.f32 %v3828_v41, %v3871_v57  ;;  %v6647_v44 = vsub.f32 %v3831_v45, %v3871_v57 }
 0x2cf   : > { %v6649_v40 = vsub.f32 %v3836_v0, %v3871_v57  ;;  %v6651_v29 = vsub.f32 %v3839_v49, %v3871_v57  ;;  %v6653_v9 = vsub.f32 %v3844_v55, %v3871_v57  ;;  %v6655_v23 = vsub.f32 %v3847_v27, %v3871_v57 }
 0x2d0   : > { %v3888_v1 = vmul.f32 %v6616_v38, %v6616_v38  ;;  %v3889_v42 = vmul.f32 %v6619_v43, %v6619_v43  ;;  %v3890_v7 = vmul.f32 %v6622_v62, %v6622_v62  ;;  %v3891_v45 = vmul.f32 %v6625_v2, %v6625_v2 }
 0x2d1   : > { %v3892_v50 = vmul.f32 %v6628_v21, %v6628_v21  ;;  %v3893_v56 = vmul.f32 %v6631_v11, %v6631_v11  ;;  %v3894_v13 = vmul.f32 %v6634_v8, %v6634_v8  ;;  %v3895_v18 = vmul.f32 %v6637_v63, %v6637_v63 }
 0x2d2   : > { %v3904_v41 = vadd.f32 %v3889_v42, %v3888_v1  ;;  %v3896_v4 = vmul.f32 %v6640_v24, %v6640_v24  ;;  %v3897_v37 = vmul.f32 %v6643_v5, %v6643_v5  ;;  %v3898_v0 = vmul.f32 %v6645_v22, %v6645_v22 }
 0x2d3   : > { %v3899_v31 = vmul.f32 %v6647_v44, %v6647_v44  ;;  %v3900_v6 = vmul.f32 %v6649_v40, %v6649_v40  ;;  %v3901_v12 = vmul.f32 %v6651_v29, %v6651_v29  ;;  %v3902_v36 = vmul.f32 %v6653_v9, %v6653_v9 }
 0x2d4   : > { %v3905_v3 = vadd.f32 %v3904_v41, %v3890_v7  ;;  %v3903_v15 = vmul.f32 %v6655_v23, %v6655_v23  ;;  %v3931_v27 = vlaneseq }
 0x2d6   : > { %v3906_v52 = vadd.f32 %v3905_v3, %v3891_v45  ;;  %v3932_v51 = vshrl.u32 %v3931_v27, 7 }
 0x2d8   : > { %v3907_v14 = vadd.f32 %v3906_v52, %v3892_v50  ;;  %v3933_v33 = vsub.s32 0, %v3932_v51  ;;  %v4550_v50 = vld [vmem:[%s1280_s12] ss:$0 sm:$0xff] }
 0x2da   : > { %v3908_v59 = vadd.f32 %v3907_v14, %v3893_v56 }
 0x2dc   : > { %v3909_v60 = vadd.f32 %v3908_v59, %v3894_v13 }
 0x2de   : > { %v3910_v61 = vadd.f32 %v3909_v60, %v3895_v18 }
 0x2e0   : > { %v3911_v53 = vadd.f32 %v3910_v61, %v3896_v4 }
 0x2e2   : > { %v3912_v28 = vadd.f32 %v3911_v53, %v3897_v37 }
 0x2e4   : > { %v3913_v49 = vadd.f32 %v3912_v28, %v3898_v0 }
 0x2e6   : > { %v3914_v10 = vadd.f32 %v3913_v49, %v3899_v31 }
 0x2e8   : > { %v3915_v30 = vadd.f32 %v3914_v10, %v3900_v6 }
 0x2ea   : > { %v3916_v32 = vadd.f32 %v3915_v30, %v3901_v12 }
 0x2ec   : > { %v3917_v16 = vadd.f32 %v3916_v32, %v3902_v36 }
 0x2ee   : > { %v3918_v17 = vadd.f32 %v3917_v16, %v3903_v15 }
 0x2f0   : > { %v3919_v39 = vrot.slane %v3918_v17, 4 }
 0x2f2   : > { %v3920_v25 = vadd.f32 %v3919_v39, %v3918_v17 }
 0x2f4   : > { %v3921_v19 = vrot.slane %v3920_v25, 2 }
 0x2f6   : > { %v3922_v54 = vadd.f32 %v3921_v19, %v3920_v25 }
 0x2f8   : > { %v3923_v20 = vrot.slane %v3922_v54, 1 }
 0x2fa   : > { %v3924_v55 = vadd.f32 %v3923_v20, %v3922_v54 }
 0x2fc   : > { %v3925_v46 = vmul.f32 0.0078125, %v3924_v55 }
 0x2fe   : > { %v3927_v26 = vadd.f32 1e-05, %v3925_v46 }
 0x300   : > { %5298 = vrsqrt.f32 %v3927_v26 }
 0x30a   : > { %v5299_v58 = vpop.eup %5298 }
 0x30b   : > { %v3929_v34 = vmul.f32 %v5299_v58, %v3926_v47 }
 0x30d   : > { %v3934_v48 = vrot.slane %v3929_v34, %v3933_v33 }
 0x30f   : > { %v3936_v35 = vmul.f32 %v3934_v48, %v6616_v38  ;;  %v3937_v57 = vmul.f32 %v3934_v48, %v6619_v43  ;;  %v3938_v1 = vmul.f32 %v3934_v48, %v6622_v62  ;;  %v3939_v42 = vmul.f32 %v3934_v48, %v6625_v2 }
 0x310   : > { %v3940_v7 = vmul.f32 %v3934_v48, %v6628_v21  ;;  %v3941_v41 = vmul.f32 %v3934_v48, %v6631_v11  ;;  %v3942_v45 = vmul.f32 %v3934_v48, %v6634_v8  ;;  %v3943_v3 = vmul.f32 %v3934_v48, %v6637_v63 }
 0x311   : > { %v3944_v52 = vmul.f32 %v3934_v48, %v6640_v24  ;;  %v3945_v56 = vmul.f32 %v3934_v48, %v6643_v5  ;;  %v3946_v38 = vmul.f32 %v3934_v48, %v6645_v22  ;;  %v3947_v43 = vmul.f32 %v3934_v48, %v6647_v44 }
 0x312   : > { %v3948_v62 = vmul.f32 %v3934_v48, %v6649_v40  ;;  %v3949_v2 = vmul.f32 %v3934_v48, %v6651_v29  ;;  %v3950_v21 = vmul.f32 %v3934_v48, %v6653_v9  ;;  %v3951_v11 = vmul.f32 %v3934_v48, %v6655_v23 }
 0x313   : > { %v3959_v8 = vadd.f32 %v4550_v50, %v3936_v35  ;;  %v3960_v14 = vadd.f32 %v4550_v50, %v3937_v57  ;;  %v3961_v63 = vadd.f32 %v4550_v50, %v3938_v1  ;;  %v3962_v13 = vadd.f32 %v4550_v50, %v3939_v42 }
 0x314   : > { %v3963_v59 = vadd.f32 %v4550_v50, %v3940_v7  ;;  %v3964_v24 = vadd.f32 %v4550_v50, %v3941_v41  ;;  %v3965_v18 = vadd.f32 %v4550_v50, %v3942_v45  ;;  %v3966_v5 = vadd.f32 %v4550_v50, %v3943_v3 }
 0x315   : > { %v3967_v60 = vadd.f32 %v4550_v50, %v3944_v52  ;;  %v3968_v22 = vadd.f32 %v4550_v50, %v3945_v56  ;;  %v3969_v4 = vadd.f32 %v4550_v50, %v3946_v38  ;;  %v3970_v44 = vadd.f32 %v4550_v50, %v3947_v43 }
 0x316   : > { %v3971_v61 = vadd.f32 %v4550_v50, %v3948_v62  ;;  %v3972_v40 = vadd.f32 %v4550_v50, %v3949_v2  ;;  %v3973_v29 = vadd.f32 %v4550_v50, %v3950_v21  ;;  %v3974_v37 = vadd.f32 %v4550_v50, %v3951_v11 }
 0x317   : > { %vm3975_vm0 = vcmp.ge.f32.partialorder %v3959_v8, 0.0  ;;  %vm3976_vm1 = vcmp.ge.f32.partialorder %v3960_v14, 0.0  ;;  %vm3977_vm2 = vcmp.ge.f32.partialorder %v3961_v63, 0.0  ;;  %vm3978_vm3 = vcmp.ge.f32.partialorder %v3962_v13, 0.0 }
 0x318   : > { %vm3979_vm4 = vcmp.ge.f32.partialorder %v3963_v59, 0.0  ;;  %vm3980_vm5 = vcmp.ge.f32.partialorder %v3964_v24, 0.0  ;;  %vm3981_vm6 = vcmp.ge.f32.partialorder %v3965_v18, 0.0  ;;  %vm3982_vm7 = vcmp.ge.f32.partialorder %v3966_v5, 0.0 }
 0x319   : > { %vm3983_vm8 = vcmp.ge.f32.partialorder %v3967_v60, 0.0  ;;  %vm3984_vm9 = vcmp.ge.f32.partialorder %v3968_v22, 0.0  ;;  %vm3985_vm10 = vcmp.ge.f32.partialorder %v3969_v4, 0.0  ;;  %vm3986_vm11 = vcmp.ge.f32.partialorder %v3970_v44, 0.0 }
 0x31a   : > { %vm3987_vm12 = vcmp.ge.f32.partialorder %v3971_v61, 0.0  ;;  %vm3988_vm13 = vcmp.ge.f32.partialorder %v3972_v40, 0.0  ;;  %vm3989_vm14 = vcmp.ge.f32.partialorder %v3973_v29, 0.0  ;;  %vm3990_vm15 = vcmp.ge.f32.partialorder %v3974_v37, 0.0 }
 0x31b   : > { %v3991_v9 = vmul.f32 0.2, %v3959_v8  ;;  %v3992_v23 = vmul.f32 0.2, %v3960_v14  ;;  %v3993_v53 = vmul.f32 0.2, %v3961_v63 }
 0x31c   : > { %v3994_v0 = vmul.f32 0.2, %v3962_v13  ;;  %v3995_v28 = vmul.f32 0.2, %v3963_v59  ;;  %v3996_v31 = vmul.f32 0.2, %v3964_v24 }
 0x31d   : > { %v3997_v49 = vmul.f32 0.2, %v3965_v18  ;;  %v3998_v6 = vmul.f32 0.2, %v3966_v5  ;;  %v3999_v10 = vmul.f32 0.2, %v3967_v60  ;;  %v4007_v12 = vsel %vm3975_vm0, %v3959_v8, %v3991_v9 }
 0x31e   : > { %v4000_v30 = vmul.f32 0.2, %v3968_v22  ;;  %v4001_v36 = vmul.f32 0.2, %v3969_v4  ;;  %v4002_v32 = vmul.f32 0.2, %v3970_v44  ;;  %v4008_v15 = vsel %vm3976_vm1, %v3960_v14, %v3992_v23 }
 0x31f   : > { %v4003_v16 = vmul.f32 0.2, %v3971_v61  ;;  %v4004_v17 = vmul.f32 0.2, %v3972_v40  ;;  %v4005_v39 = vmul.f32 0.2, %v3973_v29  ;;  %v4009_v25 = vsel %vm3977_vm2, %v3961_v63, %v3993_v53 }
 0x320   : > { %v4006_v19 = vmul.f32 0.2, %v3974_v37  ;;  %v4010_v54 = vsel %vm3978_vm3, %v3962_v13, %v3994_v0  ;;  %v4011_v20 = vsel %vm3979_vm4, %v3963_v59, %v3995_v28  ;;  %v4012_v55 = vsel %vm3980_vm5, %v3964_v24, %v3996_v31 }
 0x321   : > { %v4013_v46 = vsel %vm3981_vm6, %v3965_v18, %v3997_v49  ;;  %v4014_v26 = vsel %vm3982_vm7, %v3966_v5, %v3998_v6  ;;  %v4015_v27 = vsel %vm3983_vm8, %v3967_v60, %v3999_v10  ;;  %v4016_v51 = vsel %vm3984_vm9, %v3968_v22, %v4000_v30 }
 0x322   : > { %v4017_v47 = vsel %vm3985_vm10, %v3969_v4, %v4001_v36  ;;  %v4018_v33 = vsel %vm3986_vm11, %v3970_v44, %v4002_v32  ;;  %v4019_v58 = vsel %vm3987_vm12, %v3971_v61, %v4003_v16  ;;  %v4020_v34 = vsel %vm3988_vm13, %v3972_v40, %v4004_v17  ;;  %4109 = sbr.rel (!%p5380_p5) target bundleno = 823 (0x337), region = 81 }
 0x323   : > { %v4021_v48 = vsel %vm3989_vm14, %v3973_v29, %v4005_v39  ;;  %v4022_v35 = vsel %vm3990_vm15, %v3974_v37, %v4006_v19  ;;  %v4590_v57 = vpack.c.bf16 %v4008_v15, %v4007_v12  ;;  %v4595_v1 = vpack.c.bf16 %v4010_v54, %v4009_v25 }
 0x324   : > { %v4600_v42 = vpack.c.bf16 %v4012_v55, %v4011_v20  ;;  %v4605_v7 = vpack.c.bf16 %v4014_v26, %v4013_v46  ;;  %v4610_v41 = vpack.c.bf16 %v4016_v51, %v4015_v27  ;;  %v4615_v45 = vpack.c.bf16 %v4018_v33, %v4017_v47 }
 0x325   : > { %4591 = vst [vmem:[%s6734_s15] sm:$0xff] %v4590_v57   ;;  %4627 = vst [vmem:[%s6734_s15 + $0x8] sm:$0xff] %v4595_v1   ;;  %v4620_v3 = vpack.c.bf16 %v4020_v34, %v4019_v58  ;;  %v4625_v50 = vpack.c.bf16 %v4022_v35, %v4021_v48 }
 0x326   : > { %4628 = vst [vmem:[%s6734_s15 + $0x10] sm:$0xff] %v4600_v42   ;;  %4629 = vst [vmem:[%s6734_s15 + $0x18] sm:$0xff] %v4605_v7  }
 0x327   : > { %4630 = vst [vmem:[%s6734_s15 + $0x20] sm:$0xff] %v4610_v41   ;;  %4631 = vst [vmem:[%s6734_s15 + $0x28] sm:$0xff] %v4615_v45  }
 0x328   : > { %4632 = vst [vmem:[%s6734_s15 + $0x30] sm:$0xff] %v4620_v3   ;;  %4633 = vst [vmem:[%s6734_s15 + $0x38] sm:$0xff] %v4625_v50  }
 0x32c   : > { %v4127_v52 = vld [vmem:[%s6734_s15] sm:$0xf]  ;;  %v4129_v56 = vld [vmem:[%s6734_s15 + $0x4] sm:$0xf]  ;;  %v4131_v38 = vld [vmem:[%s6734_s15 + $0x8] sm:$0xf] }
 0x32d   : > { %v4133_v43 = vld [vmem:[%s6734_s15 + $0xc] sm:$0xf]  ;;  %v4135_v62 = vld [vmem:[%s6734_s15 + $0x10] sm:$0xf]  ;;  %4128 = vst [vmem:[%s4111_s21] sm:$0xf] %v4127_v52 }
 0x32e   : > { %4130 = vst [vmem:[%s4111_s21 + $0x8] sm:$0xf] %v4129_v56  ;;  %4132 = vst [vmem:[%s4111_s21 + $0x10] sm:$0xf] %v4131_v38  ;;  %v4137_v2 = vld [vmem:[%s6734_s15 + $0x14] sm:$0xf] }
 0x32f   : > { %4134 = vst [vmem:[%s4111_s21 + $0x18] sm:$0xf] %v4133_v43  ;;  %4136 = vst [vmem:[%s4111_s21 + $0x20] sm:$0xf] %v4135_v62  ;;  %v4139_v21 = vld [vmem:[%s6734_s15 + $0x18] sm:$0xf] }
 0x330   : > { %v4141_v11 = vld [vmem:[%s6734_s15 + $0x1c] sm:$0xf]  ;;  %4138 = vst [vmem:[%s4111_s21 + $0x28] sm:$0xf] %v4137_v2  ;;  %4140 = vst [vmem:[%s4111_s21 + $0x30] sm:$0xf] %v4139_v21 }
 0x331   : > { %4142 = vst [vmem:[%s4111_s21 + $0x38] sm:$0xf] %v4141_v11  ;;  %v4143_v8 = vld [vmem:[%s6734_s15 + $0x20] sm:$0xf]  ;;  %v4145_v14 = vld [vmem:[%s6734_s15 + $0x24] sm:$0xf] }
 0x332   : > { %v4147_v63 = vld [vmem:[%s6734_s15 + $0x28] sm:$0xf]  ;;  %4144 = vst [vmem:[%s4111_s21 + $0x40] sm:$0xf] %v4143_v8  ;;  %4146 = vst [vmem:[%s4111_s21 + $0x48] sm:$0xf] %v4145_v14 }
 0x333   : > { %4148 = vst [vmem:[%s4111_s21 + $0x50] sm:$0xf] %v4147_v63  ;;  %v4149_v13 = vld [vmem:[%s6734_s15 + $0x2c] sm:$0xf]  ;;  %v4151_v59 = vld [vmem:[%s6734_s15 + $0x30] sm:$0xf] }
 0x334   : > { %v4153_v24 = vld [vmem:[%s6734_s15 + $0x34] sm:$0xf]  ;;  %4150 = vst [vmem:[%s4111_s21 + $0x58] sm:$0xf] %v4149_v13  ;;  %4152 = vst [vmem:[%s4111_s21 + $0x60] sm:$0xf] %v4151_v59 }
 0x335   : > { %4154 = vst [vmem:[%s4111_s21 + $0x68] sm:$0xf] %v4153_v24  ;;  %v4155_v18 = vld [vmem:[%s6734_s15 + $0x38] sm:$0xf]  ;;  %v4157_v5 = vld [vmem:[%s6734_s15 + $0x3c] sm:$0xf] }
 0x336   : > { %4156 = vst [vmem:[%s4111_s21 + $0x70] sm:$0xf] %v4155_v18  ;;  %4158 = vst [vmem:[%s4111_s21 + $0x78] sm:$0xf] %v4157_v5 }
 0x337 PF: > { %p11_p11 = scmp.ge.s32.totalorder %s5368_s19, 4   ;;  %s6782_s15 = smov %s5318_s16 }
 0x338   : > { %s6783_s16 = smov %s5378_s22  ;;  %s6784_s17 = smov %s5368_s19 }
 0x339   :  { %13 = sbr.rel (!%p11_p11) target bundleno = 2 (0x2), region = 159 }

// kernel: discriminator_forward.7
= control target key start
LH: loop header
LB: loop body
LE: loop exit
PB: predicated region body
PF: predicated region fallthrough
CT: control target
= control target key end

     0   :  { %s9056_s18 = smov 0   ;;  %s9058_s19 = smov 0   ;;  %s10644_s0 = inlined_call_operand.vmem [shape: bf16[32,4096], index: 0, kind: input, shape index: {}]   ;;  %s10645_s1 = inlined_call_operand.vmem [shape: bf16[4096,512], index: 1, kind: input, shape index: {}]   ;;  %s10646_s2 = inlined_call_operand.vmem [shape: f32[1,512], index: 2, kind: input, shape index: {}]   ;;  %s10647_s3 = inlined_call_operand.vmem [shape: f32[1,512], index: 3, kind: input, shape index: {}]   ;;  %s10648_s4 = inlined_call_operand.vmem [shape: f32[16,512], index: 4, kind: input, shape index: {}]   ;;  %s10649_s5 = inlined_call_operand.vmem [shape: f32[2,512], index: 5, kind: output, shape index: {}]  }
   0x1   :  { %s9060_s20 = smov 0  }
   0x2 LB: > { %s7937_s21 = sadd.s32 4294967295, %s9024_s20   ;;  %s9073_s22 = sadd.s32 1, %s9024_s20   ;;  %s9024_s20 = sphi %s9060_s20, %s10653_s20   ;;  %s9020_s19 = sphi %s9058_s19, %s10652_s19   ;;  %s9016_s18 = sphi %s9056_s18, %s10651_s18  }
   0x3   : > { %s40_s23 = ssub.s32 %s9024_s20, %s9073_s22  ;;  %s43_s24 = sadd.s32 1, %s9020_s19 }
   0x4   : > { %p41_p0 = scmp.eq.s32.totalorder %s40_s23, 0  ;;  %p50_p1 = scmp.ne.s32.totalorder %s9020_s19, %s9016_s18 }
   0x5   : > { %p51_p2 = scmp.eq.s32.totalorder %s9024_s20, 0  ;;  %p7940_p4 = scmp.ge.s32.totalorder %s9024_s20, 4 }
   0x6   : > { %s9082_s25 = scalar_select %p41_p0, %s9020_s19, %s43_s24  }
   0x7   : > { %p9084_p3 = por %p51_p2, %p50_p1  ;;  %183 = sbr.rel (%p7940_p4) target bundleno = 366 (0x16e), region = 20 }
   0xe   : > { %186 = sbr.rel (!%p9084_p3) target bundleno = 359 (0x167), region = 24  ;;  %s188_s27 = sand.u32 (%p9084_p3), 1, %s9020_s19  }
   0xf   : > { %s7942_s28 = sshll.u32 (%p9084_p3), %s9024_s20, 2  ;;  %s7941_s29 = sshll.u32 (%p9084_p3), %s188_s27, 11 }
  0x10   : > { %s9096_s7 = scalar_lea.vmem (%p9084_p3), %s10645_s1, %s7942_s28  ;;  %s9100_s8 = scalar_lea.vmem (%p9084_p3), [#allocation2], %s7941_s29 }
  0x11   : > { %v208_v0 = vld [vmem:[%s9096_s7] sm:$0xf] (%p9084_p3)  ;;  %v210_v1 = vld [vmem:[%s9096_s7 + $0x10] sm:$0xf] (%p9084_p3) }
  0x12   : > { %209 = vst [vmem:[%s9100_s8] sm:$0xf] (%p9084_p3), %v208_v0  ;;  %211 = vst [vmem:[%s9100_s8 + $0x4] sm:$0xf] (%p9084_p3), %v210_v1  ;;  %v212_v2 = vld [vmem:[%s9096_s7 + $0x20] sm:$0xf] (%p9084_p3) }
  0x13   : > { %v214_v3 = vld [vmem:[%s9096_s7 + $0x30] sm:$0xf] (%p9084_p3)  ;;  %v216_v4 = vld [vmem:[%s9096_s7 + $0x40] sm:$0xf] (%p9084_p3)  ;;  %213 = vst [vmem:[%s9100_s8 + $0x8] sm:$0xf] (%p9084_p3), %v212_v2 }
  0x14   : > { %215 = vst [vmem:[%s9100_s8 + $0xc] sm:$0xf] (%p9084_p3), %v214_v3  ;;  %217 = vst [vmem:[%s9100_s8 + $0x10] sm:$0xf] (%p9084_p3), %v216_v4  ;;  %v218_v5 = vld [vmem:[%s9096_s7 + $0x50] sm:$0xf] (%p9084_p3) }
  0x15   : > { %v220_v6 = vld [vmem:[%s9096_s7 + $0x60] sm:$0xf]  ;;  %v222_v7 = vld [vmem:[%s9096_s7 + $0x70] sm:$0xf]  ;;  %219 = vst [vmem:[%s9100_s8 + $0x14] sm:$0xf] %v218_v5 }
  0x16   : > { %221 = vst [vmem:[%s9100_s8 + $0x18] sm:$0xf] %v220_v6  ;;  %223 = vst [vmem:[%s9100_s8 + $0x1c] sm:$0xf] %v222_v7  ;;  %v224_v8 = vld [vmem:[%s9096_s7 + $0x80] sm:$0xf] }
  0x17   : > { %v226_v9 = vld [vmem:[%s9096_s7 + $0x90] sm:$0xf]  ;;  %v228_v10 = vld [vmem:[%s9096_s7 + $0xa0] sm:$0xf]  ;;  %225 = vst [vmem:[%s9100_s8 + $0x20] sm:$0xf] %v224_v8 }
  0x18   : > { %227 = vst [vmem:[%s9100_s8 + $0x24] sm:$0xf] %v226_v9  ;;  %229 = vst [vmem:[%s9100_s8 + $0x28] sm:$0xf] %v228_v10  ;;  %v230_v11 = vld [vmem:[%s9096_s7 + $0xb0] sm:$0xf] }
  0x19   : > { %v232_v12 = vld [vmem:[%s9096_s7 + $0xc0] sm:$0xf]  ;;  %v234_v13 = vld [vmem:[%s9096_s7 + $0xd0] sm:$0xf]  ;;  %231 = vst [vmem:[%s9100_s8 + $0x2c] sm:$0xf] %v230_v11 }
  0x1a   : > { %233 = vst [vmem:[%s9100_s8 + $0x30] sm:$0xf] %v232_v12  ;;  %235 = vst [vmem:[%s9100_s8 + $0x34] sm:$0xf] %v234_v13  ;;  %v236_v14 = vld [vmem:[%s9096_s7 + $0xe0] sm:$0xf] }
  0x1b   : > { %v238_v15 = vld [vmem:[%s9096_s7 + $0xf0] sm:$0xf]  ;;  %v240_v16 = vld [vmem:[%s9096_s7 + $0x100] sm:$0xf]  ;;  %237 = vst [vmem:[%s9100_s8 + $0x38] sm:$0xf] %v236_v14 }
  0x1c   : > { %239 = vst [vmem:[%s9100_s8 + $0x3c] sm:$0xf] %v238_v15  ;;  %241 = vst [vmem:[%s9100_s8 + $0x40] sm:$0xf] %v240_v16  ;;  %v242_v17 = vld [vmem:[%s9096_s7 + $0x110] sm:$0xf] }
  0x1d   : > { %v244_v18 = vld [vmem:[%s9096_s7 + $0x120] sm:$0xf]  ;;  %v246_v19 = vld [vmem:[%s9096_s7 + $0x130] sm:$0xf]  ;;  %243 = vst [vmem:[%s9100_s8 + $0x44] sm:$0xf] %v242_v17 }
  0x1e   : > { %245 = vst [vmem:[%s9100_s8 + $0x48] sm:$0xf] %v244_v18  ;;  %247 = vst [vmem:[%s9100_s8 + $0x4c] sm:$0xf] %v246_v19  ;;  %v248_v20 = vld [vmem:[%s9096_s7 + $0x140] sm:$0xf] }
  0x1f   : > { %v250_v21 = vld [vmem:[%s9096_s7 + $0x150] sm:$0xf]  ;;  %v252_v22 = vld [vmem:[%s9096_s7 + $0x160] sm:$0xf]  ;;  %249 = vst [vmem:[%s9100_s8 + $0x50] sm:$0xf] %v248_v20 }
  0x20   : > { %251 = vst [vmem:[%s9100_s8 + $0x54] sm:$0xf] %v250_v21  ;;  %253 = vst [vmem:[%s9100_s8 + $0x58] sm:$0xf] %v252_v22  ;;  %v254_v23 = vld [vmem:[%s9096_s7 + $0x170] sm:$0xf] }
  0x21   : > { %v256_v24 = vld [vmem:[%s9096_s7 + $0x180] sm:$0xf]  ;;  %v258_v25 = vld [vmem:[%s9096_s7 + $0x190] sm:$0xf]  ;;  %255 = vst [vmem:[%s9100_s8 + $0x5c] sm:$0xf] %v254_v23 }
  0x22   : > { %257 = vst [vmem:[%s9100_s8 + $0x60] sm:$0xf] %v256_v24  ;;  %259 = vst [vmem:[%s9100_s8 + $0x64] sm:$0xf] %v258_v25  ;;  %v260_v26 = vld [vmem:[%s9096_s7 + $0x1a0] sm:$0xf] }
  0x23   : > { %v262_v27 = vld [vmem:[%s9096_s7 + $0x1b0] sm:$0xf]  ;;  %v264_v28 = vld [vmem:[%s9096_s7 + $0x1c0] sm:$0xf]  ;;  %261 = vst [vmem:[%s9100_s8 + $0x68] sm:$0xf] %v260_v26 }
  0x24   : > { %263 = vst [vmem:[%s9100_s8 + $0x6c] sm:$0xf] %v262_v27  ;;  %265 = vst [vmem:[%s9100_s8 + $0x70] sm:$0xf] %v264_v28  ;;  %v266_v29 = vld [vmem:[%s9096_s7 + $0x1d0] sm:$0xf] }
  0x25   : > { %v268_v30 = vld [vmem:[%s9096_s7 + $0x1e0] sm:$0xf]  ;;  %v270_v31 = vld [vmem:[%s9096_s7 + $0x1f0] sm:$0xf]  ;;  %267 = vst [vmem:[%s9100_s8 + $0x74] sm:$0xf] %v266_v29 }
  0x26   : > { %269 = vst [vmem:[%s9100_s8 + $0x78] sm:$0xf] %v268_v30  ;;  %271 = vst [vmem:[%s9100_s8 + $0x7c] sm:$0xf] %v270_v31  ;;  %v272_v32 = vld [vmem:[%s9096_s7 + $0x200] sm:$0xf] }
  0x27   : > { %v274_v33 = vld [vmem:[%s9096_s7 + $0x210] sm:$0xf]  ;;  %v276_v34 = vld [vmem:[%s9096_s7 + $0x220] sm:$0xf]  ;;  %273 = vst [vmem:[%s9100_s8 + $0x80] sm:$0xf] %v272_v32 }
  0x28   : > { %275 = vst [vmem:[%s9100_s8 + $0x84] sm:$0xf] %v274_v33  ;;  %277 = vst [vmem:[%s9100_s8 + $0x88] sm:$0xf] %v276_v34  ;;  %v278_v35 = vld [vmem:[%s9096_s7 + $0x230] sm:$0xf] }
  0x29   : > { %v280_v36 = vld [vmem:[%s9096_s7 + $0x240] sm:$0xf]  ;;  %v282_v37 = vld [vmem:[%s9096_s7 + $0x250] sm:$0xf]  ;;  %279 = vst [vmem:[%s9100_s8 + $0x8c] sm:$0xf] %v278_v35 }
  0x2a   : > { %281 = vst [vmem:[%s9100_s8 + $0x90] sm:$0xf] %v280_v36  ;;  %283 = vst [vmem:[%s9100_s8 + $0x94] sm:$0xf] %v282_v37  ;;  %v284_v38 = vld [vmem:[%s9096_s7 + $0x260] sm:$0xf] }
  0x2b   : > { %v286_v39 = vld [vmem:[%s9096_s7 + $0x270] sm:$0xf]  ;;  %v288_v40 = vld [vmem:[%s9096_s7 + $0x280] sm:$0xf]  ;;  %285 = vst [vmem:[%s9100_s8 + $0x98] sm:$0xf] %v284_v38 }
  0x2c   : > { %287 = vst [vmem:[%s9100_s8 + $0x9c] sm:$0xf] %v286_v39  ;;  %289 = vst [vmem:[%s9100_s8 + $0xa0] sm:$0xf] %v288_v40  ;;  %v290_v41 = vld [vmem:[%s9096_s7 + $0x290] sm:$0xf] }
  0x2d   : > { %v292_v42 = vld [vmem:[%s9096_s7 + $0x2a0] sm:$0xf]  ;;  %v294_v43 = vld [vmem:[%s9096_s7 + $0x2b0] sm:$0xf]  ;;  %291 = vst [vmem:[%s9100_s8 + $0xa4] sm:$0xf] %v290_v41 }
  0x2e   : > { %293 = vst [vmem:[%s9100_s8 + $0xa8] sm:$0xf] %v292_v42  ;;  %295 = vst [vmem:[%s9100_s8 + $0xac] sm:$0xf] %v294_v43  ;;  %v296_v44 = vld [vmem:[%s9096_s7 + $0x2c0] sm:$0xf] }
  0x2f   : > { %v298_v45 = vld [vmem:[%s9096_s7 + $0x2d0] sm:$0xf]  ;;  %v300_v46 = vld [vmem:[%s9096_s7 + $0x2e0] sm:$0xf]  ;;  %297 = vst [vmem:[%s9100_s8 + $0xb0] sm:$0xf] %v296_v44 }
  0x30   : > { %299 = vst [vmem:[%s9100_s8 + $0xb4] sm:$0xf] %v298_v45  ;;  %301 = vst [vmem:[%s9100_s8 + $0xb8] sm:$0xf] %v300_v46  ;;  %v302_v47 = vld [vmem:[%s9096_s7 + $0x2f0] sm:$0xf] }
  0x31   : > { %v304_v48 = vld [vmem:[%s9096_s7 + $0x300] sm:$0xf]  ;;  %v306_v49 = vld [vmem:[%s9096_s7 + $0x310] sm:$0xf]  ;;  %303 = vst [vmem:[%s9100_s8 + $0xbc] sm:$0xf] %v302_v47 }
  0x32   : > { %305 = vst [vmem:[%s9100_s8 + $0xc0] sm:$0xf] %v304_v48  ;;  %307 = vst [vmem:[%s9100_s8 + $0xc4] sm:$0xf] %v306_v49  ;;  %v308_v50 = vld [vmem:[%s9096_s7 + $0x320] sm:$0xf] }
  0x33   : > { %v310_v51 = vld [vmem:[%s9096_s7 + $0x330] sm:$0xf]  ;;  %v312_v52 = vld [vmem:[%s9096_s7 + $0x340] sm:$0xf]  ;;  %309 = vst [vmem:[%s9100_s8 + $0xc8] sm:$0xf] %v308_v50 }
  0x34   : > { %311 = vst [vmem:[%s9100_s8 + $0xcc] sm:$0xf] %v310_v51  ;;  %313 = vst [vmem:[%s9100_s8 + $0xd0] sm:$0xf] %v312_v52  ;;  %v314_v53 = vld [vmem:[%s9096_s7 + $0x350] sm:$0xf] }
  0x35   : > { %v316_v54 = vld [vmem:[%s9096_s7 + $0x360] sm:$0xf]  ;;  %v318_v55 = vld [vmem:[%s9096_s7 + $0x370] sm:$0xf]  ;;  %315 = vst [vmem:[%s9100_s8 + $0xd4] sm:$0xf] %v314_v53 }
  0x36   : > { %317 = vst [vmem:[%s9100_s8 + $0xd8] sm:$0xf] %v316_v54  ;;  %319 = vst [vmem:[%s9100_s8 + $0xdc] sm:$0xf] %v318_v55  ;;  %v320_v56 = vld [vmem:[%s9096_s7 + $0x380] sm:$0xf] }
  0x37   : > { %v322_v57 = vld [vmem:[%s9096_s7 + $0x390] sm:$0xf]  ;;  %v324_v58 = vld [vmem:[%s9096_s7 + $0x3a0] sm:$0xf]  ;;  %321 = vst [vmem:[%s9100_s8 + $0xe0] sm:$0xf] %v320_v56 }
  0x38   : > { %323 = vst [vmem:[%s9100_s8 + $0xe4] sm:$0xf] %v322_v57  ;;  %325 = vst [vmem:[%s9100_s8 + $0xe8] sm:$0xf] %v324_v58  ;;  %v326_v59 = vld [vmem:[%s9096_s7 + $0x3b0] sm:$0xf] }
  0x39   : > { %v328_v60 = vld [vmem:[%s9096_s7 + $0x3c0] sm:$0xf]  ;;  %v330_v61 = vld [vmem:[%s9096_s7 + $0x3d0] sm:$0xf]  ;;  %327 = vst [vmem:[%s9100_s8 + $0xec] sm:$0xf] %v326_v59 }
  0x3a   : > { %329 = vst [vmem:[%s9100_s8 + $0xf0] sm:$0xf] %v328_v60  ;;  %331 = vst [vmem:[%s9100_s8 + $0xf4] sm:$0xf] %v330_v61  ;;  %v332_v62 = vld [vmem:[%s9096_s7 + $0x3e0] sm:$0xf] }
  0x3b   : > { %v334_v63 = vld [vmem:[%s9096_s7 + $0x3f0] sm:$0xf]  ;;  %v336_v0 = vld [vmem:[%s9096_s7 + $0x400] sm:$0xf]  ;;  %333 = vst [vmem:[%s9100_s8 + $0xf8] sm:$0xf] %v332_v62 }
  0x3c   : > { %335 = vst [vmem:[%s9100_s8 + $0xfc] sm:$0xf] %v334_v63  ;;  %337 = vst [vmem:[%s9100_s8 + $0x100] sm:$0xf] %v336_v0  ;;  %v338_v1 = vld [vmem:[%s9096_s7 + $0x410] sm:$0xf] }
  0x3d   : > { %v340_v2 = vld [vmem:[%s9096_s7 + $0x420] sm:$0xf]  ;;  %v342_v3 = vld [vmem:[%s9096_s7 + $0x430] sm:$0xf]  ;;  %339 = vst [vmem:[%s9100_s8 + $0x104] sm:$0xf] %v338_v1 }
  0x3e   : > { %341 = vst [vmem:[%s9100_s8 + $0x108] sm:$0xf] %v340_v2  ;;  %343 = vst [vmem:[%s9100_s8 + $0x10c] sm:$0xf] %v342_v3  ;;  %v344_v4 = vld [vmem:[%s9096_s7 + $0x440] sm:$0xf] }
  0x3f   : > { %v346_v5 = vld [vmem:[%s9096_s7 + $0x450] sm:$0xf]  ;;  %v348_v6 = vld [vmem:[%s9096_s7 + $0x460] sm:$0xf]  ;;  %345 = vst [vmem:[%s9100_s8 + $0x110] sm:$0xf] %v344_v4 }
  0x40   : > { %347 = vst [vmem:[%s9100_s8 + $0x114] sm:$0xf] %v346_v5  ;;  %349 = vst [vmem:[%s9100_s8 + $0x118] sm:$0xf] %v348_v6  ;;  %v350_v7 = vld [vmem:[%s9096_s7 + $0x470] sm:$0xf] }
  0x41   : > { %v352_v8 = vld [vmem:[%s9096_s7 + $0x480] sm:$0xf]  ;;  %v354_v9 = vld [vmem:[%s9096_s7 + $0x490] sm:$0xf]  ;;  %351 = vst [vmem:[%s9100_s8 + $0x11c] sm:$0xf] %v350_v7 }
  0x42   : > { %353 = vst [vmem:[%s9100_s8 + $0x120] sm:$0xf] %v352_v8  ;;  %355 = vst [vmem:[%s9100_s8 + $0x124] sm:$0xf] %v354_v9  ;;  %v356_v10 = vld [vmem:[%s9096_s7 + $0x4a0] sm:$0xf] }
  0x43   : > { %v358_v11 = vld [vmem:[%s9096_s7 + $0x4b0] sm:$0xf]  ;;  %v360_v12 = vld [vmem:[%s9096_s7 + $0x4c0] sm:$0xf]  ;;  %357 = vst [vmem:[%s9100_s8 + $0x128] sm:$0xf] %v356_v10 }
  0x44   : > { %359 = vst [vmem:[%s9100_s8 + $0x12c] sm:$0xf] %v358_v11  ;;  %361 = vst [vmem:[%s9100_s8 + $0x130] sm:$0xf] %v360_v12  ;;  %v362_v13 = vld [vmem:[%s9096_s7 + $0x4d0] sm:$0xf] }
  0x45   : > { %v364_v14 = vld [vmem:[%s9096_s7 + $0x4e0] sm:$0xf]  ;;  %v366_v15 = vld [vmem:[%s9096_s7 + $0x4f0] sm:$0xf]  ;;  %363 = vst [vmem:[%s9100_s8 + $0x134] sm:$0xf] %v362_v13 }
  0x46   : > { %365 = vst [vmem:[%s9100_s8 + $0x138] sm:$0xf] %v364_v14  ;;  %367 = vst [vmem:[%s9100_s8 + $0x13c] sm:$0xf] %v366_v15  ;;  %v368_v16 = vld [vmem:[%s9096_s7 + $0x500] sm:$0xf] }
  0x47   : > { %v370_v17 = vld [vmem:[%s9096_s7 + $0x510] sm:$0xf]  ;;  %v372_v18 = vld [vmem:[%s9096_s7 + $0x520] sm:$0xf]  ;;  %369 = vst [vmem:[%s9100_s8 + $0x140] sm:$0xf] %v368_v16 }
  0x48   : > { %371 = vst [vmem:[%s9100_s8 + $0x144] sm:$0xf] %v370_v17  ;;  %373 = vst [vmem:[%s9100_s8 + $0x148] sm:$0xf] %v372_v18  ;;  %v374_v19 = vld [vmem:[%s9096_s7 + $0x530] sm:$0xf] }
  0x49   : > { %v376_v20 = vld [vmem:[%s9096_s7 + $0x540] sm:$0xf]  ;;  %v378_v21 = vld [vmem:[%s9096_s7 + $0x550] sm:$0xf]  ;;  %375 = vst [vmem:[%s9100_s8 + $0x14c] sm:$0xf] %v374_v19 }
  0x4a   : > { %377 = vst [vmem:[%s9100_s8 + $0x150] sm:$0xf] %v376_v20  ;;  %379 = vst [vmem:[%s9100_s8 + $0x154] sm:$0xf] %v378_v21  ;;  %v380_v22 = vld [vmem:[%s9096_s7 + $0x560] sm:$0xf] }
  0x4b   : > { %v382_v23 = vld [vmem:[%s9096_s7 + $0x570] sm:$0xf]  ;;  %v384_v24 = vld [vmem:[%s9096_s7 + $0x580] sm:$0xf]  ;;  %381 = vst [vmem:[%s9100_s8 + $0x158] sm:$0xf] %v380_v22 }
  0x4c   : > { %383 = vst [vmem:[%s9100_s8 + $0x15c] sm:$0xf] %v382_v23  ;;  %385 = vst [vmem:[%s9100_s8 + $0x160] sm:$0xf] %v384_v24  ;;  %v386_v25 = vld [vmem:[%s9096_s7 + $0x590] sm:$0xf] }
  0x4d   : > { %v388_v26 = vld [vmem:[%s9096_s7 + $0x5a0] sm:$0xf]  ;;  %v390_v27 = vld [vmem:[%s9096_s7 + $0x5b0] sm:$0xf]  ;;  %387 = vst [vmem:[%s9100_s8 + $0x164] sm:$0xf] %v386_v25 }
  0x4e   : > { %389 = vst [vmem:[%s9100_s8 + $0x168] sm:$0xf] %v388_v26  ;;  %391 = vst [vmem:[%s9100_s8 + $0x16c] sm:$0xf] %v390_v27  ;;  %v392_v28 = vld [vmem:[%s9096_s7 + $0x5c0] sm:$0xf] }
  0x4f   : > { %v394_v29 = vld [vmem:[%s9096_s7 + $0x5d0] sm:$0xf]  ;;  %v396_v30 = vld [vmem:[%s9096_s7 + $0x5e0] sm:$0xf]  ;;  %393 = vst [vmem:[%s9100_s8 + $0x170] sm:$0xf] %v392_v28 }
  0x50   : > { %395 = vst [vmem:[%s9100_s8 + $0x174] sm:$0xf] %v394_v29  ;;  %397 = vst [vmem:[%s9100_s8 + $0x178] sm:$0xf] %v396_v30  ;;  %v398_v31 = vld [vmem:[%s9096_s7 + $0x5f0] sm:$0xf] }
  0x51   : > { %v400_v32 = vld [vmem:[%s9096_s7 + $0x600] sm:$0xf]  ;;  %v402_v33 = vld [vmem:[%s9096_s7 + $0x610] sm:$0xf]  ;;  %399 = vst [vmem:[%s9100_s8 + $0x17c] sm:$0xf] %v398_v31 }
  0x52   : > { %401 = vst [vmem:[%s9100_s8 + $0x180] sm:$0xf] %v400_v32  ;;  %403 = vst [vmem:[%s9100_s8 + $0x184] sm:$0xf] %v402_v33  ;;  %v404_v34 = vld [vmem:[%s9096_s7 + $0x620] sm:$0xf] }
  0x53   : > { %v406_v35 = vld [vmem:[%s9096_s7 + $0x630] sm:$0xf]  ;;  %v408_v36 = vld [vmem:[%s9096_s7 + $0x640] sm:$0xf]  ;;  %405 = vst [vmem:[%s9100_s8 + $0x188] sm:$0xf] %v404_v34 }
  0x54   : > { %407 = vst [vmem:[%s9100_s8 + $0x18c] sm:$0xf] %v406_v35  ;;  %409 = vst [vmem:[%s9100_s8 + $0x190] sm:$0xf] %v408_v36  ;;  %v410_v37 = vld [vmem:[%s9096_s7 + $0x650] sm:$0xf] }
  0x55   : > { %v412_v38 = vld [vmem:[%s9096_s7 + $0x660] sm:$0xf]  ;;  %v414_v39 = vld [vmem:[%s9096_s7 + $0x670] sm:$0xf]  ;;  %411 = vst [vmem:[%s9100_s8 + $0x194] sm:$0xf] %v410_v37 }
  0x56   : > { %413 = vst [vmem:[%s9100_s8 + $0x198] sm:$0xf] %v412_v38  ;;  %415 = vst [vmem:[%s9100_s8 + $0x19c] sm:$0xf] %v414_v39  ;;  %v416_v40 = vld [vmem:[%s9096_s7 + $0x680] sm:$0xf] }
  0x57   : > { %v418_v41 = vld [vmem:[%s9096_s7 + $0x690] sm:$0xf]  ;;  %v420_v42 = vld [vmem:[%s9096_s7 + $0x6a0] sm:$0xf]  ;;  %417 = vst [vmem:[%s9100_s8 + $0x1a0] sm:$0xf] %v416_v40 }
  0x58   : > { %419 = vst [vmem:[%s9100_s8 + $0x1a4] sm:$0xf] %v418_v41  ;;  %421 = vst [vmem:[%s9100_s8 + $0x1a8] sm:$0xf] %v420_v42  ;;  %v422_v43 = vld [vmem:[%s9096_s7 + $0x6b0] sm:$0xf] }
  0x59   : > { %v424_v44 = vld [vmem:[%s9096_s7 + $0x6c0] sm:$0xf]  ;;  %v426_v45 = vld [vmem:[%s9096_s7 + $0x6d0] sm:$0xf]  ;;  %423 = vst [vmem:[%s9100_s8 + $0x1ac] sm:$0xf] %v422_v43 }
  0x5a   : > { %425 = vst [vmem:[%s9100_s8 + $0x1b0] sm:$0xf] %v424_v44  ;;  %427 = vst [vmem:[%s9100_s8 + $0x1b4] sm:$0xf] %v426_v45  ;;  %v428_v46 = vld [vmem:[%s9096_s7 + $0x6e0] sm:$0xf] }
  0x5b   : > { %v430_v47 = vld [vmem:[%s9096_s7 + $0x6f0] sm:$0xf]  ;;  %v432_v48 = vld [vmem:[%s9096_s7 + $0x700] sm:$0xf]  ;;  %429 = vst [vmem:[%s9100_s8 + $0x1b8] sm:$0xf] %v428_v46 }
  0x5c   : > { %431 = vst [vmem:[%s9100_s8 + $0x1bc] sm:$0xf] %v430_v47  ;;  %433 = vst [vmem:[%s9100_s8 + $0x1c0] sm:$0xf] %v432_v48  ;;  %v434_v49 = vld [vmem:[%s9096_s7 + $0x710] sm:$0xf] }
  0x5d   : > { %v436_v50 = vld [vmem:[%s9096_s7 + $0x720] sm:$0xf]  ;;  %v438_v51 = vld [vmem:[%s9096_s7 + $0x730] sm:$0xf]  ;;  %435 = vst [vmem:[%s9100_s8 + $0x1c4] sm:$0xf] %v434_v49 }
  0x5e   : > { %437 = vst [vmem:[%s9100_s8 + $0x1c8] sm:$0xf] %v436_v50  ;;  %439 = vst [vmem:[%s9100_s8 + $0x1cc] sm:$0xf] %v438_v51  ;;  %v440_v52 = vld [vmem:[%s9096_s7 + $0x740] sm:$0xf] }
  0x5f   : > { %v442_v53 = vld [vmem:[%s9096_s7 + $0x750] sm:$0xf]  ;;  %v444_v54 = vld [vmem:[%s9096_s7 + $0x760] sm:$0xf]  ;;  %441 = vst [vmem:[%s9100_s8 + $0x1d0] sm:$0xf] %v440_v52 }
  0x60   : > { %443 = vst [vmem:[%s9100_s8 + $0x1d4] sm:$0xf] %v442_v53  ;;  %445 = vst [vmem:[%s9100_s8 + $0x1d8] sm:$0xf] %v444_v54  ;;  %v446_v55 = vld [vmem:[%s9096_s7 + $0x770] sm:$0xf] }
  0x61   : > { %v448_v56 = vld [vmem:[%s9096_s7 + $0x780] sm:$0xf]  ;;  %v450_v57 = vld [vmem:[%s9096_s7 + $0x790] sm:$0xf]  ;;  %447 = vst [vmem:[%s9100_s8 + $0x1dc] sm:$0xf] %v446_v55 }
  0x62   : > { %449 = vst [vmem:[%s9100_s8 + $0x1e0] sm:$0xf] %v448_v56  ;;  %451 = vst [vmem:[%s9100_s8 + $0x1e4] sm:$0xf] %v450_v57  ;;  %v452_v58 = vld [vmem:[%s9096_s7 + $0x7a0] sm:$0xf] }
  0x63   : > { %v454_v59 = vld [vmem:[%s9096_s7 + $0x7b0] sm:$0xf]  ;;  %v456_v60 = vld [vmem:[%s9096_s7 + $0x7c0] sm:$0xf]  ;;  %453 = vst [vmem:[%s9100_s8 + $0x1e8] sm:$0xf] %v452_v58 }
  0x64   : > { %455 = vst [vmem:[%s9100_s8 + $0x1ec] sm:$0xf] %v454_v59  ;;  %457 = vst [vmem:[%s9100_s8 + $0x1f0] sm:$0xf] %v456_v60  ;;  %v458_v61 = vld [vmem:[%s9096_s7 + $0x7d0] sm:$0xf] }
  0x65   : > { %v460_v62 = vld [vmem:[%s9096_s7 + $0x7e0] sm:$0xf]  ;;  %v462_v63 = vld [vmem:[%s9096_s7 + $0x7f0] sm:$0xf]  ;;  %459 = vst [vmem:[%s9100_s8 + $0x1f4] sm:$0xf] %v458_v61 }
  0x66   : > { %461 = vst [vmem:[%s9100_s8 + $0x1f8] sm:$0xf] %v460_v62  ;;  %463 = vst [vmem:[%s9100_s8 + $0x1fc] sm:$0xf] %v462_v63  ;;  %v464_v0 = vld [vmem:[%s9096_s7 + $0x800] sm:$0xf] }
  0x67   : > { %v466_v1 = vld [vmem:[%s9096_s7 + $0x810] sm:$0xf]  ;;  %v468_v2 = vld [vmem:[%s9096_s7 + $0x820] sm:$0xf]  ;;  %465 = vst [vmem:[%s9100_s8 + $0x200] sm:$0xf] %v464_v0 }
  0x68   : > { %467 = vst [vmem:[%s9100_s8 + $0x204] sm:$0xf] %v466_v1  ;;  %469 = vst [vmem:[%s9100_s8 + $0x208] sm:$0xf] %v468_v2  ;;  %v470_v3 = vld [vmem:[%s9096_s7 + $0x830] sm:$0xf] }
  0x69   : > { %v472_v4 = vld [vmem:[%s9096_s7 + $0x840] sm:$0xf]  ;;  %v474_v5 = vld [vmem:[%s9096_s7 + $0x850] sm:$0xf]  ;;  %471 = vst [vmem:[%s9100_s8 + $0x20c] sm:$0xf] %v470_v3 }
  0x6a   : > { %473 = vst [vmem:[%s9100_s8 + $0x210] sm:$0xf] %v472_v4  ;;  %475 = vst [vmem:[%s9100_s8 + $0x214] sm:$0xf] %v474_v5  ;;  %v476_v6 = vld [vmem:[%s9096_s7 + $0x860] sm:$0xf] }
  0x6b   : > { %v478_v7 = vld [vmem:[%s9096_s7 + $0x870] sm:$0xf]  ;;  %v480_v8 = vld [vmem:[%s9096_s7 + $0x880] sm:$0xf]  ;;  %477 = vst [vmem:[%s9100_s8 + $0x218] sm:$0xf] %v476_v6 }
  0x6c   : > { %479 = vst [vmem:[%s9100_s8 + $0x21c] sm:$0xf] %v478_v7  ;;  %481 = vst [vmem:[%s9100_s8 + $0x220] sm:$0xf] %v480_v8  ;;  %v482_v9 = vld [vmem:[%s9096_s7 + $0x890] sm:$0xf] }
  0x6d   : > { %v484_v10 = vld [vmem:[%s9096_s7 + $0x8a0] sm:$0xf]  ;;  %v486_v11 = vld [vmem:[%s9096_s7 + $0x8b0] sm:$0xf]  ;;  %483 = vst [vmem:[%s9100_s8 + $0x224] sm:$0xf] %v482_v9 }
  0x6e   : > { %485 = vst [vmem:[%s9100_s8 + $0x228] sm:$0xf] %v484_v10  ;;  %487 = vst [vmem:[%s9100_s8 + $0x22c] sm:$0xf] %v486_v11  ;;  %v488_v12 = vld [vmem:[%s9096_s7 + $0x8c0] sm:$0xf] }
  0x6f   : > { %v490_v13 = vld [vmem:[%s9096_s7 + $0x8d0] sm:$0xf]  ;;  %v492_v14 = vld [vmem:[%s9096_s7 + $0x8e0] sm:$0xf]  ;;  %489 = vst [vmem:[%s9100_s8 + $0x230] sm:$0xf] %v488_v12 }
  0x70   : > { %491 = vst [vmem:[%s9100_s8 + $0x234] sm:$0xf] %v490_v13  ;;  %493 = vst [vmem:[%s9100_s8 + $0x238] sm:$0xf] %v492_v14  ;;  %v494_v15 = vld [vmem:[%s9096_s7 + $0x8f0] sm:$0xf] }
  0x71   : > { %v496_v16 = vld [vmem:[%s9096_s7 + $0x900] sm:$0xf]  ;;  %v498_v17 = vld [vmem:[%s9096_s7 + $0x910] sm:$0xf]  ;;  %495 = vst [vmem:[%s9100_s8 + $0x23c] sm:$0xf] %v494_v15 }
  0x72   : > { %497 = vst [vmem:[%s9100_s8 + $0x240] sm:$0xf] %v496_v16  ;;  %499 = vst [vmem:[%s9100_s8 + $0x244] sm:$0xf] %v498_v17  ;;  %v500_v18 = vld [vmem:[%s9096_s7 + $0x920] sm:$0xf] }
  0x73   : > { %v502_v19 = vld [vmem:[%s9096_s7 + $0x930] sm:$0xf]  ;;  %v504_v20 = vld [vmem:[%s9096_s7 + $0x940] sm:$0xf]  ;;  %501 = vst [vmem:[%s9100_s8 + $0x248] sm:$0xf] %v500_v18 }
  0x74   : > { %503 = vst [vmem:[%s9100_s8 + $0x24c] sm:$0xf] %v502_v19  ;;  %505 = vst [vmem:[%s9100_s8 + $0x250] sm:$0xf] %v504_v20  ;;  %v506_v21 = vld [vmem:[%s9096_s7 + $0x950] sm:$0xf] }
  0x75   : > { %v508_v22 = vld [vmem:[%s9096_s7 + $0x960] sm:$0xf]  ;;  %v510_v23 = vld [vmem:[%s9096_s7 + $0x970] sm:$0xf]  ;;  %507 = vst [vmem:[%s9100_s8 + $0x254] sm:$0xf] %v506_v21 }
  0x76   : > { %509 = vst [vmem:[%s9100_s8 + $0x258] sm:$0xf] %v508_v22  ;;  %511 = vst [vmem:[%s9100_s8 + $0x25c] sm:$0xf] %v510_v23  ;;  %v512_v24 = vld [vmem:[%s9096_s7 + $0x980] sm:$0xf] }
  0x77   : > { %v514_v25 = vld [vmem:[%s9096_s7 + $0x990] sm:$0xf]  ;;  %v516_v26 = vld [vmem:[%s9096_s7 + $0x9a0] sm:$0xf]  ;;  %513 = vst [vmem:[%s9100_s8 + $0x260] sm:$0xf] %v512_v24 }
  0x78   : > { %515 = vst [vmem:[%s9100_s8 + $0x264] sm:$0xf] %v514_v25  ;;  %517 = vst [vmem:[%s9100_s8 + $0x268] sm:$0xf] %v516_v26  ;;  %v518_v27 = vld [vmem:[%s9096_s7 + $0x9b0] sm:$0xf] }
  0x79   : > { %v520_v28 = vld [vmem:[%s9096_s7 + $0x9c0] sm:$0xf]  ;;  %v522_v29 = vld [vmem:[%s9096_s7 + $0x9d0] sm:$0xf]  ;;  %519 = vst [vmem:[%s9100_s8 + $0x26c] sm:$0xf] %v518_v27 }
  0x7a   : > { %521 = vst [vmem:[%s9100_s8 + $0x270] sm:$0xf] %v520_v28  ;;  %523 = vst [vmem:[%s9100_s8 + $0x274] sm:$0xf] %v522_v29  ;;  %v524_v30 = vld [vmem:[%s9096_s7 + $0x9e0] sm:$0xf] }
  0x7b   : > { %v526_v31 = vld [vmem:[%s9096_s7 + $0x9f0] sm:$0xf]  ;;  %v528_v32 = vld [vmem:[%s9096_s7 + $0xa00] sm:$0xf]  ;;  %525 = vst [vmem:[%s9100_s8 + $0x278] sm:$0xf] %v524_v30 }
  0x7c   : > { %527 = vst [vmem:[%s9100_s8 + $0x27c] sm:$0xf] %v526_v31  ;;  %529 = vst [vmem:[%s9100_s8 + $0x280] sm:$0xf] %v528_v32  ;;  %v530_v33 = vld [vmem:[%s9096_s7 + $0xa10] sm:$0xf] }
  0x7d   : > { %v532_v34 = vld [vmem:[%s9096_s7 + $0xa20] sm:$0xf]  ;;  %v534_v35 = vld [vmem:[%s9096_s7 + $0xa30] sm:$0xf]  ;;  %531 = vst [vmem:[%s9100_s8 + $0x284] sm:$0xf] %v530_v33 }
  0x7e   : > { %533 = vst [vmem:[%s9100_s8 + $0x288] sm:$0xf] %v532_v34  ;;  %535 = vst [vmem:[%s9100_s8 + $0x28c] sm:$0xf] %v534_v35  ;;  %v536_v36 = vld [vmem:[%s9096_s7 + $0xa40] sm:$0xf] }
  0x7f   : > { %v538_v37 = vld [vmem:[%s9096_s7 + $0xa50] sm:$0xf]  ;;  %v540_v38 = vld [vmem:[%s9096_s7 + $0xa60] sm:$0xf]  ;;  %537 = vst [vmem:[%s9100_s8 + $0x290] sm:$0xf] %v536_v36 }
  0x80   : > { %539 = vst [vmem:[%s9100_s8 + $0x294] sm:$0xf] %v538_v37  ;;  %541 = vst [vmem:[%s9100_s8 + $0x298] sm:$0xf] %v540_v38  ;;  %v542_v39 = vld [vmem:[%s9096_s7 + $0xa70] sm:$0xf] }
  0x81   : > { %v544_v40 = vld [vmem:[%s9096_s7 + $0xa80] sm:$0xf]  ;;  %v546_v41 = vld [vmem:[%s9096_s7 + $0xa90] sm:$0xf]  ;;  %543 = vst [vmem:[%s9100_s8 + $0x29c] sm:$0xf] %v542_v39 }
  0x82   : > { %545 = vst [vmem:[%s9100_s8 + $0x2a0] sm:$0xf] %v544_v40  ;;  %547 = vst [vmem:[%s9100_s8 + $0x2a4] sm:$0xf] %v546_v41  ;;  %v548_v42 = vld [vmem:[%s9096_s7 + $0xaa0] sm:$0xf] }
  0x83   : > { %v550_v43 = vld [vmem:[%s9096_s7 + $0xab0] sm:$0xf]  ;;  %v552_v44 = vld [vmem:[%s9096_s7 + $0xac0] sm:$0xf]  ;;  %549 = vst [vmem:[%s9100_s8 + $0x2a8] sm:$0xf] %v548_v42 }
  0x84   : > { %551 = vst [vmem:[%s9100_s8 + $0x2ac] sm:$0xf] %v550_v43  ;;  %553 = vst [vmem:[%s9100_s8 + $0x2b0] sm:$0xf] %v552_v44  ;;  %v554_v45 = vld [vmem:[%s9096_s7 + $0xad0] sm:$0xf] }
  0x85   : > { %v556_v46 = vld [vmem:[%s9096_s7 + $0xae0] sm:$0xf]  ;;  %v558_v47 = vld [vmem:[%s9096_s7 + $0xaf0] sm:$0xf]  ;;  %555 = vst [vmem:[%s9100_s8 + $0x2b4] sm:$0xf] %v554_v45 }
  0x86   : > { %557 = vst [vmem:[%s9100_s8 + $0x2b8] sm:$0xf] %v556_v46  ;;  %559 = vst [vmem:[%s9100_s8 + $0x2bc] sm:$0xf] %v558_v47  ;;  %v560_v48 = vld [vmem:[%s9096_s7 + $0xb00] sm:$0xf] }
  0x87   : > { %v562_v49 = vld [vmem:[%s9096_s7 + $0xb10] sm:$0xf]  ;;  %v564_v50 = vld [vmem:[%s9096_s7 + $0xb20] sm:$0xf]  ;;  %561 = vst [vmem:[%s9100_s8 + $0x2c0] sm:$0xf] %v560_v48 }
  0x88   : > { %563 = vst [vmem:[%s9100_s8 + $0x2c4] sm:$0xf] %v562_v49  ;;  %565 = vst [vmem:[%s9100_s8 + $0x2c8] sm:$0xf] %v564_v50  ;;  %v566_v51 = vld [vmem:[%s9096_s7 + $0xb30] sm:$0xf] }
  0x89   : > { %v568_v52 = vld [vmem:[%s9096_s7 + $0xb40] sm:$0xf]  ;;  %v570_v53 = vld [vmem:[%s9096_s7 + $0xb50] sm:$0xf]  ;;  %567 = vst [vmem:[%s9100_s8 + $0x2cc] sm:$0xf] %v566_v51 }
  0x8a   : > { %569 = vst [vmem:[%s9100_s8 + $0x2d0] sm:$0xf] %v568_v52  ;;  %571 = vst [vmem:[%s9100_s8 + $0x2d4] sm:$0xf] %v570_v53  ;;  %v572_v54 = vld [vmem:[%s9096_s7 + $0xb60] sm:$0xf] }
  0x8b   : > { %v574_v55 = vld [vmem:[%s9096_s7 + $0xb70] sm:$0xf]  ;;  %v576_v56 = vld [vmem:[%s9096_s7 + $0xb80] sm:$0xf]  ;;  %573 = vst [vmem:[%s9100_s8 + $0x2d8] sm:$0xf] %v572_v54 }
  0x8c   : > { %575 = vst [vmem:[%s9100_s8 + $0x2dc] sm:$0xf] %v574_v55  ;;  %577 = vst [vmem:[%s9100_s8 + $0x2e0] sm:$0xf] %v576_v56  ;;  %v578_v57 = vld [vmem:[%s9096_s7 + $0xb90] sm:$0xf] }
  0x8d   : > { %v580_v58 = vld [vmem:[%s9096_s7 + $0xba0] sm:$0xf]  ;;  %v582_v59 = vld [vmem:[%s9096_s7 + $0xbb0] sm:$0xf]  ;;  %579 = vst [vmem:[%s9100_s8 + $0x2e4] sm:$0xf] %v578_v57 }
  0x8e   : > { %581 = vst [vmem:[%s9100_s8 + $0x2e8] sm:$0xf] %v580_v58  ;;  %583 = vst [vmem:[%s9100_s8 + $0x2ec] sm:$0xf] %v582_v59  ;;  %v584_v60 = vld [vmem:[%s9096_s7 + $0xbc0] sm:$0xf] }
  0x8f   : > { %v586_v61 = vld [vmem:[%s9096_s7 + $0xbd0] sm:$0xf]  ;;  %v588_v62 = vld [vmem:[%s9096_s7 + $0xbe0] sm:$0xf]  ;;  %585 = vst [vmem:[%s9100_s8 + $0x2f0] sm:$0xf] %v584_v60 }
  0x90   : > { %587 = vst [vmem:[%s9100_s8 + $0x2f4] sm:$0xf] %v586_v61  ;;  %589 = vst [vmem:[%s9100_s8 + $0x2f8] sm:$0xf] %v588_v62  ;;  %v590_v63 = vld [vmem:[%s9096_s7 + $0xbf0] sm:$0xf] }
  0x91   : > { %v592_v0 = vld [vmem:[%s9096_s7 + $0xc00] sm:$0xf]  ;;  %v594_v1 = vld [vmem:[%s9096_s7 + $0xc10] sm:$0xf]  ;;  %591 = vst [vmem:[%s9100_s8 + $0x2fc] sm:$0xf] %v590_v63 }
  0x92   : > { %593 = vst [vmem:[%s9100_s8 + $0x300] sm:$0xf] %v592_v0  ;;  %595 = vst [vmem:[%s9100_s8 + $0x304] sm:$0xf] %v594_v1  ;;  %v596_v2 = vld [vmem:[%s9096_s7 + $0xc20] sm:$0xf] }
  0x93   : > { %v598_v3 = vld [vmem:[%s9096_s7 + $0xc30] sm:$0xf]  ;;  %v600_v4 = vld [vmem:[%s9096_s7 + $0xc40] sm:$0xf]  ;;  %597 = vst [vmem:[%s9100_s8 + $0x308] sm:$0xf] %v596_v2 }
  0x94   : > { %599 = vst [vmem:[%s9100_s8 + $0x30c] sm:$0xf] %v598_v3  ;;  %601 = vst [vmem:[%s9100_s8 + $0x310] sm:$0xf] %v600_v4  ;;  %v602_v5 = vld [vmem:[%s9096_s7 + $0xc50] sm:$0xf] }
  0x95   : > { %v604_v6 = vld [vmem:[%s9096_s7 + $0xc60] sm:$0xf]  ;;  %v606_v7 = vld [vmem:[%s9096_s7 + $0xc70] sm:$0xf]  ;;  %603 = vst [vmem:[%s9100_s8 + $0x314] sm:$0xf] %v602_v5 }
  0x96   : > { %605 = vst [vmem:[%s9100_s8 + $0x318] sm:$0xf] %v604_v6  ;;  %607 = vst [vmem:[%s9100_s8 + $0x31c] sm:$0xf] %v606_v7  ;;  %v608_v8 = vld [vmem:[%s9096_s7 + $0xc80] sm:$0xf] }
  0x97   : > { %v610_v9 = vld [vmem:[%s9096_s7 + $0xc90] sm:$0xf]  ;;  %v612_v10 = vld [vmem:[%s9096_s7 + $0xca0] sm:$0xf]  ;;  %609 = vst [vmem:[%s9100_s8 + $0x320] sm:$0xf] %v608_v8 }
  0x98   : > { %611 = vst [vmem:[%s9100_s8 + $0x324] sm:$0xf] %v610_v9  ;;  %613 = vst [vmem:[%s9100_s8 + $0x328] sm:$0xf] %v612_v10  ;;  %v614_v11 = vld [vmem:[%s9096_s7 + $0xcb0] sm:$0xf] }
  0x99   : > { %v616_v12 = vld [vmem:[%s9096_s7 + $0xcc0] sm:$0xf]  ;;  %v618_v13 = vld [vmem:[%s9096_s7 + $0xcd0] sm:$0xf]  ;;  %615 = vst [vmem:[%s9100_s8 + $0x32c] sm:$0xf] %v614_v11 }
  0x9a   : > { %617 = vst [vmem:[%s9100_s8 + $0x330] sm:$0xf] %v616_v12  ;;  %619 = vst [vmem:[%s9100_s8 + $0x334] sm:$0xf] %v618_v13  ;;  %v620_v14 = vld [vmem:[%s9096_s7 + $0xce0] sm:$0xf] }
  0x9b   : > { %v622_v15 = vld [vmem:[%s9096_s7 + $0xcf0] sm:$0xf]  ;;  %v624_v16 = vld [vmem:[%s9096_s7 + $0xd00] sm:$0xf]  ;;  %621 = vst [vmem:[%s9100_s8 + $0x338] sm:$0xf] %v620_v14 }
  0x9c   : > { %623 = vst [vmem:[%s9100_s8 + $0x33c] sm:$0xf] %v622_v15  ;;  %625 = vst [vmem:[%s9100_s8 + $0x340] sm:$0xf] %v624_v16  ;;  %v626_v17 = vld [vmem:[%s9096_s7 + $0xd10] sm:$0xf] }
  0x9d   : > { %v628_v18 = vld [vmem:[%s9096_s7 + $0xd20] sm:$0xf]  ;;  %v630_v19 = vld [vmem:[%s9096_s7 + $0xd30] sm:$0xf]  ;;  %627 = vst [vmem:[%s9100_s8 + $0x344] sm:$0xf] %v626_v17 }
  0x9e   : > { %629 = vst [vmem:[%s9100_s8 + $0x348] sm:$0xf] %v628_v18  ;;  %631 = vst [vmem:[%s9100_s8 + $0x34c] sm:$0xf] %v630_v19  ;;  %v632_v20 = vld [vmem:[%s9096_s7 + $0xd40] sm:$0xf] }
  0x9f   : > { %v634_v21 = vld [vmem:[%s9096_s7 + $0xd50] sm:$0xf]  ;;  %v636_v22 = vld [vmem:[%s9096_s7 + $0xd60] sm:$0xf]  ;;  %633 = vst [vmem:[%s9100_s8 + $0x350] sm:$0xf] %v632_v20 }
  0xa0   : > { %635 = vst [vmem:[%s9100_s8 + $0x354] sm:$0xf] %v634_v21  ;;  %637 = vst [vmem:[%s9100_s8 + $0x358] sm:$0xf] %v636_v22  ;;  %v638_v23 = vld [vmem:[%s9096_s7 + $0xd70] sm:$0xf] }
  0xa1   : > { %v640_v24 = vld [vmem:[%s9096_s7 + $0xd80] sm:$0xf]  ;;  %v642_v25 = vld [vmem:[%s9096_s7 + $0xd90] sm:$0xf]  ;;  %639 = vst [vmem:[%s9100_s8 + $0x35c] sm:$0xf] %v638_v23 }
  0xa2   : > { %641 = vst [vmem:[%s9100_s8 + $0x360] sm:$0xf] %v640_v24  ;;  %643 = vst [vmem:[%s9100_s8 + $0x364] sm:$0xf] %v642_v25  ;;  %v644_v26 = vld [vmem:[%s9096_s7 + $0xda0] sm:$0xf] }
  0xa3   : > { %v646_v27 = vld [vmem:[%s9096_s7 + $0xdb0] sm:$0xf]  ;;  %v648_v28 = vld [vmem:[%s9096_s7 + $0xdc0] sm:$0xf]  ;;  %645 = vst [vmem:[%s9100_s8 + $0x368] sm:$0xf] %v644_v26 }
  0xa4   : > { %647 = vst [vmem:[%s9100_s8 + $0x36c] sm:$0xf] %v646_v27  ;;  %649 = vst [vmem:[%s9100_s8 + $0x370] sm:$0xf] %v648_v28  ;;  %v650_v29 = vld [vmem:[%s9096_s7 + $0xdd0] sm:$0xf] }
  0xa5   : > { %v652_v30 = vld [vmem:[%s9096_s7 + $0xde0] sm:$0xf]  ;;  %v654_v31 = vld [vmem:[%s9096_s7 + $0xdf0] sm:$0xf]  ;;  %651 = vst [vmem:[%s9100_s8 + $0x374] sm:$0xf] %v650_v29 }
  0xa6   : > { %653 = vst [vmem:[%s9100_s8 + $0x378] sm:$0xf] %v652_v30  ;;  %655 = vst [vmem:[%s9100_s8 + $0x37c] sm:$0xf] %v654_v31  ;;  %v656_v32 = vld [vmem:[%s9096_s7 + $0xe00] sm:$0xf] }
  0xa7   : > { %v658_v33 = vld [vmem:[%s9096_s7 + $0xe10] sm:$0xf]  ;;  %v660_v34 = vld [vmem:[%s9096_s7 + $0xe20] sm:$0xf]  ;;  %657 = vst [vmem:[%s9100_s8 + $0x380] sm:$0xf] %v656_v32 }
  0xa8   : > { %659 = vst [vmem:[%s9100_s8 + $0x384] sm:$0xf] %v658_v33  ;;  %661 = vst [vmem:[%s9100_s8 + $0x388] sm:$0xf] %v660_v34  ;;  %v662_v35 = vld [vmem:[%s9096_s7 + $0xe30] sm:$0xf] }
  0xa9   : > { %v664_v36 = vld [vmem:[%s9096_s7 + $0xe40] sm:$0xf]  ;;  %v666_v37 = vld [vmem:[%s9096_s7 + $0xe50] sm:$0xf]  ;;  %663 = vst [vmem:[%s9100_s8 + $0x38c] sm:$0xf] %v662_v35 }
  0xaa   : > { %665 = vst [vmem:[%s9100_s8 + $0x390] sm:$0xf] %v664_v36  ;;  %667 = vst [vmem:[%s9100_s8 + $0x394] sm:$0xf] %v666_v37  ;;  %v668_v38 = vld [vmem:[%s9096_s7 + $0xe60] sm:$0xf] }
  0xab   : > { %v670_v39 = vld [vmem:[%s9096_s7 + $0xe70] sm:$0xf]  ;;  %v672_v40 = vld [vmem:[%s9096_s7 + $0xe80] sm:$0xf]  ;;  %669 = vst [vmem:[%s9100_s8 + $0x398] sm:$0xf] %v668_v38 }
  0xac   : > { %671 = vst [vmem:[%s9100_s8 + $0x39c] sm:$0xf] %v670_v39  ;;  %673 = vst [vmem:[%s9100_s8 + $0x3a0] sm:$0xf] %v672_v40  ;;  %v674_v41 = vld [vmem:[%s9096_s7 + $0xe90] sm:$0xf] }
  0xad   : > { %v676_v42 = vld [vmem:[%s9096_s7 + $0xea0] sm:$0xf]  ;;  %v678_v43 = vld [vmem:[%s9096_s7 + $0xeb0] sm:$0xf]  ;;  %675 = vst [vmem:[%s9100_s8 + $0x3a4] sm:$0xf] %v674_v41 }
  0xae   : > { %677 = vst [vmem:[%s9100_s8 + $0x3a8] sm:$0xf] %v676_v42  ;;  %679 = vst [vmem:[%s9100_s8 + $0x3ac] sm:$0xf] %v678_v43  ;;  %v680_v44 = vld [vmem:[%s9096_s7 + $0xec0] sm:$0xf] }
  0xaf   : > { %v682_v45 = vld [vmem:[%s9096_s7 + $0xed0] sm:$0xf]  ;;  %v684_v46 = vld [vmem:[%s9096_s7 + $0xee0] sm:$0xf]  ;;  %681 = vst [vmem:[%s9100_s8 + $0x3b0] sm:$0xf] %v680_v44 }
  0xb0   : > { %683 = vst [vmem:[%s9100_s8 + $0x3b4] sm:$0xf] %v682_v45  ;;  %685 = vst [vmem:[%s9100_s8 + $0x3b8] sm:$0xf] %v684_v46  ;;  %v686_v47 = vld [vmem:[%s9096_s7 + $0xef0] sm:$0xf] }
  0xb1   : > { %v688_v48 = vld [vmem:[%s9096_s7 + $0xf00] sm:$0xf]  ;;  %v690_v49 = vld [vmem:[%s9096_s7 + $0xf10] sm:$0xf]  ;;  %687 = vst [vmem:[%s9100_s8 + $0x3bc] sm:$0xf] %v686_v47 }
  0xb2   : > { %689 = vst [vmem:[%s9100_s8 + $0x3c0] sm:$0xf] %v688_v48  ;;  %691 = vst [vmem:[%s9100_s8 + $0x3c4] sm:$0xf] %v690_v49  ;;  %v692_v50 = vld [vmem:[%s9096_s7 + $0xf20] sm:$0xf] }
  0xb3   : > { %v694_v51 = vld [vmem:[%s9096_s7 + $0xf30] sm:$0xf]  ;;  %v696_v52 = vld [vmem:[%s9096_s7 + $0xf40] sm:$0xf]  ;;  %693 = vst [vmem:[%s9100_s8 + $0x3c8] sm:$0xf] %v692_v50 }
  0xb4   : > { %695 = vst [vmem:[%s9100_s8 + $0x3cc] sm:$0xf] %v694_v51  ;;  %697 = vst [vmem:[%s9100_s8 + $0x3d0] sm:$0xf] %v696_v52  ;;  %v698_v53 = vld [vmem:[%s9096_s7 + $0xf50] sm:$0xf] }
  0xb5   : > { %v700_v54 = vld [vmem:[%s9096_s7 + $0xf60] sm:$0xf]  ;;  %v702_v55 = vld [vmem:[%s9096_s7 + $0xf70] sm:$0xf]  ;;  %699 = vst [vmem:[%s9100_s8 + $0x3d4] sm:$0xf] %v698_v53 }
  0xb6   : > { %701 = vst [vmem:[%s9100_s8 + $0x3d8] sm:$0xf] %v700_v54  ;;  %703 = vst [vmem:[%s9100_s8 + $0x3dc] sm:$0xf] %v702_v55  ;;  %v704_v56 = vld [vmem:[%s9096_s7 + $0xf80] sm:$0xf] }
  0xb7   : > { %v706_v57 = vld [vmem:[%s9096_s7 + $0xf90] sm:$0xf]  ;;  %v708_v58 = vld [vmem:[%s9096_s7 + $0xfa0] sm:$0xf]  ;;  %705 = vst [vmem:[%s9100_s8 + $0x3e0] sm:$0xf] %v704_v56 }
  0xb8   : > { %707 = vst [vmem:[%s9100_s8 + $0x3e4] sm:$0xf] %v706_v57  ;;  %709 = vst [vmem:[%s9100_s8 + $0x3e8] sm:$0xf] %v708_v58  ;;  %v710_v59 = vld [vmem:[%s9096_s7 + $0xfb0] sm:$0xf] }
  0xb9   : > { %v712_v60 = vld [vmem:[%s9096_s7 + $0xfc0] sm:$0xf]  ;;  %v714_v61 = vld [vmem:[%s9096_s7 + $0xfd0] sm:$0xf]  ;;  %711 = vst [vmem:[%s9100_s8 + $0x3ec] sm:$0xf] %v710_v59 }
  0xba   : > { %713 = vst [vmem:[%s9100_s8 + $0x3f0] sm:$0xf] %v712_v60  ;;  %715 = vst [vmem:[%s9100_s8 + $0x3f4] sm:$0xf] %v714_v61  ;;  %v716_v62 = vld [vmem:[%s9096_s7 + $0xfe0] sm:$0xf] }
  0xbb   : > { %v718_v63 = vld [vmem:[%s9096_s7 + $0xff0] sm:$0xf]  ;;  %v720_v0 = vld [vmem:[%s9096_s7 + $0x1000] sm:$0xf]  ;;  %717 = vst [vmem:[%s9100_s8 + $0x3f8] sm:$0xf] %v716_v62 }
  0xbc   : > { %719 = vst [vmem:[%s9100_s8 + $0x3fc] sm:$0xf] %v718_v63  ;;  %721 = vst [vmem:[%s9100_s8 + $0x400] sm:$0xf] %v720_v0  ;;  %v722_v1 = vld [vmem:[%s9096_s7 + $0x1010] sm:$0xf] }
  0xbd   : > { %v724_v2 = vld [vmem:[%s9096_s7 + $0x1020] sm:$0xf]  ;;  %v726_v3 = vld [vmem:[%s9096_s7 + $0x1030] sm:$0xf]  ;;  %723 = vst [vmem:[%s9100_s8 + $0x404] sm:$0xf] %v722_v1 }
  0xbe   : > { %725 = vst [vmem:[%s9100_s8 + $0x408] sm:$0xf] %v724_v2  ;;  %727 = vst [vmem:[%s9100_s8 + $0x40c] sm:$0xf] %v726_v3  ;;  %v728_v4 = vld [vmem:[%s9096_s7 + $0x1040] sm:$0xf] }
  0xbf   : > { %v730_v5 = vld [vmem:[%s9096_s7 + $0x1050] sm:$0xf]  ;;  %v732_v6 = vld [vmem:[%s9096_s7 + $0x1060] sm:$0xf]  ;;  %729 = vst [vmem:[%s9100_s8 + $0x410] sm:$0xf] %v728_v4 }
  0xc0   : > { %731 = vst [vmem:[%s9100_s8 + $0x414] sm:$0xf] %v730_v5  ;;  %733 = vst [vmem:[%s9100_s8 + $0x418] sm:$0xf] %v732_v6  ;;  %v734_v7 = vld [vmem:[%s9096_s7 + $0x1070] sm:$0xf] }
  0xc1   : > { %v736_v8 = vld [vmem:[%s9096_s7 + $0x1080] sm:$0xf]  ;;  %v738_v9 = vld [vmem:[%s9096_s7 + $0x1090] sm:$0xf]  ;;  %735 = vst [vmem:[%s9100_s8 + $0x41c] sm:$0xf] %v734_v7 }
  0xc2   : > { %737 = vst [vmem:[%s9100_s8 + $0x420] sm:$0xf] %v736_v8  ;;  %739 = vst [vmem:[%s9100_s8 + $0x424] sm:$0xf] %v738_v9  ;;  %v740_v10 = vld [vmem:[%s9096_s7 + $0x10a0] sm:$0xf] }
  0xc3   : > { %v742_v11 = vld [vmem:[%s9096_s7 + $0x10b0] sm:$0xf]  ;;  %v744_v12 = vld [vmem:[%s9096_s7 + $0x10c0] sm:$0xf]  ;;  %741 = vst [vmem:[%s9100_s8 + $0x428] sm:$0xf] %v740_v10 }
  0xc4   : > { %743 = vst [vmem:[%s9100_s8 + $0x42c] sm:$0xf] %v742_v11  ;;  %745 = vst [vmem:[%s9100_s8 + $0x430] sm:$0xf] %v744_v12  ;;  %v746_v13 = vld [vmem:[%s9096_s7 + $0x10d0] sm:$0xf] }
  0xc5   : > { %v748_v14 = vld [vmem:[%s9096_s7 + $0x10e0] sm:$0xf]  ;;  %v750_v15 = vld [vmem:[%s9096_s7 + $0x10f0] sm:$0xf]  ;;  %747 = vst [vmem:[%s9100_s8 + $0x434] sm:$0xf] %v746_v13 }
  0xc6   : > { %749 = vst [vmem:[%s9100_s8 + $0x438] sm:$0xf] %v748_v14  ;;  %751 = vst [vmem:[%s9100_s8 + $0x43c] sm:$0xf] %v750_v15  ;;  %v752_v16 = vld [vmem:[%s9096_s7 + $0x1100] sm:$0xf] }
  0xc7   : > { %v754_v17 = vld [vmem:[%s9096_s7 + $0x1110] sm:$0xf]  ;;  %v756_v18 = vld [vmem:[%s9096_s7 + $0x1120] sm:$0xf]  ;;  %753 = vst [vmem:[%s9100_s8 + $0x440] sm:$0xf] %v752_v16 }
  0xc8   : > { %755 = vst [vmem:[%s9100_s8 + $0x444] sm:$0xf] %v754_v17  ;;  %757 = vst [vmem:[%s9100_s8 + $0x448] sm:$0xf] %v756_v18  ;;  %v758_v19 = vld [vmem:[%s9096_s7 + $0x1130] sm:$0xf] }
  0xc9   : > { %v760_v20 = vld [vmem:[%s9096_s7 + $0x1140] sm:$0xf]  ;;  %v762_v21 = vld [vmem:[%s9096_s7 + $0x1150] sm:$0xf]  ;;  %759 = vst [vmem:[%s9100_s8 + $0x44c] sm:$0xf] %v758_v19 }
  0xca   : > { %761 = vst [vmem:[%s9100_s8 + $0x450] sm:$0xf] %v760_v20  ;;  %763 = vst [vmem:[%s9100_s8 + $0x454] sm:$0xf] %v762_v21  ;;  %v764_v22 = vld [vmem:[%s9096_s7 + $0x1160] sm:$0xf] }
  0xcb   : > { %v766_v23 = vld [vmem:[%s9096_s7 + $0x1170] sm:$0xf]  ;;  %v768_v24 = vld [vmem:[%s9096_s7 + $0x1180] sm:$0xf]  ;;  %765 = vst [vmem:[%s9100_s8 + $0x458] sm:$0xf] %v764_v22 }
  0xcc   : > { %767 = vst [vmem:[%s9100_s8 + $0x45c] sm:$0xf] %v766_v23  ;;  %769 = vst [vmem:[%s9100_s8 + $0x460] sm:$0xf] %v768_v24  ;;  %v770_v25 = vld [vmem:[%s9096_s7 + $0x1190] sm:$0xf] }
  0xcd   : > { %v772_v26 = vld [vmem:[%s9096_s7 + $0x11a0] sm:$0xf]  ;;  %v774_v27 = vld [vmem:[%s9096_s7 + $0x11b0] sm:$0xf]  ;;  %771 = vst [vmem:[%s9100_s8 + $0x464] sm:$0xf] %v770_v25 }
  0xce   : > { %773 = vst [vmem:[%s9100_s8 + $0x468] sm:$0xf] %v772_v26  ;;  %775 = vst [vmem:[%s9100_s8 + $0x46c] sm:$0xf] %v774_v27  ;;  %v776_v28 = vld [vmem:[%s9096_s7 + $0x11c0] sm:$0xf] }
  0xcf   : > { %v778_v29 = vld [vmem:[%s9096_s7 + $0x11d0] sm:$0xf]  ;;  %v780_v30 = vld [vmem:[%s9096_s7 + $0x11e0] sm:$0xf]  ;;  %777 = vst [vmem:[%s9100_s8 + $0x470] sm:$0xf] %v776_v28 }
  0xd0   : > { %779 = vst [vmem:[%s9100_s8 + $0x474] sm:$0xf] %v778_v29  ;;  %781 = vst [vmem:[%s9100_s8 + $0x478] sm:$0xf] %v780_v30  ;;  %v782_v31 = vld [vmem:[%s9096_s7 + $0x11f0] sm:$0xf] }
  0xd1   : > { %v784_v32 = vld [vmem:[%s9096_s7 + $0x1200] sm:$0xf]  ;;  %v786_v33 = vld [vmem:[%s9096_s7 + $0x1210] sm:$0xf]  ;;  %783 = vst [vmem:[%s9100_s8 + $0x47c] sm:$0xf] %v782_v31 }
  0xd2   : > { %785 = vst [vmem:[%s9100_s8 + $0x480] sm:$0xf] %v784_v32  ;;  %787 = vst [vmem:[%s9100_s8 + $0x484] sm:$0xf] %v786_v33  ;;  %v788_v34 = vld [vmem:[%s9096_s7 + $0x1220] sm:$0xf] }
  0xd3   : > { %v790_v35 = vld [vmem:[%s9096_s7 + $0x1230] sm:$0xf]  ;;  %v792_v36 = vld [vmem:[%s9096_s7 + $0x1240] sm:$0xf]  ;;  %789 = vst [vmem:[%s9100_s8 + $0x488] sm:$0xf] %v788_v34 }
  0xd4   : > { %791 = vst [vmem:[%s9100_s8 + $0x48c] sm:$0xf] %v790_v35  ;;  %793 = vst [vmem:[%s9100_s8 + $0x490] sm:$0xf] %v792_v36  ;;  %v794_v37 = vld [vmem:[%s9096_s7 + $0x1250] sm:$0xf] }
  0xd5   : > { %v796_v38 = vld [vmem:[%s9096_s7 + $0x1260] sm:$0xf]  ;;  %v798_v39 = vld [vmem:[%s9096_s7 + $0x1270] sm:$0xf]  ;;  %795 = vst [vmem:[%s9100_s8 + $0x494] sm:$0xf] %v794_v37 }
  0xd6   : > { %797 = vst [vmem:[%s9100_s8 + $0x498] sm:$0xf] %v796_v38  ;;  %799 = vst [vmem:[%s9100_s8 + $0x49c] sm:$0xf] %v798_v39  ;;  %v800_v40 = vld [vmem:[%s9096_s7 + $0x1280] sm:$0xf] }
  0xd7   : > { %v802_v41 = vld [vmem:[%s9096_s7 + $0x1290] sm:$0xf]  ;;  %v804_v42 = vld [vmem:[%s9096_s7 + $0x12a0] sm:$0xf]  ;;  %801 = vst [vmem:[%s9100_s8 + $0x4a0] sm:$0xf] %v800_v40 }
  0xd8   : > { %803 = vst [vmem:[%s9100_s8 + $0x4a4] sm:$0xf] %v802_v41  ;;  %805 = vst [vmem:[%s9100_s8 + $0x4a8] sm:$0xf] %v804_v42  ;;  %v806_v43 = vld [vmem:[%s9096_s7 + $0x12b0] sm:$0xf] }
  0xd9   : > { %v808_v44 = vld [vmem:[%s9096_s7 + $0x12c0] sm:$0xf]  ;;  %v810_v45 = vld [vmem:[%s9096_s7 + $0x12d0] sm:$0xf]  ;;  %807 = vst [vmem:[%s9100_s8 + $0x4ac] sm:$0xf] %v806_v43 }
  0xda   : > { %809 = vst [vmem:[%s9100_s8 + $0x4b0] sm:$0xf] %v808_v44  ;;  %811 = vst [vmem:[%s9100_s8 + $0x4b4] sm:$0xf] %v810_v45  ;;  %v812_v46 = vld [vmem:[%s9096_s7 + $0x12e0] sm:$0xf] }
  0xdb   : > { %v814_v47 = vld [vmem:[%s9096_s7 + $0x12f0] sm:$0xf]  ;;  %v816_v48 = vld [vmem:[%s9096_s7 + $0x1300] sm:$0xf]  ;;  %813 = vst [vmem:[%s9100_s8 + $0x4b8] sm:$0xf] %v812_v46 }
  0xdc   : > { %815 = vst [vmem:[%s9100_s8 + $0x4bc] sm:$0xf] %v814_v47  ;;  %817 = vst [vmem:[%s9100_s8 + $0x4c0] sm:$0xf] %v816_v48  ;;  %v818_v49 = vld [vmem:[%s9096_s7 + $0x1310] sm:$0xf] }
  0xdd   : > { %v820_v50 = vld [vmem:[%s9096_s7 + $0x1320] sm:$0xf]  ;;  %v822_v51 = vld [vmem:[%s9096_s7 + $0x1330] sm:$0xf]  ;;  %819 = vst [vmem:[%s9100_s8 + $0x4c4] sm:$0xf] %v818_v49 }
  0xde   : > { %821 = vst [vmem:[%s9100_s8 + $0x4c8] sm:$0xf] %v820_v50  ;;  %823 = vst [vmem:[%s9100_s8 + $0x4cc] sm:$0xf] %v822_v51  ;;  %v824_v52 = vld [vmem:[%s9096_s7 + $0x1340] sm:$0xf] }
  0xdf   : > { %v826_v53 = vld [vmem:[%s9096_s7 + $0x1350] sm:$0xf]  ;;  %v828_v54 = vld [vmem:[%s9096_s7 + $0x1360] sm:$0xf]  ;;  %825 = vst [vmem:[%s9100_s8 + $0x4d0] sm:$0xf] %v824_v52 }
  0xe0   : > { %827 = vst [vmem:[%s9100_s8 + $0x4d4] sm:$0xf] %v826_v53  ;;  %829 = vst [vmem:[%s9100_s8 + $0x4d8] sm:$0xf] %v828_v54  ;;  %v830_v55 = vld [vmem:[%s9096_s7 + $0x1370] sm:$0xf] }
  0xe1   : > { %v832_v56 = vld [vmem:[%s9096_s7 + $0x1380] sm:$0xf]  ;;  %v834_v57 = vld [vmem:[%s9096_s7 + $0x1390] sm:$0xf]  ;;  %831 = vst [vmem:[%s9100_s8 + $0x4dc] sm:$0xf] %v830_v55 }
  0xe2   : > { %833 = vst [vmem:[%s9100_s8 + $0x4e0] sm:$0xf] %v832_v56  ;;  %835 = vst [vmem:[%s9100_s8 + $0x4e4] sm:$0xf] %v834_v57  ;;  %v836_v58 = vld [vmem:[%s9096_s7 + $0x13a0] sm:$0xf] }
  0xe3   : > { %v838_v59 = vld [vmem:[%s9096_s7 + $0x13b0] sm:$0xf]  ;;  %v840_v60 = vld [vmem:[%s9096_s7 + $0x13c0] sm:$0xf]  ;;  %837 = vst [vmem:[%s9100_s8 + $0x4e8] sm:$0xf] %v836_v58 }
  0xe4   : > { %839 = vst [vmem:[%s9100_s8 + $0x4ec] sm:$0xf] %v838_v59  ;;  %841 = vst [vmem:[%s9100_s8 + $0x4f0] sm:$0xf] %v840_v60  ;;  %v842_v61 = vld [vmem:[%s9096_s7 + $0x13d0] sm:$0xf] }
  0xe5   : > { %v844_v62 = vld [vmem:[%s9096_s7 + $0x13e0] sm:$0xf]  ;;  %v846_v63 = vld [vmem:[%s9096_s7 + $0x13f0] sm:$0xf]  ;;  %843 = vst [vmem:[%s9100_s8 + $0x4f4] sm:$0xf] %v842_v61 }
  0xe6   : > { %845 = vst [vmem:[%s9100_s8 + $0x4f8] sm:$0xf] %v844_v62  ;;  %847 = vst [vmem:[%s9100_s8 + $0x4fc] sm:$0xf] %v846_v63  ;;  %v848_v0 = vld [vmem:[%s9096_s7 + $0x1400] sm:$0xf] }
  0xe7   : > { %v850_v1 = vld [vmem:[%s9096_s7 + $0x1410] sm:$0xf]  ;;  %v852_v2 = vld [vmem:[%s9096_s7 + $0x1420] sm:$0xf]  ;;  %849 = vst [vmem:[%s9100_s8 + $0x500] sm:$0xf] %v848_v0 }
  0xe8   : > { %851 = vst [vmem:[%s9100_s8 + $0x504] sm:$0xf] %v850_v1  ;;  %853 = vst [vmem:[%s9100_s8 + $0x508] sm:$0xf] %v852_v2  ;;  %v854_v3 = vld [vmem:[%s9096_s7 + $0x1430] sm:$0xf] }
  0xe9   : > { %v856_v4 = vld [vmem:[%s9096_s7 + $0x1440] sm:$0xf]  ;;  %v858_v5 = vld [vmem:[%s9096_s7 + $0x1450] sm:$0xf]  ;;  %855 = vst [vmem:[%s9100_s8 + $0x50c] sm:$0xf] %v854_v3 }
  0xea   : > { %857 = vst [vmem:[%s9100_s8 + $0x510] sm:$0xf] %v856_v4  ;;  %859 = vst [vmem:[%s9100_s8 + $0x514] sm:$0xf] %v858_v5  ;;  %v860_v6 = vld [vmem:[%s9096_s7 + $0x1460] sm:$0xf] }
  0xeb   : > { %v862_v7 = vld [vmem:[%s9096_s7 + $0x1470] sm:$0xf]  ;;  %v864_v8 = vld [vmem:[%s9096_s7 + $0x1480] sm:$0xf]  ;;  %861 = vst [vmem:[%s9100_s8 + $0x518] sm:$0xf] %v860_v6 }
  0xec   : > { %863 = vst [vmem:[%s9100_s8 + $0x51c] sm:$0xf] %v862_v7  ;;  %865 = vst [vmem:[%s9100_s8 + $0x520] sm:$0xf] %v864_v8  ;;  %v866_v9 = vld [vmem:[%s9096_s7 + $0x1490] sm:$0xf] }
  0xed   : > { %v868_v10 = vld [vmem:[%s9096_s7 + $0x14a0] sm:$0xf]  ;;  %v870_v11 = vld [vmem:[%s9096_s7 + $0x14b0] sm:$0xf]  ;;  %867 = vst [vmem:[%s9100_s8 + $0x524] sm:$0xf] %v866_v9 }
  0xee   : > { %869 = vst [vmem:[%s9100_s8 + $0x528] sm:$0xf] %v868_v10  ;;  %871 = vst [vmem:[%s9100_s8 + $0x52c] sm:$0xf] %v870_v11  ;;  %v872_v12 = vld [vmem:[%s9096_s7 + $0x14c0] sm:$0xf] }
  0xef   : > { %v874_v13 = vld [vmem:[%s9096_s7 + $0x14d0] sm:$0xf]  ;;  %v876_v14 = vld [vmem:[%s9096_s7 + $0x14e0] sm:$0xf]  ;;  %873 = vst [vmem:[%s9100_s8 + $0x530] sm:$0xf] %v872_v12 }
  0xf0   : > { %875 = vst [vmem:[%s9100_s8 + $0x534] sm:$0xf] %v874_v13  ;;  %877 = vst [vmem:[%s9100_s8 + $0x538] sm:$0xf] %v876_v14  ;;  %v878_v15 = vld [vmem:[%s9096_s7 + $0x14f0] sm:$0xf] }
  0xf1   : > { %v880_v16 = vld [vmem:[%s9096_s7 + $0x1500] sm:$0xf]  ;;  %v882_v17 = vld [vmem:[%s9096_s7 + $0x1510] sm:$0xf]  ;;  %879 = vst [vmem:[%s9100_s8 + $0x53c] sm:$0xf] %v878_v15 }
  0xf2   : > { %881 = vst [vmem:[%s9100_s8 + $0x540] sm:$0xf] %v880_v16  ;;  %883 = vst [vmem:[%s9100_s8 + $0x544] sm:$0xf] %v882_v17  ;;  %v884_v18 = vld [vmem:[%s9096_s7 + $0x1520] sm:$0xf] }
  0xf3   : > { %v886_v19 = vld [vmem:[%s9096_s7 + $0x1530] sm:$0xf]  ;;  %v888_v20 = vld [vmem:[%s9096_s7 + $0x1540] sm:$0xf]  ;;  %885 = vst [vmem:[%s9100_s8 + $0x548] sm:$0xf] %v884_v18 }
  0xf4   : > { %887 = vst [vmem:[%s9100_s8 + $0x54c] sm:$0xf] %v886_v19  ;;  %889 = vst [vmem:[%s9100_s8 + $0x550] sm:$0xf] %v888_v20  ;;  %v890_v21 = vld [vmem:[%s9096_s7 + $0x1550] sm:$0xf] }
  0xf5   : > { %v892_v22 = vld [vmem:[%s9096_s7 + $0x1560] sm:$0xf]  ;;  %v894_v23 = vld [vmem:[%s9096_s7 + $0x1570] sm:$0xf]  ;;  %891 = vst [vmem:[%s9100_s8 + $0x554] sm:$0xf] %v890_v21 }
  0xf6   : > { %893 = vst [vmem:[%s9100_s8 + $0x558] sm:$0xf] %v892_v22  ;;  %895 = vst [vmem:[%s9100_s8 + $0x55c] sm:$0xf] %v894_v23  ;;  %v896_v24 = vld [vmem:[%s9096_s7 + $0x1580] sm:$0xf] }
  0xf7   : > { %v898_v25 = vld [vmem:[%s9096_s7 + $0x1590] sm:$0xf]  ;;  %v900_v26 = vld [vmem:[%s9096_s7 + $0x15a0] sm:$0xf]  ;;  %897 = vst [vmem:[%s9100_s8 + $0x560] sm:$0xf] %v896_v24 }
  0xf8   : > { %899 = vst [vmem:[%s9100_s8 + $0x564] sm:$0xf] %v898_v25  ;;  %901 = vst [vmem:[%s9100_s8 + $0x568] sm:$0xf] %v900_v26  ;;  %v902_v27 = vld [vmem:[%s9096_s7 + $0x15b0] sm:$0xf] }
  0xf9   : > { %v904_v28 = vld [vmem:[%s9096_s7 + $0x15c0] sm:$0xf]  ;;  %v906_v29 = vld [vmem:[%s9096_s7 + $0x15d0] sm:$0xf]  ;;  %903 = vst [vmem:[%s9100_s8 + $0x56c] sm:$0xf] %v902_v27 }
  0xfa   : > { %905 = vst [vmem:[%s9100_s8 + $0x570] sm:$0xf] %v904_v28  ;;  %907 = vst [vmem:[%s9100_s8 + $0x574] sm:$0xf] %v906_v29  ;;  %v908_v30 = vld [vmem:[%s9096_s7 + $0x15e0] sm:$0xf] }
  0xfb   : > { %v910_v31 = vld [vmem:[%s9096_s7 + $0x15f0] sm:$0xf]  ;;  %v912_v32 = vld [vmem:[%s9096_s7 + $0x1600] sm:$0xf]  ;;  %909 = vst [vmem:[%s9100_s8 + $0x578] sm:$0xf] %v908_v30 }
  0xfc   : > { %911 = vst [vmem:[%s9100_s8 + $0x57c] sm:$0xf] %v910_v31  ;;  %913 = vst [vmem:[%s9100_s8 + $0x580] sm:$0xf] %v912_v32  ;;  %v914_v33 = vld [vmem:[%s9096_s7 + $0x1610] sm:$0xf] }
  0xfd   : > { %v916_v34 = vld [vmem:[%s9096_s7 + $0x1620] sm:$0xf]  ;;  %v918_v35 = vld [vmem:[%s9096_s7 + $0x1630] sm:$0xf]  ;;  %915 = vst [vmem:[%s9100_s8 + $0x584] sm:$0xf] %v914_v33 }
  0xfe   : > { %917 = vst [vmem:[%s9100_s8 + $0x588] sm:$0xf] %v916_v34  ;;  %919 = vst [vmem:[%s9100_s8 + $0x58c] sm:$0xf] %v918_v35  ;;  %v920_v36 = vld [vmem:[%s9096_s7 + $0x1640] sm:$0xf] }
  0xff   : > { %v922_v37 = vld [vmem:[%s9096_s7 + $0x1650] sm:$0xf]  ;;  %v924_v38 = vld [vmem:[%s9096_s7 + $0x1660] sm:$0xf]  ;;  %921 = vst [vmem:[%s9100_s8 + $0x590] sm:$0xf] %v920_v36 }
 0x100   : > { %923 = vst [vmem:[%s9100_s8 + $0x594] sm:$0xf] %v922_v37  ;;  %925 = vst [vmem:[%s9100_s8 + $0x598] sm:$0xf] %v924_v38  ;;  %v926_v39 = vld [vmem:[%s9096_s7 + $0x1670] sm:$0xf] }
 0x101   : > { %v928_v40 = vld [vmem:[%s9096_s7 + $0x1680] sm:$0xf]  ;;  %v930_v41 = vld [vmem:[%s9096_s7 + $0x1690] sm:$0xf]  ;;  %927 = vst [vmem:[%s9100_s8 + $0x59c] sm:$0xf] %v926_v39 }
 0x102   : > { %929 = vst [vmem:[%s9100_s8 + $0x5a0] sm:$0xf] %v928_v40  ;;  %931 = vst [vmem:[%s9100_s8 + $0x5a4] sm:$0xf] %v930_v41  ;;  %v932_v42 = vld [vmem:[%s9096_s7 + $0x16a0] sm:$0xf] }
 0x103   : > { %v934_v43 = vld [vmem:[%s9096_s7 + $0x16b0] sm:$0xf]  ;;  %v936_v44 = vld [vmem:[%s9096_s7 + $0x16c0] sm:$0xf]  ;;  %933 = vst [vmem:[%s9100_s8 + $0x5a8] sm:$0xf] %v932_v42 }
 0x104   : > { %935 = vst [vmem:[%s9100_s8 + $0x5ac] sm:$0xf] %v934_v43  ;;  %937 = vst [vmem:[%s9100_s8 + $0x5b0] sm:$0xf] %v936_v44  ;;  %v938_v45 = vld [vmem:[%s9096_s7 + $0x16d0] sm:$0xf] }
 0x105   : > { %v940_v46 = vld [vmem:[%s9096_s7 + $0x16e0] sm:$0xf]  ;;  %v942_v47 = vld [vmem:[%s9096_s7 + $0x16f0] sm:$0xf]  ;;  %939 = vst [vmem:[%s9100_s8 + $0x5b4] sm:$0xf] %v938_v45 }
 0x106   : > { %941 = vst [vmem:[%s9100_s8 + $0x5b8] sm:$0xf] %v940_v46  ;;  %943 = vst [vmem:[%s9100_s8 + $0x5bc] sm:$0xf] %v942_v47  ;;  %v944_v48 = vld [vmem:[%s9096_s7 + $0x1700] sm:$0xf] }
 0x107   : > { %v946_v49 = vld [vmem:[%s9096_s7 + $0x1710] sm:$0xf]  ;;  %v948_v50 = vld [vmem:[%s9096_s7 + $0x1720] sm:$0xf]  ;;  %945 = vst [vmem:[%s9100_s8 + $0x5c0] sm:$0xf] %v944_v48 }
 0x108   : > { %947 = vst [vmem:[%s9100_s8 + $0x5c4] sm:$0xf] %v946_v49  ;;  %949 = vst [vmem:[%s9100_s8 + $0x5c8] sm:$0xf] %v948_v50  ;;  %v950_v51 = vld [vmem:[%s9096_s7 + $0x1730] sm:$0xf] }
 0x109   : > { %v952_v52 = vld [vmem:[%s9096_s7 + $0x1740] sm:$0xf]  ;;  %v954_v53 = vld [vmem:[%s9096_s7 + $0x1750] sm:$0xf]  ;;  %951 = vst [vmem:[%s9100_s8 + $0x5cc] sm:$0xf] %v950_v51 }
 0x10a   : > { %953 = vst [vmem:[%s9100_s8 + $0x5d0] sm:$0xf] %v952_v52  ;;  %955 = vst [vmem:[%s9100_s8 + $0x5d4] sm:$0xf] %v954_v53  ;;  %v956_v54 = vld [vmem:[%s9096_s7 + $0x1760] sm:$0xf] }
 0x10b   : > { %v958_v55 = vld [vmem:[%s9096_s7 + $0x1770] sm:$0xf]  ;;  %v960_v56 = vld [vmem:[%s9096_s7 + $0x1780] sm:$0xf]  ;;  %957 = vst [vmem:[%s9100_s8 + $0x5d8] sm:$0xf] %v956_v54 }
 0x10c   : > { %959 = vst [vmem:[%s9100_s8 + $0x5dc] sm:$0xf] %v958_v55  ;;  %961 = vst [vmem:[%s9100_s8 + $0x5e0] sm:$0xf] %v960_v56  ;;  %v962_v57 = vld [vmem:[%s9096_s7 + $0x1790] sm:$0xf] }
 0x10d   : > { %v964_v58 = vld [vmem:[%s9096_s7 + $0x17a0] sm:$0xf]  ;;  %v966_v59 = vld [vmem:[%s9096_s7 + $0x17b0] sm:$0xf]  ;;  %963 = vst [vmem:[%s9100_s8 + $0x5e4] sm:$0xf] %v962_v57 }
 0x10e   : > { %965 = vst [vmem:[%s9100_s8 + $0x5e8] sm:$0xf] %v964_v58  ;;  %967 = vst [vmem:[%s9100_s8 + $0x5ec] sm:$0xf] %v966_v59  ;;  %v968_v60 = vld [vmem:[%s9096_s7 + $0x17c0] sm:$0xf] }
 0x10f   : > { %v970_v61 = vld [vmem:[%s9096_s7 + $0x17d0] sm:$0xf]  ;;  %v972_v62 = vld [vmem:[%s9096_s7 + $0x17e0] sm:$0xf]  ;;  %969 = vst [vmem:[%s9100_s8 + $0x5f0] sm:$0xf] %v968_v60 }
 0x110   : > { %971 = vst [vmem:[%s9100_s8 + $0x5f4] sm:$0xf] %v970_v61  ;;  %973 = vst [vmem:[%s9100_s8 + $0x5f8] sm:$0xf] %v972_v62  ;;  %v974_v63 = vld [vmem:[%s9096_s7 + $0x17f0] sm:$0xf] }
 0x111   : > { %v976_v0 = vld [vmem:[%s9096_s7 + $0x1800] sm:$0xf]  ;;  %v978_v1 = vld [vmem:[%s9096_s7 + $0x1810] sm:$0xf]  ;;  %975 = vst [vmem:[%s9100_s8 + $0x5fc] sm:$0xf] %v974_v63 }
 0x112   : > { %977 = vst [vmem:[%s9100_s8 + $0x600] sm:$0xf] %v976_v0  ;;  %979 = vst [vmem:[%s9100_s8 + $0x604] sm:$0xf] %v978_v1  ;;  %v980_v2 = vld [vmem:[%s9096_s7 + $0x1820] sm:$0xf] }
 0x113   : > { %v982_v3 = vld [vmem:[%s9096_s7 + $0x1830] sm:$0xf]  ;;  %v984_v4 = vld [vmem:[%s9096_s7 + $0x1840] sm:$0xf]  ;;  %981 = vst [vmem:[%s9100_s8 + $0x608] sm:$0xf] %v980_v2 }
 0x114   : > { %983 = vst [vmem:[%s9100_s8 + $0x60c] sm:$0xf] %v982_v3  ;;  %985 = vst [vmem:[%s9100_s8 + $0x610] sm:$0xf] %v984_v4  ;;  %v986_v5 = vld [vmem:[%s9096_s7 + $0x1850] sm:$0xf] }
 0x115   : > { %v988_v6 = vld [vmem:[%s9096_s7 + $0x1860] sm:$0xf]  ;;  %v990_v7 = vld [vmem:[%s9096_s7 + $0x1870] sm:$0xf]  ;;  %987 = vst [vmem:[%s9100_s8 + $0x614] sm:$0xf] %v986_v5 }
 0x116   : > { %989 = vst [vmem:[%s9100_s8 + $0x618] sm:$0xf] %v988_v6  ;;  %991 = vst [vmem:[%s9100_s8 + $0x61c] sm:$0xf] %v990_v7  ;;  %v992_v8 = vld [vmem:[%s9096_s7 + $0x1880] sm:$0xf] }
 0x117   : > { %v994_v9 = vld [vmem:[%s9096_s7 + $0x1890] sm:$0xf]  ;;  %v996_v10 = vld [vmem:[%s9096_s7 + $0x18a0] sm:$0xf]  ;;  %993 = vst [vmem:[%s9100_s8 + $0x620] sm:$0xf] %v992_v8 }
 0x118   : > { %995 = vst [vmem:[%s9100_s8 + $0x624] sm:$0xf] %v994_v9  ;;  %997 = vst [vmem:[%s9100_s8 + $0x628] sm:$0xf] %v996_v10  ;;  %v998_v11 = vld [vmem:[%s9096_s7 + $0x18b0] sm:$0xf] }
 0x119   : > { %v1000_v12 = vld [vmem:[%s9096_s7 + $0x18c0] sm:$0xf]  ;;  %v1002_v13 = vld [vmem:[%s9096_s7 + $0x18d0] sm:$0xf]  ;;  %999 = vst [vmem:[%s9100_s8 + $0x62c] sm:$0xf] %v998_v11 }
 0x11a   : > { %1001 = vst [vmem:[%s9100_s8 + $0x630] sm:$0xf] %v1000_v12  ;;  %1003 = vst [vmem:[%s9100_s8 + $0x634] sm:$0xf] %v1002_v13  ;;  %v1004_v14 = vld [vmem:[%s9096_s7 + $0x18e0] sm:$0xf] }
 0x11b   : > { %v1006_v15 = vld [vmem:[%s9096_s7 + $0x18f0] sm:$0xf]  ;;  %v1008_v16 = vld [vmem:[%s9096_s7 + $0x1900] sm:$0xf]  ;;  %1005 = vst [vmem:[%s9100_s8 + $0x638] sm:$0xf] %v1004_v14 }
 0x11c   : > { %1007 = vst [vmem:[%s9100_s8 + $0x63c] sm:$0xf] %v1006_v15  ;;  %1009 = vst [vmem:[%s9100_s8 + $0x640] sm:$0xf] %v1008_v16  ;;  %v1010_v17 = vld [vmem:[%s9096_s7 + $0x1910] sm:$0xf] }
 0x11d   : > { %v1012_v18 = vld [vmem:[%s9096_s7 + $0x1920] sm:$0xf]  ;;  %v1014_v19 = vld [vmem:[%s9096_s7 + $0x1930] sm:$0xf]  ;;  %1011 = vst [vmem:[%s9100_s8 + $0x644] sm:$0xf] %v1010_v17 }
 0x11e   : > { %1013 = vst [vmem:[%s9100_s8 + $0x648] sm:$0xf] %v1012_v18  ;;  %1015 = vst [vmem:[%s9100_s8 + $0x64c] sm:$0xf] %v1014_v19  ;;  %v1016_v20 = vld [vmem:[%s9096_s7 + $0x1940] sm:$0xf] }
 0x11f   : > { %v1018_v21 = vld [vmem:[%s9096_s7 + $0x1950] sm:$0xf]  ;;  %v1020_v22 = vld [vmem:[%s9096_s7 + $0x1960] sm:$0xf]  ;;  %1017 = vst [vmem:[%s9100_s8 + $0x650] sm:$0xf] %v1016_v20 }
 0x120   : > { %1019 = vst [vmem:[%s9100_s8 + $0x654] sm:$0xf] %v1018_v21  ;;  %1021 = vst [vmem:[%s9100_s8 + $0x658] sm:$0xf] %v1020_v22  ;;  %v1022_v23 = vld [vmem:[%s9096_s7 + $0x1970] sm:$0xf] }
 0x121   : > { %v1024_v24 = vld [vmem:[%s9096_s7 + $0x1980] sm:$0xf]  ;;  %v1026_v25 = vld [vmem:[%s9096_s7 + $0x1990] sm:$0xf]  ;;  %1023 = vst [vmem:[%s9100_s8 + $0x65c] sm:$0xf] %v1022_v23 }
 0x122   : > { %1025 = vst [vmem:[%s9100_s8 + $0x660] sm:$0xf] %v1024_v24  ;;  %1027 = vst [vmem:[%s9100_s8 + $0x664] sm:$0xf] %v1026_v25  ;;  %v1028_v26 = vld [vmem:[%s9096_s7 + $0x19a0] sm:$0xf] }
 0x123   : > { %v1030_v27 = vld [vmem:[%s9096_s7 + $0x19b0] sm:$0xf]  ;;  %v1032_v28 = vld [vmem:[%s9096_s7 + $0x19c0] sm:$0xf]  ;;  %1029 = vst [vmem:[%s9100_s8 + $0x668] sm:$0xf] %v1028_v26 }
 0x124   : > { %1031 = vst [vmem:[%s9100_s8 + $0x66c] sm:$0xf] %v1030_v27  ;;  %1033 = vst [vmem:[%s9100_s8 + $0x670] sm:$0xf] %v1032_v28  ;;  %v1034_v29 = vld [vmem:[%s9096_s7 + $0x19d0] sm:$0xf] }
 0x125   : > { %v1036_v30 = vld [vmem:[%s9096_s7 + $0x19e0] sm:$0xf]  ;;  %v1038_v31 = vld [vmem:[%s9096_s7 + $0x19f0] sm:$0xf]  ;;  %1035 = vst [vmem:[%s9100_s8 + $0x674] sm:$0xf] %v1034_v29 }
 0x126   : > { %1037 = vst [vmem:[%s9100_s8 + $0x678] sm:$0xf] %v1036_v30  ;;  %1039 = vst [vmem:[%s9100_s8 + $0x67c] sm:$0xf] %v1038_v31  ;;  %v1040_v32 = vld [vmem:[%s9096_s7 + $0x1a00] sm:$0xf] }
 0x127   : > { %v1042_v33 = vld [vmem:[%s9096_s7 + $0x1a10] sm:$0xf]  ;;  %v1044_v34 = vld [vmem:[%s9096_s7 + $0x1a20] sm:$0xf]  ;;  %1041 = vst [vmem:[%s9100_s8 + $0x680] sm:$0xf] %v1040_v32 }
 0x128   : > { %1043 = vst [vmem:[%s9100_s8 + $0x684] sm:$0xf] %v1042_v33  ;;  %1045 = vst [vmem:[%s9100_s8 + $0x688] sm:$0xf] %v1044_v34  ;;  %v1046_v35 = vld [vmem:[%s9096_s7 + $0x1a30] sm:$0xf] }
 0x129   : > { %v1048_v36 = vld [vmem:[%s9096_s7 + $0x1a40] sm:$0xf]  ;;  %v1050_v37 = vld [vmem:[%s9096_s7 + $0x1a50] sm:$0xf]  ;;  %1047 = vst [vmem:[%s9100_s8 + $0x68c] sm:$0xf] %v1046_v35 }
 0x12a   : > { %1049 = vst [vmem:[%s9100_s8 + $0x690] sm:$0xf] %v1048_v36  ;;  %1051 = vst [vmem:[%s9100_s8 + $0x694] sm:$0xf] %v1050_v37  ;;  %v1052_v38 = vld [vmem:[%s9096_s7 + $0x1a60] sm:$0xf] }
 0x12b   : > { %v1054_v39 = vld [vmem:[%s9096_s7 + $0x1a70] sm:$0xf]  ;;  %v1056_v40 = vld [vmem:[%s9096_s7 + $0x1a80] sm:$0xf]  ;;  %1053 = vst [vmem:[%s9100_s8 + $0x698] sm:$0xf] %v1052_v38 }
 0x12c   : > { %1055 = vst [vmem:[%s9100_s8 + $0x69c] sm:$0xf] %v1054_v39  ;;  %1057 = vst [vmem:[%s9100_s8 + $0x6a0] sm:$0xf] %v1056_v40  ;;  %v1058_v41 = vld [vmem:[%s9096_s7 + $0x1a90] sm:$0xf] }
 0x12d   : > { %v1060_v42 = vld [vmem:[%s9096_s7 + $0x1aa0] sm:$0xf]  ;;  %v1062_v43 = vld [vmem:[%s9096_s7 + $0x1ab0] sm:$0xf]  ;;  %1059 = vst [vmem:[%s9100_s8 + $0x6a4] sm:$0xf] %v1058_v41 }
 0x12e   : > { %1061 = vst [vmem:[%s9100_s8 + $0x6a8] sm:$0xf] %v1060_v42  ;;  %1063 = vst [vmem:[%s9100_s8 + $0x6ac] sm:$0xf] %v1062_v43  ;;  %v1064_v44 = vld [vmem:[%s9096_s7 + $0x1ac0] sm:$0xf] }
 0x12f   : > { %v1066_v45 = vld [vmem:[%s9096_s7 + $0x1ad0] sm:$0xf]  ;;  %v1068_v46 = vld [vmem:[%s9096_s7 + $0x1ae0] sm:$0xf]  ;;  %1065 = vst [vmem:[%s9100_s8 + $0x6b0] sm:$0xf] %v1064_v44 }
 0x130   : > { %1067 = vst [vmem:[%s9100_s8 + $0x6b4] sm:$0xf] %v1066_v45  ;;  %1069 = vst [vmem:[%s9100_s8 + $0x6b8] sm:$0xf] %v1068_v46  ;;  %v1070_v47 = vld [vmem:[%s9096_s7 + $0x1af0] sm:$0xf] }
 0x131   : > { %v1072_v48 = vld [vmem:[%s9096_s7 + $0x1b00] sm:$0xf]  ;;  %v1074_v49 = vld [vmem:[%s9096_s7 + $0x1b10] sm:$0xf]  ;;  %1071 = vst [vmem:[%s9100_s8 + $0x6bc] sm:$0xf] %v1070_v47 }
 0x132   : > { %1073 = vst [vmem:[%s9100_s8 + $0x6c0] sm:$0xf] %v1072_v48  ;;  %1075 = vst [vmem:[%s9100_s8 + $0x6c4] sm:$0xf] %v1074_v49  ;;  %v1076_v50 = vld [vmem:[%s9096_s7 + $0x1b20] sm:$0xf] }
 0x133   : > { %v1078_v51 = vld [vmem:[%s9096_s7 + $0x1b30] sm:$0xf]  ;;  %v1080_v52 = vld [vmem:[%s9096_s7 + $0x1b40] sm:$0xf]  ;;  %1077 = vst [vmem:[%s9100_s8 + $0x6c8] sm:$0xf] %v1076_v50 }
 0x134   : > { %1079 = vst [vmem:[%s9100_s8 + $0x6cc] sm:$0xf] %v1078_v51  ;;  %1081 = vst [vmem:[%s9100_s8 + $0x6d0] sm:$0xf] %v1080_v52  ;;  %v1082_v53 = vld [vmem:[%s9096_s7 + $0x1b50] sm:$0xf] }
 0x135   : > { %v1084_v54 = vld [vmem:[%s9096_s7 + $0x1b60] sm:$0xf]  ;;  %v1086_v55 = vld [vmem:[%s9096_s7 + $0x1b70] sm:$0xf]  ;;  %1083 = vst [vmem:[%s9100_s8 + $0x6d4] sm:$0xf] %v1082_v53 }
 0x136   : > { %1085 = vst [vmem:[%s9100_s8 + $0x6d8] sm:$0xf] %v1084_v54  ;;  %1087 = vst [vmem:[%s9100_s8 + $0x6dc] sm:$0xf] %v1086_v55  ;;  %v1088_v56 = vld [vmem:[%s9096_s7 + $0x1b80] sm:$0xf] }
 0x137   : > { %v1090_v57 = vld [vmem:[%s9096_s7 + $0x1b90] sm:$0xf]  ;;  %v1092_v58 = vld [vmem:[%s9096_s7 + $0x1ba0] sm:$0xf]  ;;  %1089 = vst [vmem:[%s9100_s8 + $0x6e0] sm:$0xf] %v1088_v56 }
 0x138   : > { %1091 = vst [vmem:[%s9100_s8 + $0x6e4] sm:$0xf] %v1090_v57  ;;  %1093 = vst [vmem:[%s9100_s8 + $0x6e8] sm:$0xf] %v1092_v58  ;;  %v1094_v59 = vld [vmem:[%s9096_s7 + $0x1bb0] sm:$0xf] }
 0x139   : > { %v1096_v60 = vld [vmem:[%s9096_s7 + $0x1bc0] sm:$0xf]  ;;  %v1098_v61 = vld [vmem:[%s9096_s7 + $0x1bd0] sm:$0xf]  ;;  %1095 = vst [vmem:[%s9100_s8 + $0x6ec] sm:$0xf] %v1094_v59 }
 0x13a   : > { %1097 = vst [vmem:[%s9100_s8 + $0x6f0] sm:$0xf] %v1096_v60  ;;  %1099 = vst [vmem:[%s9100_s8 + $0x6f4] sm:$0xf] %v1098_v61  ;;  %v1100_v62 = vld [vmem:[%s9096_s7 + $0x1be0] sm:$0xf] }
 0x13b   : > { %v1102_v63 = vld [vmem:[%s9096_s7 + $0x1bf0] sm:$0xf]  ;;  %v1104_v0 = vld [vmem:[%s9096_s7 + $0x1c00] sm:$0xf]  ;;  %1101 = vst [vmem:[%s9100_s8 + $0x6f8] sm:$0xf] %v1100_v62 }
 0x13c   : > { %1103 = vst [vmem:[%s9100_s8 + $0x6fc] sm:$0xf] %v1102_v63  ;;  %1105 = vst [vmem:[%s9100_s8 + $0x700] sm:$0xf] %v1104_v0  ;;  %v1106_v1 = vld [vmem:[%s9096_s7 + $0x1c10] sm:$0xf] }
 0x13d   : > { %v1108_v2 = vld [vmem:[%s9096_s7 + $0x1c20] sm:$0xf]  ;;  %v1110_v3 = vld [vmem:[%s9096_s7 + $0x1c30] sm:$0xf]  ;;  %1107 = vst [vmem:[%s9100_s8 + $0x704] sm:$0xf] %v1106_v1 }
 0x13e   : > { %1109 = vst [vmem:[%s9100_s8 + $0x708] sm:$0xf] %v1108_v2  ;;  %1111 = vst [vmem:[%s9100_s8 + $0x70c] sm:$0xf] %v1110_v3  ;;  %v1112_v4 = vld [vmem:[%s9096_s7 + $0x1c40] sm:$0xf] }
 0x13f   : > { %v1114_v5 = vld [vmem:[%s9096_s7 + $0x1c50] sm:$0xf]  ;;  %v1116_v6 = vld [vmem:[%s9096_s7 + $0x1c60] sm:$0xf]  ;;  %1113 = vst [vmem:[%s9100_s8 + $0x710] sm:$0xf] %v1112_v4 }
 0x140   : > { %1115 = vst [vmem:[%s9100_s8 + $0x714] sm:$0xf] %v1114_v5  ;;  %1117 = vst [vmem:[%s9100_s8 + $0x718] sm:$0xf] %v1116_v6  ;;  %v1118_v7 = vld [vmem:[%s9096_s7 + $0x1c70] sm:$0xf] }
 0x141   : > { %v1120_v8 = vld [vmem:[%s9096_s7 + $0x1c80] sm:$0xf]  ;;  %v1122_v9 = vld [vmem:[%s9096_s7 + $0x1c90] sm:$0xf]  ;;  %1119 = vst [vmem:[%s9100_s8 + $0x71c] sm:$0xf] %v1118_v7 }
 0x142   : > { %1121 = vst [vmem:[%s9100_s8 + $0x720] sm:$0xf] %v1120_v8  ;;  %1123 = vst [vmem:[%s9100_s8 + $0x724] sm:$0xf] %v1122_v9  ;;  %v1124_v10 = vld [vmem:[%s9096_s7 + $0x1ca0] sm:$0xf] }
 0x143   : > { %v1126_v11 = vld [vmem:[%s9096_s7 + $0x1cb0] sm:$0xf]  ;;  %v1128_v12 = vld [vmem:[%s9096_s7 + $0x1cc0] sm:$0xf]  ;;  %1125 = vst [vmem:[%s9100_s8 + $0x728] sm:$0xf] %v1124_v10 }
 0x144   : > { %1127 = vst [vmem:[%s9100_s8 + $0x72c] sm:$0xf] %v1126_v11  ;;  %1129 = vst [vmem:[%s9100_s8 + $0x730] sm:$0xf] %v1128_v12  ;;  %v1130_v13 = vld [vmem:[%s9096_s7 + $0x1cd0] sm:$0xf] }
 0x145   : > { %v1132_v14 = vld [vmem:[%s9096_s7 + $0x1ce0] sm:$0xf]  ;;  %v1134_v15 = vld [vmem:[%s9096_s7 + $0x1cf0] sm:$0xf]  ;;  %1131 = vst [vmem:[%s9100_s8 + $0x734] sm:$0xf] %v1130_v13 }
 0x146   : > { %1133 = vst [vmem:[%s9100_s8 + $0x738] sm:$0xf] %v1132_v14  ;;  %1135 = vst [vmem:[%s9100_s8 + $0x73c] sm:$0xf] %v1134_v15  ;;  %v1136_v16 = vld [vmem:[%s9096_s7 + $0x1d00] sm:$0xf] }
 0x147   : > { %v1138_v17 = vld [vmem:[%s9096_s7 + $0x1d10] sm:$0xf]  ;;  %v1140_v18 = vld [vmem:[%s9096_s7 + $0x1d20] sm:$0xf]  ;;  %1137 = vst [vmem:[%s9100_s8 + $0x740] sm:$0xf] %v1136_v16 }
 0x148   : > { %1139 = vst [vmem:[%s9100_s8 + $0x744] sm:$0xf] %v1138_v17  ;;  %1141 = vst [vmem:[%s9100_s8 + $0x748] sm:$0xf] %v1140_v18  ;;  %v1142_v19 = vld [vmem:[%s9096_s7 + $0x1d30] sm:$0xf] }
 0x149   : > { %v1144_v20 = vld [vmem:[%s9096_s7 + $0x1d40] sm:$0xf]  ;;  %v1146_v21 = vld [vmem:[%s9096_s7 + $0x1d50] sm:$0xf]  ;;  %1143 = vst [vmem:[%s9100_s8 + $0x74c] sm:$0xf] %v1142_v19 }
 0x14a   : > { %1145 = vst [vmem:[%s9100_s8 + $0x750] sm:$0xf] %v1144_v20  ;;  %1147 = vst [vmem:[%s9100_s8 + $0x754] sm:$0xf] %v1146_v21  ;;  %v1148_v22 = vld [vmem:[%s9096_s7 + $0x1d60] sm:$0xf] }
 0x14b   : > { %v1150_v23 = vld [vmem:[%s9096_s7 + $0x1d70] sm:$0xf]  ;;  %v1152_v24 = vld [vmem:[%s9096_s7 + $0x1d80] sm:$0xf]  ;;  %1149 = vst [vmem:[%s9100_s8 + $0x758] sm:$0xf] %v1148_v22 }
 0x14c   : > { %1151 = vst [vmem:[%s9100_s8 + $0x75c] sm:$0xf] %v1150_v23  ;;  %1153 = vst [vmem:[%s9100_s8 + $0x760] sm:$0xf] %v1152_v24  ;;  %v1154_v25 = vld [vmem:[%s9096_s7 + $0x1d90] sm:$0xf] }
 0x14d   : > { %v1156_v26 = vld [vmem:[%s9096_s7 + $0x1da0] sm:$0xf]  ;;  %v1158_v27 = vld [vmem:[%s9096_s7 + $0x1db0] sm:$0xf]  ;;  %1155 = vst [vmem:[%s9100_s8 + $0x764] sm:$0xf] %v1154_v25 }
 0x14e   : > { %1157 = vst [vmem:[%s9100_s8 + $0x768] sm:$0xf] %v1156_v26  ;;  %1159 = vst [vmem:[%s9100_s8 + $0x76c] sm:$0xf] %v1158_v27  ;;  %v1160_v28 = vld [vmem:[%s9096_s7 + $0x1dc0] sm:$0xf] }
 0x14f   : > { %v1162_v29 = vld [vmem:[%s9096_s7 + $0x1dd0] sm:$0xf]  ;;  %v1164_v30 = vld [vmem:[%s9096_s7 + $0x1de0] sm:$0xf]  ;;  %1161 = vst [vmem:[%s9100_s8 + $0x770] sm:$0xf] %v1160_v28 }
 0x150   : > { %1163 = vst [vmem:[%s9100_s8 + $0x774] sm:$0xf] %v1162_v29  ;;  %1165 = vst [vmem:[%s9100_s8 + $0x778] sm:$0xf] %v1164_v30  ;;  %v1166_v31 = vld [vmem:[%s9096_s7 + $0x1df0] sm:$0xf] }
 0x151   : > { %v1168_v32 = vld [vmem:[%s9096_s7 + $0x1e00] sm:$0xf]  ;;  %v1170_v33 = vld [vmem:[%s9096_s7 + $0x1e10] sm:$0xf]  ;;  %1167 = vst [vmem:[%s9100_s8 + $0x77c] sm:$0xf] %v1166_v31 }
 0x152   : > { %1169 = vst [vmem:[%s9100_s8 + $0x780] sm:$0xf] %v1168_v32  ;;  %1171 = vst [vmem:[%s9100_s8 + $0x784] sm:$0xf] %v1170_v33  ;;  %v1172_v34 = vld [vmem:[%s9096_s7 + $0x1e20] sm:$0xf] }
 0x153   : > { %v1174_v35 = vld [vmem:[%s9096_s7 + $0x1e30] sm:$0xf]  ;;  %v1176_v36 = vld [vmem:[%s9096_s7 + $0x1e40] sm:$0xf]  ;;  %1173 = vst [vmem:[%s9100_s8 + $0x788] sm:$0xf] %v1172_v34 }
 0x154   : > { %1175 = vst [vmem:[%s9100_s8 + $0x78c] sm:$0xf] %v1174_v35  ;;  %1177 = vst [vmem:[%s9100_s8 + $0x790] sm:$0xf] %v1176_v36  ;;  %v1178_v37 = vld [vmem:[%s9096_s7 + $0x1e50] sm:$0xf] }
 0x155   : > { %v1180_v38 = vld [vmem:[%s9096_s7 + $0x1e60] sm:$0xf]  ;;  %v1182_v39 = vld [vmem:[%s9096_s7 + $0x1e70] sm:$0xf]  ;;  %1179 = vst [vmem:[%s9100_s8 + $0x794] sm:$0xf] %v1178_v37 }
 0x156   : > { %1181 = vst [vmem:[%s9100_s8 + $0x798] sm:$0xf] %v1180_v38  ;;  %1183 = vst [vmem:[%s9100_s8 + $0x79c] sm:$0xf] %v1182_v39  ;;  %v1184_v40 = vld [vmem:[%s9096_s7 + $0x1e80] sm:$0xf] }
 0x157   : > { %v1186_v41 = vld [vmem:[%s9096_s7 + $0x1e90] sm:$0xf]  ;;  %v1188_v42 = vld [vmem:[%s9096_s7 + $0x1ea0] sm:$0xf]  ;;  %1185 = vst [vmem:[%s9100_s8 + $0x7a0] sm:$0xf] %v1184_v40 }
 0x158   : > { %1187 = vst [vmem:[%s9100_s8 + $0x7a4] sm:$0xf] %v1186_v41  ;;  %1189 = vst [vmem:[%s9100_s8 + $0x7a8] sm:$0xf] %v1188_v42  ;;  %v1190_v43 = vld [vmem:[%s9096_s7 + $0x1eb0] sm:$0xf] }
 0x159   : > { %v1192_v44 = vld [vmem:[%s9096_s7 + $0x1ec0] sm:$0xf]  ;;  %v1194_v45 = vld [vmem:[%s9096_s7 + $0x1ed0] sm:$0xf]  ;;  %1191 = vst [vmem:[%s9100_s8 + $0x7ac] sm:$0xf] %v1190_v43 }
 0x15a   : > { %1193 = vst [vmem:[%s9100_s8 + $0x7b0] sm:$0xf] %v1192_v44  ;;  %1195 = vst [vmem:[%s9100_s8 + $0x7b4] sm:$0xf] %v1194_v45  ;;  %v1196_v46 = vld [vmem:[%s9096_s7 + $0x1ee0] sm:$0xf] }
 0x15b   : > { %v1198_v47 = vld [vmem:[%s9096_s7 + $0x1ef0] sm:$0xf]  ;;  %v1200_v48 = vld [vmem:[%s9096_s7 + $0x1f00] sm:$0xf]  ;;  %1197 = vst [vmem:[%s9100_s8 + $0x7b8] sm:$0xf] %v1196_v46 }
 0x15c   : > { %1199 = vst [vmem:[%s9100_s8 + $0x7bc] sm:$0xf] %v1198_v47  ;;  %1201 = vst [vmem:[%s9100_s8 + $0x7c0] sm:$0xf] %v1200_v48  ;;  %v1202_v49 = vld [vmem:[%s9096_s7 + $0x1f10] sm:$0xf] }
 0x15d   : > { %v1204_v50 = vld [vmem:[%s9096_s7 + $0x1f20] sm:$0xf]  ;;  %v1206_v51 = vld [vmem:[%s9096_s7 + $0x1f30] sm:$0xf]  ;;  %1203 = vst [vmem:[%s9100_s8 + $0x7c4] sm:$0xf] %v1202_v49 }
 0x15e   : > { %1205 = vst [vmem:[%s9100_s8 + $0x7c8] sm:$0xf] %v1204_v50  ;;  %1207 = vst [vmem:[%s9100_s8 + $0x7cc] sm:$0xf] %v1206_v51  ;;  %v1208_v52 = vld [vmem:[%s9096_s7 + $0x1f40] sm:$0xf] }
 0x15f   : > { %v1210_v53 = vld [vmem:[%s9096_s7 + $0x1f50] sm:$0xf]  ;;  %v1212_v54 = vld [vmem:[%s9096_s7 + $0x1f60] sm:$0xf]  ;;  %1209 = vst [vmem:[%s9100_s8 + $0x7d0] sm:$0xf] %v1208_v52 }
 0x160   : > { %1211 = vst [vmem:[%s9100_s8 + $0x7d4] sm:$0xf] %v1210_v53  ;;  %1213 = vst [vmem:[%s9100_s8 + $0x7d8] sm:$0xf] %v1212_v54  ;;  %v1214_v55 = vld [vmem:[%s9096_s7 + $0x1f70] sm:$0xf] }
 0x161   : > { %v1216_v56 = vld [vmem:[%s9096_s7 + $0x1f80] sm:$0xf]  ;;  %v1218_v57 = vld [vmem:[%s9096_s7 + $0x1f90] sm:$0xf]  ;;  %1215 = vst [vmem:[%s9100_s8 + $0x7dc] sm:$0xf] %v1214_v55 }
 0x162   : > { %1217 = vst [vmem:[%s9100_s8 + $0x7e0] sm:$0xf] %v1216_v56  ;;  %1219 = vst [vmem:[%s9100_s8 + $0x7e4] sm:$0xf] %v1218_v57  ;;  %v1220_v58 = vld [vmem:[%s9096_s7 + $0x1fa0] sm:$0xf] }
 0x163   : > { %v1222_v59 = vld [vmem:[%s9096_s7 + $0x1fb0] sm:$0xf]  ;;  %v1224_v60 = vld [vmem:[%s9096_s7 + $0x1fc0] sm:$0xf]  ;;  %1221 = vst [vmem:[%s9100_s8 + $0x7e8] sm:$0xf] %v1220_v58 }
 0x164   : > { %1223 = vst [vmem:[%s9100_s8 + $0x7ec] sm:$0xf] %v1222_v59  ;;  %1225 = vst [vmem:[%s9100_s8 + $0x7f0] sm:$0xf] %v1224_v60  ;;  %v1226_v61 = vld [vmem:[%s9096_s7 + $0x1fd0] sm:$0xf] }
 0x165   : > { %v1228_v62 = vld [vmem:[%s9096_s7 + $0x1fe0] sm:$0xf]  ;;  %v1230_v63 = vld [vmem:[%s9096_s7 + $0x1ff0] sm:$0xf]  ;;  %1227 = vst [vmem:[%s9100_s8 + $0x7f4] sm:$0xf] %v1226_v61 }
 0x166   : > { %1229 = vst [vmem:[%s9100_s8 + $0x7f8] sm:$0xf] %v1228_v62  ;;  %1231 = vst [vmem:[%s9100_s8 + $0x7fc] sm:$0xf] %v1230_v63 }
 0x167 PF: > { %4368 = sbr.rel (!%p9084_p3) target bundleno = 366 (0x16e), region = 84  ;;  %s4370_s9 = sand.u32 (%p9084_p3), 1, %s9020_s19  }
 0x168   : > { %s7944_s10 = sshll.u32 (%p9084_p3), %s9024_s20, 3  ;;  %s7943_s11 = sshll.u32 (%p9084_p3), %s4370_s9, 4 }
 0x169   : > { %s4374_s14 = scalar_lea.vmem (%p9084_p3), %s10648_s4, %s7944_s10  ;;  %s4372_s15 = scalar_lea.vmem (%p9084_p3), [#allocation3], %s7943_s11 }
 0x16a   : > { %v4404_v0 = vld [vmem:[%s4374_s14] sm:$0xff] (%p9084_p3) }
 0x16b   : > { %v4406_v1 = vld [vmem:[%s4374_s14 + $0x20] sm:$0xff] (%p9084_p3)  ;;  %4405 = vst [vmem:[%s4372_s15] sm:$0xff] (%p9084_p3), %v4404_v0 }
 0x16c   : > { %4407 = vst [vmem:[%s4372_s15 + $0x8] sm:$0xff] (%p9084_p3), %v4406_v1 }
 0x16e PF: > { %p7945_p5 = scmp.ge.s32.totalorder %s9024_s20, 1  ;;  %p4412_p6 = scmp.lt.s32.totalorder %s9024_s20, 5 }
 0x170   : > { %p4413_p7 = pnand %p7945_p5, %p4412_p6 }
 0x171   : > { %s4419_s16 = sand.u32 (!%p4413_p7), 1, %s9016_s18   ;;  %v10137_v2 = vld [vmem:[%s10644_s0] sm:$0xff] (!%p4413_p7)  ;;  %v10147_v4 = vld [vmem:[%s10644_s0 + $0x8] sm:$0xff] (!%p4413_p7)  ;;  %p4462_p8 = scmp.lt.s32.totalorder (!%p4413_p7), %s7937_s21, 3  ;;  %vm7831_vm4 = vcmask (!%p4413_p7), 1040384  }
 0x172   : > { %4416 = sbr.rel (%p4413_p7) target bundleno = 943 (0x3af), region = 122  ;;  %v10142_v3 = vld [vmem:[%s10644_s0 + $0x80] sm:$0xff] (!%p4413_p7)  ;;  %s7946_s29 = sshll.u32 (!%p4413_p7), %s4419_s16, 11  ;;  %v10156_v6 = vld [vmem:[%s10644_s0 + $0x88] sm:$0xff] (!%p4413_p7) }
 0x173   : > { %v7950_v5 = vcombine.high (!%p4413_p7), %v10137_v2, %v10142_v3  ;;  %v7952_v7 = vcombine.high (!%p4413_p7), %v10147_v4, %v10156_v6  ;;  %s10160_s7 = scalar_lea.vmem (!%p4413_p7), [#allocation2], %s7946_s29  ;;  %v4505_v37 = vld [vmem:[%s10644_s0 + $0x100] sm:$0xff] (!%p4413_p7)  ;;  %v4506_v40 = vld [vmem:[%s10644_s0 + $0x108] sm:$0xff] (!%p4413_p7)  ;;  %v7949_v44 = vcombine.low (!%p4413_p7), %v10137_v2, %v10142_v3  ;;  %v7951_v45 = vcombine.low (!%p4413_p7), %v10147_v4, %v10156_v6  ;;  %s7947_s20 = sshll.u32 (!%p4413_p7), %s4419_s16, 4 }
 0x174   : > { %v8744_v8 = vld [vmem:[%s10160_s7 + $0x40] sm:$0xff] (!%p4413_p7)   ;;  %v8748_v12 = vld [vmem:[%s10160_s7 + $0x48] sm:$0xff] (!%p4413_p7)   ;;  %v8752_v16 = vld [vmem:[%s10160_s7 + $0x50] sm:$0xff] (!%p4413_p7)   ;;  %s4428_s14 = scalar_lea.vmem (!%p4413_p7), [#allocation3], %s7947_s20 }
 0x175   : > { %6937 = vmatprep.mubr.bf16.mxu0 (!%p4413_p7), %v7950_v5  ;;  %v8745_v9 = vld [vmem:[%s10160_s7 + $0xc0] sm:$0xff] (!%p4413_p7)   ;;  %6986 = vmatprep.mubr.bf16.mxu1 (!%p4413_p7), %v7952_v7  ;;  %v8749_v13 = vld [vmem:[%s10160_s7 + $0xc8] sm:$0xff] (!%p4413_p7)   ;;  %v8753_v17 = vld [vmem:[%s10160_s7 + $0xd0] sm:$0xff] (!%p4413_p7)  }
 0x176   : > { %8272 = vmatprep.subr.bf16.mxu0 (!%p4413_p7), %v8744_v8  ;;  %v8746_v10 = vld [vmem:[%s10160_s7] sm:$0xff] (!%p4413_p7)   ;;  %8300 = vmatprep.subr.bf16.mxu1 (!%p4413_p7), %v8745_v9  ;;  %v8750_v14 = vld [vmem:[%s10160_s7 + $0x8] sm:$0xff] (!%p4413_p7)   ;;  %v8754_v18 = vld [vmem:[%s10160_s7 + $0x10] sm:$0xff] (!%p4413_p7)  }
 0x177   : > { %v8747_v11 = vld [vmem:[%s10160_s7 + $0x80] sm:$0xff] (!%p4413_p7)   ;;  %8273 = vmatpush3.bf16.msra.mxu0 (!%p4413_p7), %v8746_v10  ;;  %v8751_v15 = vld [vmem:[%s10160_s7 + $0x88] sm:$0xff] (!%p4413_p7)   ;;  %v8755_v19 = vld [vmem:[%s10160_s7 + $0x90] sm:$0xff] (!%p4413_p7)  }
 0x178   : > { %8301 = vmatpush3.bf16.msra.mxu1 (!%p4413_p7), %v8747_v11  ;;  %8274 = vmatprep.subr.bf16.mxu0 (!%p4413_p7), %v8748_v12  ;;  %v8756_v20 = vld [vmem:[%s10160_s7 + $0x58] sm:$0xff] (!%p4413_p7)   ;;  %v8760_v24 = vld [vmem:[%s10160_s7 + $0x60] sm:$0xff] (!%p4413_p7)   ;;  %v8764_v28 = vld [vmem:[%s10160_s7 + $0x68] sm:$0xff] (!%p4413_p7)  }
 0x179   : > { %8302 = vmatprep.subr.bf16.mxu1 %v8749_v13  ;;  %v8757_v21 = vld [vmem:[%s10160_s7 + $0xd8] sm:$0xff]   ;;  %v8761_v25 = vld [vmem:[%s10160_s7 + $0xe0] sm:$0xff]   ;;  %v8765_v29 = vld [vmem:[%s10160_s7 + $0xe8] sm:$0xff]   ;;  %s10655_s21 = smov (!%p4462_p8, %s7937_s21), 3 }
 0x17a   : > { %v8758_v22 = vld [vmem:[%s10160_s7 + $0x18] sm:$0xff]   ;;  %v8762_v26 = vld [vmem:[%s10160_s7 + $0x20] sm:$0xff]   ;;  %v8766_v30 = vld [vmem:[%s10160_s7 + $0x28] sm:$0xff]   ;;  %s4464_s10 = scalar_lea.vmem %s10646_s2, %s10655_s21  ;;  %s4467_s13 = scalar_lea.vmem %s10647_s3, %s10655_s21 }
 0x17b   : > { %8275 = vmatpush3.bf16.msra.mxu0 %v8750_v14  ;;  %v8759_v23 = vld [vmem:[%s10160_s7 + $0x98] sm:$0xff]   ;;  %v8763_v27 = vld [vmem:[%s10160_s7 + $0xa0] sm:$0xff]   ;;  %v8767_v31 = vld [vmem:[%s10160_s7 + $0xa8] sm:$0xff]   ;;  %s7948_s18 = sshll.u32 %s10655_s21, 1 }
 0x17c   : > { %8303 = vmatpush3.bf16.msra.mxu1 %v8751_v15  ;;  %8276 = vmatprep.subr.bf16.mxu0 %v8752_v16  ;;  %v8768_v32 = vld [vmem:[%s10160_s7 + $0x70] sm:$0xff]   ;;  %v8772_v36 = vld [vmem:[%s10160_s7 + $0x78] sm:$0xff]   ;;  %v4521_v38 = vld [vmem:[%s10644_s0 + $0x180] sm:$0xff]  ;;  %s4471_s17 = scalar_lea.vmem %s10649_s5, %s7948_s18 }
 0x17d   : > { %8304 = vmatprep.subr.bf16.mxu1 %v8753_v17  ;;  %v8769_v33 = vld [vmem:[%s10160_s7 + $0xf0] sm:$0xff]   ;;  %v8773_v39 = vld [vmem:[%s10160_s7 + $0xf8] sm:$0xff]   ;;  %v4522_v41 = vld [vmem:[%s10644_s0 + $0x188] sm:$0xff]  ;;  %v7982_v48 = vcombine.high %v4505_v37, %v4521_v38  ;;  %v7981_v56 = vcombine.low %v4505_v37, %v4521_v38 }
 0x17e   : > { %v8770_v34 = vld [vmem:[%s10160_s7 + $0x30] sm:$0xff]   ;;  %v8774_v42 = vld [vmem:[%s10160_s7 + $0x38] sm:$0xff]   ;;  %v8776_v46 = vld [vmem:[%s10160_s7 + $0x140] sm:$0xff]   ;;  %v7984_v50 = vcombine.high %v4506_v40, %v4522_v41  ;;  %v7983_v58 = vcombine.low %v4506_v40, %v4522_v41 }
 0x17f   : > { %8277 = vmatpush3.bf16.msra.mxu0 %v8754_v18  ;;  %v8771_v35 = vld [vmem:[%s10160_s7 + $0xb0] sm:$0xff]   ;;  %v8775_v43 = vld [vmem:[%s10160_s7 + $0xb8] sm:$0xff]   ;;  %v8777_v47 = vld [vmem:[%s10160_s7 + $0x1c0] sm:$0xff]  }
 0x180   : > { %8305 = vmatpush3.bf16.msra.mxu1 %v8755_v19  ;;  %8278 = vmatprep.subr.bf16.mxu0 %v8756_v20  ;;  %v8778_v49 = vld [vmem:[%s10160_s7 + $0x100] sm:$0xff]   ;;  %v8780_v52 = vld [vmem:[%s10160_s7 + $0x148] sm:$0xff]   ;;  %v8784_v57 = vld [vmem:[%s10160_s7 + $0x150] sm:$0xff]  }
 0x181   : > { %8306 = vmatprep.subr.bf16.mxu1 %v8757_v21  ;;  %v8779_v51 = vld [vmem:[%s10160_s7 + $0x180] sm:$0xff]   ;;  %v8781_v53 = vld [vmem:[%s10160_s7 + $0x1c8] sm:$0xff]   ;;  %v8785_v59 = vld [vmem:[%s10160_s7 + $0x1d0] sm:$0xff]  }
 0x182   : > { %v8782_v54 = vld [vmem:[%s10160_s7 + $0x108] sm:$0xff]   ;;  %v8786_v60 = vld [vmem:[%s10160_s7 + $0x110] sm:$0xff]   ;;  %v8788_v62 = vld [vmem:[%s10160_s7 + $0x158] sm:$0xff]  }
 0x183   : > { %8279 = vmatpush3.bf16.msra.mxu0 %v8758_v22  ;;  %v8783_v55 = vld [vmem:[%s10160_s7 + $0x188] sm:$0xff]   ;;  %v8787_v61 = vld [vmem:[%s10160_s7 + $0x190] sm:$0xff]   ;;  %v8789_v63 = vld [vmem:[%s10160_s7 + $0x1d8] sm:$0xff]  }
 0x184   : > { %8307 = vmatpush3.bf16.msra.mxu1 %v8759_v23  ;;  %8280 = vmatprep.subr.bf16.mxu0 %v8760_v24  ;;  %v8790_v0 = vld [vmem:[%s10160_s7 + $0x118] sm:$0xff]   ;;  %v8792_v2 = vld [vmem:[%s10160_s7 + $0x160] sm:$0xff]   ;;  %v8796_v6 = vld [vmem:[%s10160_s7 + $0x168] sm:$0xff]  }
 0x185   : > { %8308 = vmatprep.subr.bf16.mxu1 %v8761_v25  ;;  %v8791_v1 = vld [vmem:[%s10160_s7 + $0x198] sm:$0xff]   ;;  %v8793_v3 = vld [vmem:[%s10160_s7 + $0x1e0] sm:$0xff]   ;;  %v8797_v7 = vld [vmem:[%s10160_s7 + $0x1e8] sm:$0xff]  }
 0x186   : > { %v8794_v4 = vld [vmem:[%s10160_s7 + $0x120] sm:$0xff]   ;;  %v8798_v8 = vld [vmem:[%s10160_s7 + $0x128] sm:$0xff]   ;;  %v8800_v10 = vld [vmem:[%s10160_s7 + $0x170] sm:$0xff]  }
 0x187   : > { %8281 = vmatpush3.bf16.msra.mxu0 %v8762_v26  ;;  %v8795_v5 = vld [vmem:[%s10160_s7 + $0x1a0] sm:$0xff]   ;;  %v8799_v9 = vld [vmem:[%s10160_s7 + $0x1a8] sm:$0xff]   ;;  %v8801_v11 = vld [vmem:[%s10160_s7 + $0x1f0] sm:$0xff]  }
 0x188   : > { %8309 = vmatpush3.bf16.msra.mxu1 %v8763_v27  ;;  %8282 = vmatprep.subr.bf16.mxu0 %v8764_v28  ;;  %v8802_v12 = vld [vmem:[%s10160_s7 + $0x130] sm:$0xff]   ;;  %v8804_v14 = vld [vmem:[%s10160_s7 + $0x178] sm:$0xff]   ;;  %v8808_v26 = vld [vmem:[%s10160_s7 + $0x240] sm:$0xff]  }
 0x189   : > { %8310 = vmatprep.subr.bf16.mxu1 %v8765_v29  ;;  %v8803_v13 = vld [vmem:[%s10160_s7 + $0x1b0] sm:$0xff]   ;;  %v8805_v16 = vld [vmem:[%s10160_s7 + $0x1f8] sm:$0xff]   ;;  %v8809_v27 = vld [vmem:[%s10160_s7 + $0x2c0] sm:$0xff]  }
 0x18a   : > { %v4475_v15 = vld [vmem:[%s10644_s0 + $0x10] sm:$0xff]  ;;  %v8806_v17 = vld [vmem:[%s10160_s7 + $0x138] sm:$0xff]   ;;  %v8810_v28 = vld [vmem:[%s10160_s7 + $0x200] sm:$0xff]  }
 0x18b   : > { %8283 = vmatpush3.bf16.msra.mxu0 %v8766_v30  ;;  %v8807_v18 = vld [vmem:[%s10160_s7 + $0x1b8] sm:$0xff]   ;;  %v4491_v19 = vld [vmem:[%s10644_s0 + $0x90] sm:$0xff]  ;;  %v8811_v29 = vld [vmem:[%s10160_s7 + $0x280] sm:$0xff]  }
 0x18c   : > { %8311 = vmatpush3.bf16.msra.mxu1 %v8767_v31  ;;  %8284 = vmatprep.subr.bf16.mxu0 %v8768_v32  ;;  %v4476_v20 = vld [vmem:[%s10644_s0 + $0x18] sm:$0xff]  ;;  %v7953_v22 = vcombine.low %v4475_v15, %v4491_v19  ;;  %v7954_v23 = vcombine.high %v4475_v15, %v4491_v19  ;;  %v8812_v30 = vld [vmem:[%s10160_s7 + $0x248] sm:$0xff]   ;;  %v8816_v38 = vld [vmem:[%s10160_s7 + $0x250] sm:$0xff]  }
 0x18d   : > { %8312 = vmatprep.subr.bf16.mxu1 %v8769_v33  ;;  %v4492_v21 = vld [vmem:[%s10644_s0 + $0x98] sm:$0xff]  ;;  %v8813_v31 = vld [vmem:[%s10160_s7 + $0x2c8] sm:$0xff]   ;;  %v4525_v19 = vld [vmem:[%s10644_s0 + $0x1a0] sm:$0xff] }
 0x18e   : > { %v7955_v24 = vcombine.low %v4476_v20, %v4492_v21  ;;  %v7956_v25 = vcombine.high %v4476_v20, %v4492_v21  ;;  %v8814_v32 = vld [vmem:[%s10160_s7 + $0x208] sm:$0xff]   ;;  %v4508_v40 = vld [vmem:[%s10644_s0 + $0x118] sm:$0xff] }
 0x18f   : > { %8285 = vmatpush3.bf16.msra.mxu0 %v8770_v34  ;;  %v8815_v33 = vld [vmem:[%s10160_s7 + $0x288] sm:$0xff]   ;;  %v4507_v34 = vld [vmem:[%s10644_s0 + $0x110] sm:$0xff]  ;;  %v4524_v41 = vld [vmem:[%s10644_s0 + $0x198] sm:$0xff] }
 0x190   : > { %8313 = vmatpush3.bf16.msra.mxu1 %v8771_v35  ;;  %8286 = vmatprep.subr.bf16.mxu0 %v8772_v36  ;;  %v4523_v35 = vld [vmem:[%s10644_s0 + $0x190] sm:$0xff]  ;;  %v8845_v15 = vld [vmem:[%s10160_s7 + $0x3c8] sm:$0xff]  }
 0x191   : > { %8314 = vmatprep.subr.bf16.mxu1 %v8773_v39  ;;  %v7986_v36 = vcombine.high %v4507_v34, %v4523_v35  ;;  %v7985_v37 = vcombine.low %v4507_v34, %v4523_v35  ;;  %v8817_v39 = vld [vmem:[%s10160_s7 + $0x2d0] sm:$0xff]   ;;  %v8856_v34 = vld [vmem:[%s10160_s7 + $0x360] sm:$0xff]  }
 0x192   : > { %v8857_v35 = vld [vmem:[%s10160_s7 + $0x3e0] sm:$0xff]  }
 0x193   : > { %8287 = vmatpush3.bf16.msra.mxu0 %v8774_v42  ;;  %v7988_v42 = vcombine.high %v4508_v40, %v4524_v41 }
 0x194   : > { %8315 = vmatpush3.bf16.msra.mxu1 %v8775_v43  ;;  %8328 = vmatprep.subr.bf16.mxu0 %v8776_v46  ;;  %v8818_v43 = vld [vmem:[%s10160_s7 + $0x210] sm:$0xff]   ;;  %v8820_v46 = vld [vmem:[%s10160_s7 + $0x258] sm:$0xff]  }
 0x195   : > { %8356 = vmatprep.subr.bf16.mxu1 %v8777_v47  ;;  %v8821_v47 = vld [vmem:[%s10160_s7 + $0x2d8] sm:$0xff]  }
 0x196   : > { %6938 = vmatmul.mubr.bf16.vlgmr.msra.gmra.mrb[0].mxu0 %v7949_v44  ;;  %v7987_v44 = vcombine.low %v4508_v40, %v4524_v41  ;;  %v8862_v40 = vld [vmem:[%s10160_s7 + $0x328] sm:$0xff]  }
 0x197   : > { %6987 = vmatmul.mubr.bf16.vlgmr.msra.gmra.mrb[0].mxu1 %v7951_v45  ;;  %8329 = vmatpush3.bf16.msra.mxu0 %v8778_v49  ;;  %v8819_v45 = vld [vmem:[%s10160_s7 + $0x290] sm:$0xff]   ;;  %v8823_v49 = vld [vmem:[%s10160_s7 + $0x298] sm:$0xff]   ;;  %v8863_v41 = vld [vmem:[%s10160_s7 + $0x3a8] sm:$0xff]  }
 0x198   : > { %8357 = vmatpush3.bf16.msra.mxu1 %v8779_v51  ;;  %6945 = vmatprep.mubr.bf16.mxu0 %v7982_v48  ;;  %v8822_v48 = vld [vmem:[%s10160_s7 + $0x218] sm:$0xff]   ;;  %v8825_v51 = vld [vmem:[%s10160_s7 + $0x2e0] sm:$0xff]  }
 0x199   : > { %8330 = vmatprep.subr.bf16.mxu0 %v8780_v52  ;;  %6994 = vmatprep.mubr.bf16.mxu1 %v7984_v50  ;;  %v8824_v50 = vld [vmem:[%s10160_s7 + $0x260] sm:$0xff]  }
 0x19a   : > { %8358 = vmatprep.subr.bf16.mxu1 %v8781_v53  ;;  %v8826_v52 = vld [vmem:[%s10160_s7 + $0x220] sm:$0xff]  }
 0x19b   : > { %8331 = vmatpush3.bf16.msra.mxu0 %v8782_v54  ;;  %v8827_v53 = vld [vmem:[%s10160_s7 + $0x2a0] sm:$0xff]   ;;  %v8828_v54 = vld [vmem:[%s10160_s7 + $0x268] sm:$0xff]  }
 0x19c   : > { %8359 = vmatpush3.bf16.msra.mxu1 %v8783_v55  ;;  %8332 = vmatprep.subr.bf16.mxu0 %v8784_v57  ;;  %v8829_v55 = vld [vmem:[%s10160_s7 + $0x2e8] sm:$0xff]  }
 0x19d   : > { %8360 = vmatprep.subr.bf16.mxu1 %v8785_v59  ;;  %v8831_v57 = vld [vmem:[%s10160_s7 + $0x2a8] sm:$0xff]   ;;  %v8833_v59 = vld [vmem:[%s10160_s7 + $0x2f0] sm:$0xff]  }
 0x19e   : > { %6946 = vmatmul.mubr.bf16.gmra.mrb[4].mxu0 %v7981_v56  ;;  %v8830_v56 = vld [vmem:[%s10160_s7 + $0x228] sm:$0xff]  }
 0x19f   : > { %8333 = vmatpush3.bf16.msra.mxu0 %v8786_v60  ;;  %6995 = vmatmul.mubr.bf16.gmra.mrb[4].mxu1 %v7983_v58  ;;  %v8832_v58 = vld [vmem:[%s10160_s7 + $0x270] sm:$0xff]  }
 0x1a0   : > { %8361 = vmatpush3.bf16.msra.mxu1 %v8787_v61  ;;  %8334 = vmatprep.subr.bf16.mxu0 %v8788_v62  ;;  %v8834_v60 = vld [vmem:[%s10160_s7 + $0x230] sm:$0xff]   ;;  %v8836_v62 = vld [vmem:[%s10160_s7 + $0x278] sm:$0xff]  }
 0x1a1   : > { %8362 = vmatprep.subr.bf16.mxu1 %v8789_v63  ;;  %7035 = vmatprep.mubr.bf16.mxu0 %v7954_v23  ;;  %v8835_v61 = vld [vmem:[%s10160_s7 + $0x2b0] sm:$0xff]   ;;  %v8837_v63 = vld [vmem:[%s10160_s7 + $0x2f8] sm:$0xff]  }
 0x1a2   : > { %7084 = vmatprep.mubr.bf16.mxu1 %v7956_v25  ;;  %v8849_v23 = vld [vmem:[%s10160_s7 + $0x3d0] sm:$0xff]   ;;  %v4526_v25 = vld [vmem:[%s10644_s0 + $0x1a8] sm:$0xff] }
 0x1a3   : > { %8335 = vmatpush3.bf16.msra.mxu0 %v8790_v0  ;;  %v8838_v0 = vld [vmem:[%s10160_s7 + $0x238] sm:$0xff]  }
 0x1a4   : > { %8363 = vmatpush3.bf16.msra.mxu1 %v8791_v1  ;;  %8336 = vmatprep.subr.bf16.mxu0 %v8792_v2  ;;  %v8839_v1 = vld [vmem:[%s10160_s7 + $0x2b8] sm:$0xff]   ;;  %v4477_v2 = vld [vmem:[%s10644_s0 + $0x20] sm:$0xff] }
 0x1a5   : > { %8364 = vmatprep.subr.bf16.mxu1 %v8793_v3  ;;  %v4493_v3 = vld [vmem:[%s10644_s0 + $0xa0] sm:$0xff] }
 0x1a7   : > { %8337 = vmatpush3.bf16.msra.mxu0 %v8794_v4  ;;  %v7957_v4 = vcombine.low %v4477_v2, %v4493_v3 }
 0x1a8   : > { %8365 = vmatpush3.bf16.msra.mxu1 %v8795_v5  ;;  %8338 = vmatprep.subr.bf16.mxu0 %v8796_v6  ;;  %v7958_v5 = vcombine.high %v4477_v2, %v4493_v3  ;;  %v4478_v6 = vld [vmem:[%s10644_s0 + $0x28] sm:$0xff]  ;;  %v4511_v2 = vld [vmem:[%s10644_s0 + $0x130] sm:$0xff] }
 0x1a9   : > { %8366 = vmatprep.subr.bf16.mxu1 %v8797_v7  ;;  %v4494_v7 = vld [vmem:[%s10644_s0 + $0xa8] sm:$0xff]  ;;  %v4527_v3 = vld [vmem:[%s10644_s0 + $0x1b0] sm:$0xff] }
 0x1ab   : > { %8339 = vmatpush3.bf16.msra.mxu0 %v8798_v8  ;;  %v7959_v8 = vcombine.low %v4478_v6, %v4494_v7 }
 0x1ac   : > { %8367 = vmatpush3.bf16.msra.mxu1 %v8799_v9  ;;  %8340 = vmatprep.subr.bf16.mxu0 %v8800_v10  ;;  %v7960_v9 = vcombine.high %v4478_v6, %v4494_v7  ;;  %v8840_v10 = vld [vmem:[%s10160_s7 + $0x340] sm:$0xff]   ;;  %v8880_v6 = vld [vmem:[%s10160_s7 + $0x450] sm:$0xff]  }
 0x1ad   : > { %8368 = vmatprep.subr.bf16.mxu1 %v8801_v11  ;;  %v8841_v11 = vld [vmem:[%s10160_s7 + $0x3c0] sm:$0xff]   ;;  %v8881_v7 = vld [vmem:[%s10160_s7 + $0x4d0] sm:$0xff]  }
 0x1af   : > { %8341 = vmatpush3.bf16.msra.mxu0 %v8802_v12  ;;  %v8842_v12 = vld [vmem:[%s10160_s7 + $0x300] sm:$0xff]  }
 0x1b0   : > { %8369 = vmatpush3.bf16.msra.mxu1 %v8803_v13  ;;  %8342 = vmatprep.subr.bf16.mxu0 %v8804_v14  ;;  %v8843_v13 = vld [vmem:[%s10160_s7 + $0x380] sm:$0xff]   ;;  %v8844_v14 = vld [vmem:[%s10160_s7 + $0x348] sm:$0xff]  }
 0x1b1   : > { %8370 = vmatprep.subr.bf16.mxu1 %v8805_v16  ;;  %v8846_v16 = vld [vmem:[%s10160_s7 + $0x308] sm:$0xff]  }
 0x1b3   : > { %8343 = vmatpush3.bf16.msra.mxu0 %v8806_v17  ;;  %v8847_v17 = vld [vmem:[%s10160_s7 + $0x388] sm:$0xff]  }
 0x1b4   : > { %8371 = vmatpush3.bf16.msra.mxu1 %v8807_v18  ;;  %8384 = vmatprep.subr.bf16.mxu0 %v8808_v26  ;;  %v4509_v18 = vld [vmem:[%s10644_s0 + $0x120] sm:$0xff] }
 0x1b5   : > { %8412 = vmatprep.subr.bf16.mxu1 %v8809_v27  ;;  %v7990_v20 = vcombine.high %v4509_v18, %v4525_v19  ;;  %v7989_v21 = vcombine.low %v4509_v18, %v4525_v19  ;;  %v8850_v27 = vld [vmem:[%s10160_s7 + $0x310] sm:$0xff]   ;;  %v8888_v18 = vld [vmem:[%s10160_s7 + $0x460] sm:$0xff]  }
 0x1b6   : > { %7036 = vmatmul.mubr.bf16.vlgmr.msra.gmra.mrb[8].mxu0 %v7953_v22  ;;  %v8848_v22 = vld [vmem:[%s10160_s7 + $0x350] sm:$0xff]   ;;  %v8889_v19 = vld [vmem:[%s10160_s7 + $0x4e0] sm:$0xff]  }
 0x1b7   : > { %7085 = vmatmul.mubr.bf16.vlgmr.msra.gmra.mrb[8].mxu1 %v7955_v24  ;;  %8385 = vmatpush3.bf16.msra.mxu0 %v8810_v28  ;;  %v4510_v24 = vld [vmem:[%s10644_s0 + $0x128] sm:$0xff] }
 0x1b8   : > { %8413 = vmatpush3.bf16.msra.mxu1 %v8811_v29  ;;  %8386 = vmatprep.subr.bf16.mxu0 %v8812_v30  ;;  %v7992_v26 = vcombine.high %v4510_v24, %v4526_v25  ;;  %v7991_v28 = vcombine.low %v4510_v24, %v4526_v25  ;;  %v8851_v29 = vld [vmem:[%s10160_s7 + $0x390] sm:$0xff]   ;;  %v8852_v30 = vld [vmem:[%s10160_s7 + $0x358] sm:$0xff]   ;;  %v8894_v24 = vld [vmem:[%s10160_s7 + $0x428] sm:$0xff]  }
 0x1b9   : > { %8414 = vmatprep.subr.bf16.mxu1 %v8813_v31  ;;  %7043 = vmatprep.mubr.bf16.mxu0 %v7986_v36  ;;  %v8853_v31 = vld [vmem:[%s10160_s7 + $0x3d8] sm:$0xff]   ;;  %v8858_v36 = vld [vmem:[%s10160_s7 + $0x320] sm:$0xff]   ;;  %v8895_v25 = vld [vmem:[%s10160_s7 + $0x4a8] sm:$0xff]  }
 0x1ba   : > { %7092 = vmatprep.mubr.bf16.mxu1 %v7988_v42  ;;  %v8864_v42 = vld [vmem:[%s10160_s7 + $0x370] sm:$0xff]  }
 0x1bb   : > { %8387 = vmatpush3.bf16.msra.mxu0 %v8814_v32  ;;  %v8854_v32 = vld [vmem:[%s10160_s7 + $0x318] sm:$0xff]  }
 0x1bc   : > { %8415 = vmatpush3.bf16.msra.mxu1 %v8815_v33  ;;  %8388 = vmatprep.subr.bf16.mxu0 %v8816_v38  ;;  %v8855_v33 = vld [vmem:[%s10160_s7 + $0x398] sm:$0xff]   ;;  %v8860_v38 = vld [vmem:[%s10160_s7 + $0x368] sm:$0xff]  }
 0x1bd   : > { %8416 = vmatprep.subr.bf16.mxu1 %v8817_v39  ;;  %v8861_v39 = vld [vmem:[%s10160_s7 + $0x3e8] sm:$0xff]  }
 0x1be   : > { %7044 = vmatmul.mubr.bf16.gmra.mrb[12].mxu0 %v7985_v37  ;;  %v8859_v37 = vld [vmem:[%s10160_s7 + $0x3a0] sm:$0xff]  }
 0x1bf   : > { %8389 = vmatpush3.bf16.msra.mxu0 %v8818_v43  ;;  %7093 = vmatmul.mubr.bf16.gmra.mrb[12].mxu1 %v7987_v44  ;;  %v8865_v43 = vld [vmem:[%s10160_s7 + $0x3f0] sm:$0xff]  }
 0x1c0   : > { %8417 = vmatpush3.bf16.msra.mxu1 %v8819_v45  ;;  %8390 = vmatprep.subr.bf16.mxu0 %v8820_v46  ;;  %v8866_v44 = vld [vmem:[%s10160_s7 + $0x330] sm:$0xff]   ;;  %v8868_v46 = vld [vmem:[%s10160_s7 + $0x378] sm:$0xff]  }
 0x1c1   : > { %8418 = vmatprep.subr.bf16.mxu1 %v8821_v47  ;;  %7133 = vmatprep.mubr.bf16.mxu0 %v7958_v5  ;;  %v8867_v45 = vld [vmem:[%s10160_s7 + $0x3b0] sm:$0xff]   ;;  %v8869_v47 = vld [vmem:[%s10160_s7 + $0x3f8] sm:$0xff]   ;;  %v7993_v5 = vcombine.low %v4511_v2, %v4527_v3 }
 0x1c2   : > { %7182 = vmatprep.mubr.bf16.mxu1 %v7960_v9  ;;  %v4528_v9 = vld [vmem:[%s10644_s0 + $0x1b8] sm:$0xff] }
 0x1c3   : > { %8391 = vmatpush3.bf16.msra.mxu0 %v8822_v48  ;;  %v8870_v48 = vld [vmem:[%s10160_s7 + $0x338] sm:$0xff]  }
 0x1c4   : > { %8419 = vmatpush3.bf16.msra.mxu1 %v8823_v49  ;;  %8392 = vmatprep.subr.bf16.mxu0 %v8824_v50  ;;  %v8871_v49 = vld [vmem:[%s10160_s7 + $0x3b8] sm:$0xff]   ;;  %v4479_v50 = vld [vmem:[%s10644_s0 + $0x30] sm:$0xff] }
 0x1c5   : > { %8420 = vmatprep.subr.bf16.mxu1 %v8825_v51  ;;  %v4495_v51 = vld [vmem:[%s10644_s0 + $0xb0] sm:$0xff] }
 0x1c7   : > { %8393 = vmatpush3.bf16.msra.mxu0 %v8826_v52  ;;  %v4480_v52 = vld [vmem:[%s10644_s0 + $0x38] sm:$0xff] }
 0x1c8   : > { %8421 = vmatpush3.bf16.msra.mxu1 %v8827_v53  ;;  %8394 = vmatprep.subr.bf16.mxu0 %v8828_v54  ;;  %v7961_v53 = vcombine.low %v4479_v50, %v4495_v51  ;;  %v7962_v54 = vcombine.high %v4479_v50, %v4495_v51  ;;  %v4513_v50 = vld [vmem:[%s10644_s0 + $0x140] sm:$0xff] }
 0x1c9   : > { %8422 = vmatprep.subr.bf16.mxu1 %v8829_v55  ;;  %v4496_v55 = vld [vmem:[%s10644_s0 + $0xb8] sm:$0xff]  ;;  %v4529_v51 = vld [vmem:[%s10644_s0 + $0x1c0] sm:$0xff] }
 0x1cb   : > { %8395 = vmatpush3.bf16.msra.mxu0 %v8830_v56  ;;  %v7963_v56 = vcombine.low %v4480_v52, %v4496_v55 }
 0x1cc   : > { %8423 = vmatpush3.bf16.msra.mxu1 %v8831_v57  ;;  %8396 = vmatprep.subr.bf16.mxu0 %v8832_v58  ;;  %v7964_v57 = vcombine.high %v4480_v52, %v4496_v55  ;;  %v8872_v58 = vld [vmem:[%s10160_s7 + $0x440] sm:$0xff]   ;;  %v7998_v52 = vcombine.high %v4513_v50, %v4529_v51  ;;  %v8913_v55 = vld [vmem:[%s10160_s7 + $0x5d0] sm:$0xff]  }
 0x1cd   : > { %8424 = vmatprep.subr.bf16.mxu1 %v8833_v59  ;;  %v8873_v59 = vld [vmem:[%s10160_s7 + $0x4c0] sm:$0xff]  }
 0x1cf   : > { %8397 = vmatpush3.bf16.msra.mxu0 %v8834_v60  ;;  %v8874_v60 = vld [vmem:[%s10160_s7 + $0x400] sm:$0xff]  }
 0x1d0   : > { %8425 = vmatpush3.bf16.msra.mxu1 %v8835_v61  ;;  %8398 = vmatprep.subr.bf16.mxu0 %v8836_v62  ;;  %v8875_v61 = vld [vmem:[%s10160_s7 + $0x480] sm:$0xff]   ;;  %v8876_v62 = vld [vmem:[%s10160_s7 + $0x448] sm:$0xff]  }
 0x1d1   : > { %8426 = vmatprep.subr.bf16.mxu1 %v8837_v63  ;;  %v8877_v63 = vld [vmem:[%s10160_s7 + $0x4c8] sm:$0xff]  }
 0x1d3   : > { %8399 = vmatpush3.bf16.msra.mxu0 %v8838_v0  ;;  %v8878_v0 = vld [vmem:[%s10160_s7 + $0x408] sm:$0xff]  }
 0x1d4   : > { %8427 = vmatpush3.bf16.msra.mxu1 %v8839_v1  ;;  %8440 = vmatprep.subr.bf16.mxu0 %v8840_v10  ;;  %v8879_v1 = vld [vmem:[%s10160_s7 + $0x488] sm:$0xff]  }
 0x1d5   : > { %8468 = vmatprep.subr.bf16.mxu1 %v8841_v11  ;;  %v8882_v11 = vld [vmem:[%s10160_s7 + $0x410] sm:$0xff]  }
 0x1d6   : > { %7134 = vmatmul.mubr.bf16.vlgmr.msra.gmra.mrb[16].mxu0 %v7957_v4  ;;  %v7994_v4 = vcombine.high %v4511_v2, %v4527_v3  ;;  %v8920_v2 = vld [vmem:[%s10160_s7 + $0x560] sm:$0xff]  }
 0x1d7   : > { %7183 = vmatmul.mubr.bf16.vlgmr.msra.gmra.mrb[16].mxu1 %v7959_v8  ;;  %8441 = vmatpush3.bf16.msra.mxu0 %v8842_v12  ;;  %v4512_v8 = vld [vmem:[%s10644_s0 + $0x138] sm:$0xff]  ;;  %v8921_v3 = vld [vmem:[%s10160_s7 + $0x5e0] sm:$0xff]  }
 0x1d8   : > { %8469 = vmatpush3.bf16.msra.mxu1 %v8843_v13  ;;  %8442 = vmatprep.subr.bf16.mxu0 %v8844_v14  ;;  %v7996_v10 = vcombine.high %v4512_v8, %v4528_v9  ;;  %v7995_v12 = vcombine.low %v4512_v8, %v4528_v9  ;;  %v8883_v13 = vld [vmem:[%s10160_s7 + $0x490] sm:$0xff]   ;;  %v8884_v14 = vld [vmem:[%s10160_s7 + $0x458] sm:$0xff]   ;;  %v8926_v8 = vld [vmem:[%s10160_s7 + $0x528] sm:$0xff]  }
 0x1d9   : > { %8470 = vmatprep.subr.bf16.mxu1 %v8845_v15  ;;  %7141 = vmatprep.mubr.bf16.mxu0 %v7990_v20  ;;  %v8885_v15 = vld [vmem:[%s10160_s7 + $0x4d8] sm:$0xff]   ;;  %v8890_v20 = vld [vmem:[%s10160_s7 + $0x420] sm:$0xff]   ;;  %v8927_v9 = vld [vmem:[%s10160_s7 + $0x5a8] sm:$0xff]  }
 0x1da   : > { %7190 = vmatprep.mubr.bf16.mxu1 %v7992_v26  ;;  %v8896_v26 = vld [vmem:[%s10160_s7 + $0x470] sm:$0xff]  }
 0x1db   : > { %8443 = vmatpush3.bf16.msra.mxu0 %v8846_v16  ;;  %v8886_v16 = vld [vmem:[%s10160_s7 + $0x418] sm:$0xff]  }
 0x1dc   : > { %8471 = vmatpush3.bf16.msra.mxu1 %v8847_v17  ;;  %8444 = vmatprep.subr.bf16.mxu0 %v8848_v22  ;;  %v8887_v17 = vld [vmem:[%s10160_s7 + $0x498] sm:$0xff]   ;;  %v8892_v22 = vld [vmem:[%s10160_s7 + $0x468] sm:$0xff]  }
 0x1dd   : > { %8472 = vmatprep.subr.bf16.mxu1 %v8849_v23  ;;  %v8893_v23 = vld [vmem:[%s10160_s7 + $0x4e8] sm:$0xff]  }
 0x1de   : > { %7142 = vmatmul.mubr.bf16.gmra.mrb[20].mxu0 %v7989_v21  ;;  %v8891_v21 = vld [vmem:[%s10160_s7 + $0x4a0] sm:$0xff]  }
 0x1df   : > { %8445 = vmatpush3.bf16.msra.mxu0 %v8850_v27  ;;  %7191 = vmatmul.mubr.bf16.gmra.mrb[20].mxu1 %v7991_v28  ;;  %v8897_v27 = vld [vmem:[%s10160_s7 + $0x4f0] sm:$0xff]  }
 0x1e0   : > { %8473 = vmatpush3.bf16.msra.mxu1 %v8851_v29  ;;  %8446 = vmatprep.subr.bf16.mxu0 %v8852_v30  ;;  %v8898_v28 = vld [vmem:[%s10160_s7 + $0x430] sm:$0xff]   ;;  %v8900_v30 = vld [vmem:[%s10160_s7 + $0x478] sm:$0xff]  }
 0x1e1   : > { %8474 = vmatprep.subr.bf16.mxu1 %v8853_v31  ;;  %7231 = vmatprep.mubr.bf16.mxu0 %v7962_v54  ;;  %v8899_v29 = vld [vmem:[%s10160_s7 + $0x4b0] sm:$0xff]   ;;  %v8901_v31 = vld [vmem:[%s10160_s7 + $0x4f8] sm:$0xff]  }
 0x1e2   : > { %7280 = vmatprep.mubr.bf16.mxu1 %v7964_v57  ;;  %v8912_v54 = vld [vmem:[%s10160_s7 + $0x550] sm:$0xff]   ;;  %v4530_v57 = vld [vmem:[%s10644_s0 + $0x1c8] sm:$0xff] }
 0x1e3   : > { %8447 = vmatpush3.bf16.msra.mxu0 %v8854_v32  ;;  %v8902_v32 = vld [vmem:[%s10160_s7 + $0x438] sm:$0xff]  }
 0x1e4   : > { %8475 = vmatpush3.bf16.msra.mxu1 %v8855_v33  ;;  %8448 = vmatprep.subr.bf16.mxu0 %v8856_v34  ;;  %v8903_v33 = vld [vmem:[%s10160_s7 + $0x4b8] sm:$0xff]   ;;  %v4481_v34 = vld [vmem:[%s10644_s0 + $0x40] sm:$0xff] }
 0x1e5   : > { %8476 = vmatprep.subr.bf16.mxu1 %v8857_v35  ;;  %v4497_v35 = vld [vmem:[%s10644_s0 + $0xc0] sm:$0xff] }
 0x1e7   : > { %8449 = vmatpush3.bf16.msra.mxu0 %v8858_v36  ;;  %v4482_v36 = vld [vmem:[%s10644_s0 + $0x48] sm:$0xff] }
 0x1e8   : > { %8477 = vmatpush3.bf16.msra.mxu1 %v8859_v37  ;;  %8450 = vmatprep.subr.bf16.mxu0 %v8860_v38  ;;  %v4498_v37 = vld [vmem:[%s10644_s0 + $0xc8] sm:$0xff]  ;;  %v7965_v38 = vcombine.low %v4481_v34, %v4497_v35 }
 0x1e9   : > { %8478 = vmatprep.subr.bf16.mxu1 %v8861_v39  ;;  %v7966_v39 = vcombine.high %v4481_v34, %v4497_v35  ;;  %v4515_v34 = vld [vmem:[%s10644_s0 + $0x150] sm:$0xff] }
 0x1ea   : > { %v4531_v35 = vld [vmem:[%s10644_s0 + $0x1d0] sm:$0xff] }
 0x1eb   : > { %8451 = vmatpush3.bf16.msra.mxu0 %v8862_v40  ;;  %v7967_v40 = vcombine.low %v4482_v36, %v4498_v37 }
 0x1ec   : > { %8479 = vmatpush3.bf16.msra.mxu1 %v8863_v41  ;;  %8452 = vmatprep.subr.bf16.mxu0 %v8864_v42  ;;  %v7968_v41 = vcombine.high %v4482_v36, %v4498_v37  ;;  %v8904_v42 = vld [vmem:[%s10160_s7 + $0x540] sm:$0xff]   ;;  %v8002_v36 = vcombine.high %v4515_v34, %v4531_v35  ;;  %v8001_v37 = vcombine.low %v4515_v34, %v4531_v35 }
 0x1ed   : > { %8480 = vmatprep.subr.bf16.mxu1 %v8865_v43  ;;  %v8905_v43 = vld [vmem:[%s10160_s7 + $0x5c0] sm:$0xff]  }
 0x1ef   : > { %8453 = vmatpush3.bf16.msra.mxu0 %v8866_v44  ;;  %v8906_v44 = vld [vmem:[%s10160_s7 + $0x500] sm:$0xff]  }
 0x1f0   : > { %8481 = vmatpush3.bf16.msra.mxu1 %v8867_v45  ;;  %8454 = vmatprep.subr.bf16.mxu0 %v8868_v46  ;;  %v8907_v45 = vld [vmem:[%s10160_s7 + $0x580] sm:$0xff]   ;;  %v8908_v46 = vld [vmem:[%s10160_s7 + $0x548] sm:$0xff]  }
 0x1f1   : > { %8482 = vmatprep.subr.bf16.mxu1 %v8869_v47  ;;  %v8909_v47 = vld [vmem:[%s10160_s7 + $0x5c8] sm:$0xff]  }
 0x1f3   : > { %8455 = vmatpush3.bf16.msra.mxu0 %v8870_v48  ;;  %v8910_v48 = vld [vmem:[%s10160_s7 + $0x508] sm:$0xff]  }
 0x1f4   : > { %8483 = vmatpush3.bf16.msra.mxu1 %v8871_v49  ;;  %8496 = vmatprep.subr.bf16.mxu0 %v8872_v58  ;;  %v8911_v49 = vld [vmem:[%s10160_s7 + $0x588] sm:$0xff]  }
 0x1f5   : > { %8524 = vmatprep.subr.bf16.mxu1 %v8873_v59  ;;  %v8914_v59 = vld [vmem:[%s10160_s7 + $0x510] sm:$0xff]  }
 0x1f6   : > { %7232 = vmatmul.mubr.bf16.vlgmr.msra.gmra.mrb[24].mxu0 %v7961_v53  ;;  %v7997_v53 = vcombine.low %v4513_v50, %v4529_v51  ;;  %v8952_v50 = vld [vmem:[%s10160_s7 + $0x660] sm:$0xff]  }
 0x1f7   : > { %7281 = vmatmul.mubr.bf16.vlgmr.msra.gmra.mrb[24].mxu1 %v7963_v56  ;;  %8497 = vmatpush3.bf16.msra.mxu0 %v8874_v60  ;;  %v4514_v56 = vld [vmem:[%s10644_s0 + $0x148] sm:$0xff]  ;;  %v8953_v51 = vld [vmem:[%s10160_s7 + $0x6e0] sm:$0xff]  }
 0x1f8   : > { %8525 = vmatpush3.bf16.msra.mxu1 %v8875_v61  ;;  %8498 = vmatprep.subr.bf16.mxu0 %v8876_v62  ;;  %v8000_v58 = vcombine.high %v4514_v56, %v4530_v57  ;;  %v7999_v60 = vcombine.low %v4514_v56, %v4530_v57  ;;  %v8915_v61 = vld [vmem:[%s10160_s7 + $0x590] sm:$0xff]   ;;  %v8916_v62 = vld [vmem:[%s10160_s7 + $0x558] sm:$0xff]   ;;  %v8958_v56 = vld [vmem:[%s10160_s7 + $0x628] sm:$0xff]  }
 0x1f9   : > { %8526 = vmatprep.subr.bf16.mxu1 %v8877_v63  ;;  %7239 = vmatprep.mubr.bf16.mxu0 %v7994_v4  ;;  %v8917_v63 = vld [vmem:[%s10160_s7 + $0x5d8] sm:$0xff]   ;;  %v8922_v4 = vld [vmem:[%s10160_s7 + $0x520] sm:$0xff]   ;;  %v8959_v57 = vld [vmem:[%s10160_s7 + $0x6a8] sm:$0xff]  }
 0x1fa   : > { %7288 = vmatprep.mubr.bf16.mxu1 %v7996_v10  ;;  %v8928_v10 = vld [vmem:[%s10160_s7 + $0x570] sm:$0xff]  }
 0x1fb   : > { %8499 = vmatpush3.bf16.msra.mxu0 %v8878_v0  ;;  %v8918_v0 = vld [vmem:[%s10160_s7 + $0x518] sm:$0xff]  }
 0x1fc   : > { %8527 = vmatpush3.bf16.msra.mxu1 %v8879_v1  ;;  %8500 = vmatprep.subr.bf16.mxu0 %v8880_v6  ;;  %v8919_v1 = vld [vmem:[%s10160_s7 + $0x598] sm:$0xff]   ;;  %v8924_v6 = vld [vmem:[%s10160_s7 + $0x568] sm:$0xff]  }
 0x1fd   : > { %8528 = vmatprep.subr.bf16.mxu1 %v8881_v7  ;;  %v8925_v7 = vld [vmem:[%s10160_s7 + $0x5e8] sm:$0xff]  }
 0x1fe   : > { %7240 = vmatmul.mubr.bf16.gmra.mrb[28].mxu0 %v7993_v5  ;;  %v8923_v5 = vld [vmem:[%s10160_s7 + $0x5a0] sm:$0xff]  }
 0x1ff   : > { %8501 = vmatpush3.bf16.msra.mxu0 %v8882_v11  ;;  %7289 = vmatmul.mubr.bf16.gmra.mrb[28].mxu1 %v7995_v12  ;;  %v8929_v11 = vld [vmem:[%s10160_s7 + $0x5f0] sm:$0xff]  }
 0x200   : > { %8529 = vmatpush3.bf16.msra.mxu1 %v8883_v13  ;;  %8502 = vmatprep.subr.bf16.mxu0 %v8884_v14  ;;  %v8930_v12 = vld [vmem:[%s10160_s7 + $0x530] sm:$0xff]   ;;  %v8932_v14 = vld [vmem:[%s10160_s7 + $0x578] sm:$0xff]  }
 0x201   : > { %8530 = vmatprep.subr.bf16.mxu1 %v8885_v15  ;;  %7329 = vmatprep.mubr.bf16.mxu0 %v7966_v39  ;;  %v8931_v13 = vld [vmem:[%s10160_s7 + $0x5b0] sm:$0xff]   ;;  %v8933_v15 = vld [vmem:[%s10160_s7 + $0x5f8] sm:$0xff]  }
 0x202   : > { %7378 = vmatprep.mubr.bf16.mxu1 %v7968_v41  ;;  %v8945_v39 = vld [vmem:[%s10160_s7 + $0x6d0] sm:$0xff]   ;;  %v4532_v41 = vld [vmem:[%s10644_s0 + $0x1d8] sm:$0xff] }
 0x203   : > { %8503 = vmatpush3.bf16.msra.mxu0 %v8886_v16  ;;  %v8934_v16 = vld [vmem:[%s10160_s7 + $0x538] sm:$0xff]  }
 0x204   : > { %8531 = vmatpush3.bf16.msra.mxu1 %v8887_v17  ;;  %8504 = vmatprep.subr.bf16.mxu0 %v8888_v18  ;;  %v8935_v17 = vld [vmem:[%s10160_s7 + $0x5b8] sm:$0xff]   ;;  %v4483_v18 = vld [vmem:[%s10644_s0 + $0x50] sm:$0xff] }
 0x205   : > { %8532 = vmatprep.subr.bf16.mxu1 %v8889_v19  ;;  %v4499_v19 = vld [vmem:[%s10644_s0 + $0xd0] sm:$0xff] }
 0x207   : > { %8505 = vmatpush3.bf16.msra.mxu0 %v8890_v20  ;;  %v7969_v20 = vcombine.low %v4483_v18, %v4499_v19 }
 0x208   : > { %8533 = vmatpush3.bf16.msra.mxu1 %v8891_v21  ;;  %8506 = vmatprep.subr.bf16.mxu0 %v8892_v22  ;;  %v7970_v21 = vcombine.high %v4483_v18, %v4499_v19  ;;  %v4484_v22 = vld [vmem:[%s10644_s0 + $0x58] sm:$0xff]  ;;  %v4517_v18 = vld [vmem:[%s10644_s0 + $0x160] sm:$0xff] }
 0x209   : > { %8534 = vmatprep.subr.bf16.mxu1 %v8893_v23  ;;  %v4500_v23 = vld [vmem:[%s10644_s0 + $0xd8] sm:$0xff]  ;;  %v4533_v19 = vld [vmem:[%s10644_s0 + $0x1e0] sm:$0xff] }
 0x20b   : > { %8507 = vmatpush3.bf16.msra.mxu0 %v8894_v24  ;;  %v7971_v24 = vcombine.low %v4484_v22, %v4500_v23 }
 0x20c   : > { %8535 = vmatpush3.bf16.msra.mxu1 %v8895_v25  ;;  %8508 = vmatprep.subr.bf16.mxu0 %v8896_v26  ;;  %v7972_v25 = vcombine.high %v4484_v22, %v4500_v23  ;;  %v8936_v26 = vld [vmem:[%s10160_s7 + $0x640] sm:$0xff]   ;;  %v8005_v22 = vcombine.low %v4517_v18, %v4533_v19  ;;  %v8976_v23 = vld [vmem:[%s10160_s7 + $0x750] sm:$0xff]  }
 0x20d   : > { %8536 = vmatprep.subr.bf16.mxu1 %v8897_v27  ;;  %v8937_v27 = vld [vmem:[%s10160_s7 + $0x6c0] sm:$0xff]  }
 0x20f   : > { %8509 = vmatpush3.bf16.msra.mxu0 %v8898_v28  ;;  %v8938_v28 = vld [vmem:[%s10160_s7 + $0x600] sm:$0xff]  }
 0x210   : > { %8537 = vmatpush3.bf16.msra.mxu1 %v8899_v29  ;;  %8510 = vmatprep.subr.bf16.mxu0 %v8900_v30  ;;  %v8939_v29 = vld [vmem:[%s10160_s7 + $0x680] sm:$0xff]   ;;  %v8940_v30 = vld [vmem:[%s10160_s7 + $0x648] sm:$0xff]  }
 0x211   : > { %8538 = vmatprep.subr.bf16.mxu1 %v8901_v31  ;;  %v8941_v31 = vld [vmem:[%s10160_s7 + $0x6c8] sm:$0xff]  }
 0x213   : > { %8511 = vmatpush3.bf16.msra.mxu0 %v8902_v32  ;;  %v8942_v32 = vld [vmem:[%s10160_s7 + $0x608] sm:$0xff]  }
 0x214   : > { %8539 = vmatpush3.bf16.msra.mxu1 %v8903_v33  ;;  %8552 = vmatprep.subr.bf16.mxu0 %v8904_v42  ;;  %v8943_v33 = vld [vmem:[%s10160_s7 + $0x688] sm:$0xff]  }
 0x215   : > { %8580 = vmatprep.subr.bf16.mxu1 %v8905_v43  ;;  %v8946_v43 = vld [vmem:[%s10160_s7 + $0x610] sm:$0xff]  }
 0x216   : > { %7330 = vmatmul.mubr.bf16.vlgmr.msra.gmra.mrb[32].mxu0 %v7965_v38  ;;  %v8944_v38 = vld [vmem:[%s10160_s7 + $0x650] sm:$0xff]  }
 0x217   : > { %7379 = vmatmul.mubr.bf16.vlgmr.msra.gmra.mrb[32].mxu1 %v7967_v40  ;;  %8553 = vmatpush3.bf16.msra.mxu0 %v8906_v44  ;;  %v4516_v40 = vld [vmem:[%s10644_s0 + $0x158] sm:$0xff] }
 0x218   : > { %8581 = vmatpush3.bf16.msra.mxu1 %v8907_v45  ;;  %8554 = vmatprep.subr.bf16.mxu0 %v8908_v46  ;;  %v8004_v42 = vcombine.high %v4516_v40, %v4532_v41  ;;  %v8003_v44 = vcombine.low %v4516_v40, %v4532_v41  ;;  %v8947_v45 = vld [vmem:[%s10160_s7 + $0x690] sm:$0xff]   ;;  %v8948_v46 = vld [vmem:[%s10160_s7 + $0x658] sm:$0xff]  }
 0x219   : > { %8582 = vmatprep.subr.bf16.mxu1 %v8909_v47  ;;  %7337 = vmatprep.mubr.bf16.mxu0 %v7998_v52  ;;  %v8949_v47 = vld [vmem:[%s10160_s7 + $0x6d8] sm:$0xff]   ;;  %v8954_v52 = vld [vmem:[%s10160_s7 + $0x620] sm:$0xff]  }
 0x21a   : > { %7386 = vmatprep.mubr.bf16.mxu1 %v8000_v58  ;;  %v8960_v58 = vld [vmem:[%s10160_s7 + $0x670] sm:$0xff]  }
 0x21b   : > { %8555 = vmatpush3.bf16.msra.mxu0 %v8910_v48  ;;  %v8950_v48 = vld [vmem:[%s10160_s7 + $0x618] sm:$0xff]  }
 0x21c   : > { %8583 = vmatpush3.bf16.msra.mxu1 %v8911_v49  ;;  %8556 = vmatprep.subr.bf16.mxu0 %v8912_v54  ;;  %v8951_v49 = vld [vmem:[%s10160_s7 + $0x698] sm:$0xff]   ;;  %v8956_v54 = vld [vmem:[%s10160_s7 + $0x668] sm:$0xff]  }
 0x21d   : > { %8584 = vmatprep.subr.bf16.mxu1 %v8913_v55  ;;  %v8957_v55 = vld [vmem:[%s10160_s7 + $0x6e8] sm:$0xff]  }
 0x21e   : > { %7338 = vmatmul.mubr.bf16.gmra.mrb[36].mxu0 %v7997_v53  ;;  %v8955_v53 = vld [vmem:[%s10160_s7 + $0x6a0] sm:$0xff]  }
 0x21f   : > { %8557 = vmatpush3.bf16.msra.mxu0 %v8914_v59  ;;  %7387 = vmatmul.mubr.bf16.gmra.mrb[36].mxu1 %v7999_v60  ;;  %v8961_v59 = vld [vmem:[%s10160_s7 + $0x6f0] sm:$0xff]  }
 0x220   : > { %8585 = vmatpush3.bf16.msra.mxu1 %v8915_v61  ;;  %8558 = vmatprep.subr.bf16.mxu0 %v8916_v62  ;;  %v8962_v60 = vld [vmem:[%s10160_s7 + $0x630] sm:$0xff]   ;;  %v8964_v62 = vld [vmem:[%s10160_s7 + $0x678] sm:$0xff]  }
 0x221   : > { %8586 = vmatprep.subr.bf16.mxu1 %v8917_v63  ;;  %7427 = vmatprep.mubr.bf16.mxu0 %v7970_v21  ;;  %v8963_v61 = vld [vmem:[%s10160_s7 + $0x6b0] sm:$0xff]   ;;  %v8965_v63 = vld [vmem:[%s10160_s7 + $0x6f8] sm:$0xff]   ;;  %v8006_v21 = vcombine.high %v4517_v18, %v4533_v19 }
 0x222   : > { %7476 = vmatprep.mubr.bf16.mxu1 %v7972_v25  ;;  %v8977_v25 = vld [vmem:[%s10160_s7 + $0x7d0] sm:$0xff]  }
 0x223   : > { %8559 = vmatpush3.bf16.msra.mxu0 %v8918_v0  ;;  %v8966_v0 = vld [vmem:[%s10160_s7 + $0x638] sm:$0xff]  }
 0x224   : > { %8587 = vmatpush3.bf16.msra.mxu1 %v8919_v1  ;;  %8560 = vmatprep.subr.bf16.mxu0 %v8920_v2  ;;  %v8967_v1 = vld [vmem:[%s10160_s7 + $0x6b8] sm:$0xff]   ;;  %v4485_v2 = vld [vmem:[%s10644_s0 + $0x60] sm:$0xff] }
 0x225   : > { %8588 = vmatprep.subr.bf16.mxu1 %v8921_v3  ;;  %v4501_v3 = vld [vmem:[%s10644_s0 + $0xe0] sm:$0xff] }
 0x227   : > { %8561 = vmatpush3.bf16.msra.mxu0 %v8922_v4  ;;  %v4486_v4 = vld [vmem:[%s10644_s0 + $0x68] sm:$0xff] }
 0x228   : > { %8589 = vmatpush3.bf16.msra.mxu1 %v8923_v5  ;;  %8562 = vmatprep.subr.bf16.mxu0 %v8924_v6  ;;  %v7973_v5 = vcombine.low %v4485_v2, %v4501_v3  ;;  %v7974_v6 = vcombine.high %v4485_v2, %v4501_v3  ;;  %v8990_v2 = vld [vmem:[%s10160_s7 + $0x728] sm:$0xff]  }
 0x229   : > { %8590 = vmatprep.subr.bf16.mxu1 %v8925_v7  ;;  %v4502_v7 = vld [vmem:[%s10644_s0 + $0xe8] sm:$0xff] }
 0x22b   : > { %8563 = vmatpush3.bf16.msra.mxu0 %v8926_v8  ;;  %v7975_v8 = vcombine.low %v4486_v4, %v4502_v7 }
 0x22c   : > { %8591 = vmatpush3.bf16.msra.mxu1 %v8927_v9  ;;  %8564 = vmatprep.subr.bf16.mxu0 %v8928_v10  ;;  %v7976_v9 = vcombine.high %v4486_v4, %v4502_v7  ;;  %v8968_v10 = vld [vmem:[%s10160_s7 + $0x740] sm:$0xff]   ;;  %v8991_v4 = vld [vmem:[%s10160_s7 + $0x7a8] sm:$0xff]   ;;  %v8993_v7 = vld [vmem:[%s10160_s7 + $0x7f0] sm:$0xff]  }
 0x22d   : > { %8592 = vmatprep.subr.bf16.mxu1 %v8929_v11  ;;  %v8969_v11 = vld [vmem:[%s10160_s7 + $0x7c0] sm:$0xff]  }
 0x22f   : > { %8565 = vmatpush3.bf16.msra.mxu0 %v8930_v12  ;;  %v8970_v12 = vld [vmem:[%s10160_s7 + $0x700] sm:$0xff]  }
 0x230   : > { %8593 = vmatpush3.bf16.msra.mxu1 %v8931_v13  ;;  %8566 = vmatprep.subr.bf16.mxu0 %v8932_v14  ;;  %v8971_v13 = vld [vmem:[%s10160_s7 + $0x780] sm:$0xff]   ;;  %v8972_v14 = vld [vmem:[%s10160_s7 + $0x748] sm:$0xff]  }
 0x231   : > { %8594 = vmatprep.subr.bf16.mxu1 %v8933_v15  ;;  %v8973_v15 = vld [vmem:[%s10160_s7 + $0x7c8] sm:$0xff]  }
 0x233   : > { %8567 = vmatpush3.bf16.msra.mxu0 %v8934_v16  ;;  %v8974_v16 = vld [vmem:[%s10160_s7 + $0x708] sm:$0xff]  }
 0x234   : > { %8595 = vmatpush3.bf16.msra.mxu1 %v8935_v17  ;;  %8608 = vmatprep.subr.bf16.mxu0 %v8936_v26  ;;  %v8975_v17 = vld [vmem:[%s10160_s7 + $0x788] sm:$0xff]  }
 0x235   : > { %8636 = vmatprep.subr.bf16.mxu1 %v8937_v27  ;;  %v4518_v27 = vld [vmem:[%s10644_s0 + $0x168] sm:$0xff] }
 0x236   : > { %7428 = vmatmul.mubr.bf16.vlgmr.msra.gmra.mrb[40].mxu0 %v7969_v20 }
 0x237   : > { %7477 = vmatmul.mubr.bf16.vlgmr.msra.gmra.mrb[40].mxu1 %v7971_v24  ;;  %8609 = vmatpush3.bf16.msra.mxu0 %v8938_v28  ;;  %v4534_v28 = vld [vmem:[%s10644_s0 + $0x1e8] sm:$0xff] }
 0x238   : > { %8637 = vmatpush3.bf16.msra.mxu1 %v8939_v29  ;;  %8610 = vmatprep.subr.bf16.mxu0 %v8940_v30  ;;  %v8007_v34 = vcombine.low %v4518_v27, %v4534_v28 }
 0x239   : > { %8638 = vmatprep.subr.bf16.mxu1 %v8941_v31  ;;  %7435 = vmatprep.mubr.bf16.mxu0 %v8002_v36 }
 0x23a   : > { %7484 = vmatprep.mubr.bf16.mxu1 %v8004_v42 }
 0x23b   : > { %8611 = vmatpush3.bf16.msra.mxu0 %v8942_v32  ;;  %v8008_v32 = vcombine.high %v4518_v27, %v4534_v28 }
 0x23c   : > { %8639 = vmatpush3.bf16.msra.mxu1 %v8943_v33  ;;  %8612 = vmatprep.subr.bf16.mxu0 %v8944_v38  ;;  %v8978_v33 = vld [vmem:[%s10160_s7 + $0x710] sm:$0xff]  }
 0x23d   : > { %8640 = vmatprep.subr.bf16.mxu1 %v8945_v39  ;;  %v8980_v39 = vld [vmem:[%s10160_s7 + $0x758] sm:$0xff]  }
 0x23e   : > { %7436 = vmatmul.mubr.bf16.gmra.mrb[44].mxu0 %v8001_v37  ;;  %v8979_v37 = vld [vmem:[%s10160_s7 + $0x790] sm:$0xff]  }
 0x23f   : > { %8613 = vmatpush3.bf16.msra.mxu0 %v8946_v43  ;;  %7485 = vmatmul.mubr.bf16.gmra.mrb[44].mxu1 %v8003_v44  ;;  %v8981_v43 = vld [vmem:[%s10160_s7 + $0x7d8] sm:$0xff]  }
 0x240   : > { %8641 = vmatpush3.bf16.msra.mxu1 %v8947_v45  ;;  %8614 = vmatprep.subr.bf16.mxu0 %v8948_v46  ;;  %v8982_v45 = vld [vmem:[%s10160_s7 + $0x718] sm:$0xff]  }
 0x241   : > { %8642 = vmatprep.subr.bf16.mxu1 %v8949_v47  ;;  %7525 = vmatprep.mubr.bf16.mxu0 %v7974_v6  ;;  %v8983_v47 = vld [vmem:[%s10160_s7 + $0x798] sm:$0xff]  }
 0x242   : > { %7574 = vmatprep.mubr.bf16.mxu1 %v7976_v9  ;;  %v8995_v9 = vld [vmem:[%s10160_s7 + $0x7b0] sm:$0xff]  }
 0x243   : > { %8615 = vmatpush3.bf16.msra.mxu0 %v8950_v48 }
 0x244   : > { %8643 = vmatpush3.bf16.msra.mxu1 %v8951_v49  ;;  %8616 = vmatprep.subr.bf16.mxu0 %v8952_v50  ;;  %v8984_v50 = vld [vmem:[%s10160_s7 + $0x760] sm:$0xff]  }
 0x245   : > { %8644 = vmatprep.subr.bf16.mxu1 %v8953_v51 }
 0x247   : > { %8617 = vmatpush3.bf16.msra.mxu0 %v8954_v52  ;;  %v8985_v52 = vld [vmem:[%s10160_s7 + $0x7e0] sm:$0xff]  }
 0x248   : > { %8645 = vmatpush3.bf16.msra.mxu1 %v8955_v53  ;;  %8618 = vmatprep.subr.bf16.mxu0 %v8956_v54 }
 0x249   : > { %8646 = vmatprep.subr.bf16.mxu1 %v8957_v55  ;;  %v8986_v55 = vld [vmem:[%s10160_s7 + $0x720] sm:$0xff]  }
 0x24b   : > { %8619 = vmatpush3.bf16.msra.mxu0 %v8958_v56 }
 0x24c   : > { %8647 = vmatpush3.bf16.msra.mxu1 %v8959_v57  ;;  %8620 = vmatprep.subr.bf16.mxu0 %v8960_v58  ;;  %v8987_v58 = vld [vmem:[%s10160_s7 + $0x7a0] sm:$0xff]  }
 0x24d   : > { %8648 = vmatprep.subr.bf16.mxu1 %v8961_v59 }
 0x24f   : > { %8621 = vmatpush3.bf16.msra.mxu0 %v8962_v60  ;;  %v8988_v60 = vld [vmem:[%s10160_s7 + $0x768] sm:$0xff]  }
 0x250   : > { %8649 = vmatpush3.bf16.msra.mxu1 %v8963_v61  ;;  %8622 = vmatprep.subr.bf16.mxu0 %v8964_v62 }
 0x251   : > { %8650 = vmatprep.subr.bf16.mxu1 %v8965_v63  ;;  %v8989_v63 = vld [vmem:[%s10160_s7 + $0x7e8] sm:$0xff]  }
 0x253   : > { %8623 = vmatpush3.bf16.msra.mxu0 %v8966_v0 }
 0x254   : > { %8651 = vmatpush3.bf16.msra.mxu1 %v8967_v1  ;;  %8664 = vmatprep.subr.bf16.mxu0 %v8968_v10  ;;  %v8996_v10 = vld [vmem:[%s10160_s7 + $0x778] sm:$0xff]  }
 0x255   : > { %8692 = vmatprep.subr.bf16.mxu1 %v8969_v11  ;;  %v8997_v11 = vld [vmem:[%s10160_s7 + $0x7f8] sm:$0xff]  }
 0x256   : > { %7526 = vmatmul.mubr.bf16.vlgmr.msra.gmra.mrb[48].mxu0 %v7973_v5  ;;  %v8992_v5 = vld [vmem:[%s10160_s7 + $0x770] sm:$0xff]  }
 0x257   : > { %7575 = vmatmul.mubr.bf16.vlgmr.msra.gmra.mrb[48].mxu1 %v7975_v8  ;;  %8665 = vmatpush3.bf16.msra.mxu0 %v8970_v12  ;;  %v8994_v8 = vld [vmem:[%s10160_s7 + $0x730] sm:$0xff]   ;;  %v8998_v12 = vld [vmem:[%s10160_s7 + $0x738] sm:$0xff]  }
 0x258   : > { %8693 = vmatpush3.bf16.msra.mxu1 %v8971_v13  ;;  %8666 = vmatprep.subr.bf16.mxu0 %v8972_v14  ;;  %v8999_v13 = vld [vmem:[%s10160_s7 + $0x7b8] sm:$0xff]   ;;  %v4487_v14 = vld [vmem:[%s10644_s0 + $0x70] sm:$0xff] }
 0x259   : > { %8694 = vmatprep.subr.bf16.mxu1 %v8973_v15  ;;  %7533 = vmatprep.mubr.bf16.mxu0 %v8006_v21  ;;  %v4503_v15 = vld [vmem:[%s10644_s0 + $0xf0] sm:$0xff] }
 0x25a   : > { %7582 = vmatprep.mubr.bf16.mxu1 %v8008_v32  ;;  %v7977_v18 = vcombine.low %v4487_v14, %v4503_v15  ;;  %v7978_v19 = vcombine.high %v4487_v14, %v4503_v15 }
 0x25b   : > { %8667 = vmatpush3.bf16.msra.mxu0 %v8974_v16  ;;  %v4488_v16 = vld [vmem:[%s10644_s0 + $0x78] sm:$0xff] }
 0x25c   : > { %8695 = vmatpush3.bf16.msra.mxu1 %v8975_v17  ;;  %8668 = vmatprep.subr.bf16.mxu0 %v8976_v23  ;;  %v4504_v17 = vld [vmem:[%s10644_s0 + $0xf8] sm:$0xff]  ;;  %v4535_v23 = vld [vmem:[%s10644_s0 + $0x1f0] sm:$0xff] }
 0x25d   : > { %8696 = vmatprep.subr.bf16.mxu1 %v8977_v25  ;;  %v7980_v21 = vcombine.high %v4488_v16, %v4504_v17 }
 0x25e   : > { %7534 = vmatmul.mubr.bf16.gmra.mrb[52].mxu0 %v8005_v22  ;;  %v4519_v22 = vld [vmem:[%s10644_s0 + $0x170] sm:$0xff] }
 0x25f   : > { %8669 = vmatpush3.bf16.msra.mxu0 %v8978_v33  ;;  %7583 = vmatmul.mubr.bf16.gmra.mrb[52].mxu1 %v8007_v34  ;;  %v8010_v25 = vcombine.high %v4519_v22, %v4535_v23 }
 0x260   : > { %8697 = vmatpush3.bf16.msra.mxu1 %v8979_v37  ;;  %8670 = vmatprep.subr.bf16.mxu0 %v8980_v39 }
 0x261   : > { %8698 = vmatprep.subr.bf16.mxu1 %v8981_v43  ;;  %7623 = vmatprep.mubr.bf16.mxu0 %v7978_v19 }
 0x262   : > { %7672 = vmatprep.mubr.bf16.mxu1 %v7980_v21 }
 0x263   : > { %8671 = vmatpush3.bf16.msra.mxu0 %v8982_v45 }
 0x264   : > { %8699 = vmatpush3.bf16.msra.mxu1 %v8983_v47  ;;  %8672 = vmatprep.subr.bf16.mxu0 %v8984_v50 }
 0x265   : > { %8700 = vmatprep.subr.bf16.mxu1 %v8985_v52 }
 0x267   : > { %8673 = vmatpush3.bf16.msra.mxu0 %v8986_v55 }
 0x268   : > { %8701 = vmatpush3.bf16.msra.mxu1 %v8987_v58  ;;  %8674 = vmatprep.subr.bf16.mxu0 %v8988_v60 }
 0x269   : > { %v8288_v20 = vpop.f32.mrb[0].mxu0  ;;  %8702 = vmatprep.subr.bf16.mxu1 %v8989_v63 }
 0x26a   : > { %v8316_v24 = vpop.f32.mrb[0].mxu1  ;;  %v8289_v26 = vpop.f32.mrb[1].mxu0 }
 0x26b   : > { %v8290_v29 = vadd.f32 %v8289_v26, %v8288_v20  ;;  %v8317_v30 = vpop.f32.mrb[1].mxu1  ;;  %v8291_v31 = vpop.f32.mrb[2].mxu0  ;;  %8675 = vmatpush3.bf16.msra.mxu0 %v8990_v2  ;;  %v7979_v20 = vcombine.low %v4488_v16, %v4504_v17  ;;  %v4536_v26 = vld [vmem:[%s10644_s0 + $0x1f8] sm:$0xff] }
 0x26c   : > { %v8318_v35 = vadd.f32 %v8317_v30, %v8316_v24  ;;  %v8319_v36 = vpop.f32.mrb[2].mxu1  ;;  %v8292_v38 = vpop.f32.mrb[3].mxu0  ;;  %8703 = vmatpush3.bf16.msra.mxu1 %v8991_v4  ;;  %8676 = vmatprep.subr.bf16.mxu0 %v8992_v5  ;;  %v4520_v24 = vld [vmem:[%s10644_s0 + $0x178] sm:$0xff]  ;;  %v8009_v30 = vcombine.low %v4519_v22, %v4535_v23 }
 0x26d   : > { %v8293_v41 = vadd.f32 %v8292_v38, %v8291_v31  ;;  %v8320_v42 = vpop.f32.mrb[3].mxu1  ;;  %8704 = vmatprep.subr.bf16.mxu1 %v8993_v7  ;;  %v8012_v27 = vcombine.high %v4520_v24, %v4536_v26  ;;  %v8011_v31 = vcombine.low %v4520_v24, %v4536_v26 }
 0x26e   : > { %v10559_v40 = vadd.f32 %v8318_v35, %v8290_v29  ;;  %v8321_v44 = vadd.f32 %v8320_v42, %v8319_v36 }
 0x26f   : > { %8677 = vmatpush3.bf16.msra.mxu0 %v8994_v8 }
 0x270   : > { %v10564_v48 = vadd.f32 %v8321_v44, %v8293_v41  ;;  %8705 = vmatpush3.bf16.msra.mxu1 %v8995_v9  ;;  %8678 = vmatprep.subr.bf16.mxu0 %v8996_v10 }
 0x271   : > { %v8294_v46 = vpop.f32.mrb[4].mxu0  ;;  %8706 = vmatprep.subr.bf16.mxu1 %v8997_v11 }
 0x272   : > { %v8322_v49 = vpop.f32.mrb[4].mxu1  ;;  %v8295_v51 = vpop.f32.mrb[5].mxu0 }
 0x273   : > { %v8296_v53 = vadd.f32 %v8295_v51, %v8294_v46  ;;  %v8323_v54 = vpop.f32.mrb[5].mxu1  ;;  %v8297_v57 = vpop.f32.mrb[6].mxu0  ;;  %8679 = vmatpush3.bf16.msra.mxu0 %v8998_v12 }
 0x274   : > { %v8324_v56 = vadd.f32 %v8323_v54, %v8322_v49  ;;  %v8325_v59 = vpop.f32.mrb[6].mxu1  ;;  %v8298_v62 = vpop.f32.mrb[7].mxu0  ;;  %8707 = vmatpush3.bf16.msra.mxu1 %v8999_v13 }
 0x275   : > { %v8299_v0 = vadd.f32 %v8298_v62, %v8297_v57  ;;  %v8326_v1 = vpop.f32.mrb[7].mxu1 }
 0x276   : > { %v10571_v61 = vadd.f32 %v8324_v56, %v8296_v53  ;;  %v8327_v3 = vadd.f32 %v8326_v1, %v8325_v59  ;;  %7624 = vmatmul.mubr.bf16.vlgmr.msra.gmra.mrb[56].mxu0 %v7977_v18 }
 0x277   : > { %7673 = vmatmul.mubr.bf16.vlgmr.msra.gmra.mrb[56].mxu1 %v7979_v20  ;;  %7631 = vmatprep.mubr.bf16.mxu0 %v8010_v25 }
 0x278   : > { %v10577_v6 = vadd.f32 %v8327_v3, %v8299_v0  ;;  %7680 = vmatprep.mubr.bf16.mxu1 %v8012_v27 }
 0x27e   : > { %7632 = vmatmul.mubr.bf16.gmra.mrb[60].mxu0 %v8009_v30 }
 0x27f   : > { %7681 = vmatmul.mubr.bf16.gmra.mrb[60].mxu1 %v8011_v31 }
 0x289   : > { %v8344_v28 = vpop.f32.mrb[8].mxu0 }
 0x28a   : > { %v8372_v29 = vpop.f32.mrb[8].mxu1  ;;  %v8345_v32 = vpop.f32.mrb[9].mxu0 }
 0x28b   : > { %v8373_v33 = vpop.f32.mrb[9].mxu1  ;;  %v8346_v34 = vadd.f32 %v8345_v32, %v8344_v28  ;;  %v8347_v36 = vpop.f32.mrb[10].mxu0 }
 0x28c   : > { %v8374_v35 = vadd.f32 %v8373_v33, %v8372_v29  ;;  %v8375_v37 = vpop.f32.mrb[10].mxu1  ;;  %v8348_v38 = vpop.f32.mrb[11].mxu0 }
 0x28d   : > { %v8376_v39 = vpop.f32.mrb[11].mxu1  ;;  %v7038_v41 = vadd.f32 %v8346_v34, %v10559_v40  ;;  %v8349_v42 = vadd.f32 %v8348_v38, %v8347_v36 }
 0x28e   : > { %v8377_v43 = vadd.f32 %v8376_v39, %v8375_v37 }
 0x28f   : > { %v7087_v44 = vadd.f32 %v8374_v35, %v7038_v41  ;;  %v7041_v45 = vadd.f32 %v8349_v42, %v10564_v48 }
 0x291   : > { %v7090_v46 = vadd.f32 %v8377_v43, %v7041_v45  ;;  %v8350_v47 = vpop.f32.mrb[12].mxu0 }
 0x292   : > { %v8351_v49 = vpop.f32.mrb[13].mxu0  ;;  %v8378_v54 = vpop.f32.mrb[12].mxu1 }
 0x293   : > { %v8352_v50 = vadd.f32 %v8351_v49, %v8350_v47  ;;  %v8353_v51 = vpop.f32.mrb[14].mxu0  ;;  %v8379_v56 = vpop.f32.mrb[13].mxu1 }
 0x294   : > { %v8354_v52 = vpop.f32.mrb[15].mxu0  ;;  %v8380_v57 = vadd.f32 %v8379_v56, %v8378_v54  ;;  %v8381_v58 = vpop.f32.mrb[14].mxu1 }
 0x295   : > { %v7046_v53 = vadd.f32 %v8352_v50, %v10571_v61  ;;  %v8355_v55 = vadd.f32 %v8354_v52, %v8353_v51  ;;  %v8382_v59 = vpop.f32.mrb[15].mxu1 }
 0x296   : > { %v8383_v62 = vadd.f32 %v8382_v59, %v8381_v58 }
 0x297   : > { %v7049_v40 = vadd.f32 %v8355_v55, %v10577_v6  ;;  %v7095_v60 = vadd.f32 %v8380_v57, %v7046_v53 }
 0x299   : > { %v7098_v63 = vadd.f32 %v8383_v62, %v7049_v40 }
 0x2a9   : > { %v8400_v48 = vpop.f32.mrb[16].mxu0 }
 0x2aa   : > { %v8428_v0 = vpop.f32.mrb[16].mxu1  ;;  %v8401_v1 = vpop.f32.mrb[17].mxu0 }
 0x2ab   : > { %v8402_v2 = vadd.f32 %v8401_v1, %v8400_v48  ;;  %v8429_v3 = vpop.f32.mrb[17].mxu1  ;;  %v8403_v4 = vpop.f32.mrb[18].mxu0 }
 0x2ac   : > { %v8430_v5 = vadd.f32 %v8429_v3, %v8428_v0  ;;  %v8431_v7 = vpop.f32.mrb[18].mxu1  ;;  %v8404_v61 = vpop.f32.mrb[19].mxu0 }
 0x2ad   : > { %v7136_v8 = vadd.f32 %v8402_v2, %v7087_v44  ;;  %v8405_v9 = vadd.f32 %v8404_v61, %v8403_v4  ;;  %v8432_v10 = vpop.f32.mrb[19].mxu1 }
 0x2ae   : > { %v8433_v11 = vadd.f32 %v8432_v10, %v8431_v7 }
 0x2af   : > { %v7185_v6 = vadd.f32 %v8430_v5, %v7136_v8  ;;  %v7139_v12 = vadd.f32 %v8405_v9, %v7090_v46 }
 0x2b1   : > { %v7188_v13 = vadd.f32 %v8433_v11, %v7139_v12  ;;  %v8406_v14 = vpop.f32.mrb[20].mxu0 }
 0x2b2   : > { %v8407_v15 = vpop.f32.mrb[21].mxu0  ;;  %v8434_v18 = vpop.f32.mrb[20].mxu1 }
 0x2b3   : > { %v8408_v16 = vadd.f32 %v8407_v15, %v8406_v14  ;;  %v8409_v17 = vpop.f32.mrb[22].mxu0  ;;  %v8435_v22 = vpop.f32.mrb[21].mxu1 }
 0x2b4   : > { %v8410_v19 = vpop.f32.mrb[23].mxu0  ;;  %v8436_v23 = vadd.f32 %v8435_v22, %v8434_v18  ;;  %v8437_v24 = vpop.f32.mrb[22].mxu1 }
 0x2b5   : > { %v7144_v20 = vadd.f32 %v8408_v16, %v7095_v60  ;;  %v8411_v21 = vadd.f32 %v8410_v19, %v8409_v17  ;;  %v8438_v26 = vpop.f32.mrb[23].mxu1 }
 0x2b6   : > { %v8439_v28 = vadd.f32 %v8438_v26, %v8437_v24 }
 0x2b7   : > { %v7147_v25 = vadd.f32 %v8411_v21, %v7098_v63  ;;  %v7193_v27 = vadd.f32 %v8436_v23, %v7144_v20 }
 0x2b9   : > { %v7196_v29 = vadd.f32 %v8439_v28, %v7147_v25 }
 0x2c9   : > { %v8456_v30 = vpop.f32.mrb[24].mxu0 }
 0x2ca   : > { %v8484_v31 = vpop.f32.mrb[24].mxu1  ;;  %v8457_v32 = vpop.f32.mrb[25].mxu0 }
 0x2cb   : > { %v8458_v33 = vadd.f32 %v8457_v32, %v8456_v30  ;;  %v8485_v34 = vpop.f32.mrb[25].mxu1  ;;  %v8459_v35 = vpop.f32.mrb[26].mxu0 }
 0x2cc   : > { %v8486_v36 = vadd.f32 %v8485_v34, %v8484_v31  ;;  %v8487_v37 = vpop.f32.mrb[26].mxu1  ;;  %v8460_v38 = vpop.f32.mrb[27].mxu0 }
 0x2cd   : > { %v7234_v39 = vadd.f32 %v8458_v33, %v7185_v6  ;;  %v8461_v41 = vadd.f32 %v8460_v38, %v8459_v35  ;;  %v8488_v42 = vpop.f32.mrb[27].mxu1 }
 0x2ce   : > { %v8489_v43 = vadd.f32 %v8488_v42, %v8487_v37 }
 0x2cf   : > { %v7283_v44 = vadd.f32 %v8486_v36, %v7234_v39  ;;  %v7237_v45 = vadd.f32 %v8461_v41, %v7188_v13 }
 0x2d1   : > { %v7286_v46 = vadd.f32 %v8489_v43, %v7237_v45  ;;  %v8462_v47 = vpop.f32.mrb[28].mxu0 }
 0x2d2   : > { %v8463_v49 = vpop.f32.mrb[29].mxu0  ;;  %v8490_v54 = vpop.f32.mrb[28].mxu1 }
 0x2d3   : > { %v8464_v50 = vadd.f32 %v8463_v49, %v8462_v47  ;;  %v8465_v51 = vpop.f32.mrb[30].mxu0  ;;  %v8491_v56 = vpop.f32.mrb[29].mxu1 }
 0x2d4   : > { %v8466_v52 = vpop.f32.mrb[31].mxu0  ;;  %v8492_v57 = vadd.f32 %v8491_v56, %v8490_v54  ;;  %v8493_v58 = vpop.f32.mrb[30].mxu1 }
 0x2d5   : > { %v7242_v53 = vadd.f32 %v8464_v50, %v7193_v27  ;;  %v8467_v55 = vadd.f32 %v8466_v52, %v8465_v51  ;;  %v8494_v59 = vpop.f32.mrb[31].mxu1 }
 0x2d6   : > { %v8495_v62 = vadd.f32 %v8494_v59, %v8493_v58 }
 0x2d7   : > { %v7245_v40 = vadd.f32 %v8467_v55, %v7196_v29  ;;  %v7291_v60 = vadd.f32 %v8492_v57, %v7242_v53 }
 0x2d9   : > { %v7294_v63 = vadd.f32 %v8495_v62, %v7245_v40 }
 0x2e9   : > { %v8512_v48 = vpop.f32.mrb[32].mxu0 }
 0x2ea   : > { %v8540_v0 = vpop.f32.mrb[32].mxu1  ;;  %v8513_v1 = vpop.f32.mrb[33].mxu0 }
 0x2eb   : > { %v8541_v2 = vpop.f32.mrb[33].mxu1  ;;  %v8514_v3 = vadd.f32 %v8513_v1, %v8512_v48  ;;  %v8515_v5 = vpop.f32.mrb[34].mxu0 }
 0x2ec   : > { %v8542_v4 = vadd.f32 %v8541_v2, %v8540_v0  ;;  %v8543_v7 = vpop.f32.mrb[34].mxu1  ;;  %v8516_v61 = vpop.f32.mrb[35].mxu0 }
 0x2ed   : > { %v8544_v8 = vpop.f32.mrb[35].mxu1  ;;  %v7332_v9 = vadd.f32 %v8514_v3, %v7283_v44  ;;  %v8517_v10 = vadd.f32 %v8516_v61, %v8515_v5 }
 0x2ee   : > { %v8545_v11 = vadd.f32 %v8544_v8, %v8543_v7 }
 0x2ef   : > { %v7381_v6 = vadd.f32 %v8542_v4, %v7332_v9  ;;  %v7335_v12 = vadd.f32 %v8517_v10, %v7286_v46 }
 0x2f1   : > { %v7384_v13 = vadd.f32 %v8545_v11, %v7335_v12  ;;  %v8518_v14 = vpop.f32.mrb[36].mxu0 }
 0x2f2   : > { %v8519_v15 = vpop.f32.mrb[37].mxu0  ;;  %v8546_v20 = vpop.f32.mrb[36].mxu1 }
 0x2f3   : > { %v8520_v16 = vadd.f32 %v8519_v15, %v8518_v14  ;;  %v8521_v17 = vpop.f32.mrb[38].mxu0  ;;  %v8547_v22 = vpop.f32.mrb[37].mxu1 }
 0x2f4   : > { %v8522_v18 = vpop.f32.mrb[39].mxu0  ;;  %v8548_v24 = vadd.f32 %v8547_v22, %v8546_v20  ;;  %v8549_v25 = vpop.f32.mrb[38].mxu1 }
 0x2f5   : > { %v7340_v19 = vadd.f32 %v8520_v16, %v7291_v60  ;;  %v8523_v21 = vadd.f32 %v8522_v18, %v8521_v17  ;;  %v8550_v26 = vpop.f32.mrb[39].mxu1 }
 0x2f6   : > { %v8551_v28 = vadd.f32 %v8550_v26, %v8549_v25 }
 0x2f7   : > { %v7343_v23 = vadd.f32 %v8523_v21, %v7294_v63  ;;  %v7389_v27 = vadd.f32 %v8548_v24, %v7340_v19 }
 0x2f9   : > { %v7392_v29 = vadd.f32 %v8551_v28, %v7343_v23 }
 0x309   : > { %v8568_v30 = vpop.f32.mrb[40].mxu0 }
 0x30a   : > { %v8596_v31 = vpop.f32.mrb[40].mxu1  ;;  %v8569_v32 = vpop.f32.mrb[41].mxu0 }
 0x30b   : > { %v8570_v33 = vadd.f32 %v8569_v32, %v8568_v30  ;;  %v8597_v34 = vpop.f32.mrb[41].mxu1  ;;  %v8571_v35 = vpop.f32.mrb[42].mxu0 }
 0x30c   : > { %v8598_v36 = vadd.f32 %v8597_v34, %v8596_v31  ;;  %v8599_v37 = vpop.f32.mrb[42].mxu1  ;;  %v8572_v38 = vpop.f32.mrb[43].mxu0 }
 0x30d   : > { %v7430_v39 = vadd.f32 %v8570_v33, %v7381_v6  ;;  %v8573_v41 = vadd.f32 %v8572_v38, %v8571_v35  ;;  %v8600_v42 = vpop.f32.mrb[43].mxu1 }
 0x30e   : > { %v8601_v43 = vadd.f32 %v8600_v42, %v8599_v37 }
 0x30f   : > { %v7479_v44 = vadd.f32 %v8598_v36, %v7430_v39  ;;  %v7433_v45 = vadd.f32 %v8573_v41, %v7384_v13 }
 0x311   : > { %v7482_v46 = vadd.f32 %v8601_v43, %v7433_v45  ;;  %v8574_v47 = vpop.f32.mrb[44].mxu0 }
 0x312   : > { %v8575_v49 = vpop.f32.mrb[45].mxu0  ;;  %v8602_v52 = vpop.f32.mrb[44].mxu1 }
 0x313   : > { %v8576_v50 = vadd.f32 %v8575_v49, %v8574_v47  ;;  %v8577_v51 = vpop.f32.mrb[46].mxu0  ;;  %v8603_v56 = vpop.f32.mrb[45].mxu1 }
 0x314   : > { %v8578_v53 = vpop.f32.mrb[47].mxu0  ;;  %v8604_v40 = vadd.f32 %v8603_v56, %v8602_v52  ;;  %v8605_v57 = vpop.f32.mrb[46].mxu1 }
 0x315   : > { %v7438_v54 = vadd.f32 %v8576_v50, %v7389_v27  ;;  %v8579_v55 = vadd.f32 %v8578_v53, %v8577_v51  ;;  %v8606_v59 = vpop.f32.mrb[47].mxu1 }
 0x316   : > { %v8607_v62 = vadd.f32 %v8606_v59, %v8605_v57 }
 0x317   : > { %v7441_v58 = vadd.f32 %v8579_v55, %v7392_v29  ;;  %v7487_v60 = vadd.f32 %v8604_v40, %v7438_v54 }
 0x319   : > { %v7490_v63 = vadd.f32 %v8607_v62, %v7441_v58 }
 0x329   : > { %v8624_v48 = vpop.f32.mrb[48].mxu0 }
 0x32a   : > { %v8652_v0 = vpop.f32.mrb[48].mxu1  ;;  %v8625_v1 = vpop.f32.mrb[49].mxu0 }
 0x32b   : > { %v8626_v2 = vadd.f32 %v8625_v1, %v8624_v48  ;;  %v8653_v3 = vpop.f32.mrb[49].mxu1  ;;  %v8627_v4 = vpop.f32.mrb[50].mxu0 }
 0x32c   : > { %v8654_v5 = vadd.f32 %v8653_v3, %v8652_v0  ;;  %v8655_v7 = vpop.f32.mrb[50].mxu1  ;;  %v8628_v61 = vpop.f32.mrb[51].mxu0 }
 0x32d   : > { %v7528_v8 = vadd.f32 %v8626_v2, %v7479_v44  ;;  %v8629_v9 = vadd.f32 %v8628_v61, %v8627_v4  ;;  %v8656_v10 = vpop.f32.mrb[51].mxu1 }
 0x32e   : > { %v8657_v11 = vadd.f32 %v8656_v10, %v8655_v7 }
 0x32f   : > { %v7577_v6 = vadd.f32 %v8654_v5, %v7528_v8  ;;  %v7531_v12 = vadd.f32 %v8629_v9, %v7482_v46 }
 0x331   : > { %v7580_v13 = vadd.f32 %v8657_v11, %v7531_v12  ;;  %v8630_v14 = vpop.f32.mrb[52].mxu0 }
 0x332   : > { %v8631_v15 = vpop.f32.mrb[53].mxu0  ;;  %v8658_v20 = vpop.f32.mrb[52].mxu1 }
 0x333   : > { %v8632_v16 = vadd.f32 %v8631_v15, %v8630_v14  ;;  %v8633_v17 = vpop.f32.mrb[54].mxu0  ;;  %v8659_v22 = vpop.f32.mrb[53].mxu1 }
 0x334   : > { %v8634_v18 = vpop.f32.mrb[55].mxu0  ;;  %v8660_v24 = vadd.f32 %v8659_v22, %v8658_v20  ;;  %v8661_v25 = vpop.f32.mrb[54].mxu1 }
 0x335   : > { %v7536_v19 = vadd.f32 %v8632_v16, %v7487_v60  ;;  %v8635_v21 = vadd.f32 %v8634_v18, %v8633_v17  ;;  %v8662_v26 = vpop.f32.mrb[55].mxu1 }
 0x336   : > { %v8663_v28 = vadd.f32 %v8662_v26, %v8661_v25 }
 0x337   : > { %v7539_v23 = vadd.f32 %v8635_v21, %v7490_v63  ;;  %v7585_v27 = vadd.f32 %v8660_v24, %v7536_v19 }
 0x339   : > { %v7588_v29 = vadd.f32 %v8663_v28, %v7539_v23 }
 0x349   : > { %v8680_v30 = vpop.f32.mrb[56].mxu0 }
 0x34a   : > { %v8708_v31 = vpop.f32.mrb[56].mxu1  ;;  %v8681_v32 = vpop.f32.mrb[57].mxu0 }
 0x34b   : > { %v8709_v33 = vpop.f32.mrb[57].mxu1  ;;  %v8682_v34 = vadd.f32 %v8681_v32, %v8680_v30  ;;  %v8683_v36 = vpop.f32.mrb[58].mxu0 }
 0x34c   : > { %v8710_v35 = vadd.f32 %v8709_v33, %v8708_v31  ;;  %v8711_v37 = vpop.f32.mrb[58].mxu1  ;;  %v8684_v38 = vpop.f32.mrb[59].mxu0 }
 0x34d   : > { %v8712_v39 = vpop.f32.mrb[59].mxu1  ;;  %v7626_v41 = vadd.f32 %v8682_v34, %v7577_v6  ;;  %v8685_v42 = vadd.f32 %v8684_v38, %v8683_v36  ;;  %v8269_v34 = vld [vmem:[%s4467_s13] ss:$0 sm:$0xff] }
 0x34e   : > { %v8713_v43 = vadd.f32 %v8712_v39, %v8711_v37 }
 0x34f   : > { %v7675_v44 = vadd.f32 %v8710_v35, %v7626_v41  ;;  %v7629_v45 = vadd.f32 %v8685_v42, %v7580_v13 }
 0x351   : > { %v7678_v46 = vadd.f32 %v8713_v43, %v7629_v45  ;;  %v8686_v47 = vpop.f32.mrb[60].mxu0  ;;  %v7755_v45 = vld [vmem:[%s4428_s14 + $0x8] sm:$0xff] }
 0x352   : > { %v8714_v49 = vpop.f32.mrb[60].mxu1  ;;  %v8687_v50 = vpop.f32.mrb[61].mxu0 }
 0x353   : > { %v8715_v51 = vpop.f32.mrb[61].mxu1  ;;  %v7689_v52 = vadd.f32 %v7678_v46, %v7675_v44  ;;  %v8688_v53 = vadd.f32 %v8687_v50, %v8686_v47  ;;  %v8689_v55 = vpop.f32.mrb[62].mxu0 }
 0x354   : > { %v8716_v54 = vadd.f32 %v8715_v51, %v8714_v49  ;;  %v8717_v56 = vpop.f32.mrb[62].mxu1  ;;  %v8690_v40 = vpop.f32.mrb[63].mxu0 }
 0x355   : > { %v8718_v57 = vpop.f32.mrb[63].mxu1  ;;  %v7634_v58 = vadd.f32 %v8688_v53, %v7585_v27  ;;  %v8691_v59 = vadd.f32 %v8690_v40, %v8689_v55  ;;  %v7722_v27 = vlaneseq }
 0x356   : > { %v8719_v60 = vadd.f32 %v8718_v57, %v8717_v56 }
 0x357   : > { %v7683_v62 = vadd.f32 %v8716_v54, %v7634_v58  ;;  %v7637_v63 = vadd.f32 %v8691_v59, %v7588_v29  ;;  %v7723_v28 = vshrl.u32 %v7722_v27, 7  ;;  %v7717_v29 = vld [vmem:[%s4464_s10] sm:$0x1] }
 0x359   : > { %v7690_v48 = vadd.f32 %v7689_v52, %v7683_v62  ;;  %v7686_v0 = vadd.f32 %v8719_v60, %v7637_v63  ;;  %v7724_v30 = vsub.s32 0, %v7723_v28 }
 0x35b   : > { %v7691_v1 = vadd.f32 %v7690_v48, %v7686_v0 }
 0x35d   : > { %v7692_v2 = vrot.slane %v7691_v1, 4 }
 0x35f   : > { %v7693_v3 = vadd.f32 %v7692_v2, %v7691_v1 }
 0x361   : > { %v7694_v4 = vrot.slane %v7693_v3, 2 }
 0x363   : > { %v7695_v5 = vadd.f32 %v7694_v4, %v7693_v3 }
 0x365   : > { %v7696_v7 = vrot.slane %v7695_v5, 1 }
 0x367   : > { %v7697_v61 = vadd.f32 %v7696_v7, %v7695_v5 }
 0x369   : > { %v7698_v8 = vmul.f32 0.03125, %v7697_v61 }
 0x36b   : > { %v7699_v9 = vsub.f32 %v7675_v44, %v7698_v8  ;;  %v7700_v10 = vsub.f32 %v7678_v46, %v7698_v8  ;;  %v7701_v11 = vsub.f32 %v7683_v62, %v7698_v8  ;;  %v7702_v6 = vsub.f32 %v7686_v0, %v7698_v8  ;;  %v7754_v44 = vld [vmem:[%s4428_s14] sm:$0xff] }
 0x36d   : > { %v7703_v12 = vmul.f32 %v7699_v9, %v7699_v9  ;;  %v7704_v13 = vmul.f32 %v7700_v10, %v7700_v10  ;;  %v7705_v14 = vmul.f32 %v7701_v11, %v7701_v11  ;;  %v7706_v16 = vmul.f32 %v7702_v6, %v7702_v6 }
 0x36f   : > { %v7707_v15 = vadd.f32 %v7704_v13, %v7703_v12 }
 0x371   : > { %v7708_v17 = vadd.f32 %v7707_v15, %v7705_v14 }
 0x373   : > { %v7709_v18 = vadd.f32 %v7708_v17, %v7706_v16 }
 0x375   : > { %v7710_v19 = vrot.slane %v7709_v18, 4 }
 0x377   : > { %v7711_v20 = vadd.f32 %v7710_v19, %v7709_v18 }
 0x379   : > { %v7712_v21 = vrot.slane %v7711_v20, 2 }
 0x37b   : > { %v7713_v22 = vadd.f32 %v7712_v21, %v7711_v20 }
 0x37d   : > { %v7714_v23 = vrot.slane %v7713_v22, 1 }
 0x37f   : > { %v7715_v24 = vadd.f32 %v7714_v23, %v7713_v22 }
 0x381   : > { %v7716_v25 = vmul.f32 0.03125, %v7715_v24 }
 0x383   : > { %v7718_v26 = vadd.f32 1e-05, %v7716_v25 }
 0x385   : > { %9000 = vrsqrt.f32 %v7718_v26 }
 0x38f   : > { %v9001_v31 = vpop.eup %9000 }
 0x390   : > { %v7720_v32 = vmul.f32 %v9001_v31, %v7717_v29 }
 0x392   : > { %v7725_v33 = vrot.slane %v7720_v32, %v7724_v30 }
 0x394   : > { %v7727_v35 = vmul.f32 %v7725_v33, %v7699_v9  ;;  %v7728_v36 = vmul.f32 %v7725_v33, %v7700_v10  ;;  %v7729_v37 = vmul.f32 %v7725_v33, %v7701_v11  ;;  %v7730_v38 = vmul.f32 %v7725_v33, %v7702_v6 }
 0x396   : > { %v7738_v39 = vadd.f32 %v8269_v34, %v7727_v35  ;;  %v7739_v41 = vadd.f32 %v8269_v34, %v7728_v36  ;;  %v7740_v42 = vadd.f32 %v8269_v34, %v7729_v37  ;;  %v7741_v43 = vadd.f32 %v8269_v34, %v7730_v38 }
 0x398   : > { %vm7742_vm0 = vcmp.ge.f32.partialorder %v7738_v39, 0.0  ;;  %vm7743_vm1 = vcmp.ge.f32.partialorder %v7739_v41, 0.0  ;;  %vm7744_vm2 = vcmp.ge.f32.partialorder %v7740_v42, 0.0  ;;  %vm7745_vm3 = vcmp.ge.f32.partialorder %v7741_v43, 0.0 }
 0x399   : > { %v7746_v46 = vmul.f32 0.2, %v7738_v39  ;;  %v7747_v47 = vmul.f32 0.2, %v7739_v41  ;;  %v7748_v49 = vmul.f32 0.2, %v7740_v42 }
 0x39a   : > { %v7749_v50 = vmul.f32 0.2, %v7741_v43 }
 0x39b   : > { %v7750_v51 = vsel %vm7742_vm0, %v7738_v39, %v7746_v46  ;;  %v7751_v52 = vsel %vm7743_vm1, %v7739_v41, %v7747_v47  ;;  %v7752_v53 = vsel %vm7744_vm2, %v7740_v42, %v7748_v49 }
 0x39c   : > { %v7753_v54 = vsel %vm7745_vm3, %v7741_v43, %v7749_v50  ;;  %v7756_v55 = vmul.f32 %v7754_v44, %v7750_v51  ;;  %v7757_v56 = vmul.f32 %v7755_v45, %v7751_v52  ;;  %v7758_v40 = vmul.f32 %v7754_v44, %v7752_v53 }
 0x39d   : > { %v7759_v57 = vmul.f32 %v7755_v45, %v7753_v54 }
 0x39e   : > { %v7789_v58 = vadd.f32 %v7757_v56, %v7756_v55 }
 0x39f   : > { %v7824_v59 = vadd.f32 %v7759_v57, %v7758_v40 }
 0x3a0   : > { %v7792_v60 = vrot.slane %v7789_v58, 4 }
 0x3a1   : > { %v7825_v62 = vrot.slane %v7824_v59, 4 }
 0x3a2   : > { %v7793_v63 = vadd.f32 %v7792_v60, %v7789_v58 }
 0x3a3   : > { %v7826_v48 = vadd.f32 %v7825_v62, %v7824_v59 }
 0x3a4   : > { %v7794_v0 = vrot.slane %v7793_v63, 2 }
 0x3a5   : > { %v7827_v1 = vrot.slane %v7826_v48, 2 }
 0x3a6   : > { %v7795_v2 = vadd.f32 %v7794_v0, %v7793_v63 }
 0x3a7   : > { %v7828_v3 = vadd.f32 %v7827_v1, %v7826_v48 }
 0x3a8   : > { %v7796_v4 = vrot.slane %v7795_v2, 1 }
 0x3a9   : > { %v7829_v5 = vrot.slane %v7828_v3, 1 }
 0x3aa   : > { %v7797_v7 = vadd.f32 %v7796_v4, %v7795_v2 }
 0x3ab   : > { %v7830_v61 = vadd.f32 %v7829_v5, %v7828_v3 }
 0x3ad   : > { %v7832_v8 = vsel %vm7831_vm4, %v7797_v7, %v7830_v61 }
 0x3ae   : > { %7833 = vst [vmem:[%s4471_s17] sm:$0x3] %v7832_v8 }
 0x3af PF: > { %p12_p9 = scmp.ge.s32.totalorder %s9073_s22, 6   ;;  %s10651_s18 = smov %s9020_s19 }
 0x3b0   : > { %s10652_s19 = smov %s9082_s25  ;;  %s10653_s20 = smov %s9073_s22 }
 0x3b1   :  { %14 = sbr.rel (!%p12_p9) target bundleno = 2 (0x2), region = 183 }

</bundles_post_ra>
